<compile_context>
chip_gen: v5e
topology: v5e:2x2
jax: 0.10.0
libtpu: 0.0.40
codegen_flags: <defaults>
</compile_context>

<pallas_src>
import functools

import numpy as np
import jax
import jax.numpy as jnp
from jax.experimental import pallas as pl
from jax.experimental.pallas import tpu as pltpu


# Small synthetic STFT configuration (real Denoiser defaults: filter_length=1200,
# hop=120, win=1200 for 48 kHz audio; scaled down here, same structure).
FILTER_LENGTH = 256
HOP_LENGTH = 64
CUTOFF = FILTER_LENGTH // 2 + 1                      # 129 frequency bins
C_PAD = ((CUTOFF + 127) // 128) * 128                # 256: lane-padded cutoff
R_FRAMES = FILTER_LENGTH // HOP_LENGTH               # 4: overlap factor
M_TILE = 256                                         # frames per grid step
MATMUL_DTYPE = jnp.bfloat16                          # bf16 operands, f32 accumulate
_TINY = float(np.finfo(np.float32).tiny)

assert FILTER_LENGTH % 128 == 0
assert FILTER_LENGTH % HOP_LENGTH == 0
assert R_FRAMES % 2 == 0 and (2 * HOP_LENGTH) % 128 == 0   # lane-aligned pairing
assert R_FRAMES - 1 <= 8                                   # halo fits in 8 rows
assert M_TILE % 8 == 0


# --------------------------------------------------------------------------- #
# Init-time: STFT bases (fused + lane-padded), bias spectrum, window gain.
# --------------------------------------------------------------------------- #
def _make_stft_bases():
    """tacotron2/waveglow STFT forward/inverse bases (periodic hann window),
    packed as [real | imag] halves, zero-padded to C_PAD lanes per half."""
    n, hop, cutoff = FILTER_LENGTH, HOP_LENGTH, CUTOFF
    fourier = np.fft.fft(np.eye(n))
    fourier = np.vstack([np.real(fourier[:cutoff]), np.imag(fourier[:cutoff])])  # (2C, N)
    win = 0.5 - 0.5 * np.cos(2.0 * np.pi * np.arange(n) / n)          # periodic hann
    forward_basis = fourier * win[None, :]                            # (2C, N)
    scale = n / hop
    inverse_basis = np.linalg.pinv(scale * fourier).T * win[None, :]  # (2C, N)

    fwd_cat = np.zeros((n, 2 * C_PAD), np.float32)
    fwd_cat[:, :cutoff] = forward_basis[:cutoff].T
    fwd_cat[:, C_PAD:C_PAD + cutoff] = forward_basis[cutoff:].T
    inv_cat = np.zeros((2 * C_PAD, n), np.float32)
    inv_cat[:cutoff, :] = inverse_basis[:cutoff]
    inv_cat[C_PAD:C_PAD + cutoff, :] = inverse_basis[cutoff:]
    return jnp.asarray(fwd_cat), jnp.asarray(inv_cat)


def _frame_audio(audio):
    """Init-time only: reflect-pad and frame (B, L) -> (B, T, FILTER_LENGTH)."""
    b = audio.shape[0]
    half = FILTER_LENGTH // 2
    padded = jnp.pad(audio, ((0, 0), (half, half)), mode="reflect")
    lpad = padded.shape[1]
    t = (lpad - FILTER_LENGTH) // HOP_LENGTH + 1
    tb = t + R_FRAMES - 1
    blocks = padded[:, :tb * HOP_LENGTH].reshape(b, tb, HOP_LENGTH)
    return jnp.concatenate([blocks[:, r:r + t, :] for r in range(R_FRAMES)], axis=-1)


def make_bias_spec(bias_audio, fwd_cat_f32):
    """__init__-time: bias_spec = STFT(bias_audio).magnitude.mean(time)."""
    frames = _frame_audio(bias_audio.astype(jnp.float32))             # (1, T, N)
    spec = jnp.einsum("btn,nc->btc", frames, fwd_cat_f32)             # (1, T, 2*C_PAD)
    real = spec[..., :C_PAD]
    imag = spec[..., C_PAD:]
    mag = jnp.sqrt(real * real + imag * imag)
    return jnp.mean(mag, axis=1)                                      # (1, C_PAD)


@functools.lru_cache(maxsize=None)
def _inverse_gain_np(num_frames):
    """Host-side window_sumsquare correction * (N/hop)."""
    n, hop = FILTER_LENGTH, HOP_LENGTH
    win = 0.5 - 0.5 * np.cos(2.0 * np.pi * np.arange(n) / n)
    win_sq = (win * win).astype(np.float32)
    out_len = (num_frames - 1) * hop + n
    wsum = np.zeros(out_len, np.float32)
    for t in range(num_frames):
        wsum[t * hop:t * hop + n] += win_sq
    tiny = np.finfo(np.float32).tiny
    ratio = float(n) / hop
    return np.where(wsum > tiny, ratio / wsum, ratio).astype(np.float32)


def init_denoiser(bias_audio):
    fwd_cat, inv_cat = _make_stft_bases()
    bias_spec = make_bias_spec(bias_audio, fwd_cat)                   # (1, C_PAD) f32
    return {
        "fwd": fwd_cat.astype(MATMUL_DTYPE),      # (N, 2*C_PAD)
        "inv": inv_cat.astype(MATMUL_DTYPE),      # (2*C_PAD, N)
        "bias_spec": bias_spec,                   # (1, C_PAD) float32
    }


# --------------------------------------------------------------------------- #
# Fused kernel: frame assembly -> STFT -> magnitude denoise -> iSTFT -> OLA.
# --------------------------------------------------------------------------- #
def _denoiser_kernel(blk_ref, fwd_ref, inv_ref, thresh_ref, out_ref, *,
                     m_tile, n_frames):
    h = HOP_LENGTH
    # blk_ref: (m_tile + 8, 2H) bf16 hop-block pairs, pair row p = [block p|block p+1]
    # Frame m = [block m..m+R-1] = lane-aligned concat of pair rows m, m+2, ...
    blk = blk_ref[...]
    frames = jnp.concatenate(
        [blk[2 * p:2 * p + m_tile, :] for p in range(R_FRAMES // 2)],
        axis=-1)                                                      # (m_tile, N) bf16

    # Forward STFT: two MXU matmuls (K = FILTER_LENGTH), f32 accumulate.
    real = jnp.dot(frames, fwd_ref[:, :C_PAD], preferred_element_type=jnp.float32)
    imag = jnp.dot(frames, fwd_ref[:, C_PAD:], preferred_element_type=jnp.float32)

    # Magnitude denoise: scale = clamp(1 - thresh/mag, 0); +tiny keeps rsqrt finite
    # (padded lanes have thresh == 0 and real == imag == 0, so they stay zero).
    sq = real * real + imag * imag
    scale = jnp.maximum(1.0 - thresh_ref[...] * jax.lax.rsqrt(sq + _TINY), 0.0)

    # Inverse projection: two accumulated dots, no (m, 2*C_PAD) concat temp.
    recon = jnp.dot((real * scale).astype(MATMUL_DTYPE), inv_ref[:C_PAD, :],
                    preferred_element_type=jnp.float32)
    recon = recon + jnp.dot((imag * scale).astype(MATMUL_DTYPE), inv_ref[C_PAD:, :],
                            preferred_element_type=jnp.float32)       # (m_tile, N) f32

    # Zero out padding frames (global frame index >= n_frames): their hop blocks
    # alias real tail blocks, so they must not reach the overlap-add.
    frame_id = (pl.program_id(1) * m_tile
                + jax.lax.broadcasted_iota(jnp.int32, (m_tile, 1), 0))
    recon = jnp.where(frame_id < n_frames, recon, 0.0)

    # Fused conv_transpose1d overlap-add within the tile: (m_tile + 8, HOP) out
    # (the last 8 rows are the halo combined with the next tile in the wrapper).
    out_ref[...] = jnp.zeros_like(out_ref)
    for r in range(R_FRAMES):
        sl = pl.ds(r, m_tile)
        out_ref[sl, :] = out_ref[sl, :] + recon[:, r * h:(r + 1) * h]


def _run_denoise_kernel(blk_pairs, fwd, inv, thresh, m_tile, n_frames):
    b, t_tiles, mh, two_h = blk_pairs.shape
    n = FILTER_LENGTH
    kernel = functools.partial(_denoiser_kernel, m_tile=m_tile, n_frames=n_frames)

    def build_and_call(single_buffer_consts):
        def const_spec(shape):
            imap = lambda bi, ti: (0,) * len(shape)
            if single_buffer_consts:
                # Grid-invariant operands: no re-DMA happens anyway; single
                # buffering halves their VMEM footprint.
                return pl.BlockSpec(shape, imap,
                                    pipeline_mode=pl.Buffered(buffer_count=1))
            return pl.BlockSpec(shape, imap)

        out = pl.pallas_call(
            kernel,
            out_shape=jax.ShapeDtypeStruct((b, t_tiles, mh, HOP_LENGTH), jnp.float32),
            grid=(b, t_tiles),
            in_specs=[
                pl.BlockSpec((None, None, mh, two_h), lambda bi, ti: (bi, ti, 0, 0)),
                const_spec((n, 2 * C_PAD)),        # fused forward basis
                const_spec((2 * C_PAD, n)),        # fused inverse basis
                const_spec((1, C_PAD)),            # bias_spec * strength
            ],
            out_specs=pl.BlockSpec((None, None, mh, HOP_LENGTH),
                                   lambda bi, ti: (bi, ti, 0, 0)),
            compiler_params=pltpu.CompilerParams(
                dimension_semantics=("parallel", "parallel"),
                vmem_limit_bytes=32 * 1024 * 1024),
        )(blk_pairs, fwd, inv, thresh)
        return out

    try:
        out = build_and_call(True)
        jax.block_until_ready(out)
        return out
    except Exception:
        # pl.Buffered(1) not supported by this jax version -> default buffering.
        return build_and_call(False)


# --------------------------------------------------------------------------- #
# Forward pass (matches Denoiser.forward, single-bias / speaker_ids=None path).
# --------------------------------------------------------------------------- #
def denoiser_forward(wg_audio, params, strength=0.1, m_tile=M_TILE):
    audio = wg_audio.astype(jnp.float32)
    if audio.ndim == 3:                                   # accept (B, 1, L) too
        audio = audio[:, 0, :]
    b = audio.shape[0]
    half = FILTER_LENGTH // 2

    padded = jnp.pad(audio, ((0, 0), (half, half)), mode="reflect")
    lpad = padded.shape[1]
    t = (lpad - FILTER_LENGTH) // HOP_LENGTH + 1          # frames (== torch conv stride)
    tb = t + R_FRAMES - 1                                 # hop blocks in the output

    t_tiles = -(-t // m_tile)
    t_pad = t_tiles * m_tile

    # Hop blocks (bf16), zero-padded so every tile (+halo, +pairing) is in range.
    blocks = padded[:, :tb * HOP_LENGTH].astype(MATMUL_DTYPE).reshape(b, tb, HOP_LENGTH)
    blocks = jnp.pad(blocks, ((0, 0), (0, t_pad + 16 - tb), (0, 0)))

    # Pair consecutive hop blocks into 128-lane rows (2x duplication instead of
    # the old R_FRAMES=4x framed-audio duplication); frames are assembled
    # in-kernel from lane-aligned shifted copies of these rows.
    pairs = jnp.concatenate(
        [blocks[:, :t_pad + 8, :], blocks[:, 1:t_pad + 9, :]], axis=-1)  # (B, t_pad+8, 2H)

    # Per-(batch, tile) slabs with an 8-row halo -> one blocked DMA per grid step.
    idx = np.arange(t_tiles)[:, None] * m_tile + np.arange(m_tile + 8)[None, :]
    blk_pairs = pairs[:, idx, :]                          # (B, t_tiles, m_tile+8, 2H)

    # Runtime denoise threshold: no recompile when strength changes.
    thresh = params["bias_spec"] * jnp.float32(strength)  # (1, C_PAD)

    out_tiles = _run_denoise_kernel(blk_pairs, params["fwd"], params["inv"],
                                    thresh, m_tile, t)    # (B, t_tiles, m_tile+8, H)

    # Cross-tile combine: tiles only overlap in their 8-row halos.
    core = out_tiles[:, :, :m_tile, :].reshape(b, t_pad, HOP_LENGTH)
    core = jnp.pad(core, ((0, 0), (0, 8), (0, 0)))                       # (B, t_pad+8, H)
    halo = out_tiles[:, :, m_tile:, :]                                   # (B, t_tiles, 8, H)
    halo = jnp.pad(halo, ((0, 0), (0, 0), (0, m_tile - 8), (0, 0)))
    halo = halo.reshape(b, t_pad, HOP_LENGTH)
    halo = jnp.pad(halo, ((0, 0), (m_tile, 0), (0, 0)))[:, :t_pad + 8, :]
    sig_blocks = core + halo

    sig = sig_blocks[:, :tb, :].reshape(b, tb * HOP_LENGTH)   # (B, (t-1)*hop + N)

    # window_sumsquare normalization + hop-ratio scaling (precomputed on host).
    gain = jnp.asarray(_inverse_gain_np(int(t)))
    sig = sig * gain[None, :]

    sig = sig[:, half:-half]
    return sig[:, None, :]                                # (B, 1, num_samples)


if __name__ == "__main__":
    key = jax.random.PRNGKey(0)
    k_audio, k_bias = jax.random.split(key)

    batch, num_samples = 2, 4096
    wg_audio = 0.1 * jax.random.normal(k_audio, (batch, num_samples), jnp.float32)

    # Synthetic deterministic "vocoder bias" audio stands in for waveglow.infer()
    # at __init__ time (no checkpoint loading).
    bias_audio = 0.01 * jax.random.normal(k_bias, (1, 512), jnp.float32)
    params = init_denoiser(bias_audio)

    out = denoiser_forward(wg_audio, params, strength=0.1)
    out = jax.block_until_ready(out)

    assert out.shape == (batch, 1, num_samples), out.shape
    assert bool(jnp.all(jnp.isfinite(out)))
    print("KERNEL_OK")
</pallas_src>

<mosaic_0001>
module attributes {stable_mosaic.version = 11 : i64} {
  func.func @_denoiser_kernel(%arg0: i32, %arg1: i32, %arg2: memref<1x1x264x128xbf16, #tpu.memory_space<vmem>>, %arg3: memref<256x512xbf16, #tpu.memory_space<vmem>>, %arg4: memref<512x256xbf16, #tpu.memory_space<vmem>>, %arg5: memref<1x256xf32, #tpu.memory_space<vmem>>, %arg6: memref<1x1x264x64xf32, #tpu.memory_space<vmem>>) attributes {dimension_semantics = [#tpu.dimension_semantics<parallel>, #tpu.dimension_semantics<parallel>], iteration_bounds = array<i64: 2, 1>, scalar_prefetch = 0 : i64, scratch_operands = 0 : i64, tpu.core_type = #tpu.core_type<tc>, window_params = [{transform_indices = @transform_0, window_bounds = array<i64: 1, 1, 264, 128>}, {pipeline_mode = #tpu.pipeline_mode<synchronous>, transform_indices = @transform_1, window_bounds = array<i64: 256, 512>}, {pipeline_mode = #tpu.pipeline_mode<synchronous>, transform_indices = @transform_2, window_bounds = array<i64: 512, 256>}, {pipeline_mode = #tpu.pipeline_mode<synchronous>, transform_indices = @transform_3, window_bounds = array<i64: 1, 256>}, {transform_indices = @transform_4, window_bounds = array<i64: 1, 1, 264, 64>}]} {
    %c0 = arith.constant 0 : index
    %c0_0 = arith.constant 0 : index
    %c0_1 = arith.constant 0 : index
    %c0_2 = arith.constant 0 : index
    %0 = vector.load %arg2[%c0, %c0_0, %c0_1, %c0_2] : memref<1x1x264x128xbf16, #tpu.memory_space<vmem>>, vector<1x1x264x128xbf16>
    %1 = vector.shape_cast %0 : vector<1x1x264x128xbf16> to vector<264x128xbf16>
    %2 = vector.extract_strided_slice %1 {offsets = [0, 0], sizes = [256, 128], strides = [1, 1]} : vector<264x128xbf16> to vector<256x128xbf16>
    %3 = vector.extract_strided_slice %1 {offsets = [2, 0], sizes = [256, 128], strides = [1, 1]} : vector<264x128xbf16> to vector<256x128xbf16>
    %4 = tpu.concatenate %2, %3 in 1 : vector<256x128xbf16>, vector<256x128xbf16> -> vector<256x256xbf16>
    %c0_3 = arith.constant 0 : index
    %c0_4 = arith.constant 0 : index
    %5 = vector.load %arg3[%c0_3, %c0_4] : memref<256x512xbf16, #tpu.memory_space<vmem>>, vector<256x256xbf16>
    %cst = arith.constant dense<0.000000e+00> : vector<256x256xf32>
    %6 = tpu.matmul %4, %5, %cst {dimension_numbers = #tpu.dot_dimension_numbers<[1], [0], [0], [1], [0, 0, 1, 1], [], []>} : vector<256x256xbf16>, vector<256x256xbf16>, vector<256x256xf32> -> vector<256x256xf32>
    %c0_5 = arith.constant 0 : index
    %c256 = arith.constant 256 : index
    %7 = vector.load %arg3[%c0_5, %c256] : memref<256x512xbf16, #tpu.memory_space<vmem>>, vector<256x256xbf16>
    %cst_6 = arith.constant dense<0.000000e+00> : vector<256x256xf32>
    %8 = tpu.matmul %4, %7, %cst_6 {dimension_numbers = #tpu.dot_dimension_numbers<[1], [0], [0], [1], [0, 0, 1, 1], [], []>} : vector<256x256xbf16>, vector<256x256xbf16>, vector<256x256xf32> -> vector<256x256xf32>
    %9 = arith.mulf %6, %6 : vector<256x256xf32>
    %10 = arith.mulf %8, %8 : vector<256x256xf32>
    %11 = arith.addf %9, %10 : vector<256x256xf32>
    %c0_7 = arith.constant 0 : index
    %c0_8 = arith.constant 0 : index
    %12 = vector.load %arg5[%c0_7, %c0_8] : memref<1x256xf32, #tpu.memory_space<vmem>>, vector<1x256xf32>
    %cst_9 = arith.constant 1.17549435E-38 : f32
    %13 = vector.broadcast %cst_9 : f32 to vector<256x256xf32>
    %14 = arith.addf %11, %13 : vector<256x256xf32>
    %15 = math.rsqrt %14 : vector<256x256xf32>
    %16 = vector.broadcast %12 : vector<1x256xf32> to vector<256x256xf32>
    %17 = arith.mulf %16, %15 : vector<256x256xf32>
    %cst_10 = arith.constant 1.000000e+00 : f32
    %18 = vector.broadcast %cst_10 : f32 to vector<256x256xf32>
    %19 = arith.subf %18, %17 : vector<256x256xf32>
    %cst_11 = arith.constant 0.000000e+00 : f32
    %20 = vector.broadcast %cst_11 : f32 to vector<256x256xf32>
    %21 = arith.maximumf %19, %20 : vector<256x256xf32>
    %22 = arith.mulf %6, %21 : vector<256x256xf32>
    %23 = arith.truncf %22 : vector<256x256xf32> to vector<256x256xbf16>
    %c0_12 = arith.constant 0 : index
    %c0_13 = arith.constant 0 : index
    %24 = vector.load %arg4[%c0_12, %c0_13] : memref<512x256xbf16, #tpu.memory_space<vmem>>, vector<256x256xbf16>
    %cst_14 = arith.constant dense<0.000000e+00> : vector<256x256xf32>
    %25 = tpu.matmul %23, %24, %cst_14 {dimension_numbers = #tpu.dot_dimension_numbers<[1], [0], [0], [1], [0, 0, 1, 1], [], []>} : vector<256x256xbf16>, vector<256x256xbf16>, vector<256x256xf32> -> vector<256x256xf32>
    %26 = arith.mulf %8, %21 : vector<256x256xf32>
    %27 = arith.truncf %26 : vector<256x256xf32> to vector<256x256xbf16>
    %c256_15 = arith.constant 256 : index
    %c0_16 = arith.constant 0 : index
    %28 = vector.load %arg4[%c256_15, %c0_16] : memref<512x256xbf16, #tpu.memory_space<vmem>>, vector<256x256xbf16>
    %cst_17 = arith.constant dense<0.000000e+00> : vector<256x256xf32>
    %29 = tpu.matmul %27, %28, %cst_17 {dimension_numbers = #tpu.dot_dimension_numbers<[1], [0], [0], [1], [0, 0, 1, 1], [], []>} : vector<256x256xbf16>, vector<256x256xbf16>, vector<256x256xf32> -> vector<256x256xf32>
    %30 = arith.addf %25, %29 : vector<256x256xf32>
    %c256_i32 = arith.constant 256 : i32
    %31 = arith.muli %arg1, %c256_i32 : i32
    %32 = tpu.iota {dimensions = array<i32: 0>} : vector<256x1xi32>
    %33 = vector.broadcast %31 : i32 to vector<256x1xi32>
    %34 = arith.addi %33, %32 : vector<256x1xi32>
    %c65_i32 = arith.constant 65 : i32
    %35 = vector.broadcast %c65_i32 : i32 to vector<256x1xi32>
    %36 = arith.cmpi slt, %34, %35 : vector<256x1xi32>
    %cst_18 = arith.constant 0.000000e+00 : f32
    %37 = vector.shape_cast %36 : vector<256x1xi1> to vector<256x1xi1>
    %38 = vector.broadcast %37 : vector<256x1xi1> to vector<256x256xi1>
    %39 = vector.broadcast %cst_18 : f32 to vector<256x256xf32>
    %40 = arith.select %38, %30, %39 : vector<256x256xi1>, vector<256x256xf32>
    %cst_19 = arith.constant 0.000000e+00 : f32
    %41 = vector.broadcast %cst_19 : f32 to vector<264x64xf32>
    %c0_20 = arith.constant 0 : index
    %c0_21 = arith.constant 0 : index
    %c0_22 = arith.constant 0 : index
    %c0_23 = arith.constant 0 : index
    %42 = vector.load %arg6[%c0_20, %c0_21, %c0_22, %c0_23] : memref<1x1x264x64xf32, #tpu.memory_space<vmem>>, vector<1x1x264x64xf32>
    %43 = vector.shape_cast %42 : vector<1x1x264x64xf32> to vector<264x64xf32>
    %44 = vector.shape_cast %41 : vector<264x64xf32> to vector<1x1x264x64xf32>
    tpu.vector_store %arg6[%c0_20, %c0_21, %c0_22, %c0_23], %44 {strides = array<i32>} : memref<1x1x264x64xf32, #tpu.memory_space<vmem>>, vector<1x1x264x64xf32>,
    %c0_24 = arith.constant 0 : index
    %c0_25 = arith.constant 0 : index
    %c0_26 = arith.constant 0 : index
    %c0_27 = arith.constant 0 : index
    %45 = vector.load %arg6[%c0_24, %c0_25, %c0_26, %c0_27] : memref<1x1x264x64xf32, #tpu.memory_space<vmem>>, vector<1x1x256x64xf32>
    %46 = vector.shape_cast %45 : vector<1x1x256x64xf32> to vector<256x64xf32>
    %47 = vector.extract_strided_slice %40 {offsets = [0, 0], sizes = [256, 64], strides = [1, 1]} : vector<256x256xf32> to vector<256x64xf32>
    %48 = arith.addf %46, %47 : vector<256x64xf32>
    %c0_28 = arith.constant 0 : index
    %c0_29 = arith.constant 0 : index
    %c0_30 = arith.constant 0 : index
    %c0_31 = arith.constant 0 : index
    %49 = vector.load %arg6[%c0_28, %c0_29, %c0_30, %c0_31] : memref<1x1x264x64xf32, #tpu.memory_space<vmem>>, vector<1x1x256x64xf32>
    %50 = vector.shape_cast %49 : vector<1x1x256x64xf32> to vector<256x64xf32>
    %51 = vector.shape_cast %48 : vector<256x64xf32> to vector<1x1x256x64xf32>
    tpu.vector_store %arg6[%c0_28, %c0_29, %c0_30, %c0_31], %51 {strides = array<i32>} : memref<1x1x264x64xf32, #tpu.memory_space<vmem>>, vector<1x1x256x64xf32>,
    %c0_32 = arith.constant 0 : index
    %c0_33 = arith.constant 0 : index
    %c1 = arith.constant 1 : index
    %c0_34 = arith.constant 0 : index
    %52 = vector.load %arg6[%c0_32, %c0_33, %c1, %c0_34] : memref<1x1x264x64xf32, #tpu.memory_space<vmem>>, vector<1x1x256x64xf32>
    %53 = vector.shape_cast %52 : vector<1x1x256x64xf32> to vector<256x64xf32>
    %54 = vector.extract_strided_slice %40 {offsets = [0, 64], sizes = [256, 64], strides = [1, 1]} : vector<256x256xf32> to vector<256x64xf32>
    %55 = arith.addf %53, %54 : vector<256x64xf32>
    %c0_35 = arith.constant 0 : index
    %c0_36 = arith.constant 0 : index
    %c1_37 = arith.constant 1 : index
    %c0_38 = arith.constant 0 : index
    %56 = vector.load %arg6[%c0_35, %c0_36, %c1_37, %c0_38] : memref<1x1x264x64xf32, #tpu.memory_space<vmem>>, vector<1x1x256x64xf32>
    %57 = vector.shape_cast %56 : vector<1x1x256x64xf32> to vector<256x64xf32>
    %58 = vector.shape_cast %55 : vector<256x64xf32> to vector<1x1x256x64xf32>
    tpu.vector_store %arg6[%c0_35, %c0_36, %c1_37, %c0_38], %58 {strides = array<i32>} : memref<1x1x264x64xf32, #tpu.memory_space<vmem>>, vector<1x1x256x64xf32>,
    %c0_39 = arith.constant 0 : index
    %c0_40 = arith.constant 0 : index
    %c2 = arith.constant 2 : index
    %c0_41 = arith.constant 0 : index
    %59 = vector.load %arg6[%c0_39, %c0_40, %c2, %c0_41] : memref<1x1x264x64xf32, #tpu.memory_space<vmem>>, vector<1x1x256x64xf32>
    %60 = vector.shape_cast %59 : vector<1x1x256x64xf32> to vector<256x64xf32>
    %61 = vector.extract_strided_slice %40 {offsets = [0, 128], sizes = [256, 64], strides = [1, 1]} : vector<256x256xf32> to vector<256x64xf32>
    %62 = arith.addf %60, %61 : vector<256x64xf32>
    %c0_42 = arith.constant 0 : index
    %c0_43 = arith.constant 0 : index
    %c2_44 = arith.constant 2 : index
    %c0_45 = arith.constant 0 : index
    %63 = vector.load %arg6[%c0_42, %c0_43, %c2_44, %c0_45] : memref<1x1x264x64xf32, #tpu.memory_space<vmem>>, vector<1x1x256x64xf32>
    %64 = vector.shape_cast %63 : vector<1x1x256x64xf32> to vector<256x64xf32>
    %65 = vector.shape_cast %62 : vector<256x64xf32> to vector<1x1x256x64xf32>
    tpu.vector_store %arg6[%c0_42, %c0_43, %c2_44, %c0_45], %65 {strides = array<i32>} : memref<1x1x264x64xf32, #tpu.memory_space<vmem>>, vector<1x1x256x64xf32>,
    %c0_46 = arith.constant 0 : index
    %c0_47 = arith.constant 0 : index
    %c3 = arith.constant 3 : index
    %c0_48 = arith.constant 0 : index
    %66 = vector.load %arg6[%c0_46, %c0_47, %c3, %c0_48] : memref<1x1x264x64xf32, #tpu.memory_space<vmem>>, vector<1x1x256x64xf32>
    %67 = vector.shape_cast %66 : vector<1x1x256x64xf32> to vector<256x64xf32>
    %68 = vector.extract_strided_slice %40 {offsets = [0, 192], sizes = [256, 64], strides = [1, 1]} : vector<256x256xf32> to vector<256x64xf32>
    %69 = arith.addf %67, %68 : vector<256x64xf32>
    %c0_49 = arith.constant 0 : index
    %c0_50 = arith.constant 0 : index
    %c3_51 = arith.constant 3 : index
    %c0_52 = arith.constant 0 : index
    %70 = vector.load %arg6[%c0_49, %c0_50, %c3_51, %c0_52] : memref<1x1x264x64xf32, #tpu.memory_space<vmem>>, vector<1x1x256x64xf32>
    %71 = vector.shape_cast %70 : vector<1x1x256x64xf32> to vector<256x64xf32>
    %72 = vector.shape_cast %69 : vector<256x64xf32> to vector<1x1x256x64xf32>
    tpu.vector_store %arg6[%c0_49, %c0_50, %c3_51, %c0_52], %72 {strides = array<i32>} : memref<1x1x264x64xf32, #tpu.memory_space<vmem>>, vector<1x1x256x64xf32>,
    return
  }
  func.func @transform_0(%arg0: i32, %arg1: i32) -> (i32, i32, i32, i32) {
    %c0_i32 = arith.constant 0 : i32
    %c0_i32_0 = arith.constant 0 : i32
    %c0_i32_1 = arith.constant 0 : i32
    return %arg0, %arg1, %c0_i32, %c0_i32_0 : i32, i32, i32, i32
  }
  func.func @transform_1(%arg0: i32, %arg1: i32) -> (i32, i32) {
    %c0_i32 = arith.constant 0 : i32
    %c0_i32_0 = arith.constant 0 : i32
    %c0_i32_1 = arith.constant 0 : i32
    return %c0_i32, %c0_i32_0 : i32, i32
  }
  func.func @transform_2(%arg0: i32, %arg1: i32) -> (i32, i32) {
    %c0_i32 = arith.constant 0 : i32
    %c0_i32_0 = arith.constant 0 : i32
    %c0_i32_1 = arith.constant 0 : i32
    return %c0_i32, %c0_i32_0 : i32, i32
  }
  func.func @transform_3(%arg0: i32, %arg1: i32) -> (i32, i32) {
    %c0_i32 = arith.constant 0 : i32
    %c0_i32_0 = arith.constant 0 : i32
    %c0_i32_1 = arith.constant 0 : i32
    return %c0_i32, %c0_i32_0 : i32, i32
  }
  func.func @transform_4(%arg0: i32, %arg1: i32) -> (i32, i32, i32, i32) {
    %c0_i32 = arith.constant 0 : i32
    %c0_i32_0 = arith.constant 0 : i32
    %c0_i32_1 = arith.constant 0 : i32
    return %arg0, %arg1, %c0_i32, %c0_i32_0 : i32, i32, i32, i32
  }
}

module attributes {stable_mosaic.version = 11 : i64} {
  func.func @_denoiser_kernel(%arg0: i32, %arg1: i32, %arg2: memref<1x1x264x128xbf16, #tpu.memory_space<vmem>>, %arg3: memref<256x512xbf16, #tpu.memory_space<vmem>>, %arg4: memref<512x256xbf16, #tpu.memory_space<vmem>>, %arg5: memref<1x256xf32, #tpu.memory_space<vmem>>, %arg6: memref<1x1x264x64xf32, #tpu.memory_space<vmem>>) attributes {dimension_semantics = [#tpu.dimension_semantics<parallel>, #tpu.dimension_semantics<parallel>], iteration_bounds = array<i64: 2, 1>, scalar_prefetch = 0 : i64, scratch_operands = 0 : i64, tpu.core_type = #tpu.core_type<tc>, window_params = [{transform_indices = @transform_0, window_bounds = array<i64: 1, 1, 264, 128>}, {pipeline_mode = #tpu.pipeline_mode<synchronous>, transform_indices = @transform_1, window_bounds = array<i64: 256, 512>}, {pipeline_mode = #tpu.pipeline_mode<synchronous>, transform_indices = @transform_2, window_bounds = array<i64: 512, 256>}, {pipeline_mode = #tpu.pipeline_mode<synchronous>, transform_indices = @transform_3, window_bounds = array<i64: 1, 256>}, {transform_indices = @transform_4, window_bounds = array<i64: 1, 1, 264, 64>}]} {
    %c0 = arith.constant 0 : index
    %c0_0 = arith.constant 0 : index
    %c0_1 = arith.constant 0 : index
    %c0_2 = arith.constant 0 : index
    %0 = vector.load %arg2[%c0, %c0_0, %c0_1, %c0_2] : memref<1x1x264x128xbf16, #tpu.memory_space<vmem>>, vector<1x1x264x128xbf16>
    %1 = vector.shape_cast %0 : vector<1x1x264x128xbf16> to vector<264x128xbf16>
    %2 = vector.extract_strided_slice %1 {offsets = [0, 0], sizes = [256, 128], strides = [1, 1]} : vector<264x128xbf16> to vector<256x128xbf16>
    %3 = vector.extract_strided_slice %1 {offsets = [2, 0], sizes = [256, 128], strides = [1, 1]} : vector<264x128xbf16> to vector<256x128xbf16>
    %4 = tpu.concatenate %2, %3 in 1 : vector<256x128xbf16>, vector<256x128xbf16> -> vector<256x256xbf16>
    %c0_3 = arith.constant 0 : index
    %c0_4 = arith.constant 0 : index
    %5 = vector.load %arg3[%c0_3, %c0_4] : memref<256x512xbf16, #tpu.memory_space<vmem>>, vector<256x256xbf16>
    %cst = arith.constant dense<0.000000e+00> : vector<256x256xf32>
    %6 = tpu.matmul %4, %5, %cst {dimension_numbers = #tpu.dot_dimension_numbers<[1], [0], [0], [1], [0, 0, 1, 1], [], []>} : vector<256x256xbf16>, vector<256x256xbf16>, vector<256x256xf32> -> vector<256x256xf32>
    %c0_5 = arith.constant 0 : index
    %c256 = arith.constant 256 : index
    %7 = vector.load %arg3[%c0_5, %c256] : memref<256x512xbf16, #tpu.memory_space<vmem>>, vector<256x256xbf16>
    %cst_6 = arith.constant dense<0.000000e+00> : vector<256x256xf32>
    %8 = tpu.matmul %4, %7, %cst_6 {dimension_numbers = #tpu.dot_dimension_numbers<[1], [0], [0], [1], [0, 0, 1, 1], [], []>} : vector<256x256xbf16>, vector<256x256xbf16>, vector<256x256xf32> -> vector<256x256xf32>
    %9 = arith.mulf %6, %6 : vector<256x256xf32>
    %10 = arith.mulf %8, %8 : vector<256x256xf32>
    %11 = arith.addf %9, %10 : vector<256x256xf32>
    %c0_7 = arith.constant 0 : index
    %c0_8 = arith.constant 0 : index
    %12 = vector.load %arg5[%c0_7, %c0_8] : memref<1x256xf32, #tpu.memory_space<vmem>>, vector<1x256xf32>
    %cst_9 = arith.constant 1.17549435E-38 : f32
    %13 = vector.broadcast %cst_9 : f32 to vector<256x256xf32>
    %14 = arith.addf %11, %13 : vector<256x256xf32>
    %15 = math.rsqrt %14 : vector<256x256xf32>
    %16 = vector.broadcast %12 : vector<1x256xf32> to vector<256x256xf32>
    %17 = arith.mulf %16, %15 : vector<256x256xf32>
    %cst_10 = arith.constant 1.000000e+00 : f32
    %18 = vector.broadcast %cst_10 : f32 to vector<256x256xf32>
    %19 = arith.subf %18, %17 : vector<256x256xf32>
    %cst_11 = arith.constant 0.000000e+00 : f32
    %20 = vector.broadcast %cst_11 : f32 to vector<256x256xf32>
    %21 = arith.maximumf %19, %20 : vector<256x256xf32>
    %22 = arith.mulf %6, %21 : vector<256x256xf32>
    %23 = arith.truncf %22 : vector<256x256xf32> to vector<256x256xbf16>
    %c0_12 = arith.constant 0 : index
    %c0_13 = arith.constant 0 : index
    %24 = vector.load %arg4[%c0_12, %c0_13] : memref<512x256xbf16, #tpu.memory_space<vmem>>, vector<256x256xbf16>
    %cst_14 = arith.constant dense<0.000000e+00> : vector<256x256xf32>
    %25 = tpu.matmul %23, %24, %cst_14 {dimension_numbers = #tpu.dot_dimension_numbers<[1], [0], [0], [1], [0, 0, 1, 1], [], []>} : vector<256x256xbf16>, vector<256x256xbf16>, vector<256x256xf32> -> vector<256x256xf32>
    %26 = arith.mulf %8, %21 : vector<256x256xf32>
    %27 = arith.truncf %26 : vector<256x256xf32> to vector<256x256xbf16>
    %c256_15 = arith.constant 256 : index
    %c0_16 = arith.constant 0 : index
    %28 = vector.load %arg4[%c256_15, %c0_16] : memref<512x256xbf16, #tpu.memory_space<vmem>>, vector<256x256xbf16>
    %cst_17 = arith.constant dense<0.000000e+00> : vector<256x256xf32>
    %29 = tpu.matmul %27, %28, %cst_17 {dimension_numbers = #tpu.dot_dimension_numbers<[1], [0], [0], [1], [0, 0, 1, 1], [], []>} : vector<256x256xbf16>, vector<256x256xbf16>, vector<256x256xf32> -> vector<256x256xf32>
    %30 = arith.addf %25, %29 : vector<256x256xf32>
    %c256_i32 = arith.constant 256 : i32
    %31 = arith.muli %arg1, %c256_i32 : i32
    %32 = tpu.iota {dimensions = array<i32: 0>} : vector<256x1xi32>
    %33 = vector.broadcast %31 : i32 to vector<256x1xi32>
    %34 = arith.addi %33, %32 : vector<256x1xi32>
    %c65_i32 = arith.constant 65 : i32
    %35 = vector.broadcast %c65_i32 : i32 to vector<256x1xi32>
    %36 = arith.cmpi slt, %34, %35 : vector<256x1xi32>
    %cst_18 = arith.constant 0.000000e+00 : f32
    %37 = vector.shape_cast %36 : vector<256x1xi1> to vector<256x1xi1>
    %38 = vector.broadcast %37 : vector<256x1xi1> to vector<256x256xi1>
    %39 = vector.broadcast %cst_18 : f32 to vector<256x256xf32>
    %40 = arith.select %38, %30, %39 : vector<256x256xi1>, vector<256x256xf32>
    %cst_19 = arith.constant 0.000000e+00 : f32
    %41 = vector.broadcast %cst_19 : f32 to vector<264x64xf32>
    %c0_20 = arith.constant 0 : index
    %c0_21 = arith.constant 0 : index
    %c0_22 = arith.constant 0 : index
    %c0_23 = arith.constant 0 : index
    %42 = vector.load %arg6[%c0_20, %c0_21, %c0_22, %c0_23] : memref<1x1x264x64xf32, #tpu.memory_space<vmem>>, vector<1x1x264x64xf32>
    %43 = vector.shape_cast %42 : vector<1x1x264x64xf32> to vector<264x64xf32>
    %44 = vector.shape_cast %41 : vector<264x64xf32> to vector<1x1x264x64xf32>
    tpu.vector_store %arg6[%c0_20, %c0_21, %c0_22, %c0_23], %44 {strides = array<i32>} : memref<1x1x264x64xf32, #tpu.memory_space<vmem>>, vector<1x1x264x64xf32>,
    %c0_24 = arith.constant 0 : index
    %c0_25 = arith.constant 0 : index
    %c0_26 = arith.constant 0 : index
    %c0_27 = arith.constant 0 : index
    %45 = vector.load %arg6[%c0_24, %c0_25, %c0_26, %c0_27] : memref<1x1x264x64xf32, #tpu.memory_space<vmem>>, vector<1x1x256x64xf32>
    %46 = vector.shape_cast %45 : vector<1x1x256x64xf32> to vector<256x64xf32>
    %47 = vector.extract_strided_slice %40 {offsets = [0, 0], sizes = [256, 64], strides = [1, 1]} : vector<256x256xf32> to vector<256x64xf32>
    %48 = arith.addf %46, %47 : vector<256x64xf32>
    %c0_28 = arith.constant 0 : index
    %c0_29 = arith.constant 0 : index
    %c0_30 = arith.constant 0 : index
    %c0_31 = arith.constant 0 : index
    %49 = vector.load %arg6[%c0_28, %c0_29, %c0_30, %c0_31] : memref<1x1x264x64xf32, #tpu.memory_space<vmem>>, vector<1x1x256x64xf32>
    %50 = vector.shape_cast %49 : vector<1x1x256x64xf32> to vector<256x64xf32>
    %51 = vector.shape_cast %48 : vector<256x64xf32> to vector<1x1x256x64xf32>
    tpu.vector_store %arg6[%c0_28, %c0_29, %c0_30, %c0_31], %51 {strides = array<i32>} : memref<1x1x264x64xf32, #tpu.memory_space<vmem>>, vector<1x1x256x64xf32>,
    %c0_32 = arith.constant 0 : index
    %c0_33 = arith.constant 0 : index
    %c1 = arith.constant 1 : index
    %c0_34 = arith.constant 0 : index
    %52 = vector.load %arg6[%c0_32, %c0_33, %c1, %c0_34] : memref<1x1x264x64xf32, #tpu.memory_space<vmem>>, vector<1x1x256x64xf32>
    %53 = vector.shape_cast %52 : vector<1x1x256x64xf32> to vector<256x64xf32>
    %54 = vector.extract_strided_slice %40 {offsets = [0, 64], sizes = [256, 64], strides = [1, 1]} : vector<256x256xf32> to vector<256x64xf32>
    %55 = arith.addf %53, %54 : vector<256x64xf32>
    %c0_35 = arith.constant 0 : index
    %c0_36 = arith.constant 0 : index
    %c1_37 = arith.constant 1 : index
    %c0_38 = arith.constant 0 : index
    %56 = vector.load %arg6[%c0_35, %c0_36, %c1_37, %c0_38] : memref<1x1x264x64xf32, #tpu.memory_space<vmem>>, vector<1x1x256x64xf32>
    %57 = vector.shape_cast %56 : vector<1x1x256x64xf32> to vector<256x64xf32>
    %58 = vector.shape_cast %55 : vector<256x64xf32> to vector<1x1x256x64xf32>
    tpu.vector_store %arg6[%c0_35, %c0_36, %c1_37, %c0_38], %58 {strides = array<i32>} : memref<1x1x264x64xf32, #tpu.memory_space<vmem>>, vector<1x1x256x64xf32>,
    %c0_39 = arith.constant 0 : index
    %c0_40 = arith.constant 0 : index
    %c2 = arith.constant 2 : index
    %c0_41 = arith.constant 0 : index
    %59 = vector.load %arg6[%c0_39, %c0_40, %c2, %c0_41] : memref<1x1x264x64xf32, #tpu.memory_space<vmem>>, vector<1x1x256x64xf32>
    %60 = vector.shape_cast %59 : vector<1x1x256x64xf32> to vector<256x64xf32>
    %61 = vector.extract_strided_slice %40 {offsets = [0, 128], sizes = [256, 64], strides = [1, 1]} : vector<256x256xf32> to vector<256x64xf32>
    %62 = arith.addf %60, %61 : vector<256x64xf32>
    %c0_42 = arith.constant 0 : index
    %c0_43 = arith.constant 0 : index
    %c2_44 = arith.constant 2 : index
    %c0_45 = arith.constant 0 : index
    %63 = vector.load %arg6[%c0_42, %c0_43, %c2_44, %c0_45] : memref<1x1x264x64xf32, #tpu.memory_space<vmem>>, vector<1x1x256x64xf32>
    %64 = vector.shape_cast %63 : vector<1x1x256x64xf32> to vector<256x64xf32>
    %65 = vector.shape_cast %62 : vector<256x64xf32> to vector<1x1x256x64xf32>
    tpu.vector_store %arg6[%c0_42, %c0_43, %c2_44, %c0_45], %65 {strides = array<i32>} : memref<1x1x264x64xf32, #tpu.memory_space<vmem>>, vector<1x1x256x64xf32>,
    %c0_46 = arith.constant 0 : index
    %c0_47 = arith.constant 0 : index
    %c3 = arith.constant 3 : index
    %c0_48 = arith.constant 0 : index
    %66 = vector.load %arg6[%c0_46, %c0_47, %c3, %c0_48] : memref<1x1x264x64xf32, #tpu.memory_space<vmem>>, vector<1x1x256x64xf32>
    %67 = vector.shape_cast %66 : vector<1x1x256x64xf32> to vector<256x64xf32>
    %68 = vector.extract_strided_slice %40 {offsets = [0, 192], sizes = [256, 64], strides = [1, 1]} : vector<256x256xf32> to vector<256x64xf32>
    %69 = arith.addf %67, %68 : vector<256x64xf32>
    %c0_49 = arith.constant 0 : index
    %c0_50 = arith.constant 0 : index
    %c3_51 = arith.constant 3 : index
    %c0_52 = arith.constant 0 : index
    %70 = vector.load %arg6[%c0_49, %c0_50, %c3_51, %c0_52] : memref<1x1x264x64xf32, #tpu.memory_space<vmem>>, vector<1x1x256x64xf32>
    %71 = vector.shape_cast %70 : vector<1x1x256x64xf32> to vector<256x64xf32>
    %72 = vector.shape_cast %69 : vector<256x64xf32> to vector<1x1x256x64xf32>
    tpu.vector_store %arg6[%c0_49, %c0_50, %c3_51, %c0_52], %72 {strides = array<i32>} : memref<1x1x264x64xf32, #tpu.memory_space<vmem>>, vector<1x1x256x64xf32>,
    return
  }
  func.func @transform_0(%arg0: i32, %arg1: i32) -> (i32, i32, i32, i32) {
    %c0_i32 = arith.constant 0 : i32
    %c0_i32_0 = arith.constant 0 : i32
    %c0_i32_1 = arith.constant 0 : i32
    return %arg0, %arg1, %c0_i32, %c0_i32_0 : i32, i32, i32, i32
  }
  func.func @transform_1(%arg0: i32, %arg1: i32) -> (i32, i32) {
    %c0_i32 = arith.constant 0 : i32
    %c0_i32_0 = arith.constant 0 : i32
    %c0_i32_1 = arith.constant 0 : i32
    return %c0_i32, %c0_i32_0 : i32, i32
  }
  func.func @transform_2(%arg0: i32, %arg1: i32) -> (i32, i32) {
    %c0_i32 = arith.constant 0 : i32
    %c0_i32_0 = arith.constant 0 : i32
    %c0_i32_1 = arith.constant 0 : i32
    return %c0_i32, %c0_i32_0 : i32, i32
  }
  func.func @transform_3(%arg0: i32, %arg1: i32) -> (i32, i32) {
    %c0_i32 = arith.constant 0 : i32
    %c0_i32_0 = arith.constant 0 : i32
    %c0_i32_1 = arith.constant 0 : i32
    return %c0_i32, %c0_i32_0 : i32, i32
  }
  func.func @transform_4(%arg0: i32, %arg1: i32) -> (i32, i32, i32, i32) {
    %c0_i32 = arith.constant 0 : i32
    %c0_i32_0 = arith.constant 0 : i32
    %c0_i32_1 = arith.constant 0 : i32
    return %arg0, %arg1, %c0_i32, %c0_i32_0 : i32, i32, i32, i32
  }
}

</mosaic_0001>

<bundles_post_ra>
// kernel: tpu_custom_call.1
= control target key start
LH: loop header
LB: loop body
LE: loop exit
PB: predicated region body
PF: predicated region fallthrough
CT: control target
= control target key end

     0   :  { %9 = vsyncpa [#allocation3], 0  ;;  %s9917_s0 = inlined_call_operand.hbm [shape: bf16[2,1,264,128], index: 0, kind: input, shape index: {}]   ;;  %s9918_s1 = inlined_call_operand.hbm [shape: bf16[256,512], index: 1, kind: input, shape index: {}]   ;;  %s9919_s2 = inlined_call_operand.hbm [shape: bf16[512,256], index: 2, kind: input, shape index: {}]   ;;  %s9920_s3 = inlined_call_operand.vmem [shape: f32[1,256], index: 3, kind: input, shape index: {}]   ;;  %s9921_s4 = inlined_call_operand.vmem [shape: f32[2,1,264,64], index: 4, kind: output, shape index: {}]  }
   0x1   :  { %11 = vsyncpa [#allocation3 + $0x1], 0 }
   0x2   :  { %12 = vsyncpa [#allocation5], 0  ;;  %s6207_s15 = smov 0   ;;  %s6209_s16 = smov 0  }
   0x3   :  { %s6211_s17 = smov 0   ;;  %s6213_s18 = smov 0  }
   0x4   :  { %s6215_s19 = smov 0   ;;  %s6217_s20 = smov 0  }
   0x5 LB: > { %s4957_s21 = sadd.s32 4294967295, %s6170_s20   ;;  %p52_p0 = scmp.ne.s32.totalorder %s6154_s16, %s6150_s15  ;;  %s6170_s20 = sphi %s6217_s20, %s18_s20   ;;  %s6166_s19 = sphi %s6215_s19, %s10588_s19   ;;  %s6162_s18 = sphi %s6213_s18, %s10587_s18   ;;  %s6158_s17 = sphi %s6211_s17, %s10586_s17   ;;  %s6154_s16 = sphi %s6209_s16, %s10585_s16   ;;  %s6150_s15 = sphi %s6207_s15, %s10584_s15  }
   0x6   : > { %p6237_p1 = scmp.eq.s32.totalorder %s4957_s21, 0  ;;  %p4959_p2 = scmp.ge.s32.totalorder %s6170_s20, 1 }
   0x7   : > { %p154_p3 = scmp.lt.s32.totalorder %s6170_s20, 3  ;;  %s165_s26 = sshll.u32 %s9918_s1, 4  ;;  %s166_s26 = int_to_ptr.hbm [resolvable:$true] %s165_s26 }
   0x8   : > { %p6245_p4 = por %p6237_p1, %p52_p0  ;;  %s6172_s28 = smov [#allocation4]  }
   0x9   : > { %p6252_p5 = pnand %p4959_p2, %p154_p3  ;;  %s167_s29 = sshll.u32 %s6172_s28, 4  ;;  %s168_s29 = int_to_ptr.vmem [resolvable:$true] %s167_s29 }
   0xa   : > { %s179_s6 = sshll.u32 %s9919_s2, 4  ;;  %s6173_s7 = smov 256   ;;  %s180_s6 = int_to_ptr.hbm [resolvable:$true] %s179_s6 }
   0xb   : > { %p5704_p6 = pneg %p6252_p5  ;;  %s6174_s8 = smov 16  }
   0xc   : > { %s6175_s9 = smov [#allocation6]   ;;  %s6176_s11 = smov 128  }
   0xd   : > { %p5705_p7 = pnand %p5704_p6, %p6237_p1  ;;  %s181_s10 = sshll.u32 %s6175_s9, 4  ;;  %s182_s10 = int_to_ptr.vmem [resolvable:$true] %s181_s10 }
   0xe   : > { %s6177_s12 = smov 8   ;;  %s30_s13 = sadd.s32 1, %s6166_s19 }
   0xf   : > { %5707 = dma.hbm_to_vmem [thread:$0]  (!%p5705_p7), %s166_s26, 8192, %s168_s29, [#allocation5], %s6173_s7, %s6173_s7, %s6174_s8  }
  0x10   : > { %5710 = dma.hbm_to_vmem [thread:$0]  (!%p5705_p7), %s180_s6, 8192, %s182_s10, [#allocation5], %s6176_s11, %s6176_s11, %s6177_s12  }
  0x11   : > { %s39_s14 = sadd.s32 1, %s6158_s17  ;;  %p32_p8 = scmp.ge.s32.totalorder %s30_s13, 2 }
  0x12   : > { %p46_p9 = scmp.ne.s32.totalorder %s6158_s17, %s6154_s16  ;;  %p47_p10 = scmp.eq.s32.totalorder %s6170_s20, 0 }
  0x13   : > { %p5717_p11 = scmp.lt.s32.totalorder %s6170_s20, 2  ;;  %s10590_s13 = smov (%p32_p8, %s30_s13), 0 }
  0x14   : > { %p48_p12 = por %p47_p10, %p46_p9  ;;  %s198_s15 = sand.u32 1, %s6158_s17  }
  0x15   : > { %s34_s21 = ssub.s32 %s6166_s19, %s10590_s13  ;;  %s5690_s24 = smul.u32 132, %s198_s15 }
  0x16   : > { %p37_p13 = scmp.eq.s32.totalorder %s34_s21, 0  ;;  %s5691_s25 = smul.u32 132, %s6166_s19 }
  0x17   : > { %p5712_p0 = pnand %p5717_p11, %p48_p12  ;;  %s202_s6 = scalar_lea.vmem [#allocation2], %s5690_s24 }
  0x18   : > { %s6276_s26 = scalar_select %p37_p13, %s6158_s17, %s39_s14  }
  0x19   : > { %s209_s30 = scalar_lea.hbm %s9917_s0, %s5691_s25  ;;  %s212_s7 = sshll.u32 %s202_s6, 4  ;;  %s213_s7 = int_to_ptr.vmem [resolvable:$true] %s212_s7 }
  0x1a   : > { %s210_s5 = sshll.u32 %s209_s30, 4  ;;  %s199_s8 = scalar_lea.sflag [#allocation3], %s198_s15  ;;  %s211_s5 = int_to_ptr.hbm [resolvable:$true] %s210_s5 }
  0x1b   : > { %s6178_s9 = smov 64   ;;  %s6179_s10 = smov 4  }
  0x1c   : > { %5714 = dma.hbm_to_vmem [thread:$0]  (!%p5712_p0), %s211_s5, 2112, %s213_s7, %s199_s8, %s6178_s9, %s6178_s9, %s6179_s10  }
  0x1d   : > { %224 = sbr.rel (%p6252_p5) target bundleno = 1260 (0x4ec), region = 36 }
  0x22   : > { %s226_s11 = sand.u32 1, %s6154_s16  }
  0x23   : > { %s5692_s12 = smul.u32 132, %s226_s11  ;;  %s227_s14 = scalar_lea.sflag [#allocation3], %s226_s11 }
  0x25   : > { %s6284_s21 = scalar_lea.vmem [#allocation2], %s5692_s12 }
  0x26   : > { %6141 = dma.done.wait (%p6245_p4), %s227_s14, 2112  }
  0x27   : > { %6143 = vsyncadd (%p6245_p4), %s227_s14, 4294965184 }
  0x28   : > { %6145 = dma.done.wait (%p6237_p1), [#allocation5], 16384  }
  0x29   : > { %6147 = vsyncadd (%p6237_p1), [#allocation5], 4294950912  ;;  %v5090_v0 = vld [vmem:[#allocation4 + $0xe0] sm:$0xf]  ;;  %v5577_v1 = vld [vmem:[#allocation4 + $0xec] sm:$0xf0] }
  0x2a   : > { %v5154_v2 = vld [vmem:[#allocation4 + $0x1e0] sm:$0xf]  ;;  %v5091_v3 = vor.u32 %v5577_v1, %v5090_v0  ;;  %v5593_v4 = vld [vmem:[#allocation4 + $0x1ec] sm:$0xf0]  ;;  %v5576_v5 = vld [vmem:[#allocation4 + $0xe4] sm:$0xf] }
  0x2b   : > { %v5092_v6 = vld [vmem:[#allocation4 + $0xf0] sm:$0xf0]  ;;  %v5155_v7 = vor.u32 %v5593_v4, %v5154_v2  ;;  %v5592_v9 = vld [vmem:[#allocation4 + $0x1e4] sm:$0xf]  ;;  %v5082_v11 = vld [vmem:[#allocation4 + $0xc0] sm:$0xf] }
  0x2c   : > { %v5095_v8 = vor.u32 %v5576_v5, %v5092_v6  ;;  %v5156_v10 = vld [vmem:[#allocation4 + $0x1f0] sm:$0xf0]  ;;  %653 = vmatpush.bf16.msra.mxu0 %v5091_v3  ;;  %v5575_v13 = vld [vmem:[#allocation4 + $0xcc] sm:$0xf0]  ;;  %v5146_v14 = vld [vmem:[#allocation4 + $0x1c0] sm:$0xf] }
  0x2d   : > { %v5159_v12 = vor.u32 %v5592_v9, %v5156_v10  ;;  %v5591_v15 = vld [vmem:[#allocation4 + $0x1cc] sm:$0xf0]  ;;  %742 = vmatpush.bf16.msra.mxu1 %v5155_v7  ;;  %v5083_v16 = vor.u32 %v5575_v13, %v5082_v11  ;;  %v5574_v18 = vld [vmem:[#allocation4 + $0xc4] sm:$0xf]  ;;  %v5084_v19 = vld [vmem:[#allocation4 + $0xd0] sm:$0xf0] }
  0x2e   : > { %831 = vmatpush.bf16.msra.mxu2 %v5095_v8  ;;  %v5147_v17 = vor.u32 %v5591_v15, %v5146_v14  ;;  %v5590_v20 = vld [vmem:[#allocation4 + $0x1c4] sm:$0xf]  ;;  %v5087_v21 = vor.u32 %v5574_v18, %v5084_v19  ;;  %v5148_v22 = vld [vmem:[#allocation4 + $0x1d0] sm:$0xf0]  ;;  %v5074_v23 = vld [vmem:[#allocation4 + $0xa0] sm:$0xf] }
  0x2f   : > { %920 = vmatpush.bf16.msra.mxu3 %v5159_v12  ;;  %v5573_v24 = vld [vmem:[#allocation4 + $0xac] sm:$0xf0]  ;;  %v5151_v25 = vor.u32 %v5590_v20, %v5148_v22  ;;  %v5138_v26 = vld [vmem:[#allocation4 + $0x1a0] sm:$0xf]  ;;  %v5572_v28 = vld [vmem:[#allocation4 + $0xa4] sm:$0xf] }
  0x30   : > { %v5589_v27 = vld [vmem:[#allocation4 + $0x1ac] sm:$0xf0]  ;;  %654 = vmatpush.bf16.msra.mxu0 %v5083_v16  ;;  %v5075_v29 = vor.u32 %v5573_v24, %v5074_v23  ;;  %v5076_v30 = vld [vmem:[#allocation4 + $0xb0] sm:$0xf0]  ;;  %v5588_v31 = vld [vmem:[#allocation4 + $0x1a4] sm:$0xf] }
  0x31   : > { %v5140_v32 = vld [vmem:[#allocation4 + $0x1b0] sm:$0xf0]  ;;  %743 = vmatpush.bf16.msra.mxu1 %v5147_v17  ;;  %v5139_v33 = vor.u32 %v5589_v27, %v5138_v26  ;;  %v5079_v34 = vor.u32 %v5572_v28, %v5076_v30  ;;  %v5066_v35 = vld [vmem:[#allocation4 + $0x80] sm:$0xf]  ;;  %v5571_v36 = vld [vmem:[#allocation4 + $0x8c] sm:$0xf0] }
  0x32   : > { %832 = vmatpush.bf16.msra.mxu2 %v5087_v21  ;;  %v5130_v37 = vld [vmem:[#allocation4 + $0x180] sm:$0xf]  ;;  %v5143_v38 = vor.u32 %v5588_v31, %v5140_v32  ;;  %v5587_v39 = vld [vmem:[#allocation4 + $0x18c] sm:$0xf0]  ;;  %v5570_v40 = vld [vmem:[#allocation4 + $0x84] sm:$0xf]  ;;  %v5067_v44 = vor.u32 %v5571_v36, %v5066_v35 }
  0x33   : > { %921 = vmatpush.bf16.msra.mxu3 %v5151_v25  ;;  %v5068_v41 = vld [vmem:[#allocation4 + $0x90] sm:$0xf0]  ;;  %v5586_v42 = vld [vmem:[#allocation4 + $0x184] sm:$0xf]  ;;  %v5131_v45 = vor.u32 %v5587_v39, %v5130_v37  ;;  %v5058_v47 = vld [vmem:[#allocation4 + $0x60] sm:$0xf] }
  0x34   : > { %v5132_v43 = vld [vmem:[#allocation4 + $0x190] sm:$0xf0]  ;;  %655 = vmatpush.bf16.msra.mxu0 %v5075_v29  ;;  %v5071_v46 = vor.u32 %v5570_v40, %v5068_v41  ;;  %v5569_v48 = vld [vmem:[#allocation4 + $0x6c] sm:$0xf0]  ;;  %v5122_v49 = vld [vmem:[#allocation4 + $0x160] sm:$0xf] }
  0x35   : > { %744 = vmatpush.bf16.msra.mxu1 %v5139_v33  ;;  %v5135_v50 = vor.u32 %v5586_v42, %v5132_v43  ;;  %v5585_v51 = vld [vmem:[#allocation4 + $0x16c] sm:$0xf0]  ;;  %v5568_v52 = vld [vmem:[#allocation4 + $0x64] sm:$0xf]  ;;  %v5060_v53 = vld [vmem:[#allocation4 + $0x70] sm:$0xf0]  ;;  %v5059_v56 = vor.u32 %v5569_v48, %v5058_v47 }
  0x36   : > { %833 = vmatpush.bf16.msra.mxu2 %v5079_v34  ;;  %v5584_v54 = vld [vmem:[#allocation4 + $0x164] sm:$0xf]  ;;  %v5124_v55 = vld [vmem:[#allocation4 + $0x170] sm:$0xf0]  ;;  %v5123_v57 = vor.u32 %v5585_v51, %v5122_v49  ;;  %v5063_v58 = vor.u32 %v5568_v52, %v5060_v53  ;;  %v5050_v59 = vld [vmem:[#allocation4 + $0x40] sm:$0xf] }
  0x37   : > { %922 = vmatpush.bf16.msra.mxu3 %v5143_v38  ;;  %v5567_v60 = vld [vmem:[#allocation4 + $0x4c] sm:$0xf0]  ;;  %v5114_v61 = vld [vmem:[#allocation4 + $0x140] sm:$0xf]  ;;  %v5127_v62 = vor.u32 %v5584_v54, %v5124_v55  ;;  %v5566_v0 = vld [vmem:[#allocation4 + $0x44] sm:$0xf] }
  0x38   : > { %656 = vmatpush.bf16.msra.mxu0 %v5067_v44  ;;  %v5583_v63 = vld [vmem:[#allocation4 + $0x14c] sm:$0xf0]  ;;  %v5052_v1 = vld [vmem:[#allocation4 + $0x50] sm:$0xf0]  ;;  %v5582_v2 = vld [vmem:[#allocation4 + $0x144] sm:$0xf]  ;;  %v5051_v4 = vor.u32 %v5567_v60, %v5050_v59 }
  0x39   : > { %745 = vmatpush.bf16.msra.mxu1 %v5131_v45  ;;  %v5116_v3 = vld [vmem:[#allocation4 + $0x150] sm:$0xf0]  ;;  %v5115_v5 = vor.u32 %v5583_v63, %v5114_v61  ;;  %v5055_v6 = vor.u32 %v5566_v0, %v5052_v1  ;;  %v5042_v7 = vld [vmem:[#allocation4 + $0x20] sm:$0xf]  ;;  %v5565_v8 = vld [vmem:[#allocation4 + $0x2c] sm:$0xf0] }
  0x3a   : > { %834 = vmatpush.bf16.msra.mxu2 %v5071_v46  ;;  %v5106_v9 = vld [vmem:[#allocation4 + $0x120] sm:$0xf]  ;;  %v5119_v10 = vor.u32 %v5582_v2, %v5116_v3  ;;  %v5581_v11 = vld [vmem:[#allocation4 + $0x12c] sm:$0xf0]  ;;  %v5564_v12 = vld [vmem:[#allocation4 + $0x24] sm:$0xf]  ;;  %v5043_v16 = vor.u32 %v5565_v8, %v5042_v7 }
  0x3b   : > { %923 = vmatpush.bf16.msra.mxu3 %v5135_v50  ;;  %v5044_v13 = vld [vmem:[#allocation4 + $0x30] sm:$0xf0]  ;;  %v5580_v14 = vld [vmem:[#allocation4 + $0x124] sm:$0xf]  ;;  %v5034_v17 = vld [vmem:[#allocation4] sm:$0xf]  ;;  %v5107_v20 = vor.u32 %v5581_v11, %v5106_v9 }
  0x3c   : > { %657 = vmatpush.bf16.msra.mxu0 %v5059_v56  ;;  %v5108_v15 = vld [vmem:[#allocation4 + $0x130] sm:$0xf0]  ;;  %v5563_v18 = vld [vmem:[#allocation4 + $0xc] sm:$0xf0]  ;;  %v5098_v19 = vld [vmem:[#allocation4 + $0x100] sm:$0xf]  ;;  %v5047_v21 = vor.u32 %v5564_v12, %v5044_v13 }
  0x3d   : > { %746 = vmatpush.bf16.msra.mxu1 %v5123_v57  ;;  %v5579_v22 = vld [vmem:[#allocation4 + $0x10c] sm:$0xf0]  ;;  %v6295_v23 = vld [vmem:[%s6284_s21] sm:$0xff]  ;;  %v6298_v24 = vld [vmem:[%s6284_s21 + $0x8] sm:$0xff]  ;;  %v5111_v25 = vor.u32 %v5580_v14, %v5108_v15  ;;  %v5035_v32 = vor.u32 %v5563_v18, %v5034_v17  ;;  %vm411_vm0 = vcmask 1046528   ;;  %s6181_s27 = smov 64  }
  0x3e   : > { %835 = vmatpush.bf16.msra.mxu2 %v5063_v58  ;;  %v5562_v26 = vld [vmem:[#allocation4 + $0x4] sm:$0xf]  ;;  %v5036_v27 = vld [vmem:[#allocation4 + $0x10] sm:$0xf0]  ;;  %v5608_v30 = vld [vmem:[#allocation4 + $0xec] sm:$0xf]  ;;  %v5099_v35 = vor.u32 %v5579_v22, %v5098_v19 }
  0x3f   : > { %924 = vmatpush.bf16.msra.mxu3 %v5127_v62  ;;  %v5578_v28 = vld [vmem:[#allocation4 + $0x104] sm:$0xf]  ;;  %v5100_v29 = vld [vmem:[#allocation4 + $0x110] sm:$0xf0]  ;;  %v5220_v31 = vld [vmem:[#allocation4 + $0xf8] sm:$0xf0]  ;;  %v5039_v36 = vor.u32 %v5562_v26, %v5036_v27 }
  0x40   : > { %658 = vmatpush.bf16.msra.mxu0 %v5051_v4  ;;  %v5624_v33 = vld [vmem:[#allocation4 + $0x1ec] sm:$0xf]  ;;  %v5284_v34 = vld [vmem:[#allocation4 + $0x1f8] sm:$0xf0]  ;;  %v412_v37 = vrot.slane %v6295_v23, 1  ;;  %v413_v38 = vrot.slane %v6298_v24, 1  ;;  %v5103_v39 = vor.u32 %v5578_v28, %v5100_v29  ;;  %v5223_v40 = vor.u32 %v5608_v30, %v5220_v31 }
  0x41   : > { %747 = vmatpush.bf16.msra.mxu1 %v5115_v5  ;;  %v5218_v41 = vld [vmem:[#allocation4 + $0xe8] sm:$0xf]  ;;  %v5609_v42 = vld [vmem:[#allocation4 + $0xf4] sm:$0xf0]  ;;  %v5287_v43 = vor.u32 %v5624_v33, %v5284_v34  ;;  %v5606_v49 = vld [vmem:[#allocation4 + $0xcc] sm:$0xf] }
  0x42   : > { %836 = vmatpush.bf16.msra.mxu2 %v5055_v6  ;;  %v5282_v44 = vld [vmem:[#allocation4 + $0x1e8] sm:$0xf]  ;;  %v5625_v45 = vld [vmem:[#allocation4 + $0x1f4] sm:$0xf0]  ;;  %v6303_v46 = vsel %vm411_vm0, %v412_v37, %v413_v38  ;;  %v5219_v47 = vor.u32 %v5609_v42, %v5218_v41  ;;  %v5212_v50 = vld [vmem:[#allocation4 + $0xd8] sm:$0xf0] }
  0x43   : > { %925 = vmatpush.bf16.msra.mxu3 %v5119_v10  ;;  %v5283_v48 = vor.u32 %v5625_v45, %v5282_v44  ;;  %v5622_v51 = vld [vmem:[#allocation4 + $0x1cc] sm:$0xf]  ;;  %v5215_v52 = vor.u32 %v5606_v49, %v5212_v50  ;;  %v5276_v53 = vld [vmem:[#allocation4 + $0x1d8] sm:$0xf0]  ;;  %v5210_v54 = vld [vmem:[#allocation4 + $0xc8] sm:$0xf] }
  0x44   : > { %659 = vmatpush.bf16.msra.mxu0 %v5043_v16  ;;  %v5607_v55 = vld [vmem:[#allocation4 + $0xd4] sm:$0xf0]  ;;  %v5279_v56 = vor.u32 %v5622_v51, %v5276_v53  ;;  %v5274_v58 = vld [vmem:[#allocation4 + $0x1c8] sm:$0xf]  ;;  %v5604_v3 = vld [vmem:[#allocation4 + $0xac] sm:$0xf] }
  0x45   : > { %748 = vmatpush.bf16.msra.mxu1 %v5107_v20  ;;  %v5211_v57 = vor.u32 %v5607_v55, %v5210_v54  ;;  %v5623_v59 = vld [vmem:[#allocation4 + $0x1d4] sm:$0xf0]  ;;  %v6310_v61 = vld [vmem:[%s6284_s21 + $0x10] sm:$0xff]  ;;  %v5204_v4 = vld [vmem:[#allocation4 + $0xb8] sm:$0xf0]  ;;  %p270_p1 = scmp.lt.s32.totalorder %s6162_s18, 1 }
  0x46   : > { %837 = vmatpush.bf16.msra.mxu2 %v5047_v21  ;;  %v5275_v60 = vor.u32 %v5623_v59, %v5274_v58  ;;  %v415_v62 = vrot.slane %v6310_v61, 1  ;;  %v6321_v0 = vld [vmem:[%s6284_s21 + $0x18] sm:$0xff]  ;;  %v5620_v5 = vld [vmem:[#allocation4 + $0x1ac] sm:$0xf]  ;;  %v5207_v6 = vor.u32 %v5604_v3, %v5204_v4  ;;  %v5268_v7 = vld [vmem:[#allocation4 + $0x1b8] sm:$0xf0] }
  0x47   : > { %926 = vmatpush.bf16.msra.mxu3 %v5111_v25  ;;  %v417_v1 = vrot.slane %v6321_v0, 1  ;;  %v5202_v8 = vld [vmem:[#allocation4 + $0xa8] sm:$0xf]  ;;  %v5605_v9 = vld [vmem:[#allocation4 + $0xb4] sm:$0xf0]  ;;  %v5271_v10 = vor.u32 %v5620_v5, %v5268_v7  ;;  %s10592_s18 = smov (!%p270_p1, %s6162_s18), 1 }
  0x48   : > { %660 = vmatpush.bf16.msra.mxu0 %v5035_v32  ;;  %v6314_v63 = vsel %vm411_vm0, %v413_v38, %v415_v62  ;;  %v5203_v11 = vor.u32 %v5605_v9, %v5202_v8  ;;  %v5266_v12 = vld [vmem:[#allocation4 + $0x1a8] sm:$0xf]  ;;  %v5621_v13 = vld [vmem:[#allocation4 + $0x1b4] sm:$0xf0]  ;;  %v5602_v21 = vld [vmem:[#allocation4 + $0x8c] sm:$0xf] }
  0x49   : > { %749 = vmatpush.bf16.msra.mxu1 %v5099_v35  ;;  %v6325_v2 = vsel %vm411_vm0, %v415_v62, %v417_v1  ;;  %v5267_v14 = vor.u32 %v5621_v13, %v5266_v12  ;;  %v6332_v15 = vld [vmem:[%s6284_s21 + $0x20] sm:$0xff]  ;;  %v6343_v18 = vld [vmem:[%s6284_s21 + $0x28] sm:$0xff]  ;;  %v5618_v25 = vld [vmem:[#allocation4 + $0x18c] sm:$0xf]  ;;  %s5693_s15 = smul.u32 264, %s10592_s18 }
  0x4a   : > { %838 = vmatpush.bf16.msra.mxu2 %v5039_v36  ;;  %v419_v16 = vrot.slane %v6332_v15, 1  ;;  %v421_v19 = vrot.slane %v6343_v18, 1  ;;  %v5196_v22 = vld [vmem:[#allocation4 + $0x98] sm:$0xf0]  ;;  %v5194_v28 = vld [vmem:[#allocation4 + $0x88] sm:$0xf] }
  0x4b   : > { %927 = vmatpush.bf16.msra.mxu3 %v5103_v39  ;;  %661 = vmatmul.bf16.vlgmr.msra.gmra.mxu0 %v6295_v23  ;;  %v5199_v26 = vor.u32 %v5602_v21, %v5196_v22  ;;  %v5260_v27 = vld [vmem:[#allocation4 + $0x198] sm:$0xf0]  ;;  %v5603_v29 = vld [vmem:[#allocation4 + $0x94] sm:$0xf0]  ;;  %v5258_v32 = vld [vmem:[#allocation4 + $0x188] sm:$0xf]  ;;  %s9207_s28 = scalar_lea.vmem %s9921_s4, %s5693_s15 }
  0x4c   : > { %750 = vmatmul.bf16.vlgmr.msra.gmra.mxu1 %v6303_v46  ;;  %1201 = vmatpush.bf16.msrb.mxu0 %v5219_v47  ;;  %v6336_v17 = vsel %vm411_vm0, %v417_v1, %v419_v16  ;;  %v6347_v20 = vsel %vm411_vm0, %v419_v16, %v421_v19  ;;  %v5263_v30 = vor.u32 %v5618_v25, %v5260_v27  ;;  %v5619_v33 = vld [vmem:[#allocation4 + $0x194] sm:$0xf0]  ;;  %v6354_v35 = vld [vmem:[%s6284_s21 + $0x30] sm:$0xff]  ;;  %v5188_v42 = vld [vmem:[#allocation4 + $0x78] sm:$0xf0] }
  0x4d   : > { %839 = vmatmul.bf16.vlgmr.msra.gmra.mxu2 %v6295_v23  ;;  %1290 = vmatpush.bf16.msrb.mxu1 %v5283_v48  ;;  %v5195_v31 = vor.u32 %v5603_v29, %v5194_v28  ;;  %v5259_v34 = vor.u32 %v5619_v33, %v5258_v32  ;;  %v423_v36 = vrot.slane %v6354_v35, 1  ;;  %v6365_v38 = vld [vmem:[%s6284_s21 + $0x38] sm:$0xff]  ;;  %v5600_v41 = vld [vmem:[#allocation4 + $0x6c] sm:$0xf]  ;;  %v5252_v45 = vld [vmem:[#allocation4 + $0x178] sm:$0xf0] }
  0x4e   : > { %1379 = vmatpush.bf16.msrb.mxu2 %v5223_v40  ;;  %928 = vmatmul.bf16.vlgmr.msra.gmra.mxu3 %v6303_v46  ;;  %v425_v39 = vrot.slane %v6365_v38, 1  ;;  %v5191_v44 = vor.u32 %v5600_v41, %v5188_v42  ;;  %v6376_v48 = vld [vmem:[%s6284_s21 + $0x40] sm:$0xff]  ;;  %v5186_v49 = vld [vmem:[#allocation4 + $0x68] sm:$0xf]  ;;  %v5598_v3 = vld [vmem:[#allocation4 + $0x4c] sm:$0xf] }
  0x4f   : > { %1468 = vmatpush.bf16.msrb.mxu3 %v5287_v43  ;;  %v6358_v37 = vsel %vm411_vm0, %v421_v19, %v423_v36  ;;  %v5616_v43 = vld [vmem:[#allocation4 + $0x16c] sm:$0xf]  ;;  %v5601_v50 = vld [vmem:[#allocation4 + $0x74] sm:$0xf0]  ;;  %v5250_v51 = vld [vmem:[#allocation4 + $0x168] sm:$0xf] }
  0x50   : > { %1202 = vmatpush.bf16.msrb.mxu0 %v5211_v57  ;;  %v6369_v40 = vsel %vm411_vm0, %v423_v36, %v425_v39  ;;  %v5255_v47 = vor.u32 %v5616_v43, %v5252_v45  ;;  %v5187_v53 = vor.u32 %v5601_v50, %v5186_v49  ;;  %v5617_v54 = vld [vmem:[#allocation4 + $0x174] sm:$0xf0]  ;;  %v6387_v57 = vld [vmem:[%s6284_s21 + $0x48] sm:$0xff]  ;;  %v5180_v4 = vld [vmem:[#allocation4 + $0x58] sm:$0xf0] }
  0x51   : > { %1291 = vmatpush.bf16.msrb.mxu1 %v5275_v60  ;;  %v5251_v55 = vor.u32 %v5617_v54, %v5250_v51  ;;  %v429_v58 = vrot.slane %v6387_v57, 1  ;;  %v5614_v5 = vld [vmem:[#allocation4 + $0x14c] sm:$0xf]  ;;  %v5244_v7 = vld [vmem:[#allocation4 + $0x158] sm:$0xf0]  ;;  %v6421_v45 = vld [vmem:[%s6284_s21 + $0x58] sm:$0xff] }
  0x52   : > { %1380 = vmatpush.bf16.msrb.mxu2 %v5215_v52  ;;  %v427_v52 = vrot.slane %v6376_v48, 1  ;;  %v5247_v9 = vor.u32 %v5614_v5, %v5244_v7  ;;  %v5178_v19 = vld [vmem:[#allocation4 + $0x48] sm:$0xf]  ;;  %v5599_v21 = vld [vmem:[#allocation4 + $0x54] sm:$0xf0]  ;;  %v433_v49 = vrot.slane %v6421_v45, 1 }
  0x53   : > { %1469 = vmatpush.bf16.msrb.mxu3 %v5279_v56  ;;  %v5242_v22 = vld [vmem:[#allocation4 + $0x148] sm:$0xf]  ;;  %v5615_v27 = vld [vmem:[#allocation4 + $0x154] sm:$0xf0]  ;;  %v5236_v5 = vld [vmem:[#allocation4 + $0x138] sm:$0xf0] }
  0x54   : > { %1203 = vmatpush.bf16.msrb.mxu0 %v5203_v11  ;;  %v6380_v56 = vsel %vm411_vm0, %v425_v39, %v427_v52  ;;  %v6391_v62 = vsel %vm411_vm0, %v427_v52, %v429_v58  ;;  %v5243_v28 = vor.u32 %v5615_v27, %v5242_v22  ;;  %v5597_v22 = vld [vmem:[#allocation4 + $0x34] sm:$0xf0] }
  0x55   : > { %1292 = vmatpush.bf16.msrb.mxu1 %v5267_v14  ;;  %v6402_v14 = vld [vmem:[%s6284_s21 + $0x50] sm:$0xff] }
  0x56   : > { %1381 = vmatpush.bf16.msrb.mxu2 %v5207_v6  ;;  %v5183_v6 = vor.u32 %v5598_v3, %v5180_v4  ;;  %v431_v25 = vrot.slane %v6402_v14, 1  ;;  %v5612_v3 = vld [vmem:[#allocation4 + $0x12c] sm:$0xf] }
  0x57   : > { %1470 = vmatpush.bf16.msrb.mxu3 %v5271_v10  ;;  %v5239_v7 = vor.u32 %v5612_v3, %v5236_v5 }
  0x58   : > { %1204 = vmatpush.bf16.msrb.mxu0 %v5195_v31 }
  0x59   : > { %1293 = vmatpush.bf16.msrb.mxu1 %v5259_v34  ;;  %v6410_v34 = vsel %vm411_vm0, %v429_v58, %v431_v25 }
  0x5a   : > { %1382 = vmatpush.bf16.msrb.mxu2 %v5199_v26  ;;  %v5179_v26 = vor.u32 %v5599_v21, %v5178_v19  ;;  %v5170_v21 = vld [vmem:[#allocation4 + $0x28] sm:$0xf] }
  0x5b   : > { %666 = vmatmul.bf16.gmra.mxu0 %v6298_v24  ;;  %1471 = vmatpush.bf16.msrb.mxu3 %v5263_v30  ;;  %v5171_v27 = vor.u32 %v5597_v22, %v5170_v21  ;;  %v5594_v21 = vld [vmem:[#allocation4 + $0xc] sm:$0xf]  ;;  %v5164_v22 = vld [vmem:[#allocation4 + $0x18] sm:$0xf0] }
  0x5c   : > { %755 = vmatmul.bf16.gmra.mxu1 %v6314_v63  ;;  %1205 = vmatpush.bf16.msrb.mxu0 %v5187_v53 }
  0x5d   : > { %844 = vmatmul.bf16.gmra.mxu2 %v6298_v24  ;;  %1294 = vmatpush.bf16.msrb.mxu1 %v5251_v55  ;;  %v6429_v55 = vsel %vm411_vm0, %v431_v25, %v433_v49  ;;  %v5234_v25 = vld [vmem:[#allocation4 + $0x128] sm:$0xf] }
  0x5e   : > { %933 = vmatmul.bf16.gmra.mxu3 %v6314_v63  ;;  %1383 = vmatpush.bf16.msrb.mxu2 %v5191_v44 }
  0x5f   : > { %1472 = vmatpush.bf16.msrb.mxu3 %v5255_v47 }
  0x60   : > { %1206 = vmatpush.bf16.msrb.mxu0 %v5179_v26 }
  0x61   : > { %1295 = vmatpush.bf16.msrb.mxu1 %v5243_v28  ;;  %v5613_v28 = vld [vmem:[#allocation4 + $0x134] sm:$0xf0] }
  0x62   : > { %1384 = vmatpush.bf16.msrb.mxu2 %v5183_v6 }
  0x63   : > { %1473 = vmatpush.bf16.msrb.mxu3 %v5247_v9 }
  0x64   : > { %1207 = vmatpush.bf16.msrb.mxu0 %v5171_v27  ;;  %v5167_v27 = vor.u32 %v5594_v21, %v5164_v22 }
  0x67   : > { %1474 = vmatpush.bf16.msrb.mxu3 %v5239_v7 }
  0x6b   : > { %671 = vmatmul.bf16.gmra.mxu0 %v6310_v61 }
  0x6c   : > { %760 = vmatmul.bf16.gmra.mxu1 %v6325_v2 }
  0x6d   : > { %849 = vmatmul.bf16.gmra.mxu2 %v6310_v61 }
  0x6e   : > { %938 = vmatmul.bf16.gmra.mxu3 %v6325_v2 }
  0x7b   : > { %676 = vmatmul.bf16.gmra.mxu0 %v6321_v0 }
  0x7c   : > { %765 = vmatmul.bf16.gmra.mxu1 %v6336_v17 }
  0x7d   : > { %854 = vmatmul.bf16.gmra.mxu2 %v6321_v0 }
  0x7e   : > { %943 = vmatmul.bf16.gmra.mxu3 %v6336_v17 }
  0x8b   : > { %681 = vmatmul.bf16.gmra.mxu0 %v6332_v15 }
  0x8c   : > { %770 = vmatmul.bf16.gmra.mxu1 %v6347_v20 }
  0x8d   : > { %859 = vmatmul.bf16.gmra.mxu2 %v6332_v15 }
  0x8e   : > { %948 = vmatmul.bf16.gmra.mxu3 %v6347_v20 }
  0x9b   : > { %686 = vmatmul.bf16.gmra.mxu0 %v6343_v18 }
  0x9c   : > { %775 = vmatmul.bf16.gmra.mxu1 %v6358_v37 }
  0x9d   : > { %864 = vmatmul.bf16.gmra.mxu2 %v6343_v18 }
  0x9e   : > { %953 = vmatmul.bf16.gmra.mxu3 %v6358_v37 }
  0xab   : > { %691 = vmatmul.bf16.gmra.mxu0 %v6354_v35 }
  0xac   : > { %780 = vmatmul.bf16.gmra.mxu1 %v6369_v40 }
  0xad   : > { %869 = vmatmul.bf16.gmra.mxu2 %v6354_v35 }
  0xae   : > { %958 = vmatmul.bf16.gmra.mxu3 %v6369_v40 }
  0xbb   : > { %696 = vmatmul.bf16.gmra.mxu0 %v6365_v38 }
  0xbc   : > { %785 = vmatmul.bf16.gmra.mxu1 %v6380_v56 }
  0xbd   : > { %874 = vmatmul.bf16.gmra.mxu2 %v6365_v38 }
  0xbe   : > { %963 = vmatmul.bf16.gmra.mxu3 %v6380_v56 }
  0xc8   : > { %v662_v59 = vpop.f32.mrf.mxu0 }
  0xc9   : > { %v751_v60 = vpop.f32.mrf.mxu1 }
  0xca   : > { %v6393_v1 = vadd.f32 %v751_v60, %v662_v59  ;;  %v5596_v59 = vld [vmem:[#allocation4 + $0x2c] sm:$0xf]  ;;  %v5172_v60 = vld [vmem:[#allocation4 + $0x38] sm:$0xf0] }
  0xcb   : > { %701 = vmatmul.bf16.gmra.mxu0 %v6376_v48  ;;  %v5175_v4 = vor.u32 %v5596_v59, %v5172_v60  ;;  %v5559_v60 = vld [vmem:[%s6284_s21 + $0x68] sm:$0xff] }
  0xcc   : > { %790 = vmatmul.bf16.gmra.mxu1 %v6391_v62 }
  0xcd   : > { %879 = vmatmul.bf16.gmra.mxu2 %v6376_v48 }
  0xce   : > { %968 = vmatmul.bf16.gmra.mxu3 %v6391_v62  ;;  %1385 = vmatpush.bf16.msrb.mxu2 %v5175_v4 }
  0xd0   : > { %v840_v8 = vpop.f32.mrf.mxu2  ;;  %v664_v11 = vpop.f32.mrf.mxu0 }
  0xd1   : > { %v929_v10 = vpop.f32.mrf.mxu3  ;;  %v753_v13 = vpop.f32.mrf.mxu1 }
  0xd2   : > { %v6399_v12 = vadd.f32 %v929_v10, %v840_v8  ;;  %v6404_v16 = vadd.f32 %v753_v13, %v664_v11  ;;  %v5558_v13 = vld [vmem:[%s6284_s21 + $0x60] sm:$0xff]  ;;  %1386 = vmatpush.bf16.msrb.mxu2 %v5167_v27 }
  0xd3   : > { %v435_v26 = vrot.slane %v5558_v13, 1 }
  0xd8   : > { %v842_v29 = vpop.f32.mrf.mxu2  ;;  %v667_v31 = vpop.f32.mrf.mxu0 }
  0xd9   : > { %v931_v30 = vpop.f32.mrf.mxu3  ;;  %v756_v33 = vpop.f32.mrf.mxu1 }
  0xda   : > { %v6407_v32 = vadd.f32 %v931_v30, %v842_v29  ;;  %v6412_v36 = vadd.f32 %v756_v33, %v667_v31  ;;  %v5235_v29 = vor.u32 %v5613_v28, %v5234_v25  ;;  %v5610_v25 = vld [vmem:[#allocation4 + $0x10c] sm:$0xf]  ;;  %v5228_v28 = vld [vmem:[#allocation4 + $0x118] sm:$0xf0] }
  0xdb   : > { %706 = vmatmul.bf16.gmra.mxu0 %v6387_v57 }
  0xdc   : > { %10069 = vst [vmem:[#allocation9_spill] sm:$0xff] %v6412_v36  ;;  %795 = vmatmul.bf16.gmra.mxu1 %v6410_v34 }
  0xdd   : > { %884 = vmatmul.bf16.gmra.mxu2 %v6387_v57  ;;  %1296 = vmatpush.bf16.msrb.mxu1 %v5235_v29 }
  0xde   : > { %973 = vmatmul.bf16.gmra.mxu3 %v6410_v34 }
  0xe0   : > { %v845_v39 = vpop.f32.mrf.mxu2  ;;  %v669_v42 = vpop.f32.mrf.mxu0 }
  0xe1   : > { %v934_v41 = vpop.f32.mrf.mxu3  ;;  %v758_v44 = vpop.f32.mrf.mxu1 }
  0xe2   : > { %v6418_v43 = vadd.f32 %v934_v41, %v845_v39  ;;  %v6423_v47 = vadd.f32 %v758_v44, %v669_v42  ;;  %v6445_v42 = vsel %vm411_vm0, %v433_v49, %v435_v26  ;;  %v437_v49 = vrot.slane %v5559_v60, 1 }
  0xe4   : > { %10070 = vst [vmem:[#allocation10_spill] sm:$0xff] %v6418_v43 }
  0xe5   : > { %10071 = vst [vmem:[#allocation11_spill] sm:$0xff] %v6423_v47 }
  0xe8   : > { %v847_v50 = vpop.f32.mrf.mxu2  ;;  %v672_v52 = vpop.f32.mrf.mxu0 }
  0xe9   : > { %v936_v51 = vpop.f32.mrf.mxu3  ;;  %v761_v54 = vpop.f32.mrf.mxu1 }
  0xea   : > { %v6426_v53 = vadd.f32 %v936_v51, %v847_v50  ;;  %v6431_v58 = vadd.f32 %v761_v54, %v672_v52 }
  0xeb   : > { %711 = vmatmul.bf16.gmra.mxu0 %v6402_v14 }
  0xec   : > { %10072 = vst [vmem:[#allocation12_spill] sm:$0xff] %v6426_v53  ;;  %800 = vmatmul.bf16.gmra.mxu1 %v6429_v55 }
  0xed   : > { %10073 = vst [vmem:[#allocation13_spill] sm:$0xff] %v6431_v58  ;;  %889 = vmatmul.bf16.gmra.mxu2 %v6402_v14 }
  0xee   : > { %978 = vmatmul.bf16.gmra.mxu3 %v6429_v55 }
  0xf0   : > { %v850_v6 = vpop.f32.mrf.mxu2  ;;  %v674_v9 = vpop.f32.mrf.mxu0 }
  0xf1   : > { %v939_v8 = vpop.f32.mrf.mxu3  ;;  %v763_v11 = vpop.f32.mrf.mxu1 }
  0xf2   : > { %v6437_v10 = vadd.f32 %v939_v8, %v850_v6  ;;  %v6440_v19 = vadd.f32 %v763_v11, %v674_v9  ;;  %v6461_v9 = vsel %vm411_vm0, %v435_v26, %v437_v49 }
  0xf3   : > { %10081 = vst [vmem:[#allocation21_spill] sm:$0xff] %v6461_v9 }
  0xf4   : > { %10074 = vst [vmem:[#allocation14_spill] sm:$0xff] %v6437_v10 }
  0xf5   : > { %10075 = vst [vmem:[#allocation15_spill] sm:$0xff] %v6440_v19 }
  0xf8   : > { %v852_v30 = vpop.f32.mrf.mxu2  ;;  %v677_v33 = vpop.f32.mrf.mxu0 }
  0xf9   : > { %v941_v31 = vpop.f32.mrf.mxu3  ;;  %v766_v41 = vpop.f32.mrf.mxu1 }
  0xfa   : > { %v6442_v39 = vadd.f32 %v941_v31, %v852_v30  ;;  %v6447_v44 = vadd.f32 %v766_v41, %v677_v33  ;;  %v5231_v30 = vor.u32 %v5610_v25, %v5228_v28 }
  0xfb   : > { %716 = vmatmul.bf16.gmra.mxu0 %v6421_v45 }
  0xfc   : > { %10076 = vst [vmem:[#allocation16_spill] sm:$0xff] %v6442_v39  ;;  %805 = vmatmul.bf16.gmra.mxu1 %v6445_v42  ;;  %1475 = vmatpush.bf16.msrb.mxu3 %v5231_v30 }
  0xfd   : > { %10077 = vst [vmem:[#allocation17_spill] sm:$0xff] %v6447_v44  ;;  %894 = vmatmul.bf16.gmra.mxu2 %v6421_v45 }
  0xfe   : > { %983 = vmatmul.bf16.gmra.mxu3 %v6445_v42 }
 0x100   : > { %v855_v50 = vpop.f32.mrf.mxu2  ;;  %v679_v52 = vpop.f32.mrf.mxu0 }
 0x101   : > { %v944_v51 = vpop.f32.mrf.mxu3  ;;  %v768_v59 = vpop.f32.mrf.mxu1 }
 0x102   : > { %v6453_v54 = vadd.f32 %v944_v51, %v855_v50  ;;  %v6456_v3 = vadd.f32 %v768_v59, %v679_v52  ;;  %v5560_v50 = vld [vmem:[%s6284_s21 + $0x70] sm:$0xff]  ;;  %v5595_v52 = vld [vmem:[#allocation4 + $0x14] sm:$0xf0] }
 0x103   : > { %v5226_v59 = vld [vmem:[#allocation4 + $0x108] sm:$0xf] }
 0x104   : > { %10078 = vst [vmem:[#allocation18_spill] sm:$0xff] %v6453_v54 }
 0x105   : > { %10079 = vst [vmem:[#allocation19_spill] sm:$0xff] %v6456_v3 }
 0x108   : > { %v857_v4 = vpop.f32.mrf.mxu2  ;;  %v682_v6 = vpop.f32.mrf.mxu0 }
 0x109   : > { %v946_v5 = vpop.f32.mrf.mxu3  ;;  %v771_v8 = vpop.f32.mrf.mxu1 }
 0x10a   : > { %v6458_v7 = vadd.f32 %v946_v5, %v857_v4  ;;  %v6463_v11 = vadd.f32 %v771_v8, %v682_v6  ;;  %v439_v4 = vrot.slane %v5560_v50, 1  ;;  %v5611_v6 = vld [vmem:[#allocation4 + $0x114] sm:$0xf0] }
 0x10b   : > { %721 = vmatmul.bf16.gmra.mxu0 %v5558_v13  ;;  %v5227_v8 = vor.u32 %v5611_v6, %v5226_v59  ;;  %v5561_v59 = vld [vmem:[%s6284_s21 + $0x78] sm:$0xff] }
 0x10c   : > { %10080 = vst [vmem:[#allocation20_spill] sm:$0xff] %v6458_v7  ;;  %810 = vmatmul.bf16.gmra.mxu1 %v6461_v9 }
 0x10d   : > { %10082 = vst [vmem:[#allocation22_spill] sm:$0xff] %v6463_v11  ;;  %899 = vmatmul.bf16.gmra.mxu2 %v5558_v13  ;;  %v5162_v13 = vld [vmem:[#allocation4 + $0x8] sm:$0xf]  ;;  %1297 = vmatpush.bf16.msrb.mxu1 %v5227_v8 }
 0x10e   : > { %988 = vmatmul.bf16.gmra.mxu3 %v6461_v9  ;;  %v5163_v5 = vor.u32 %v5595_v52, %v5162_v13 }
 0x110   : > { %v860_v29 = vpop.f32.mrf.mxu2  ;;  %v684_v33 = vpop.f32.mrf.mxu0  ;;  %1208 = vmatpush.bf16.msrb.mxu0 %v5163_v5 }
 0x111   : > { %v949_v31 = vpop.f32.mrf.mxu3  ;;  %v773_v41 = vpop.f32.mrf.mxu1 }
 0x112   : > { %v6467_v26 = vadd.f32 %v949_v31, %v860_v29  ;;  %v6470_v51 = vadd.f32 %v773_v41, %v684_v33  ;;  %v6475_v29 = vsel %vm411_vm0, %v437_v49, %v439_v4  ;;  %v441_v49 = vrot.slane %v5561_v59, 1 }
 0x113   : > { %10086 = vst [vmem:[#allocation26_spill] sm:$0xff] %v6475_v29 }
 0x114   : > { %10083 = vst [vmem:[#allocation23_spill] sm:$0xff] %v6467_v26 }
 0x115   : > { %10084 = vst [vmem:[#allocation24_spill] sm:$0xff] %v6470_v51  ;;  %v5689_v51 = vld [vmem:[#allocation6 + $0x1f4] sm:$0xf0] }
 0x118   : > { %v862_v21 = vpop.f32.mrf.mxu2  ;;  %v687_v25 = vpop.f32.mrf.mxu0 }
 0x119   : > { %v951_v22 = vpop.f32.mrf.mxu3  ;;  %v776_v28 = vpop.f32.mrf.mxu1 }
 0x11a   : > { %v6472_v27 = vadd.f32 %v951_v22, %v862_v21  ;;  %v6477_v30 = vadd.f32 %v776_v28, %v687_v25 }
 0x11b   : > { %726 = vmatmul.bf16.gmra.mxu0 %v5559_v60 }
 0x11c   : > { %10085 = vst [vmem:[#allocation25_spill] sm:$0xff] %v6472_v27  ;;  %815 = vmatmul.bf16.gmra.mxu1 %v6475_v29 }
 0x11d   : > { %10087 = vst [vmem:[#allocation27_spill] sm:$0xff] %v6477_v30  ;;  %904 = vmatmul.bf16.gmra.mxu2 %v5559_v60  ;;  %v6489_v60 = vsel %vm411_vm0, %v439_v4, %v441_v49 }
 0x11e   : > { %993 = vmatmul.bf16.gmra.mxu3 %v6475_v29  ;;  %10091 = vst [vmem:[#allocation31_spill] sm:$0xff] %v6489_v60  ;;  %v311_v29 = vld [vmem:[%s6284_s21 + $0x80] sm:$0xf] }
 0x120   : > { %v865_v31 = vpop.f32.mrf.mxu2  ;;  %v689_v41 = vpop.f32.mrf.mxu0 }
 0x121   : > { %v954_v33 = vpop.f32.mrf.mxu3  ;;  %v778_v52 = vpop.f32.mrf.mxu1 }
 0x122   : > { %v6481_v13 = vadd.f32 %v954_v33, %v865_v31  ;;  %v6484_v5 = vadd.f32 %v778_v52, %v689_v41  ;;  %v409_v31 = vunpack.c.l.b16 %v311_v29  ;;  %v5672_v33 = vld [vmem:[#allocation6 + $0x174] sm:$0xf]  ;;  %v5348_v41 = vld [vmem:[#allocation6 + $0x178] sm:$0xf0]  ;;  %v5410_v29 = vld [vmem:[#allocation6 + $0x1f0] sm:$0xf] }
 0x123   : > { %v5688_v52 = vld [vmem:[#allocation6 + $0x1f4] sm:$0xf]  ;;  %v5351_v9 = vor.u32 %v5672_v33, %v5348_v41  ;;  %v5411_v33 = vor.u32 %v5689_v51, %v5410_v29 }
 0x124   : > { %10088 = vst [vmem:[#allocation28_spill] sm:$0xff] %v6481_v13 }
 0x125   : > { %10089 = vst [vmem:[#allocation29_spill] sm:$0xff] %v6484_v5  ;;  %3245 = vmatpush.bf16.msra.mxu2 %v5351_v9  ;;  %3156 = vmatpush.bf16.msra.mxu1 %v5411_v33 }
 0x128   : > { %v867_v6 = vpop.f32.mrf.mxu2  ;;  %v692_v21 = vpop.f32.mrf.mxu0 }
 0x129   : > { %v956_v8 = vpop.f32.mrf.mxu3  ;;  %v781_v25 = vpop.f32.mrf.mxu1 }
 0x12a   : > { %v6486_v22 = vadd.f32 %v956_v8, %v867_v6  ;;  %v6491_v28 = vadd.f32 %v781_v25, %v692_v21  ;;  %v5412_v6 = vld [vmem:[#allocation6 + $0x1f8] sm:$0xf0] }
 0x12b   : > { %731 = vmatmul.bf16.gmra.mxu0 %v5560_v50 }
 0x12c   : > { %10090 = vst [vmem:[#allocation30_spill] sm:$0xff] %v6486_v22  ;;  %820 = vmatmul.bf16.gmra.mxu1 %v6489_v60  ;;  %v5415_v22 = vor.u32 %v5688_v52, %v5412_v6 }
 0x12d   : > { %10092 = vst [vmem:[#allocation32_spill] sm:$0xff] %v6491_v28  ;;  %909 = vmatmul.bf16.gmra.mxu2 %v5560_v50  ;;  %v410_v28 = vpack.c.b16 %v409_v31, %v409_v31  ;;  %v5346_v50 = vld [vmem:[#allocation6 + $0x170] sm:$0xf] }
 0x12e   : > { %998 = vmatmul.bf16.gmra.mxu3 %v6489_v60  ;;  %v5673_v60 = vld [vmem:[#allocation6 + $0x174] sm:$0xf0] }
 0x12f   : > { %3334 = vmatpush.bf16.msra.mxu3 %v5415_v22  ;;  %v443_v30 = vrot.slane %v410_v28, 1  ;;  %v5347_v27 = vor.u32 %v5673_v60, %v5346_v50 }
 0x130   : > { %v870_v8 = vpop.f32.mrf.mxu2  ;;  %v694_v4 = vpop.f32.mrf.mxu0 }
 0x131   : > { %v959_v5 = vpop.f32.mrf.mxu3  ;;  %v783_v25 = vpop.f32.mrf.mxu1  ;;  %3067 = vmatpush.bf16.msra.mxu0 %v5347_v27  ;;  %v6503_v31 = vsel %vm411_vm0, %v441_v49, %v443_v30 }
 0x132   : > { %v6496_v21 = vadd.f32 %v959_v5, %v870_v8  ;;  %v6498_v13 = vadd.f32 %v783_v25, %v694_v4  ;;  %10096 = vst [vmem:[#allocation36_spill] sm:$0xff] %v6503_v31 }
 0x134   : > { %10093 = vst [vmem:[#allocation33_spill] sm:$0xff] %v6496_v21 }
 0x135   : > { %10094 = vst [vmem:[#allocation34_spill] sm:$0xff] %v6498_v13 }
 0x138   : > { %v872_v41 = vpop.f32.mrf.mxu2  ;;  %v697_v6 = vpop.f32.mrf.mxu0 }
 0x139   : > { %v961_v52 = vpop.f32.mrf.mxu3  ;;  %v786_v5 = vpop.f32.mrf.mxu1 }
 0x13a   : > { %v6500_v9 = vadd.f32 %v961_v52, %v872_v41  ;;  %v6505_v22 = vadd.f32 %v786_v5, %v697_v6  ;;  %v5340_v41 = vld [vmem:[#allocation6 + $0x168] sm:$0xf0]  ;;  %v5686_v52 = vld [vmem:[#allocation6 + $0x1e4] sm:$0xf] }
 0x13b   : > { %736 = vmatmul.bf16.gmra.mxu0 %v5561_v59  ;;  %v5404_v5 = vld [vmem:[#allocation6 + $0x1e8] sm:$0xf0] }
 0x13c   : > { %10095 = vst [vmem:[#allocation35_spill] sm:$0xff] %v6500_v9  ;;  %825 = vmatmul.bf16.gmra.mxu1 %v6503_v31 }
 0x13d   : > { %10097 = vst [vmem:[#allocation37_spill] sm:$0xff] %v6505_v22  ;;  %914 = vmatmul.bf16.gmra.mxu2 %v5561_v59  ;;  %v5670_v59 = vld [vmem:[#allocation6 + $0x164] sm:$0xf] }
 0x13e   : > { %1003 = vmatmul.bf16.gmra.mxu3 %v6503_v31  ;;  %v5343_v6 = vor.u32 %v5670_v59, %v5340_v41  ;;  %v5402_v31 = vld [vmem:[#allocation6 + $0x1e0] sm:$0xf] }
 0x140   : > { %v875_v51 = vpop.f32.mrf.mxu2  ;;  %v699_v27 = vpop.f32.mrf.mxu0  ;;  %3246 = vmatpush.bf16.msra.mxu2 %v5343_v6 }
 0x141   : > { %v964_v60 = vpop.f32.mrf.mxu3  ;;  %v788_v8 = vpop.f32.mrf.mxu1 }
 0x142   : > { %v6509_v28 = vadd.f32 %v964_v60, %v875_v51  ;;  %v6511_v4 = vadd.f32 %v788_v8, %v699_v27  ;;  %v5407_v60 = vor.u32 %v5686_v52, %v5404_v5 }
 0x144   : > { %10098 = vst [vmem:[#allocation38_spill] sm:$0xff] %v6509_v28  ;;  %3335 = vmatpush.bf16.msra.mxu3 %v5407_v60 }
 0x145   : > { %10099 = vst [vmem:[#allocation39_spill] sm:$0xff] %v6511_v4 }
 0x148   : > { %v877_v25 = vpop.f32.mrf.mxu2  ;;  %v702_v30 = vpop.f32.mrf.mxu0 }
 0x149   : > { %v966_v50 = vpop.f32.mrf.mxu3  ;;  %v791_v29 = vpop.f32.mrf.mxu1 }
 0x14a   : > { %v6513_v49 = vadd.f32 %v966_v50, %v877_v25  ;;  %v6515_v33 = vadd.f32 %v791_v29, %v702_v30  ;;  %v5338_v29 = vld [vmem:[#allocation6 + $0x160] sm:$0xf] }
 0x14b   : > { %1209 = vmatmul.bf16.vlgmr.msrb.gmra.mxu0 %v6295_v23 }
 0x14c   : > { %10100 = vst [vmem:[#allocation40_spill] sm:$0xff] %v6513_v49  ;;  %1298 = vmatmul.bf16.vlgmr.msrb.gmra.mxu1 %v6303_v46 }
 0x14d   : > { %10101 = vst [vmem:[#allocation41_spill] sm:$0xff] %v6515_v33  ;;  %1387 = vmatmul.bf16.vlgmr.msrb.gmra.mxu2 %v6295_v23  ;;  %v5671_v23 = vld [vmem:[#allocation6 + $0x164] sm:$0xf0] }
 0x14e   : > { %1476 = vmatmul.bf16.vlgmr.msrb.gmra.mxu3 %v6303_v46  ;;  %v5339_v46 = vor.u32 %v5671_v23, %v5338_v29  ;;  %v5687_v33 = vld [vmem:[#allocation6 + $0x1e4] sm:$0xf0] }
 0x14f   : > { %v5403_v49 = vor.u32 %v5687_v33, %v5402_v31 }
 0x150   : > { %v880_v51 = vpop.f32.mrf.mxu2  ;;  %v704_v8 = vpop.f32.mrf.mxu0  ;;  %3068 = vmatpush.bf16.msra.mxu0 %v5339_v46 }
 0x151   : > { %v969_v27 = vpop.f32.mrf.mxu3  ;;  %v793_v50 = vpop.f32.mrf.mxu1  ;;  %3157 = vmatpush.bf16.msra.mxu1 %v5403_v49 }
 0x152   : > { %v6521_v25 = vadd.f32 %v969_v27, %v880_v51  ;;  %v6523_v30 = vadd.f32 %v793_v50, %v704_v8 }
 0x154   : > { %10102 = vst [vmem:[#allocation42_spill] sm:$0xff] %v6521_v25 }
 0x155   : > { %10103 = vst [vmem:[#allocation43_spill] sm:$0xff] %v6523_v30 }
 0x158   : > { %v882_v4 = vpop.f32.mrf.mxu2  ;;  %v707_v41 = vpop.f32.mrf.mxu0 }
 0x159   : > { %v971_v59 = vpop.f32.mrf.mxu3  ;;  %v796_v6 = vpop.f32.mrf.mxu1 }
 0x15a   : > { %v6525_v52 = vadd.f32 %v971_v59, %v882_v4  ;;  %v6527_v5 = vadd.f32 %v796_v6, %v707_v41  ;;  %v5684_v59 = vld [vmem:[#allocation6 + $0x1d4] sm:$0xf]  ;;  %v5396_v6 = vld [vmem:[#allocation6 + $0x1d8] sm:$0xf0] }
 0x15b   : > { %1214 = vmatmul.bf16.gmra.mxu0 %v6298_v24 }
 0x15c   : > { %10104 = vst [vmem:[#allocation44_spill] sm:$0xff] %v6525_v52  ;;  %1303 = vmatmul.bf16.gmra.mxu1 %v6314_v63 }
 0x15d   : > { %10105 = vst [vmem:[#allocation45_spill] sm:$0xff] %v6527_v5  ;;  %1392 = vmatmul.bf16.gmra.mxu2 %v6298_v24  ;;  %v5668_v24 = vld [vmem:[#allocation6 + $0x154] sm:$0xf] }
 0x15e   : > { %1481 = vmatmul.bf16.gmra.mxu3 %v6314_v63  ;;  %v5332_v63 = vld [vmem:[#allocation6 + $0x158] sm:$0xf0] }
 0x15f   : > { %v5335_v41 = vor.u32 %v5668_v24, %v5332_v63 }
 0x160   : > { %v885_v51 = vpop.f32.mrf.mxu2  ;;  %v709_v33 = vpop.f32.mrf.mxu0 }
 0x161   : > { %v974_v31 = vpop.f32.mrf.mxu3  ;;  %v798_v27 = vpop.f32.mrf.mxu1  ;;  %3247 = vmatpush.bf16.msra.mxu2 %v5335_v41 }
 0x162   : > { %v6533_v60 = vadd.f32 %v974_v31, %v885_v51  ;;  %v6535_v49 = vadd.f32 %v798_v27, %v709_v33  ;;  %v5399_v31 = vor.u32 %v5684_v59, %v5396_v6 }
 0x164   : > { %10106 = vst [vmem:[#allocation46_spill] sm:$0xff] %v6533_v60  ;;  %3336 = vmatpush.bf16.msra.mxu3 %v5399_v31 }
 0x165   : > { %10107 = vst [vmem:[#allocation47_spill] sm:$0xff] %v6535_v49 }
 0x168   : > { %v887_v4 = vpop.f32.mrf.mxu2  ;;  %v712_v50 = vpop.f32.mrf.mxu0 }
 0x169   : > { %v976_v8 = vpop.f32.mrf.mxu3  ;;  %v801_v23 = vpop.f32.mrf.mxu1 }
 0x16a   : > { %v6537_v29 = vadd.f32 %v976_v8, %v887_v4  ;;  %v6539_v46 = vadd.f32 %v801_v23, %v712_v50  ;;  %v5330_v23 = vld [vmem:[#allocation6 + $0x150] sm:$0xf] }
 0x16b   : > { %1219 = vmatmul.bf16.gmra.mxu0 %v6310_v61 }
 0x16c   : > { %10108 = vst [vmem:[#allocation48_spill] sm:$0xff] %v6537_v29  ;;  %1308 = vmatmul.bf16.gmra.mxu1 %v6325_v2  ;;  %v5685_v29 = vld [vmem:[#allocation6 + $0x1d4] sm:$0xf0] }
 0x16d   : > { %10109 = vst [vmem:[#allocation49_spill] sm:$0xff] %v6539_v46  ;;  %1397 = vmatmul.bf16.gmra.mxu2 %v6310_v61  ;;  %v5669_v61 = vld [vmem:[#allocation6 + $0x154] sm:$0xf0]  ;;  %v5394_v46 = vld [vmem:[#allocation6 + $0x1d0] sm:$0xf] }
 0x16e   : > { %1486 = vmatmul.bf16.gmra.mxu3 %v6325_v2  ;;  %v5331_v2 = vor.u32 %v5669_v61, %v5330_v23  ;;  %v5395_v49 = vor.u32 %v5685_v29, %v5394_v46 }
 0x170   : > { %v890_v51 = vpop.f32.mrf.mxu2  ;;  %v714_v27 = vpop.f32.mrf.mxu0  ;;  %3069 = vmatpush.bf16.msra.mxu0 %v5331_v2  ;;  %3158 = vmatpush.bf16.msra.mxu1 %v5395_v49 }
 0x171   : > { %v979_v33 = vpop.f32.mrf.mxu3  ;;  %v803_v8 = vpop.f32.mrf.mxu1 }
 0x172   : > { %v6545_v4 = vadd.f32 %v979_v33, %v890_v51  ;;  %v6547_v50 = vadd.f32 %v803_v8, %v714_v27 }
 0x174   : > { %10110 = vst [vmem:[#allocation50_spill] sm:$0xff] %v6545_v4 }
 0x175   : > { %10111 = vst [vmem:[#allocation51_spill] sm:$0xff] %v6547_v50 }
 0x178   : > { %v892_v60 = vpop.f32.mrf.mxu2  ;;  %v717_v63 = vpop.f32.mrf.mxu0 }
 0x179   : > { %v981_v24 = vpop.f32.mrf.mxu3  ;;  %v806_v41 = vpop.f32.mrf.mxu1 }
 0x17a   : > { %v6549_v59 = vadd.f32 %v981_v24, %v892_v60  ;;  %v6551_v6 = vadd.f32 %v806_v41, %v717_v63  ;;  %v5682_v24 = vld [vmem:[#allocation6 + $0x1c4] sm:$0xf]  ;;  %v5388_v41 = vld [vmem:[#allocation6 + $0x1c8] sm:$0xf0] }
 0x17b   : > { %1224 = vmatmul.bf16.gmra.mxu0 %v6321_v0 }
 0x17c   : > { %10112 = vst [vmem:[#allocation52_spill] sm:$0xff] %v6549_v59  ;;  %1313 = vmatmul.bf16.gmra.mxu1 %v6336_v17 }
 0x17d   : > { %10113 = vst [vmem:[#allocation53_spill] sm:$0xff] %v6551_v6  ;;  %1402 = vmatmul.bf16.gmra.mxu2 %v6321_v0  ;;  %v5666_v0 = vld [vmem:[#allocation6 + $0x144] sm:$0xf] }
 0x17e   : > { %1491 = vmatmul.bf16.gmra.mxu3 %v6336_v17  ;;  %v5324_v17 = vld [vmem:[#allocation6 + $0x148] sm:$0xf0] }
 0x17f   : > { %v5327_v63 = vor.u32 %v5666_v0, %v5324_v17 }
 0x180   : > { %v895_v51 = vpop.f32.mrf.mxu2  ;;  %v719_v46 = vpop.f32.mrf.mxu0 }
 0x181   : > { %v984_v29 = vpop.f32.mrf.mxu3  ;;  %v808_v33 = vpop.f32.mrf.mxu1  ;;  %3248 = vmatpush.bf16.msra.mxu2 %v5327_v63 }
 0x182   : > { %v6557_v31 = vadd.f32 %v984_v29, %v895_v51  ;;  %v6559_v49 = vadd.f32 %v808_v33, %v719_v46  ;;  %v5391_v29 = vor.u32 %v5682_v24, %v5388_v41 }
 0x184   : > { %10114 = vst [vmem:[#allocation54_spill] sm:$0xff] %v6557_v31  ;;  %3337 = vmatpush.bf16.msra.mxu3 %v5391_v29 }
 0x185   : > { %10115 = vst [vmem:[#allocation55_spill] sm:$0xff] %v6559_v49 }
 0x188   : > { %v897_v60 = vpop.f32.mrf.mxu2  ;;  %v722_v8 = vpop.f32.mrf.mxu0 }
 0x189   : > { %v986_v27 = vpop.f32.mrf.mxu3  ;;  %v811_v61 = vpop.f32.mrf.mxu1 }
 0x18a   : > { %v6561_v23 = vadd.f32 %v986_v27, %v897_v60  ;;  %v6563_v2 = vadd.f32 %v811_v61, %v722_v8  ;;  %v5322_v61 = vld [vmem:[#allocation6 + $0x140] sm:$0xf] }
 0x18b   : > { %1229 = vmatmul.bf16.gmra.mxu0 %v6332_v15 }
 0x18c   : > { %10116 = vst [vmem:[#allocation56_spill] sm:$0xff] %v6561_v23  ;;  %1318 = vmatmul.bf16.gmra.mxu1 %v6347_v20  ;;  %v5683_v23 = vld [vmem:[#allocation6 + $0x1c4] sm:$0xf0] }
 0x18d   : > { %10117 = vst [vmem:[#allocation57_spill] sm:$0xff] %v6563_v2  ;;  %1407 = vmatmul.bf16.gmra.mxu2 %v6332_v15  ;;  %v5667_v15 = vld [vmem:[#allocation6 + $0x144] sm:$0xf0]  ;;  %v5386_v2 = vld [vmem:[#allocation6 + $0x1c0] sm:$0xf] }
 0x18e   : > { %1496 = vmatmul.bf16.gmra.mxu3 %v6347_v20  ;;  %v5323_v20 = vor.u32 %v5667_v15, %v5322_v61  ;;  %v5387_v49 = vor.u32 %v5683_v23, %v5386_v2 }
 0x190   : > { %v900_v51 = vpop.f32.mrf.mxu2  ;;  %v724_v33 = vpop.f32.mrf.mxu0  ;;  %3070 = vmatpush.bf16.msra.mxu0 %v5323_v20  ;;  %3159 = vmatpush.bf16.msra.mxu1 %v5387_v49 }
 0x191   : > { %v989_v46 = vpop.f32.mrf.mxu3  ;;  %v813_v27 = vpop.f32.mrf.mxu1 }
 0x192   : > { %v6569_v60 = vadd.f32 %v989_v46, %v900_v51  ;;  %v6571_v8 = vadd.f32 %v813_v27, %v724_v33 }
 0x194   : > { %10118 = vst [vmem:[#allocation58_spill] sm:$0xff] %v6569_v60 }
 0x195   : > { %10119 = vst [vmem:[#allocation59_spill] sm:$0xff] %v6571_v8 }
 0x198   : > { %v902_v31 = vpop.f32.mrf.mxu2  ;;  %v727_v17 = vpop.f32.mrf.mxu0 }
 0x199   : > { %v991_v0 = vpop.f32.mrf.mxu3  ;;  %v816_v63 = vpop.f32.mrf.mxu1 }
 0x19a   : > { %v6573_v24 = vadd.f32 %v991_v0, %v902_v31  ;;  %v6575_v41 = vadd.f32 %v816_v63, %v727_v17 }
 0x19b   : > { %1234 = vmatmul.bf16.gmra.mxu0 %v6343_v18 }
 0x19c   : > { %10120 = vst [vmem:[#allocation60_spill] sm:$0xff] %v6573_v24  ;;  %1323 = vmatmul.bf16.gmra.mxu1 %v6358_v37 }
 0x19d   : > { %10121 = vst [vmem:[#allocation61_spill] sm:$0xff] %v6575_v41  ;;  %1412 = vmatmul.bf16.gmra.mxu2 %v6343_v18 }
 0x19e   : > { %1501 = vmatmul.bf16.gmra.mxu3 %v6358_v37 }
 0x1a0   : > { %v905_v51 = vpop.f32.mrf.mxu2  ;;  %v729_v2 = vpop.f32.mrf.mxu0 }
 0x1a1   : > { %v994_v23 = vpop.f32.mrf.mxu3  ;;  %v818_v46 = vpop.f32.mrf.mxu1 }
 0x1a2   : > { %v6581_v29 = vadd.f32 %v994_v23, %v905_v51  ;;  %v6583_v49 = vadd.f32 %v818_v46, %v729_v2 }
 0x1a4   : > { %10122 = vst [vmem:[#allocation62_spill] sm:$0xff] %v6581_v29 }
 0x1a5   : > { %10123 = vst [vmem:[#allocation63_spill] sm:$0xff] %v6583_v49 }
 0x1a8   : > { %v907_v31 = vpop.f32.mrf.mxu2  ;;  %v732_v27 = vpop.f32.mrf.mxu0 }
 0x1a9   : > { %v996_v33 = vpop.f32.mrf.mxu3  ;;  %v821_v15 = vpop.f32.mrf.mxu1 }
 0x1aa   : > { %v6585_v61 = vadd.f32 %v996_v33, %v907_v31  ;;  %v6587_v20 = vadd.f32 %v821_v15, %v732_v27 }
 0x1ab   : > { %1239 = vmatmul.bf16.gmra.mxu0 %v6354_v35 }
 0x1ac   : > { %10124 = vst [vmem:[#allocation64_spill] sm:$0xff] %v6585_v61  ;;  %1328 = vmatmul.bf16.gmra.mxu1 %v6369_v40 }
 0x1ad   : > { %10125 = vst [vmem:[#allocation65_spill] sm:$0xff] %v6587_v20  ;;  %1417 = vmatmul.bf16.gmra.mxu2 %v6354_v35 }
 0x1ae   : > { %1506 = vmatmul.bf16.gmra.mxu3 %v6369_v40 }
 0x1b0   : > { %v910_v18 = vpop.f32.mrf.mxu2  ;;  %v734_v0 = vpop.f32.mrf.mxu0 }
 0x1b1   : > { %v999_v37 = vpop.f32.mrf.mxu3  ;;  %v823_v63 = vpop.f32.mrf.mxu1 }
 0x1b2   : > { %v6593_v17 = vadd.f32 %v999_v37, %v910_v18  ;;  %v6595_v51 = vadd.f32 %v823_v63, %v734_v0 }
 0x1b4   : > { %10126 = vst [vmem:[#allocation66_spill] sm:$0xff] %v6593_v17  ;;  %v5380_v17 = vld [vmem:[#allocation6 + $0x1b8] sm:$0xf0] }
 0x1b5   : > { %10127 = vst [vmem:[#allocation67_spill] sm:$0xff] %v6595_v51  ;;  %v5680_v51 = vld [vmem:[#allocation6 + $0x1b4] sm:$0xf] }
 0x1b8   : > { %v912_v23 = vpop.f32.mrf.mxu2  ;;  %v737_v46 = vpop.f32.mrf.mxu0 }
 0x1b9   : > { %v1001_v2 = vpop.f32.mrf.mxu3  ;;  %v826_v33 = vpop.f32.mrf.mxu1 }
 0x1ba   : > { %v6597_v31 = vadd.f32 %v1001_v2, %v912_v23  ;;  %v6599_v27 = vadd.f32 %v826_v33, %v737_v46 }
 0x1bb   : > { %1244 = vmatmul.bf16.gmra.mxu0 %v6365_v38 }
 0x1bc   : > { %10128 = vst [vmem:[#allocation68_spill] sm:$0xff] %v6597_v31  ;;  %1333 = vmatmul.bf16.gmra.mxu1 %v6380_v56  ;;  %v5664_v31 = vld [vmem:[#allocation6 + $0x134] sm:$0xf] }
 0x1bd   : > { %10129 = vst [vmem:[#allocation69_spill] sm:$0xff] %v6599_v27  ;;  %1422 = vmatmul.bf16.gmra.mxu2 %v6365_v38  ;;  %v5316_v38 = vld [vmem:[#allocation6 + $0x138] sm:$0xf0] }
 0x1be   : > { %1511 = vmatmul.bf16.gmra.mxu3 %v6380_v56  ;;  %v5319_v56 = vor.u32 %v5664_v31, %v5316_v38 }
 0x1c0   : > { %v915_v35 = vpop.f32.mrf.mxu2  ;;  %v739_v15 = vpop.f32.mrf.mxu0  ;;  %3249 = vmatpush.bf16.msra.mxu2 %v5319_v56  ;;  %v5665_v56 = vld [vmem:[#allocation6 + $0x134] sm:$0xf0] }
 0x1c1   : > { %v1004_v40 = vpop.f32.mrf.mxu3  ;;  %v828_v37 = vpop.f32.mrf.mxu1 }
 0x1c2   : > { %v6605_v18 = vadd.f32 %v1004_v40, %v915_v35  ;;  %v6607_v0 = vadd.f32 %v828_v37, %v739_v15  ;;  %v1557_v35 = vmul.f32 %v6393_v1, %v6393_v1  ;;  %v5383_v15 = vor.u32 %v5680_v51, %v5380_v17  ;;  %v5314_v51 = vld [vmem:[#allocation6 + $0x130] sm:$0xf] }
 0x1c4   : > { %10130 = vst [vmem:[#allocation70_spill] sm:$0xff] %v6605_v18  ;;  %3338 = vmatpush.bf16.msra.mxu3 %v5383_v15  ;;  %v5315_v15 = vor.u32 %v5665_v56, %v5314_v51 }
 0x1c5   : > { %10131 = vst [vmem:[#allocation71_spill] sm:$0xff] %v6607_v0 }
 0x1c6   : > { %3071 = vmatpush.bf16.msra.mxu0 %v5315_v15 }
 0x1c8   : > { %v917_v63 = vpop.f32.mrf.mxu2  ;;  %v1210_v2 = vpop.f32.mrf.mxu0 }
 0x1c9   : > { %v1006_v23 = vpop.f32.mrf.mxu3  ;;  %v1299_v33 = vpop.f32.mrf.mxu1 }
 0x1ca   : > { %v6609_v46 = vadd.f32 %v1006_v23, %v917_v63  ;;  %v6611_v27 = vadd.f32 %v1299_v33, %v1210_v2 }
 0x1cb   : > { %1249 = vmatmul.bf16.gmra.mxu0 %v6376_v48 }
 0x1cc   : > { %10132 = vst [vmem:[#allocation72_spill] sm:$0xff] %v6609_v46  ;;  %v1621_v40 = vmul.f32 %v6611_v27, %v6611_v27  ;;  %1338 = vmatmul.bf16.gmra.mxu1 %v6391_v62 }
 0x1cd   : > { %10133 = vst [vmem:[#allocation73_spill] sm:$0xff] %v6611_v27  ;;  %1427 = vmatmul.bf16.gmra.mxu2 %v6376_v48  ;;  %v1558_v27 = vmul.f32 %v6399_v12, %v6399_v12 }
 0x1ce   : > { %1516 = vmatmul.bf16.gmra.mxu3 %v6391_v62  ;;  %v1685_v37 = vadd.f32 %v1621_v40, %v1557_v35  ;;  %v1559_v62 = vmul.f32 %v6404_v16, %v6404_v16  ;;  %v5378_v35 = vld [vmem:[#allocation6 + $0x1b0] sm:$0xf] }
 0x1d0   : > { %v1388_v63 = vpop.f32.mrf.mxu2  ;;  %v1750_v23 = vadd.f32 1.1754944e-38, %v1685_v37  ;;  %v1212_v2 = vpop.f32.mrf.mxu0  ;;  %v5681_v37 = vld [vmem:[#allocation6 + $0x1b4] sm:$0xf0] }
 0x1d1   : > { %v1477_v31 = vpop.f32.mrf.mxu3  ;;  %v1301_v38 = vpop.f32.mrf.mxu1 }
 0x1d2   : > { %v6621_v33 = vadd.f32 %v1477_v31, %v1388_v63  ;;  %5893 = vrsqrt.f32 %v1750_v23  ;;  %v6623_v46 = vadd.f32 %v1301_v38, %v1212_v2  ;;  %v5379_v31 = vor.u32 %v5681_v37, %v5378_v35 }
 0x1d3   : > { %vm1820_vm2 = vweird.f32 %v1750_v23 }
 0x1d4   : > { %10134 = vst [vmem:[#allocation74_spill] sm:$0xff] %v6621_v33  ;;  %v1622_v48 = vmul.f32 %v6621_v33, %v6621_v33  ;;  %v1623_v17 = vmul.f32 %v6623_v46, %v6623_v46  ;;  %3160 = vmatpush.bf16.msra.mxu1 %v5379_v31 }
 0x1d5   : > { %10135 = vst [vmem:[#allocation75_spill] sm:$0xff] %v6623_v46 }
 0x1d6   : > { %v1686_v40 = vadd.f32 %v1622_v48, %v1558_v27  ;;  %v1687_v63 = vadd.f32 %v1623_v17, %v1559_v62  ;;  %v1560_v27 = vmul.f32 %v6407_v32, %v6407_v32 }
 0x1d8   : > { %v1751_v2 = vadd.f32 1.1754944e-38, %v1686_v40  ;;  %v1390_v38 = vpop.f32.mrf.mxu2  ;;  %v5894_v0 = vpop.eup %5893  ;;  %v1752_v18 = vadd.f32 1.1754944e-38, %v1687_v63 }
 0x1d9   : > { %v1479_v33 = vpop.f32.mrf.mxu3  ;;  %v1215_v20 = vpop.f32.mrf.mxu0  ;;  %v1815_v61 = vmul.f32 %v5894_v0, %v1750_v23  ;;  %vm1821_vm1 = vweird.f32 %v5894_v0 }
 0x1da   : > { %5895 = vrsqrt.f32 %v1751_v2  ;;  %v1304_v49 = vpop.f32.mrf.mxu1  ;;  %v6633_v46 = vadd.f32 %v1479_v33, %v1390_v38  ;;  %vm1822_vm3 = vmor %vm1820_vm2, %vm1821_vm1  ;;  %vm1830_vm6 = vweird.f32 %v1751_v2  ;;  %vm1840_vm8 = vweird.f32 %v1752_v18 }
 0x1db   : > { %5897 = vrsqrt.f32 %v1752_v18  ;;  %v1816_v29 = vmul.f32 %v5894_v0, %v1815_v61  ;;  %1254 = vmatmul.bf16.gmra.mxu0 %v6387_v57  ;;  %v1749_v61 = vld [vmem:[%s9920_s3] sm:$0x3] }
 0x1dc   : > { %10136 = vst [vmem:[#allocation76_spill] sm:$0xff] %v6633_v46  ;;  %v1624_v48 = vmul.f32 %v6633_v46, %v6633_v46  ;;  %1343 = vmatmul.bf16.gmra.mxu1 %v6410_v34  ;;  %v6654_v31 = vperm.slane %v1749_v61, 0 }
 0x1dd   : > { %1432 = vmatmul.bf16.gmra.mxu2 %v6387_v57  ;;  %v1817_v62 = vmul.f32 0.5, %v1816_v29 }
 0x1de   : > { %1521 = vmatmul.bf16.gmra.mxu3 %v6410_v34  ;;  %v1688_v17 = vadd.f32 %v1624_v48, %v1560_v27 }
 0x1df   : > { %v1818_v33 = vsub.f32 1.5, %v1817_v62 }
 0x1e0   : > { %v5896_v51 = vpop.eup %5895  ;;  %v6646_v56 = vpop.f32.mrf.mxu2  ;;  %v6648_v15 = vadd.f32 1.1754944e-38, %v1688_v17 }
 0x1e1   : > { %v5898_v35 = vpop.eup %5897  ;;  %v1825_v40 = vmul.f32 %v5896_v51, %v1751_v2  ;;  %v1482_v37 = vpop.f32.mrf.mxu3  ;;  %v1819_v57 = vmul.f32 %v5894_v0, %v1818_v33  ;;  %vm1831_vm4 = vweird.f32 %v5896_v51 }
 0x1e2   : > { %v6650_v63 = vpop.f32.mrf.mxu0  ;;  %v1835_v34 = vmul.f32 %v5898_v35, %v1752_v18  ;;  %v6652_v29 = vpop.f32.mrf.mxu1  ;;  %5899 = vrsqrt.f32 %v6648_v15  ;;  %vm1841_vm5 = vweird.f32 %v5898_v35  ;;  %vm6662_vm7 = vmor %vm1830_vm6, %vm1831_vm4  ;;  %vm1850_vm11 = vweird.f32 %v6648_v15 }
 0x1e3   : > { %v1826_v38 = vmul.f32 %v5896_v51, %v1825_v40  ;;  %v1823_v27 = vsel %vm1822_vm3, %v5894_v0, %v1819_v57  ;;  %vm1842_vm9 = vmor %vm1840_vm8, %vm1841_vm5 }
 0x1e4   : > { %v1836_v48 = vmul.f32 %v5898_v35, %v1835_v34  ;;  %v2459_v17 = vmul.f32 %v6654_v31, %v1823_v27  ;;  %v6667_v34 = vadd.f32 %v1304_v49, %v1215_v20  ;;  %v6669_v27 = vperm.slane %v1749_v61, 1 }
 0x1e5   : > { %v1827_v62 = vmul.f32 0.5, %v1826_v38  ;;  %v1561_v61 = vmul.f32 %v6412_v36, %v6412_v36 }
 0x1e6   : > { %v1837_v46 = vmul.f32 0.5, %v1836_v48  ;;  %v2523_v38 = vsub.f32 1.0, %v2459_v17  ;;  %v1625_v20 = vmul.f32 %v6667_v34, %v6667_v34  ;;  %v5662_v17 = vld [vmem:[#allocation6 + $0x124] sm:$0xf] }
 0x1e7   : > { %v1828_v41 = vsub.f32 1.5, %v1827_v62 }
 0x1e8   : > { %v1838_v24 = vsub.f32 1.5, %v1837_v46  ;;  %v6658_v23 = vpop.f32.mrf.mxu2  ;;  %v5900_v33 = vpop.eup %5899  ;;  %v6683_v6 = vmax.f32 %v2523_v38, 0.0  ;;  %v6692_v38 = vadd.f32 %v1482_v37, %v6646_v56 }
 0x1e9   : > { %v1829_v8 = vmul.f32 %v5896_v51, %v1828_v41  ;;  %v6660_v60 = vpop.f32.mrf.mxu3  ;;  %v1845_v57 = vmul.f32 %v5900_v33, %v6648_v15  ;;  %vm1851_vm10 = vweird.f32 %v5900_v33 }
 0x1ea   : > { %v1220_v40 = vpop.f32.mrf.mxu0  ;;  %v1839_v0 = vmul.f32 %v5898_v35, %v1838_v24  ;;  %v1309_v46 = vpop.f32.mrf.mxu1  ;;  %vm1852_vm12 = vmor %vm1850_vm11, %vm1851_vm10  ;;  %v1626_v37 = vmul.f32 %v6692_v38, %v6692_v38 }
 0x1eb   : > { %v1833_v41 = vsel %vm6662_vm7, %v5896_v51, %v1829_v8  ;;  %v1846_v48 = vmul.f32 %v5900_v33, %v1845_v57  ;;  %1259 = vmatmul.bf16.gmra.mxu0 %v6402_v14  ;;  %v6680_v18 = vadd.f32 %v1309_v46, %v1220_v40 }
 0x1ec   : > { %v1843_v2 = vsel %vm1842_vm9, %v5898_v35, %v1839_v0  ;;  %1348 = vmatmul.bf16.gmra.mxu1 %v6429_v55  ;;  %v2460_v8 = vmul.f32 %v6669_v27, %v1833_v41  ;;  %v5308_v0 = vld [vmem:[#allocation6 + $0x128] sm:$0xf0] }
 0x1ed   : > { %v2461_v24 = vmul.f32 %v6654_v31, %v1843_v2  ;;  %1437 = vmatmul.bf16.gmra.mxu2 %v6402_v14  ;;  %v1847_v49 = vmul.f32 0.5, %v1846_v48  ;;  %v2651_v2 = vmul.f32 %v6683_v6, %v6393_v1 }
 0x1ee   : > { %1526 = vmatmul.bf16.gmra.mxu3 %v6429_v55  ;;  %v1689_v55 = vadd.f32 %v1625_v20, %v1561_v61  ;;  %v2524_v48 = vsub.f32 1.0, %v2460_v8  ;;  %v5678_v20 = vld [vmem:[#allocation6 + $0x1a4] sm:$0xf]  ;;  %v5372_v61 = vld [vmem:[#allocation6 + $0x1a8] sm:$0xf0] }
 0x1ef   : > { %v2525_v51 = vsub.f32 1.0, %v2461_v24  ;;  %v1848_v35 = vsub.f32 1.5, %v1847_v49 }
 0x1f0   : > { %v1398_v62 = vpop.f32.mrf.mxu2  ;;  %v6702_v56 = vadd.f32 1.1754944e-38, %v1689_v55  ;;  %v6706_v1 = vmax.f32 %v2524_v48, 0.0 }
 0x1f1   : > { %v6688_v14 = vmax.f32 %v2525_v51, 0.0  ;;  %v1487_v57 = vpop.f32.mrf.mxu3  ;;  %v1849_v46 = vmul.f32 %v5900_v33, %v1848_v35  ;;  %v5311_v51 = vor.u32 %v5662_v17, %v5308_v0  ;;  %v5375_v35 = vor.u32 %v5678_v20, %v5372_v61  ;;  %v5663_v20 = vld [vmem:[#allocation6 + $0x124] sm:$0xf0]  ;;  %v6021_v61 = vld [vmem:[%s6284_s21 + $0x58] sm:$0xff] }
 0x1f2   : > { %v1222_v40 = vpop.f32.mrf.mxu0  ;;  %v1311_v41 = vpop.f32.mrf.mxu1  ;;  %5901 = vrsqrt.f32 %v6702_v56  ;;  %vm1860_vm14 = vweird.f32 %v6702_v56 }
 0x1f3   : > { %v2653_v24 = vmul.f32 %v6688_v14, %v6404_v16  ;;  %v1853_v49 = vsel %vm1852_vm12, %v5900_v33, %v1849_v46  ;;  %3250 = vmatpush.bf16.msra.mxu2 %v5311_v51  ;;  %v6710_v16 = vadd.f32 %v6652_v29, %v6650_v63  ;;  %v1562_v33 = vmul.f32 %v6418_v43, %v6418_v43 }
 0x1f4   : > { %v2462_v15 = vmul.f32 %v6669_v27, %v1853_v49  ;;  %v6716_v46 = vadd.f32 %v1487_v57, %v1398_v62  ;;  %3339 = vmatpush.bf16.msra.mxu3 %v5375_v35  ;;  %v2652_v29 = vmul.f32 %v6706_v1, %v6399_v12  ;;  %v6731_v51 = vadd.f32 %v6660_v60, %v6658_v23 }
 0x1f5   : > { %v6699_v36 = vpack.c.bf16 %v2653_v24, %v2651_v2  ;;  %v1690_v48 = vadd.f32 %v1626_v37, %v1562_v33  ;;  %v6719_v24 = vadd.f32 %v1311_v41, %v1222_v40  ;;  %v1627_v62 = vmul.f32 %v6710_v16, %v6710_v16  ;;  %v5370_v41 = vld [vmem:[#allocation6 + $0x1a0] sm:$0xf] }
 0x1f6   : > { %v2526_v8 = vsub.f32 1.0, %v2462_v15  ;;  %10140 = vst [vmem:[#allocation78_spill] sm:$0xff] %v6716_v46  ;;  %v5306_v15 = vld [vmem:[#allocation6 + $0x120] sm:$0xf]  ;;  %v1563_v40 = vmul.f32 %v6423_v47, %v6423_v47 }
 0x1f7   : > { %10139 = vst [vmem:[#allocation77_spill] sm:$0xff] %v6699_v36  ;;  %v6741_v37 = vadd.f32 1.1754944e-38, %v1690_v48  ;;  %v5307_v23 = vor.u32 %v5663_v20, %v5306_v15  ;;  %v6753_v48 = vmul.f32 %v6437_v10, %v6437_v10  ;;  %v6780_v10 = vmul.f32 %v6453_v54, %v6453_v54  ;;  %v10163_v36 = vld [vmem:[#allocation41_spill] sm:$0xff] }
 0x1f8   : > { %v1400_v17 = vpop.f32.mrf.mxu2  ;;  %v6714_v0 = vmax.f32 %v2526_v8, 0.0  ;;  %10141 = vst [vmem:[#allocation79_spill] sm:$0xff] %v6719_v24  ;;  %v1691_v60 = vadd.f32 %v1627_v62, %v1563_v40  ;;  %v6743_v33 = vpop.eup %5901  ;;  %v6761_v62 = vmul.f32 %v6442_v39, %v6442_v39 }
 0x1f9   : > { %v1489_v55 = vpop.f32.mrf.mxu3  ;;  %3072 = vmatpush.bf16.msra.mxu0 %v5307_v23  ;;  %5903 = vrsqrt.f32 %v6741_v37  ;;  %vm1861_vm13 = vweird.f32 %v6743_v33  ;;  %vm1870_vm1 = vweird.f32 %v6741_v37 }
 0x1fa   : > { %v1225_v2 = vpop.f32.mrf.mxu0  ;;  %v1314_v63 = vpop.f32.mrf.mxu1  ;;  %v2654_v49 = vmul.f32 %v6714_v0, %v6407_v32  ;;  %v6727_v57 = vadd.f32 %v1489_v55, %v1400_v17  ;;  %v5679_v32 = vld [vmem:[#allocation6 + $0x1a4] sm:$0xf0]  ;;  %v1564_v17 = vmul.f32 %v6426_v53, %v6426_v53  ;;  %v6764_v20 = vadd.f32 1.1754944e-38, %v1691_v60  ;;  %vm7011_vm15 = vmor %vm1860_vm14, %vm1861_vm13 }
 0x1fb   : > { %1264 = vmatmul.bf16.gmra.mxu0 %v6421_v45  ;;  %v5371_v8 = vor.u32 %v5679_v32, %v5370_v41  ;;  %v1628_v45 = vmul.f32 %v6731_v51, %v6731_v51  ;;  %v6766_v40 = vadd.f32 %v1314_v63, %v1225_v2  ;;  %v6772_v32 = vmul.f32 %v6447_v44, %v6447_v44 }
 0x1fc   : > { %10142 = vst [vmem:[#allocation80_spill] sm:$0xff] %v6727_v57  ;;  %v6736_v12 = vpack.c.bf16 %v2654_v49, %v2652_v29  ;;  %1353 = vmatmul.bf16.gmra.mxu1 %v6445_v42  ;;  %v6757_v49 = vmul.f32 %v6440_v19, %v6440_v19  ;;  %v6784_v2 = vmul.f32 %v6456_v3, %v6456_v3  ;;  %5905 = vrsqrt.f32 %v6764_v20 }
 0x1fd   : > { %1442 = vmatmul.bf16.gmra.mxu2 %v6021_v61  ;;  %3161 = vmatpush.bf16.msra.mxu1 %v5371_v8  ;;  %10144 = vst [vmem:[#allocation82_spill] sm:$0xff] %v6766_v40  ;;  %v1855_v61 = vmul.f32 %v6743_v33, %v6702_v56  ;;  %v1692_v23 = vadd.f32 %v1628_v45, %v1564_v17  ;;  %vm1880_vm4 = vweird.f32 %v6764_v20 }
 0x1fe   : > { %10143 = vst [vmem:[#allocation81_spill] sm:$0xff] %v6736_v12  ;;  %1531 = vmatmul.bf16.gmra.mxu3 %v6445_v42  ;;  %v1565_v42 = vmul.f32 %v6431_v58, %v6431_v58  ;;  %v1629_v8 = vmul.f32 %v6680_v18, %v6680_v18  ;;  %v6788_v63 = vmul.f32 %v6458_v7, %v6458_v7  ;;  %v10149_v7 = vld [vmem:[#allocation27_spill] sm:$0xff] }
 0x1ff   : > { %v6792_v60 = vmul.f32 %v6463_v11, %v6463_v11  ;;  %v6796_v45 = vmul.f32 %v6467_v26, %v6467_v26  ;;  %v6810_v3 = vmul.f32 %v10149_v7, %v10149_v7  ;;  %v10150_v11 = vld [vmem:[#allocation28_spill] sm:$0xff]  ;;  %v10151_v26 = vld [vmem:[#allocation29_spill] sm:$0xff]  ;;  %v6828_v43 = vpop.eup %5903 }
 0x200   : > { %v1403_v35 = vpop.f32.mrf.mxu2  ;;  %v6814_v39 = vmul.f32 %v10150_v11, %v10150_v11  ;;  %v6818_v58 = vmul.f32 %v10151_v26, %v10151_v26  ;;  %v1693_v7 = vadd.f32 %v1629_v8, %v1565_v42  ;;  %v10153_v11 = vld [vmem:[#allocation32_spill] sm:$0xff]  ;;  %v6836_v26 = vmul.f32 %v6496_v21, %v6496_v21  ;;  %v10159_v21 = vld [vmem:[#allocation39_spill] sm:$0xff] }
 0x201   : > { %v1492_v55 = vpop.f32.mrf.mxu3  ;;  %v6832_v53 = vmul.f32 %v10153_v11, %v10153_v11  ;;  %v6848_v8 = vmul.f32 %v6505_v22, %v6505_v22  ;;  %v6852_v11 = vmul.f32 %v6509_v28, %v6509_v28  ;;  %v6856_v47 = vmul.f32 %v10159_v21, %v10159_v21 }
 0x202   : > { %v1227_v29 = vpop.f32.mrf.mxu0  ;;  %v1316_v15 = vpop.f32.mrf.mxu1  ;;  %v6768_v41 = vadd.f32 %v1492_v55, %v1403_v35  ;;  %v10146_v35 = vld [vmem:[#allocation24_spill] sm:$0xff]  ;;  %v10147_v55 = vld [vmem:[#allocation25_spill] sm:$0xff]  ;;  %10154 = vst [vmem:[#allocation85_spill] sm:$0xff] %v6836_v26  ;;  %v6868_v22 = vmul.f32 %v6521_v25, %v6521_v25  ;;  %v6872_v28 = vmul.f32 %v6523_v30, %v6523_v30  ;;  %v6876_v21 = vmul.f32 %v6525_v52, %v6525_v52 }
 0x203   : > { %v6800_v17 = vmul.f32 %v10146_v35, %v10146_v35  ;;  %v6804_v54 = vmul.f32 %v10147_v55, %v10147_v55  ;;  %v6806_v44 = vadd.f32 %v1316_v15, %v1227_v29  ;;  %v10152_v35 = vld [vmem:[#allocation30_spill] sm:$0xff]  ;;  %v1856_v29 = vmul.f32 %v6743_v33, %v1855_v61  ;;  %10157 = vst [vmem:[#allocation88_spill] sm:$0xff] %v6848_v8  ;;  %v6884_v25 = vpop.eup %5905  ;;  %v5300_v26 = vld [vmem:[#allocation6 + $0x118] sm:$0xf0] }
 0x204   : > { %10145 = vst [vmem:[#allocation83_spill] sm:$0xff] %v6768_v41  ;;  %v6823_v55 = vmul.f32 %v10152_v35, %v10152_v35  ;;  %v6826_v15 = vadd.f32 1.1754944e-38, %v1692_v23  ;;  %v6840_v35 = vmul.f32 %v6498_v13, %v6498_v13  ;;  %v6844_v61 = vmul.f32 %v6500_v9, %v6500_v9  ;;  %v10161_v13 = vld [vmem:[#allocation40_spill] sm:$0xff] }
 0x205   : > { %10148 = vst [vmem:[#allocation84_spill] sm:$0xff] %v6806_v44  ;;  %v6860_v12 = vmul.f32 %v10161_v13, %v10161_v13  ;;  %v1865_v13 = vmul.f32 %v6828_v43, %v6741_v37  ;;  %v6888_v30 = vmul.f32 %v6527_v5, %v6527_v5  ;;  %vm1871_vm0 = vweird.f32 %v6828_v43 }
 0x206   : > { %10155 = vst [vmem:[#allocation86_spill] sm:$0xff] %v6840_v35  ;;  %5907 = vrsqrt.f32 %v6826_v15  ;;  %vm7095_vm2 = vmor %vm1870_vm1, %vm1871_vm0  ;;  %vm1881_vm3 = vweird.f32 %v6884_v25  ;;  %vm1890_vm6 = vweird.f32 %v6826_v15 }
 0x207   : > { %10156 = vst [vmem:[#allocation87_spill] sm:$0xff] %v6844_v61  ;;  %v6864_v61 = vmul.f32 %v10163_v36, %v10163_v36  ;;  %v6881_v36 = vadd.f32 1.1754944e-38, %v1693_v7  ;;  %vm7126_vm5 = vmor %vm1880_vm4, %vm1881_vm3 }
 0x208   : > { %v1405_v19 = vpop.f32.mrf.mxu2  ;;  %10158 = vst [vmem:[#allocation89_spill] sm:$0xff] %v6852_v11  ;;  %v1630_v11 = vmul.f32 %v6716_v46, %v6716_v46 }
 0x209   : > { %v1494_v42 = vpop.f32.mrf.mxu3  ;;  %10160 = vst [vmem:[#allocation90_spill] sm:$0xff] %v6856_v47  ;;  %v1857_v47 = vmul.f32 0.5, %v1856_v29  ;;  %v10171_v29 = vld [vmem:[#allocation47_spill] sm:$0xff]  ;;  %5909 = vrsqrt.f32 %v6881_v36  ;;  %vm1900_vm7 = vweird.f32 %v6881_v36 }
 0x20a   : > { %v1230_v23 = vpop.f32.mrf.mxu0  ;;  %10162 = vst [vmem:[#allocation91_spill] sm:$0xff] %v6860_v12  ;;  %v1319_v9 = vpop.f32.mrf.mxu1  ;;  %v10175_v12 = vld [vmem:[#allocation21_spill] sm:$0xff]  ;;  %v6905_v8 = vadd.f32 %v1494_v42, %v1405_v19  ;;  %v6924_v19 = vmul.f32 %v6549_v59, %v6549_v59  ;;  %v10186_v59 = vld [vmem:[#allocation55_spill] sm:$0xff] }
 0x20b   : > { %10164 = vst [vmem:[#allocation92_spill] sm:$0xff] %v6864_v61  ;;  %v6022_v61 = vld [vmem:[%s6284_s21 + $0x60] sm:$0xff]  ;;  %v6907_v5 = vadd.f32 %v1319_v9, %v1230_v23  ;;  %v1858_v9 = vsub.f32 1.5, %v1857_v47  ;;  %v6942_v47 = vmul.f32 %v10186_v59, %v10186_v59  ;;  %v1694_v59 = vadd.f32 %v1630_v11, %v6753_v48 }
 0x20c   : > { %10165 = vst [vmem:[#allocation93_spill] sm:$0xff] %v6868_v22  ;;  %1269 = vmatmul.bf16.gmra.mxu0 %v6022_v61  ;;  %v10173_v22 = vld [vmem:[#allocation48_spill] sm:$0xff]  ;;  %1358 = vmatmul.bf16.gmra.mxu1 %v10175_v12  ;;  %v10182_v23 = vld [vmem:[#allocation53_spill] sm:$0xff] }
 0x20d   : > { %10166 = vst [vmem:[#allocation94_spill] sm:$0xff] %v6872_v28  ;;  %v10169_v28 = vld [vmem:[#allocation46_spill] sm:$0xff]  ;;  %v6900_v7 = vmul.f32 %v10173_v22, %v10173_v22  ;;  %1447 = vmatmul.bf16.gmra.mxu2 %v6022_v61  ;;  %v6916_v22 = vmul.f32 %v6545_v4, %v6545_v4  ;;  %v1866_v61 = vmul.f32 %v6828_v43, %v1865_v13 }
 0x20e   : > { %10167 = vst [vmem:[#allocation95_spill] sm:$0xff] %v6876_v21  ;;  %v6892_v52 = vmul.f32 %v10169_v28, %v10169_v28  ;;  %v6896_v21 = vmul.f32 %v10171_v29, %v10171_v29  ;;  %1536 = vmatmul.bf16.gmra.mxu3 %v10175_v12  ;;  %v10177_v28 = vld [vmem:[#allocation49_spill] sm:$0xff]  ;;  %v1875_v12 = vmul.f32 %v6884_v25, %v6764_v20  ;;  %v5362_v20 = vld [vmem:[#allocation6 + $0x190] sm:$0xf] }
 0x20f   : > { %10168 = vst [vmem:[#allocation96_spill] sm:$0xff] %v6888_v30  ;;  %v6912_v29 = vmul.f32 %v10177_v28, %v10177_v28  ;;  %v6934_v4 = vmul.f32 %v10182_v23, %v10182_v23  ;;  %v10184_v28 = vld [vmem:[#allocation54_spill] sm:$0xff]  ;;  %v1631_v13 = vmul.f32 %v6719_v24, %v6719_v24  ;;  %v10194_v30 = vld [vmem:[#allocation59_spill] sm:$0xff]  ;;  %v1859_v11 = vmul.f32 %v6743_v33, %v1858_v9 }
 0x210   : > { %10170 = vst [vmem:[#allocation97_spill] sm:$0xff] %v6892_v52  ;;  %v6930_v42 = vpop.f32.mrf.mxu2  ;;  %v6969_v35 = vmul.f32 %v10194_v30, %v10194_v30  ;;  %v1867_v48 = vmul.f32 0.5, %v1866_v61  ;;  %v6996_v61 = vadd.f32 1.1754944e-38, %v1694_v59  ;;  %v1634_v59 = vmul.f32 %v6768_v41, %v6768_v41 }
 0x211   : > { %10172 = vst [vmem:[#allocation98_spill] sm:$0xff] %v6896_v21  ;;  %v10192_v21 = vld [vmem:[#allocation58_spill] sm:$0xff]  ;;  %v1695_v9 = vadd.f32 %v1631_v13, %v6757_v49  ;;  %v1863_v13 = vsel %vm7011_vm15, %v6743_v33, %v1859_v11 }
 0x212   : > { %10174 = vst [vmem:[#allocation99_spill] sm:$0xff] %v6900_v7  ;;  %v6920_v7 = vmul.f32 %v6547_v50, %v6547_v50  ;;  %v6938_v50 = vmul.f32 %v10184_v28, %v10184_v28  ;;  %v6965_v52 = vmul.f32 %v10192_v21, %v10192_v21  ;;  %v1876_v21 = vmul.f32 %v6884_v25, %v1875_v12 }
 0x213   : > { %10176 = vst [vmem:[#allocation21_spill] sm:$0xff] %v6905_v8  ;;  %5911 = vrsqrt.f32 %v6996_v61  ;;  %vm1910_vm12 = vweird.f32 %v6996_v61 }
 0x214   : > { %10178 = vst [vmem:[#allocation100_spill] sm:$0xff] %v6912_v29  ;;  %v10188_v29 = vld [vmem:[#allocation56_spill] sm:$0xff] }
 0x215   : > { %10179 = vst [vmem:[#allocation101_spill] sm:$0xff] %v6916_v22  ;;  %v6950_v22 = vpop.eup %5907  ;;  %v6954_v23 = vmul.f32 %v10188_v29, %v10188_v29  ;;  %v10196_v29 = vld [vmem:[#allocation60_spill] sm:$0xff] }
 0x216   : > { %10180 = vst [vmem:[#allocation102_spill] sm:$0xff] %v6920_v7  ;;  %v6948_v7 = vpop.f32.mrf.mxu0  ;;  %vm1891_vm8 = vweird.f32 %v6950_v22 }
 0x217   : > { %10181 = vst [vmem:[#allocation103_spill] sm:$0xff] %v6924_v19  ;;  %v6946_v19 = vpop.f32.mrf.mxu3  ;;  %vm7161_vm9 = vmor %vm1890_vm6, %vm1891_vm8 }
 0x218   : > { %10183 = vst [vmem:[#allocation104_spill] sm:$0xff] %v6934_v4  ;;  %v10190_v4 = vld [vmem:[#allocation57_spill] sm:$0xff] }
 0x219   : > { %10185 = vst [vmem:[#allocation105_spill] sm:$0xff] %v6938_v50  ;;  %v6958_v28 = vmul.f32 %v10190_v4, %v10190_v4  ;;  %v1321_v50 = vpop.f32.mrf.mxu1  ;;  %v10198_v4 = vld [vmem:[#allocation61_spill] sm:$0xff] }
 0x21a   : > { %10187 = vst [vmem:[#allocation106_spill] sm:$0xff] %v6942_v47  ;;  %v1632_v47 = vmul.f32 %v6727_v57, %v6727_v57  ;;  %v10200_v57 = vld [vmem:[#allocation62_spill] sm:$0xff] }
 0x21b   : > { %10189 = vst [vmem:[#allocation107_spill] sm:$0xff] %v6954_v23  ;;  %v6973_v23 = vmul.f32 %v10196_v29, %v10196_v29  ;;  %v6984_v30 = vmul.f32 %v10200_v57, %v10200_v57  ;;  %v1633_v57 = vmul.f32 %v6766_v40, %v6766_v40 }
 0x21c   : > { %10191 = vst [vmem:[#allocation108_spill] sm:$0xff] %v6958_v28  ;;  %v6977_v28 = vmul.f32 %v10198_v4, %v10198_v4  ;;  %v1885_v4 = vmul.f32 %v6950_v22, %v6826_v15  ;;  %v1696_v12 = vadd.f32 %v1632_v47, %v6761_v62  ;;  %v10210_v62 = vld [vmem:[#allocation66_spill] sm:$0xff] }
 0x21d   : > { %10193 = vst [vmem:[#allocation109_spill] sm:$0xff] %v6965_v52  ;;  %v5660_v52 = vld [vmem:[#allocation6 + $0x114] sm:$0xf]  ;;  %v7019_v47 = vmul.f32 %v10210_v62, %v10210_v62 }
 0x21e   : > { %10195 = vst [vmem:[#allocation110_spill] sm:$0xff] %v6969_v35  ;;  %v10202_v35 = vld [vmem:[#allocation63_spill] sm:$0xff]  ;;  %v5303_v56 = vor.u32 %v5660_v52, %v5300_v26  ;;  %v1886_v24 = vmul.f32 %v6950_v22, %v1885_v4  ;;  %v7031_v52 = vadd.f32 1.1754944e-38, %v1695_v9  ;;  %v7033_v33 = vpop.f32.mrf.mxu0  ;;  %v1697_v4 = vadd.f32 %v1633_v57, %v6772_v32  ;;  %v10216_v9 = vld [vmem:[#allocation69_spill] sm:$0xff] }
 0x21f   : > { %10197 = vst [vmem:[#allocation111_spill] sm:$0xff] %v6973_v23  ;;  %v6988_v29 = vmul.f32 %v10202_v35, %v10202_v35  ;;  %v5676_v62 = vld [vmem:[#allocation6 + $0x194] sm:$0xf]  ;;  %v1499_v49 = vpop.f32.mrf.mxu3  ;;  %v6023_v32 = vld [vmem:[%s6284_s21 + $0x68] sm:$0xff] }
 0x220   : > { %10199 = vst [vmem:[#allocation112_spill] sm:$0xff] %v6977_v28  ;;  %v6993_v28 = vpop.eup %5909  ;;  %3251 = vmatpush.bf16.msra.mxu2 %v5303_v56  ;;  %v7047_v56 = vmul.f32 %v10216_v9, %v10216_v9  ;;  %1274 = vmatmul.bf16.gmra.mxu0 %v6023_v32  ;;  %v1887_v46 = vmul.f32 0.5, %v1886_v24  ;;  %5913 = vrsqrt.f32 %v7031_v52  ;;  %v10221_v24 = vld [vmem:[#allocation70_spill] sm:$0xff]  ;;  %vm1920_vm14 = vweird.f32 %v7031_v52 }
 0x221   : > { %10201 = vst [vmem:[#allocation113_spill] sm:$0xff] %v6984_v30  ;;  %v10204_v30 = vld [vmem:[#allocation64_spill] sm:$0xff]  ;;  %v1895_v26 = vmul.f32 %v6993_v28, %v6881_v36  ;;  %1452 = vmatmul.bf16.gmra.mxu2 %v6023_v32  ;;  %vm1901_vm10 = vweird.f32 %v6993_v28 }
 0x222   : > { %10203 = vst [vmem:[#allocation114_spill] sm:$0xff] %v6988_v29  ;;  %v7003_v35 = vmul.f32 %v10204_v30, %v10204_v30  ;;  %v10206_v29 = vld [vmem:[#allocation65_spill] sm:$0xff]  ;;  %v1877_v30 = vmul.f32 0.5, %v1876_v21  ;;  %v10214_v21 = vld [vmem:[#allocation68_spill] sm:$0xff]  ;;  %vm7211_vm11 = vmor %vm1900_vm7, %vm1901_vm10 }
 0x223   : > { %v7007_v23 = vmul.f32 %v10206_v29, %v10206_v29  ;;  %10211 = vst [vmem:[#allocation117_spill] sm:$0xff] %v7019_v47  ;;  %v1868_v29 = vsub.f32 1.5, %v1867_v48  ;;  %v5364_v47 = vld [vmem:[#allocation6 + $0x198] sm:$0xf0]  ;;  %v7037_v11 = vmul.f32 %v10214_v21, %v10214_v21  ;;  %v7040_v48 = vadd.f32 1.1754944e-38, %v1696_v12 }
 0x224   : > { %10205 = vst [vmem:[#allocation115_spill] sm:$0xff] %v7003_v35  ;;  %v10212_v35 = vld [vmem:[#allocation67_spill] sm:$0xff]  ;;  %v1698_v21 = vadd.f32 %v1634_v59, %v6780_v10  ;;  %v1878_v41 = vsub.f32 1.5, %v1877_v30  ;;  %v1635_v12 = vmul.f32 %v6806_v44, %v6806_v44  ;;  %v5367_v57 = vor.u32 %v5676_v62, %v5364_v47  ;;  %v7085_v47 = vpop.eup %5911 }
 0x225   : > { %10207 = vst [vmem:[#allocation116_spill] sm:$0xff] %v7007_v23  ;;  %v1410_v23 = vpop.f32.mrf.mxu2  ;;  %v7026_v40 = vmul.f32 %v10212_v35, %v10212_v35  ;;  %v7043_v35 = vpop.f32.mrf.mxu1  ;;  %v1896_v9 = vmul.f32 %v6993_v28, %v1895_v26  ;;  %5915 = vrsqrt.f32 %v7040_v48  ;;  %v7066_v10 = vadd.f32 1.1754944e-38, %v1697_v4  ;;  %v10223_v62 = vld [vmem:[#allocation71_spill] sm:$0xff] }
 0x226   : > { %10215 = vst [vmem:[#allocation119_spill] sm:$0xff] %v7037_v11  ;;  %v1869_v11 = vmul.f32 %v6828_v43, %v1868_v29  ;;  %3340 = vmatpush.bf16.msra.mxu3 %v5367_v57  ;;  %v7069_v30 = vadd.f32 %v1321_v50, %v6948_v7  ;;  %v7071_v29 = vadd.f32 %v1499_v49, %v1410_v23  ;;  %v10225_v50 = vld [vmem:[#allocation72_spill] sm:$0xff]  ;;  %v10227_v23 = vld [vmem:[#allocation75_spill] sm:$0xff]  ;;  %vm1911_vm13 = vweird.f32 %v7085_v47 }
 0x227   : > { %10213 = vst [vmem:[#allocation118_spill] sm:$0xff] %v7026_v40  ;;  %v7050_v40 = vmul.f32 %v6654_v31, %v1863_v13  ;;  %v7062_v13 = vadd.f32 %v6946_v19, %v6930_v42  ;;  %v7075_v59 = vmul.f32 %v10221_v24, %v10221_v24  ;;  %v7079_v19 = vmul.f32 %v10223_v62, %v10223_v62  ;;  %v1502_v32 = vpop.f32.mrf.mxu3  ;;  %v10230_v24 = vld [vmem:[#allocation73_spill] sm:$0xff]  ;;  %v5677_v49 = vld [vmem:[#allocation6 + $0x194] sm:$0xf0] }
 0x228   : > { %10217 = vst [vmem:[#allocation120_spill] sm:$0xff] %v7047_v56  ;;  %v10218_v56 = vld [vmem:[#allocation26_spill] sm:$0xff]  ;;  %v7082_v42 = vadd.f32 1.1754944e-38, %v1698_v21  ;;  %v7089_v7 = vmul.f32 %v10225_v50, %v10225_v50  ;;  %v2781_v26 = vmul.f32 %v6688_v14, %v10227_v23  ;;  %v1699_v37 = vadd.f32 %v1635_v12, %v6784_v2  ;;  %v1237_v23 = vpop.f32.mrf.mxu0  ;;  %v5298_v2 = vld [vmem:[#allocation6 + $0x110] sm:$0xf] }
 0x229   : > { %1363 = vmatmul.bf16.gmra.mxu1 %v10218_v56  ;;  %10219 = vst [vmem:[#allocation26_spill] sm:$0xff] %v7069_v30  ;;  %1541 = vmatmul.bf16.gmra.mxu3 %v10218_v56  ;;  %v2527_v4 = vsub.f32 1.0, %v7050_v40  ;;  %v1873_v56 = vsel %vm7095_vm2, %v6828_v43, %v1869_v11  ;;  %v1879_v57 = vmul.f32 %v6884_v25, %v1878_v41  ;;  %v1888_v62 = vsub.f32 1.5, %v1887_v46  ;;  %v5661_v40 = vld [vmem:[#allocation6 + $0x114] sm:$0xf0]  ;;  %v10231_v43 = vld [vmem:[#allocation74_spill] sm:$0xff]  ;;  %vm7269_vm2 = vmor %vm1910_vm12, %vm1911_vm13 }
 0x22a   : > { %10220 = vst [vmem:[#allocation121_spill] sm:$0xff] %v7071_v29  ;;  %v1636_v14 = vmul.f32 %v6905_v8, %v6905_v8  ;;  %v2779_v50 = vmul.f32 %v6683_v6, %v10230_v24  ;;  %5917 = vrsqrt.f32 %v7066_v10  ;;  %v2780_v41 = vmul.f32 %v6706_v1, %v10231_v43 }
 0x22b   : > { %10222 = vst [vmem:[#allocation122_spill] sm:$0xff] %v7075_v59  ;;  %v1897_v59 = vmul.f32 0.5, %v1896_v9  ;;  %v1905_v11 = vmul.f32 %v7085_v47, %v6996_v61  ;;  %5919 = vrsqrt.f32 %v7082_v42  ;;  %v2464_v9 = vmul.f32 %v6669_v27, %v1873_v56 }
 0x22c   : > { %10224 = vst [vmem:[#allocation123_spill] sm:$0xff] %v7079_v19  ;;  %v7121_v46 = vpack.c.bf16 %v2781_v26, %v2779_v50  ;;  %v7131_v1 = vadd.f32 1.1754944e-38, %v1699_v37  ;;  %v1883_v43 = vsel %vm7126_vm5, %v6884_v25, %v1879_v57  ;;  %v1700_v50 = vadd.f32 %v1636_v14, %v6788_v63 }
 0x22d   : > { %10226 = vst [vmem:[#allocation124_spill] sm:$0xff] %v7089_v7  ;;  %v1413_v21 = vpop.f32.mrf.mxu2  ;;  %v1326_v12 = vpop.f32.mrf.mxu1  ;;  %v1637_v26 = vmul.f32 %v6907_v5, %v6907_v5  ;;  %v5299_v56 = vor.u32 %v5661_v40, %v5298_v2  ;;  %v7140_v19 = vmax.f32 %v2527_v4, 0.0  ;;  %v1889_v8 = vmul.f32 %v6950_v22, %v1888_v62 }
 0x22e   : > { %v7111_v7 = vpop.eup %5913  ;;  %v1898_v37 = vsub.f32 1.5, %v1897_v59  ;;  %v1906_v44 = vmul.f32 %v7085_v47, %v1905_v11  ;;  %v5363_v63 = vor.u32 %v5677_v49, %v5362_v20  ;;  %v2528_v2 = vsub.f32 1.0, %v2464_v9 }
 0x22f   : > { %v7119_v6 = vpop.eup %5915  ;;  %10234 = vst [vmem:[#allocation75_spill] sm:$0xff] %v7140_v19  ;;  %v1915_v25 = vmul.f32 %v7111_v7, %v7031_v52  ;;  %3073 = vmatpush.bf16.msra.mxu0 %v5299_v56  ;;  %v2465_v4 = vmul.f32 %v6654_v31, %v1883_v43  ;;  %5921 = vrsqrt.f32 %v7131_v1  ;;  %v7155_v59 = vadd.f32 %v7043_v35, %v7033_v33  ;;  %v1504_v35 = vpop.f32.mrf.mxu3  ;;  %v10238_v43 = vld [vmem:[#allocation76_spill] sm:$0xff] }
 0x230   : > { %v1925_v57 = vmul.f32 %v7119_v6, %v7040_v48  ;;  %v7149_v14 = vpop.eup %5917  ;;  %v7165_v24 = vadd.f32 1.1754944e-38, %v1700_v50  ;;  %v1701_v9 = vadd.f32 %v1637_v26, %v6792_v60  ;;  %3162 = vmatpush.bf16.msra.mxu1 %v5363_v63  ;;  %v7168_v20 = vadd.f32 %v1502_v32, %v1413_v21  ;;  %v1240_v33 = vpop.f32.mrf.mxu0  ;;  %v10240_v63 = vld [vmem:[#allocation31_spill] sm:$0xff] }
 0x231   : > { %10235 = vst [vmem:[#allocation73_spill] sm:$0xff] %v7155_v59  ;;  %v7157_v40 = vpop.eup %5919  ;;  %v7170_v49 = vadd.f32 %v1326_v12, %v1237_v23  ;;  %v2782_v56 = vmul.f32 %v6714_v0, %v10238_v43  ;;  %v1893_v15 = vsel %vm7161_vm9, %v6950_v22, %v1889_v8  ;;  %v1899_v50 = vmul.f32 %v6993_v28, %v1898_v37  ;;  %v6024_v37 = vld [vmem:[%s6284_s21 + $0x70] sm:$0xff] }
 0x232   : > { %v1907_v26 = vmul.f32 0.5, %v1906_v44  ;;  %v1916_v21 = vmul.f32 %v7111_v7, %v1915_v25  ;;  %v1926_v32 = vmul.f32 %v7119_v6, %v1925_v57  ;;  %v1935_v12 = vmul.f32 %v7149_v14, %v7066_v10  ;;  %1279 = vmatmul.bf16.gmra.mxu0 %v6024_v37  ;;  %1457 = vmatmul.bf16.gmra.mxu2 %v6024_v37 }
 0x233   : > { %v1945_v0 = vmul.f32 %v7157_v40, %v7082_v42  ;;  %v1638_v22 = vmul.f32 %v7062_v13, %v7062_v13  ;;  %v7192_v44 = vmax.f32 %v2528_v2, 0.0  ;;  %v2529_v25 = vsub.f32 1.0, %v2465_v4 }
 0x234   : > { %5923 = vrsqrt.f32 %v7165_v24  ;;  %v7195_v57 = vadd.f32 1.1754944e-38, %v1701_v9  ;;  %v7200_v11 = vpack.c.bf16 %v2782_v56, %v2780_v41  ;;  %v1639_v4 = vmul.f32 %v7069_v30, %v7069_v30 }
 0x235   : > { %v1415_v62 = vpop.f32.mrf.mxu2  ;;  %v1329_v60 = vpop.f32.mrf.mxu1  ;;  %10239 = vst [vmem:[#allocation74_spill] sm:$0xff] %v7192_v44  ;;  %v1903_v41 = vsel %vm7211_vm11, %v6993_v28, %v1899_v50  ;;  %v1908_v9 = vsub.f32 1.5, %v1907_v26  ;;  %v1927_v43 = vmul.f32 0.5, %v1926_v32  ;;  %v1936_v36 = vmul.f32 %v7149_v14, %v1935_v12 }
 0x236   : > { %v7181_v23 = vadd.f32 %v1504_v35, %v1415_v62  ;;  %v7189_v8 = vadd.f32 %v1329_v60, %v1240_v33  ;;  %v7198_v62 = vpop.eup %5921  ;;  %v7204_v35 = vmul.f32 %v7140_v19, %v6667_v34  ;;  %v2466_v33 = vmul.f32 %v6669_v27, %v1893_v15 }
 0x237   : > { %v1917_v34 = vmul.f32 0.5, %v1916_v21  ;;  %v1946_v56 = vmul.f32 %v7157_v40, %v1945_v0  ;;  %v1702_v15 = vadd.f32 %v1638_v22, %v6796_v45  ;;  %v7227_v19 = vmul.f32 %v7192_v44, %v6692_v38  ;;  %v1507_v26 = vpop.f32.mrf.mxu3 }
 0x238   : > { %v7229_v28 = vmax.f32 %v2529_v25, 0.0  ;;  %v1955_v50 = vmul.f32 %v7198_v62, %v7131_v1  ;;  %5925 = vrsqrt.f32 %v7195_v57  ;;  %v7234_v21 = vpop.f32.mrf.mxu0  ;;  %v2530_v32 = vsub.f32 1.0, %v2466_v33 }
 0x239   : > { %1368 = vmatmul.bf16.gmra.mxu1 %v10240_v63  ;;  %1546 = vmatmul.bf16.gmra.mxu3 %v10240_v63  ;;  %v1703_v45 = vadd.f32 %v1639_v4, %v6800_v17  ;;  %v2467_v0 = vmul.f32 %v6654_v31, %v1903_v41  ;;  %v1909_v22 = vmul.f32 %v7085_v47, %v1908_v9  ;;  %v1918_v37 = vsub.f32 1.5, %v1917_v34  ;;  %v5658_v4 = vld [vmem:[#allocation6 + $0x104] sm:$0xf]  ;;  %v5292_v41 = vld [vmem:[#allocation6 + $0x108] sm:$0xf0] }
 0x23a   : > { %10243 = vst [vmem:[#allocation76_spill] sm:$0xff] %v7229_v28  ;;  %v7241_v38 = vpop.eup %5923  ;;  %v1928_v63 = vsub.f32 1.5, %v1927_v43  ;;  %v1937_v2 = vmul.f32 0.5, %v1936_v36  ;;  %v1947_v33 = vmul.f32 0.5, %v1946_v56  ;;  %v7247_v44 = vadd.f32 1.1754944e-38, %v1702_v15 }
 0x23b   : > { %v2785_v30 = vmul.f32 %v7229_v28, %v6710_v16  ;;  %vm1921_vm15 = vweird.f32 %v7111_v7  ;;  %vm1930_vm0 = vweird.f32 %v7040_v48  ;;  %v1956_v17 = vmul.f32 %v7198_v62, %v1955_v50  ;;  %v5674_v9 = vld [vmem:[#allocation6 + $0x184] sm:$0xf]  ;;  %v5356_v56 = vld [vmem:[#allocation6 + $0x188] sm:$0xf0]  ;;  %v10252_v48 = vld [vmem:[#allocation36_spill] sm:$0xff] }
 0x23c   : > { %vm1940_vm1 = vweird.f32 %v7066_v10  ;;  %v1965_v34 = vmul.f32 %v7241_v38, %v7165_v24  ;;  %v7257_v43 = vadd.f32 1.1754944e-38, %v1703_v45  ;;  %v1640_v36 = vmul.f32 %v7071_v29, %v7071_v29  ;;  %vm7298_vm4 = vmor %vm1920_vm14, %vm1921_vm15 }
 0x23d   : > { %v1418_v60 = vpop.f32.mrf.mxu2  ;;  %v7239_v12 = vpop.f32.mrf.mxu1  ;;  %v5295_v16 = vor.u32 %v5658_v4, %v5292_v41  ;;  %v2531_v50 = vsub.f32 1.0, %v2467_v0  ;;  %v1641_v45 = vmul.f32 %v7155_v59, %v7155_v59  ;;  %v5359_v28 = vor.u32 %v5674_v9, %v5356_v56 }
 0x23e   : > { %v7245_v25 = vadd.f32 %v1507_v26, %v1418_v60  ;;  %v7261_v15 = vpop.eup %5925  ;;  %v7263_v60 = vmax.f32 %v2530_v32, 0.0  ;;  %v1913_v4 = vsel %vm7269_vm2, %v7085_v47, %v1909_v22  ;;  %v1919_v32 = vmul.f32 %v7111_v7, %v1918_v37 }
 0x23f   : > { %v1929_v0 = vmul.f32 %v7119_v6, %v1928_v63  ;;  %vm1931_vm3 = vweird.f32 %v7119_v6  ;;  %3252 = vmatpush.bf16.msra.mxu2 %v5295_v16  ;;  %v1938_v61 = vsub.f32 1.5, %v1937_v2  ;;  %v1948_v41 = vsub.f32 1.5, %v1947_v33  ;;  %3341 = vmatpush.bf16.msra.mxu3 %v5359_v28  ;;  %v7289_v37 = vpop.f32.mrf.mxu3 }
 0x240   : > { %10244 = vst [vmem:[#allocation31_spill] sm:$0xff] %v7263_v60  ;;  %v1957_v29 = vmul.f32 0.5, %v1956_v17  ;;  %5927 = vrsqrt.f32 %v7247_v44  ;;  %v1966_v59 = vmul.f32 %v7241_v38, %v1965_v34  ;;  %v1975_v9 = vmul.f32 %v7261_v15, %v7195_v57  ;;  %v7304_v33 = vpop.f32.mrf.mxu0  ;;  %vm7319_vm6 = vmor %vm1930_vm0, %vm1931_vm3 }
 0x241   : > { %5929 = vrsqrt.f32 %v7257_v43  ;;  %v1704_v47 = vadd.f32 %v1640_v36, %v6804_v54  ;;  %v7291_v63 = vmax.f32 %v2531_v50, 0.0  ;;  %v2468_v2 = vmul.f32 %v6669_v27, %v1913_v4  ;;  %v5290_v4 = vld [vmem:[#allocation6 + $0x100] sm:$0xf] }
 0x242   : > { %vm1950_vm5 = vweird.f32 %v7082_v42  ;;  %v1705_v54 = vadd.f32 %v1641_v45, %v6810_v3  ;;  %v7310_v34 = vmul.f32 %v7263_v60, %v6731_v51  ;;  %v1923_v52 = vsel %vm7298_vm4, %v7111_v7, %v1919_v32  ;;  %v6025_v3 = vld [vmem:[%s6284_s21 + $0x78] sm:$0xff]  ;;  %v5659_v32 = vld [vmem:[#allocation6 + $0x104] sm:$0xf0] }
 0x243   : > { %10247 = vst [vmem:[#allocation125_spill] sm:$0xff] %v7291_v63  ;;  %vm1941_vm7 = vweird.f32 %v7149_v14  ;;  %vm1951_vm8 = vweird.f32 %v7157_v40  ;;  %1284 = vmatmul.bf16.gmra.mxu0 %v6025_v3  ;;  %v1933_v51 = vsel %vm7319_vm6, %v7119_v6, %v1929_v0  ;;  %v1939_v7 = vmul.f32 %v7149_v14, %v1938_v61  ;;  %v5675_v61 = vld [vmem:[#allocation6 + $0x184] sm:$0xf0]  ;;  %1462 = vmatmul.bf16.gmra.mxu2 %v6025_v3 }
 0x244   : > { %v1949_v16 = vmul.f32 %v7157_v40, %v1948_v41  ;;  %v1958_v56 = vsub.f32 1.5, %v1957_v29  ;;  %v1967_v50 = vmul.f32 0.5, %v1966_v59  ;;  %v1976_v26 = vmul.f32 %v7261_v15, %v1975_v9  ;;  %vm7348_vm9 = vmor %vm1940_vm1, %vm1941_vm7 }
 0x245   : > { %v7287_v22 = vpop.f32.mrf.mxu2  ;;  %v7306_v17 = vpop.f32.mrf.mxu1  ;;  %v7333_v45 = vadd.f32 1.1754944e-38, %v1704_v47  ;;  %v7336_v28 = vpack.c.bf16 %v2785_v30, %v7204_v35  ;;  %v7342_v6 = vmul.f32 %v7291_v63, %v6680_v18  ;;  %v2532_v0 = vsub.f32 1.0, %v2468_v2  ;;  %v5354_v35 = vld [vmem:[#allocation6 + $0x180] sm:$0xf]  ;;  %vm7365_vm10 = vmor %vm1950_vm5, %vm1951_vm8 }
 0x246   : > { %v7338_v60 = vpop.eup %5927  ;;  %v7352_v59 = vadd.f32 1.1754944e-38, %v1705_v54  ;;  %v1642_v30 = vmul.f32 %v7168_v20, %v7168_v20  ;;  %v2469_v41 = vmul.f32 %v6654_v31, %v1923_v52  ;;  %v2470_v10 = vmul.f32 %v6669_v27, %v1933_v51 }
 0x247   : > { %v7357_v18 = vpop.eup %5929  ;;  %vm1961_vm11 = vweird.f32 %v7198_v62  ;;  %v1643_v47 = vmul.f32 %v7170_v49, %v7170_v49  ;;  %v1943_v2 = vsel %vm7348_vm9, %v7149_v14, %v1939_v7  ;;  %v1953_v54 = vsel %vm7365_vm10, %v7157_v40, %v1949_v16 }
 0x248   : > { %v1959_v52 = vmul.f32 %v7198_v62, %v1958_v56  ;;  %v5291_v42 = vor.u32 %v5659_v32, %v5290_v4  ;;  %v1968_v36 = vsub.f32 1.5, %v1967_v50  ;;  %v1977_v3 = vmul.f32 0.5, %v1976_v26  ;;  %v1512_v50 = vpop.f32.mrf.mxu3 }
 0x249   : > { %1373 = vmatmul.bf16.gmra.mxu1 %v10252_v48  ;;  %1551 = vmatmul.bf16.gmra.mxu3 %v10252_v48  ;;  %5931 = vrsqrt.f32 %v7333_v45  ;;  %v5355_v51 = vor.u32 %v5675_v61, %v5354_v35  ;;  %v1985_v48 = vmul.f32 %v7338_v60, %v7247_v44  ;;  %v1995_v63 = vmul.f32 %v7357_v18, %v7257_v43 }
 0x24a   : > { %5933 = vrsqrt.f32 %v7352_v59  ;;  %v1706_v14 = vadd.f32 %v1642_v30, %v6814_v39  ;;  %3074 = vmatpush.bf16.msra.mxu0 %v5291_v42  ;;  %v2533_v40 = vsub.f32 1.0, %v2469_v41  ;;  %vm1960_vm12 = vweird.f32 %v7131_v1  ;;  %v7403_v1 = vpop.f32.mrf.mxu0  ;;  %v10267_v39 = vld [vmem:[#allocation79_spill] sm:$0xff] }
 0x24b   : > { %v1707_v7 = vadd.f32 %v1643_v47, %v6818_v58  ;;  %v1644_v16 = vmul.f32 %v7181_v23, %v7181_v23  ;;  %3163 = vmatpush.bf16.msra.mxu1 %v5355_v51  ;;  %v7390_v26 = vmax.f32 %v2532_v0, 0.0  ;;  %v2534_v4 = vsub.f32 1.0, %v2470_v10  ;;  %vm7395_vm13 = vmor %vm1960_vm12, %vm1961_vm11 }
 0x24c   : > { %v2471_v32 = vmul.f32 %v6654_v31, %v1943_v2  ;;  %v7401_v58 = vadd.f32 %v7289_v37, %v7287_v22  ;;  %v2472_v0 = vmul.f32 %v6669_v27, %v1953_v54  ;;  %v1963_v30 = vsel %vm7395_vm13, %v7198_v62, %v1959_v52 }
 0x24d   : > { %v1423_v56 = vpop.f32.mrf.mxu2  ;;  %10257 = vst [vmem:[#allocation36_spill] sm:$0xff] %v7390_v26  ;;  %v7405_v29 = vpop.f32.mrf.mxu1  ;;  %v1969_v35 = vmul.f32 %v7241_v38, %v1968_v36  ;;  %vm1971_vm14 = vweird.f32 %v7241_v38  ;;  %v1978_v61 = vsub.f32 1.5, %v1977_v3  ;;  %v1986_v41 = vmul.f32 %v7338_v60, %v1985_v48 }
 0x24e   : > { %10260 = vst [vmem:[#allocation126_spill] sm:$0xff] %v7401_v58  ;;  %v1996_v22 = vmul.f32 %v7357_v18, %v1995_v63  ;;  %v7415_v37 = vadd.f32 1.1754944e-38, %v1706_v14  ;;  %v7419_v9 = vmax.f32 %v2533_v40, 0.0  ;;  %vm1970_vm15 = vweird.f32 %v7165_v24 }
 0x24f   : > { %v7417_v10 = vpop.eup %5931  ;;  %v7422_v47 = vadd.f32 1.1754944e-38, %v1707_v7  ;;  %v1708_v62 = vadd.f32 %v1644_v16, %v6823_v55  ;;  %v7427_v54 = vmax.f32 %v2534_v4, 0.0  ;;  %v2535_v52 = vsub.f32 1.0, %v2471_v32  ;;  %vm7429_vm0 = vmor %vm1970_vm15, %vm1971_vm14  ;;  %v10266_v4 = vld [vmem:[#allocation78_spill] sm:$0xff] }
 0x250   : > { %10261 = vst [vmem:[#allocation127_spill] sm:$0xff] %v7419_v9  ;;  %v7425_v2 = vpop.eup %5933  ;;  %v1645_v63 = vmul.f32 %v7189_v8, %v7189_v8  ;;  %v7437_v36 = vadd.f32 %v7306_v17, %v7304_v33  ;;  %v2536_v24 = vsub.f32 1.0, %v2472_v0  ;;  %v2473_v3 = vmul.f32 %v6654_v31, %v1963_v30 }
 0x251   : > { %10262 = vst [vmem:[#allocation128_spill] sm:$0xff] %v7427_v54  ;;  %v1973_v55 = vsel %vm7429_vm0, %v7241_v38, %v1969_v35  ;;  %vm1981_vm1 = vweird.f32 %v7261_v15  ;;  %v1979_v51 = vmul.f32 %v7261_v15, %v1978_v61  ;;  %v1987_v48 = vmul.f32 0.5, %v1986_v41 }
 0x252   : > { %v1997_v14 = vmul.f32 0.5, %v1996_v22  ;;  %5935 = vrsqrt.f32 %v7415_v37  ;;  %v2005_v40 = vmul.f32 %v7417_v10, %v7333_v45  ;;  %v2015_v33 = vmul.f32 %v7425_v2, %v7352_v59 }
 0x253   : > { %5937 = vrsqrt.f32 %v7422_v47  ;;  %v7451_v17 = vadd.f32 1.1754944e-38, %v1708_v62  ;;  %3075 = vmatmul.bf16.vlgmr.msra.gmra.mxu0 %v7121_v46  ;;  %v7454_v38 = vmax.f32 %v2535_v52, 0.0  ;;  %vm1980_vm2 = vweird.f32 %v7195_v57  ;;  %v1250_v52 = vpop.f32.mrf.mxu0  ;;  %3253 = vmatmul.bf16.vlgmr.msra.gmra.mxu2 %v7121_v46 }
 0x254   : > { %v1709_v7 = vadd.f32 %v1645_v63, %v6832_v53  ;;  %v7458_v16 = vadd.f32 %v1512_v50, %v1423_v56  ;;  %v7463_v32 = vmul.f32 %v7390_v26, %v10266_v4  ;;  %v7467_v0 = vmul.f32 %v7419_v9, %v10267_v39  ;;  %vm7474_vm3 = vmor %vm1980_vm2, %vm1981_vm1  ;;  %v7480_v56 = vpop.f32.mrf.mxu3  ;;  %v10271_v50 = vld [vmem:[#allocation80_spill] sm:$0xff] }
 0x255   : > { %10265 = vst [vmem:[#allocation129_spill] sm:$0xff] %v7454_v38  ;;  %v7469_v30 = vmax.f32 %v2536_v24, 0.0  ;;  %v2474_v35 = vmul.f32 %v6669_v27, %v1973_v55  ;;  %v7478_v57 = vpop.f32.mrf.mxu2  ;;  %v7484_v61 = vmul.f32 %v7427_v54, %v10271_v50  ;;  %v2537_v41 = vsub.f32 1.0, %v2473_v3  ;;  %v1339_v42 = vpop.f32.mrf.mxu1  ;;  %v10272_v3 = vld [vmem:[#allocation82_spill] sm:$0xff]  ;;  %v5476_v9 = vld [vmem:[#allocation6 + $0x78] sm:$0xf0] }
 0x256   : > { %v1983_v22 = vsel %vm7474_vm3, %v7261_v15, %v1979_v51  ;;  %v1988_v62 = vsub.f32 1.5, %v1987_v48  ;;  %v1998_v63 = vsub.f32 1.5, %v1997_v14  ;;  %v2006_v24 = vmul.f32 %v7417_v10, %v2005_v40  ;;  %v10273_v14 = vld [vmem:[#allocation83_spill] sm:$0xff]  ;;  %v10284_v54 = vld [vmem:[#allocation86_spill] sm:$0xff] }
 0x257   : > { %10268 = vst [vmem:[#allocation78_spill] sm:$0xff] %v7469_v30  ;;  %v2016_v55 = vmul.f32 %v7425_v2, %v2015_v33  ;;  %5939 = vrsqrt.f32 %v7451_v17  ;;  %v7498_v39 = vmul.f32 %v7454_v38, %v10272_v3  ;;  %v7500_v15 = vadd.f32 1.1754944e-38, %v1709_v7 }
 0x258   : > { %v7494_v4 = vpop.eup %5935  ;;  %v1646_v46 = vmul.f32 %v7245_v25, %v7245_v25  ;;  %v7506_v51 = vadd.f32 %v7239_v12, %v7234_v21  ;;  %v2538_v40 = vsub.f32 1.0, %v2474_v35  ;;  %v2475_v33 = vmul.f32 %v6654_v31, %v1983_v22 }
 0x259   : > { %3164 = vmatmul.bf16.vlgmr.msra.gmra.mxu1 %v7200_v11  ;;  %3342 = vmatmul.bf16.vlgmr.msra.gmra.mxu3 %v7200_v11  ;;  %v7508_v48 = vpop.eup %5937  ;;  %v7512_v11 = vmul.f32 %v7469_v30, %v10273_v14  ;;  %vm1990_vm4 = vweird.f32 %v7247_v44  ;;  %v7516_v7 = vmax.f32 %v2537_v41, 0.0  ;;  %v1989_v53 = vmul.f32 %v7338_v60, %v1988_v62  ;;  %v10276_v41 = vld [vmem:[#allocation85_spill] sm:$0xff]  ;;  %v5656_v44 = vld [vmem:[#allocation6 + $0xf4] sm:$0xf] }
 0x25a   : > { %vm1991_vm5 = vweird.f32 %v7338_v60  ;;  %vm2001_vm6 = vweird.f32 %v7357_v18  ;;  %v1999_v21 = vmul.f32 %v7357_v18, %v1998_v63  ;;  %v2007_v12 = vmul.f32 0.5, %v2006_v24 }
 0x25b   : > { %10274 = vst [vmem:[#allocation79_spill] sm:$0xff] %v7512_v11  ;;  %v2017_v50 = vmul.f32 0.5, %v2016_v55  ;;  %v2025_v3 = vmul.f32 %v7494_v4, %v7415_v37  ;;  %v2035_v35 = vmul.f32 %v7508_v48, %v7422_v47  ;;  %5941 = vrsqrt.f32 %v7500_v15  ;;  %vm7536_vm7 = vmor %vm1990_vm4, %vm1991_vm5  ;;  %v7570_v11 = vpop.f32.mrf.mxu0 }
 0x25c   : > { %10275 = vst [vmem:[#allocation80_spill] sm:$0xff] %v7516_v7  ;;  %v1710_v22 = vadd.f32 %v1646_v46, %v10276_v41  ;;  %v1647_v62 = vmul.f32 %v7506_v51, %v7506_v51  ;;  %v7532_v30 = vmax.f32 %v2538_v40, 0.0  ;;  %v2539_v63 = vsub.f32 1.0, %v2475_v33  ;;  %v10280_v46 = vld [vmem:[#allocation84_spill] sm:$0xff] }
 0x25d   : > { %v7530_v14 = vpop.eup %5939  ;;  %vm2000_vm8 = vweird.f32 %v7257_v43  ;;  %v2846_v55 = vpack.c.bf16 %v7310_v34, %v7227_v19  ;;  %v7545_v41 = vmul.f32 %v7516_v7, %v10280_v46  ;;  %v1993_v40 = vsel %vm7536_vm7, %v7338_v60, %v1989_v53  ;;  %v1428_v60 = vpop.f32.mrf.mxu2 }
 0x25e   : > { %10277 = vst [vmem:[#allocation82_spill] sm:$0xff] %v7532_v30  ;;  %vm7552_vm9 = vmor %vm2000_vm8, %vm2001_vm6  ;;  %v1648_v43 = vmul.f32 %v7401_v58, %v7401_v58  ;;  %v7558_v33 = vadd.f32 %v1339_v42, %v1250_v52  ;;  %v2008_v34 = vsub.f32 1.5, %v2007_v12  ;;  %v2018_v46 = vsub.f32 1.5, %v2017_v50  ;;  %v1517_v53 = vpop.f32.mrf.mxu3  ;;  %v5640_v42 = vld [vmem:[#allocation6 + $0x74] sm:$0xf] }
 0x25f   : > { %v2003_v19 = vsel %vm7552_vm9, %v7357_v18, %v1999_v21  ;;  %v2026_v24 = vmul.f32 %v7494_v4, %v2025_v3  ;;  %v2036_v38 = vmul.f32 %v7508_v48, %v2035_v35  ;;  %v2045_v7 = vmul.f32 %v7530_v14, %v7451_v17  ;;  %v7572_v18 = vpop.f32.mrf.mxu1  ;;  %v10285_v21 = vld [vmem:[#allocation21_spill] sm:$0xff]  ;;  %v5540_v58 = vld [vmem:[#allocation6 + $0xf8] sm:$0xf0] }
 0x260   : > { %10283 = vst [vmem:[#allocation83_spill] sm:$0xff] %v7558_v33  ;;  %v7567_v26 = vadd.f32 1.1754944e-38, %v1710_v22  ;;  %v1711_v52 = vadd.f32 %v1647_v62, %v10284_v54  ;;  %v7576_v12 = vmul.f32 %v7532_v30, %v10285_v21  ;;  %v7578_v50 = vmax.f32 %v2539_v63, 0.0  ;;  %v10288_v54 = vld [vmem:[#allocation87_spill] sm:$0xff] }
 0x261   : > { %vm2010_vm10 = vweird.f32 %v7333_v45  ;;  %v5479_v3 = vor.u32 %v5640_v42, %v5476_v9  ;;  %v7581_v35 = vpop.eup %5941  ;;  %v2476_v22 = vmul.f32 %v6669_v27, %v1993_v40  ;;  %vm2011_vm11 = vweird.f32 %v7417_v10 }
 0x262   : > { %10286 = vst [vmem:[#allocation85_spill] sm:$0xff] %v7576_v12  ;;  %vm2021_vm12 = vweird.f32 %v7425_v2  ;;  %v1712_v62 = vadd.f32 %v1648_v43, %v10288_v54  ;;  %v2477_v21 = vmul.f32 %v6654_v31, %v2003_v19  ;;  %v2009_v63 = vmul.f32 %v7417_v10, %v2008_v34  ;;  %vm7615_vm14 = vmor %vm2010_vm10, %vm2011_vm11 }
 0x263   : > { %10287 = vst [vmem:[#allocation84_spill] sm:$0xff] %v7578_v50  ;;  %v2019_v30 = vmul.f32 %v7425_v2, %v2018_v46  ;;  %v2027_v12 = vmul.f32 0.5, %v2026_v24  ;;  %3761 = vmatpush.bf16.msrb.mxu2 %v5479_v3  ;;  %3080 = vmatmul.bf16.gmra.mxu0 %v7336_v28  ;;  %v2037_v9 = vmul.f32 0.5, %v2036_v38  ;;  %v2046_v40 = vmul.f32 %v7530_v14, %v2045_v7  ;;  %v10294_v3 = vld [vmem:[#allocation88_spill] sm:$0xff] }
 0x264   : > { %5943 = vrsqrt.f32 %v7567_v26  ;;  %v7593_v42 = vadd.f32 1.1754944e-38, %v1711_v52  ;;  %v2055_v43 = vmul.f32 %v7581_v35, %v7500_v15  ;;  %v1649_v19 = vmul.f32 %v7437_v36, %v7437_v36  ;;  %3258 = vmatmul.bf16.gmra.mxu2 %v7336_v28 }
 0x265   : > { %v5543_v34 = vor.u32 %v5656_v44, %v5540_v58  ;;  %v7599_v46 = vadd.f32 %v1517_v53, %v1428_v60  ;;  %v2540_v24 = vsub.f32 1.0, %v2476_v22  ;;  %vm2020_vm13 = vweird.f32 %v7352_v59 }
 0x266   : > { %v7602_v38 = vadd.f32 1.1754944e-38, %v1712_v62  ;;  %v1650_v7 = vmul.f32 %v7458_v16, %v7458_v16  ;;  %v7609_v52 = vmul.f32 %v7578_v50, %v6907_v5  ;;  %v2028_v59 = vsub.f32 1.5, %v2027_v12  ;;  %vm7629_vm0 = vmor %vm2020_vm13, %vm2021_vm12  ;;  %v7641_v54 = vpop.f32.mrf.mxu3 }
 0x267   : > { %10289 = vst [vmem:[#allocation86_spill] sm:$0xff] %v7599_v46  ;;  %vm2030_vm15 = vweird.f32 %v7415_v37  ;;  %v7622_v60 = vadd.f32 %v7405_v29, %v7403_v1  ;;  %3850 = vmatpush.bf16.msrb.mxu3 %v5543_v34  ;;  %v2541_v28 = vsub.f32 1.0, %v2477_v21  ;;  %v2013_v5 = vsel %vm7615_vm14, %v7417_v10, %v2009_v63  ;;  %v7639_v10 = vpop.f32.mrf.mxu2 }
 0x268   : > { %v2047_v53 = vmul.f32 0.5, %v2046_v40  ;;  %5945 = vrsqrt.f32 %v7593_v42  ;;  %v2023_v1 = vsel %vm7629_vm0, %v7425_v2, %v2019_v30  ;;  %v2038_v29 = vsub.f32 1.5, %v2037_v9  ;;  %v1255_v2 = vpop.f32.mrf.mxu0  ;;  %v1344_v30 = vpop.f32.mrf.mxu1 }
 0x269   : > { %3169 = vmatmul.bf16.gmra.mxu1 %v2846_v55  ;;  %3347 = vmatmul.bf16.gmra.mxu3 %v2846_v55  ;;  %v2056_v12 = vmul.f32 %v7581_v35, %v2055_v43  ;;  %v1713_v22 = vadd.f32 %v1649_v19, %v10294_v3  ;;  %v7645_v44 = vmax.f32 %v2540_v24, 0.0  ;;  %vm2040_vm1 = vweird.f32 %v7422_v47  ;;  %v10296_v55 = vld [vmem:[#allocation89_spill] sm:$0xff]  ;;  %v5657_v47 = vld [vmem:[#allocation6 + $0xf4] sm:$0xf0] }
 0x26a   : > { %v7643_v62 = vpop.eup %5943  ;;  %5947 = vrsqrt.f32 %v7602_v38  ;;  %v1714_v21 = vadd.f32 %v1650_v7, %v10296_v55  ;;  %v2478_v63 = vmul.f32 %v6669_v27, %v2013_v5  ;;  %v2029_v9 = vmul.f32 %v7494_v4, %v2028_v59  ;;  %v5641_v55 = vld [vmem:[#allocation6 + $0x74] sm:$0xf0] }
 0x26b   : > { %10295 = vst [vmem:[#allocation21_spill] sm:$0xff] %v7645_v44  ;;  %vm2031_vm2 = vweird.f32 %v7494_v4  ;;  %v1651_v40 = vmul.f32 %v7622_v60, %v7622_v60  ;;  %v7655_v43 = vmax.f32 %v2541_v28, 0.0  ;;  %v2479_v19 = vmul.f32 %v6654_v31, %v2023_v1 }
 0x26c   : > { %vm2041_vm3 = vweird.f32 %v7508_v48  ;;  %v2048_v34 = vsub.f32 1.5, %v2047_v53  ;;  %v2039_v24 = vmul.f32 %v7508_v48, %v2038_v29  ;;  %v2057_v7 = vmul.f32 0.5, %v2056_v12  ;;  %vm7672_vm4 = vmor %vm2030_vm15, %vm2031_vm2 }
 0x26d   : > { %10297 = vst [vmem:[#allocation87_spill] sm:$0xff] %v7655_v43  ;;  %v7660_v58 = vadd.f32 1.1754944e-38, %v1713_v22  ;;  %v7662_v5 = vadd.f32 %v1344_v30, %v1255_v2  ;;  %v7668_v45 = vmul.f32 %v7645_v44, %v7062_v13  ;;  %vm2050_vm5 = vweird.f32 %v7451_v17  ;;  %v10301_v13 = vld [vmem:[#allocation90_spill] sm:$0xff]  ;;  %v5474_v22 = vld [vmem:[#allocation6 + $0x70] sm:$0xf]  ;;  %vm7699_vm6 = vmor %vm2040_vm1, %vm2041_vm3 }
 0x26e   : > { %v7664_v59 = vpop.eup %5945  ;;  %v2065_v53 = vmul.f32 %v7643_v62, %v7567_v26  ;;  %v7679_v1 = vadd.f32 1.1754944e-38, %v1714_v21  ;;  %v2542_v29 = vsub.f32 1.0, %v2478_v63  ;;  %v2033_v12 = vsel %vm7672_vm4, %v7494_v4, %v2029_v9  ;;  %v10303_v30 = vld [vmem:[#allocation26_spill] sm:$0xff] }
 0x26f   : > { %10298 = vst [vmem:[#allocation88_spill] sm:$0xff] %v7662_v5  ;;  %v1715_v3 = vadd.f32 %v1651_v40, %v10301_v13  ;;  %v7687_v37 = vadd.f32 %v7480_v56, %v7478_v57  ;;  %v7693_v44 = vmul.f32 %v7655_v43, %v10303_v30  ;;  %v2543_v21 = vsub.f32 1.0, %v2479_v19  ;;  %v5538_v40 = vld [vmem:[#allocation6 + $0xf0] sm:$0xf]  ;;  %v1522_v30 = vpop.f32.mrf.mxu3 }
 0x270   : > { %v7689_v2 = vpop.eup %5947  ;;  %v2049_v57 = vmul.f32 %v7530_v14, %v2048_v34  ;;  %vm2051_vm7 = vweird.f32 %v7530_v14  ;;  %v2043_v56 = vsel %vm7699_vm6, %v7508_v48, %v2039_v24  ;;  %v2058_v63 = vsub.f32 1.5, %v2057_v7  ;;  %v7734_v4 = vpop.f32.mrf.mxu0 }
 0x271   : > { %10302 = vst [vmem:[#allocation89_spill] sm:$0xff] %v7687_v37  ;;  %v2075_v9 = vmul.f32 %v7664_v59, %v7593_v42  ;;  %5949 = vrsqrt.f32 %v7660_v58  ;;  %v2480_v19 = vmul.f32 %v6669_v27, %v2033_v12  ;;  %v2066_v28 = vmul.f32 %v7643_v62, %v2065_v53  ;;  %vm7718_vm8 = vmor %vm2050_vm5, %vm2051_vm7  ;;  %v1433_v53 = vpop.f32.mrf.mxu2 }
 0x272   : > { %5951 = vrsqrt.f32 %v7679_v1  ;;  %v5475_v34 = vor.u32 %v5641_v55, %v5474_v22  ;;  %v7714_v13 = vmax.f32 %v2542_v29, 0.0  ;;  %v2085_v24 = vmul.f32 %v7689_v2, %v7602_v38 }
 0x273   : > { %v7724_v7 = vadd.f32 1.1754944e-38, %v1715_v3  ;;  %v1652_v12 = vmul.f32 %v7687_v37, %v7687_v37  ;;  %v2481_v22 = vmul.f32 %v6654_v31, %v2043_v56  ;;  %v2053_v17 = vsel %vm7718_vm8, %v7530_v14, %v2049_v57  ;;  %v7736_v3 = vpop.f32.mrf.mxu1 }
 0x274   : > { %10306 = vst [vmem:[#allocation90_spill] sm:$0xff] %v7714_v13  ;;  %v1653_v29 = vmul.f32 %v7558_v33, %v7558_v33  ;;  %3583 = vmatpush.bf16.msrb.mxu0 %v5475_v34  ;;  %v5539_v55 = vor.u32 %v5657_v47, %v5538_v40  ;;  %v7738_v50 = vmax.f32 %v2543_v21, 0.0  ;;  %v2059_v43 = vmul.f32 %v7581_v35, %v2058_v63  ;;  %v10311_v63 = vld [vmem:[#allocation91_spill] sm:$0xff] }
 0x275   : > { %vm2061_vm9 = vweird.f32 %v7581_v35  ;;  %v2076_v56 = vmul.f32 %v7664_v59, %v2075_v9  ;;  %v2544_v37 = vsub.f32 1.0, %v2480_v19  ;;  %vm2060_vm10 = vweird.f32 %v7500_v15  ;;  %v10312_v9 = vld [vmem:[#allocation121_spill] sm:$0xff] }
 0x276   : > { %10309 = vst [vmem:[#allocation26_spill] sm:$0xff] %v7738_v50  ;;  %v2067_v14 = vmul.f32 0.5, %v2066_v28  ;;  %3672 = vmatpush.bf16.msrb.mxu1 %v5539_v55  ;;  %v7744_v57 = vadd.f32 %v1522_v30, %v1433_v53  ;;  %v2482_v47 = vmul.f32 %v6669_v27, %v2053_v17  ;;  %v2086_v21 = vmul.f32 %v7689_v2, %v2085_v24  ;;  %vm7760_vm11 = vmor %vm2060_vm10, %vm2061_vm9  ;;  %v10315_v24 = vld [vmem:[#allocation92_spill] sm:$0xff]  ;;  %v10316_v30 = vld [vmem:[#allocation73_spill] sm:$0xff] }
 0x277   : > { %v7746_v40 = vpop.eup %5949  ;;  %5953 = vrsqrt.f32 %v7724_v7  ;;  %v1716_v34 = vadd.f32 %v1652_v12, %v10311_v63  ;;  %v7756_v19 = vmul.f32 %v7714_v13, %v10312_v9  ;;  %v2545_v15 = vsub.f32 1.0, %v2481_v22 }
 0x278   : > { %10310 = vst [vmem:[#allocation130_spill] sm:$0xff] %v7744_v57  ;;  %v7752_v48 = vpop.eup %5951  ;;  %vm2070_vm12 = vweird.f32 %v7567_v26  ;;  %v1717_v53 = vadd.f32 %v1653_v29, %v10315_v24  ;;  %v7768_v12 = vmul.f32 %v7738_v50, %v10316_v30  ;;  %v2063_v17 = vsel %vm7760_vm11, %v7581_v35, %v2059_v43 }
 0x279   : > { %v2077_v55 = vmul.f32 0.5, %v2076_v56  ;;  %v1654_v22 = vmul.f32 %v7599_v46, %v7599_v46  ;;  %v7775_v63 = vmax.f32 %v2544_v37, 0.0  ;;  %v2068_v9 = vsub.f32 1.5, %v2067_v14 }
 0x27a   : > { %vm2071_vm13 = vweird.f32 %v7643_v62  ;;  %v2095_v29 = vmul.f32 %v7746_v40, %v7660_v58  ;;  %v2546_v24 = vsub.f32 1.0, %v2482_v47  ;;  %v2087_v13 = vmul.f32 0.5, %v2086_v21  ;;  %v10320_v47 = vld [vmem:[#allocation93_spill] sm:$0xff] }
 0x27b   : > { %10317 = vst [vmem:[#allocation91_spill] sm:$0xff] %v7775_v63  ;;  %v2105_v30 = vmul.f32 %v7752_v48, %v7679_v1  ;;  %v7782_v50 = vadd.f32 1.1754944e-38, %v1716_v34  ;;  %v7784_v35 = vmax.f32 %v2545_v15, 0.0  ;;  %v2483_v43 = vmul.f32 %v6654_v31, %v2063_v17  ;;  %v7801_v15 = vpop.f32.mrf.mxu2  ;;  %v7803_v17 = vpop.f32.mrf.mxu3  ;;  %vm7825_vm0 = vmor %vm2070_vm12, %vm2071_vm13 }
 0x27c   : > { %v7787_v56 = vadd.f32 1.1754944e-38, %v1717_v53  ;;  %v7791_v37 = vadd.f32 %v7572_v18, %v7570_v11  ;;  %v2078_v28 = vsub.f32 1.5, %v2077_v55  ;;  %vm2080_vm14 = vweird.f32 %v7593_v42  ;;  %v1260_v55 = vpop.f32.mrf.mxu0 }
 0x27d   : > { %10318 = vst [vmem:[#allocation121_spill] sm:$0xff] %v7784_v35  ;;  %v7793_v14 = vpop.eup %5953  ;;  %v1718_v21 = vadd.f32 %v1654_v22, %v10320_v47  ;;  %v7799_v34 = vadd.f32 %v7641_v54, %v7639_v10  ;;  %v7807_v53 = vmul.f32 %v7775_v63, %v7168_v20  ;;  %v2069_v11 = vmul.f32 %v7643_v62, %v2068_v9  ;;  %v1349_v22 = vpop.f32.mrf.mxu1 }
 0x27e   : > { %10319 = vst [vmem:[#allocation92_spill] sm:$0xff] %v7791_v37  ;;  %vm2081_vm15 = vweird.f32 %v7664_v59  ;;  %v2096_v18 = vmul.f32 %v7746_v40, %v2095_v29  ;;  %v7812_v47 = vmax.f32 %v2546_v24, 0.0  ;;  %v2088_v10 = vsub.f32 1.5, %v2087_v13 }
 0x27f   : > { %v2106_v54 = vmul.f32 %v7752_v48, %v2105_v30  ;;  %5955 = vrsqrt.f32 %v7782_v50  ;;  %v2547_v46 = vsub.f32 1.0, %v2483_v43  ;;  %v2115_v20 = vmul.f32 %v7793_v14, %v7724_v7  ;;  %vm7857_vm2 = vmor %vm2080_vm14, %vm2081_vm15 }
 0x280   : > { %10321 = vst [vmem:[#allocation73_spill] sm:$0xff] %v7812_v47  ;;  %5957 = vrsqrt.f32 %v7787_v56  ;;  %v1655_v9 = vmul.f32 %v7791_v37, %v7791_v37  ;;  %v2079_v13 = vmul.f32 %v7664_v59, %v2078_v28  ;;  %v7830_v24 = vadd.f32 1.1754944e-38, %v1718_v21 }
 0x281   : > { %v1656_v30 = vmul.f32 %v7799_v34, %v7799_v34  ;;  %v7834_v43 = vadd.f32 %v1349_v22, %v1260_v55  ;;  %v2073_v63 = vsel %vm7825_vm0, %v7643_v62, %v2069_v11  ;;  %v2097_v37 = vmul.f32 0.5, %v2096_v18  ;;  %v10327_v62 = vld [vmem:[#allocation95_spill] sm:$0xff] }
 0x282   : > { %v2847_v26 = vpack.c.bf16 %v7467_v0, %v7342_v6  ;;  %v2848_v33 = vpack.c.bf16 %v7484_v61, %v7463_v32  ;;  %v7845_v28 = vmul.f32 %v7784_v35, %v7170_v49  ;;  %v2089_v21 = vmul.f32 %v7689_v2, %v2088_v10  ;;  %v10326_v32 = vld [vmem:[#allocation94_spill] sm:$0xff] }
 0x283   : > { %vm2091_vm1 = vweird.f32 %v7689_v2  ;;  %v2107_v55 = vmul.f32 0.5, %v2106_v54  ;;  %v7851_v22 = vmul.f32 %v7812_v47, %v7181_v23  ;;  %vm2090_vm3 = vweird.f32 %v7602_v38  ;;  %v5468_v38 = vld [vmem:[#allocation6 + $0x68] sm:$0xf0]  ;;  %v1438_v29 = vpop.f32.mrf.mxu2 }
 0x284   : > { %v2116_v49 = vmul.f32 %v7793_v14, %v2115_v20  ;;  %v1719_v0 = vadd.f32 %v1655_v9, %v10326_v32  ;;  %3085 = vmatmul.bf16.gmra.mxu0 %v2847_v26  ;;  %3174 = vmatmul.bf16.gmra.mxu1 %v2848_v33  ;;  %v2484_v23 = vmul.f32 %v6669_v27, %v2073_v63  ;;  %vm2100_vm4 = vweird.f32 %v7660_v58  ;;  %vm7881_vm5 = vmor %vm2090_vm3, %vm2091_vm1  ;;  %v5638_v9 = vld [vmem:[#allocation6 + $0x64] sm:$0xf] }
 0x285   : > { %v7864_v61 = vpop.eup %5955  ;;  %v2083_v42 = vsel %vm7857_vm2, %v7664_v59, %v2079_v13  ;;  %5959 = vrsqrt.f32 %v7830_v24  ;;  %v1720_v11 = vadd.f32 %v1656_v30, %v10327_v62  ;;  %3263 = vmatmul.bf16.gmra.mxu2 %v2847_v26  ;;  %3352 = vmatmul.bf16.gmra.mxu3 %v2848_v33  ;;  %v7875_v10 = vmax.f32 %v2547_v46, 0.0  ;;  %v1527_v13 = vpop.f32.mrf.mxu3 }
 0x286   : > { %v7873_v18 = vpop.eup %5957  ;;  %v2098_v59 = vsub.f32 1.5, %v2097_v37  ;;  %vm2110_vm6 = vweird.f32 %v7679_v1  ;;  %v1657_v54 = vmul.f32 %v7662_v5, %v7662_v5  ;;  %v2093_v33 = vsel %vm7881_vm5, %v7689_v2, %v2089_v21  ;;  %v5654_v2 = vld [vmem:[#allocation6 + $0xe4] sm:$0xf]  ;;  %v5532_v21 = vld [vmem:[#allocation6 + $0xe8] sm:$0xf0]  ;;  %v1262_v1 = vpop.f32.mrf.mxu0 }
 0x287   : > { %10328 = vst [vmem:[#allocation93_spill] sm:$0xff] %v7875_v10  ;;  %v2108_v46 = vsub.f32 1.5, %v2107_v55  ;;  %v1658_v20 = vmul.f32 %v7744_v57, %v7744_v57  ;;  %v7895_v37 = vpack.c.bf16 %v7545_v41, %v7498_v39  ;;  %v2485_v30 = vmul.f32 %v6654_v31, %v2083_v42  ;;  %v10331_v41 = vld [vmem:[#allocation96_spill] sm:$0xff]  ;;  %v10332_v57 = vld [vmem:[#allocation97_spill] sm:$0xff] }
 0x288   : > { %v2117_v26 = vmul.f32 0.5, %v2116_v49  ;;  %v2125_v6 = vmul.f32 %v7864_v61, %v7782_v50  ;;  %v7900_v32 = vadd.f32 1.1754944e-38, %v1719_v0  ;;  %v2135_v55 = vmul.f32 %v7873_v18, %v7787_v56 }
 0x289   : > { %v7904_v62 = vadd.f32 1.1754944e-38, %v1720_v11  ;;  %v5471_v63 = vor.u32 %v5638_v9, %v5468_v38  ;;  %v5535_v47 = vor.u32 %v5654_v2, %v5532_v21  ;;  %v2548_v35 = vsub.f32 1.0, %v2484_v23  ;;  %v1351_v2 = vpop.f32.mrf.mxu1 }
 0x28a   : > { %v2486_v39 = vmul.f32 %v6669_v27, %v2093_v33  ;;  %vm2101_vm7 = vweird.f32 %v7746_v40  ;;  %v1721_v49 = vadd.f32 %v1657_v54, %v10331_v41  ;;  %v2099_v0 = vmul.f32 %v7746_v40, %v2098_v59  ;;  %v5639_v41 = vld [vmem:[#allocation6 + $0x64] sm:$0xf0] }
 0x28b   : > { %v7909_v42 = vpop.eup %5959  ;;  %vm2111_vm8 = vweird.f32 %v7752_v48  ;;  %v1722_v5 = vadd.f32 %v1658_v20, %v10332_v57  ;;  %v7916_v11 = vadd.f32 %v7736_v3, %v7734_v4  ;;  %3762 = vmatpush.bf16.msrb.mxu2 %v5471_v63  ;;  %3851 = vmatpush.bf16.msrb.mxu3 %v5535_v47  ;;  %v2549_v23 = vsub.f32 1.0, %v2485_v30  ;;  %vm7930_vm10 = vmor %vm2100_vm4, %vm2101_vm7 }
 0x28c   : > { %v2109_v33 = vmul.f32 %v7752_v48, %v2108_v46  ;;  %v2118_v9 = vsub.f32 1.5, %v2117_v26  ;;  %5961 = vrsqrt.f32 %v7900_v32  ;;  %vm2120_vm9 = vweird.f32 %v7724_v7  ;;  %vm7946_vm12 = vmor %vm2110_vm6, %vm2111_vm8 }
 0x28d   : > { %v2126_v59 = vmul.f32 %v7864_v61, %v2125_v6  ;;  %v2136_v54 = vmul.f32 %v7873_v18, %v2135_v55  ;;  %5963 = vrsqrt.f32 %v7904_v62  ;;  %v7924_v57 = vmax.f32 %v2548_v35, 0.0 }
 0x28e   : > { %vm2121_vm11 = vweird.f32 %v7793_v14  ;;  %v2145_v3 = vmul.f32 %v7909_v42, %v7830_v24  ;;  %v7937_v47 = vadd.f32 1.1754944e-38, %v1721_v49  ;;  %v2550_v46 = vsub.f32 1.0, %v2486_v39  ;;  %v5466_v39 = vld [vmem:[#allocation6 + $0x60] sm:$0xf]  ;;  %v1440_v49 = vpop.f32.mrf.mxu2 }
 0x28f   : > { %10333 = vst [vmem:[#allocation94_spill] sm:$0xff] %v7924_v57  ;;  %v2103_v35 = vsel %vm7930_vm10, %v7746_v40, %v2099_v0  ;;  %v7950_v20 = vadd.f32 1.1754944e-38, %v1722_v5  ;;  %v1659_v38 = vmul.f32 %v7916_v11, %v7916_v11  ;;  %v7954_v30 = vmax.f32 %v2549_v23, 0.0  ;;  %v1529_v0 = vpop.f32.mrf.mxu3  ;;  %vm7981_vm13 = vmor %vm2120_vm9, %vm2121_vm11 }
 0x290   : > { %v2113_v26 = vsel %vm7946_vm12, %v7752_v48, %v2109_v33  ;;  %v2119_v40 = vmul.f32 %v7793_v14, %v2118_v9  ;;  %v7960_v6 = vadd.f32 %v1527_v13, %v1438_v29  ;;  %v2127_v21 = vmul.f32 0.5, %v2126_v59  ;;  %v5530_v33 = vld [vmem:[#allocation6 + $0xe0] sm:$0xf]  ;;  %v5655_v9 = vld [vmem:[#allocation6 + $0xe4] sm:$0xf0] }
 0x291   : > { %10338 = vst [vmem:[#allocation95_spill] sm:$0xff] %v7954_v30  ;;  %v2137_v55 = vmul.f32 0.5, %v2136_v54  ;;  %v7964_v5 = vadd.f32 %v7803_v17, %v7801_v15  ;;  %v7966_v63 = vadd.f32 %v1351_v2, %v1262_v1  ;;  %v2487_v48 = vmul.f32 %v6654_v31, %v2103_v35  ;;  %v10342_v54 = vld [vmem:[#allocation98_spill] sm:$0xff]  ;;  %v10344_v17 = vld [vmem:[#allocation99_spill] sm:$0xff] }
 0x292   : > { %v7968_v23 = vpop.eup %5961  ;;  %v2146_v29 = vmul.f32 %v7909_v42, %v2145_v3  ;;  %5965 = vrsqrt.f32 %v7937_v47  ;;  %v5467_v13 = vor.u32 %v5639_v41, %v5466_v39  ;;  %v7975_v15 = vmax.f32 %v2550_v46, 0.0 }
 0x293   : > { %v7973_v59 = vpop.eup %5963  ;;  %5967 = vrsqrt.f32 %v7950_v20  ;;  %v1723_v4 = vadd.f32 %v1659_v38, %v10342_v54  ;;  %v5531_v3 = vor.u32 %v5655_v9, %v5530_v33  ;;  %v7989_v35 = vmul.f32 %v7875_v10, %v7189_v8 }
 0x294   : > { %10339 = vst [vmem:[#allocation96_spill] sm:$0xff] %v7975_v15  ;;  %v2488_v46 = vmul.f32 %v6669_v27, %v2113_v26  ;;  %v2123_v58 = vsel %vm7981_vm13, %v7793_v14, %v2119_v40  ;;  %3584 = vmatpush.bf16.msrb.mxu0 %v5467_v13  ;;  %v7995_v7 = vadd.f32 %v1529_v0, %v1440_v49  ;;  %v2128_v1 = vsub.f32 1.5, %v2127_v21  ;;  %v10343_v21 = vld [vmem:[#allocation126_spill] sm:$0xff]  ;;  %v1354_v13 = vpop.f32.mrf.mxu1 }
 0x295   : > { %v2138_v2 = vsub.f32 1.5, %v2137_v55  ;;  %v2155_v39 = vmul.f32 %v7968_v23, %v7900_v32  ;;  %v1660_v38 = vmul.f32 %v7964_v5, %v7964_v5  ;;  %3673 = vmatpush.bf16.msrb.mxu1 %v5531_v3  ;;  %3090 = vmatmul.bf16.gmra.mxu0 %v7895_v37  ;;  %v8004_v8 = vmul.f32 %v7924_v57, %v7245_v25 }
 0x296   : > { %vm2130_vm14 = vweird.f32 %v7782_v50  ;;  %v2147_v14 = vmul.f32 0.5, %v2146_v29  ;;  %v2165_v26 = vmul.f32 %v7973_v59, %v7904_v62  ;;  %3268 = vmatmul.bf16.gmra.mxu2 %v7895_v37  ;;  %v8012_v40 = vmul.f32 %v7954_v30, %v7506_v51  ;;  %v1265_v37 = vpop.f32.mrf.mxu0 }
 0x297   : > { %v8016_v55 = vmul.f32 %v7975_v15, %v10343_v21  ;;  %v2551_v41 = vsub.f32 1.0, %v2487_v48  ;;  %v8018_v49 = vadd.f32 1.1754944e-38, %v1723_v4  ;;  %v2552_v0 = vsub.f32 1.0, %v2488_v46  ;;  %v10346_v21 = vld [vmem:[#allocation85_spill] sm:$0xff]  ;;  %v1443_v15 = vpop.f32.mrf.mxu2  ;;  %v1532_v10 = vpop.f32.mrf.mxu3 }
 0x298   : > { %v8020_v25 = vpop.eup %5965  ;;  %v2489_v29 = vmul.f32 %v6654_v31, %v2123_v58  ;;  %vm2131_vm15 = vweird.f32 %v7864_v61  ;;  %vm2141_vm0 = vweird.f32 %v7873_v18  ;;  %v2129_v33 = vmul.f32 %v7864_v61, %v2128_v1  ;;  %v10345_v58 = vld [vmem:[#allocation79_spill] sm:$0xff] }
 0x299   : > { %v8025_v51 = vpop.eup %5967  ;;  %v2139_v9 = vmul.f32 %v7873_v18, %v2138_v2  ;;  %v2156_v48 = vmul.f32 %v7968_v23, %v2155_v39  ;;  %v1724_v54 = vadd.f32 %v1660_v38, %v10344_v17  ;;  %v2148_v4 = vsub.f32 1.5, %v2147_v14  ;;  %vm8047_vm1 = vmor %vm2130_vm14, %vm2131_vm15 }
 0x29a   : > { %v2166_v3 = vmul.f32 %v7973_v59, %v2165_v26  ;;  %v8032_v46 = vadd.f32 %v1354_v13, %v1265_v37  ;;  %v2850_v57 = vpack.c.bf16 %v10346_v21, %v10345_v58  ;;  %v2175_v30 = vmul.f32 %v8020_v25, %v7937_v47 }
 0x29b   : > { %5969 = vrsqrt.f32 %v8018_v49  ;;  %v8039_v1 = vadd.f32 %v1532_v10, %v1443_v15  ;;  %v2851_v2 = vpack.c.bf16 %v7693_v44, %v7609_v52  ;;  %vm2140_vm2 = vweird.f32 %v7787_v56 }
 0x29c   : > { %v2185_v38 = vmul.f32 %v8025_v51, %v7950_v20  ;;  %v1661_v10 = vmul.f32 %v7834_v43, %v7834_v43  ;;  %3179 = vmatmul.bf16.gmra.mxu1 %v2850_v57  ;;  %3357 = vmatmul.bf16.gmra.mxu3 %v2850_v57  ;;  %v8058_v52 = vpack.c.bf16 %v7756_v19, %v7668_v45  ;;  %v8060_v44 = vmax.f32 %v2551_v41, 0.0  ;;  %vm8066_vm3 = vmor %vm2140_vm2, %vm2141_vm0 }
 0x29d   : > { %v8062_v50 = vmax.f32 %v2552_v0, 0.0  ;;  %v8070_v15 = vadd.f32 1.1754944e-38, %v1724_v54  ;;  %v8074_v14 = vpack.c.bf16 %v7845_v28, %v7768_v12  ;;  %v2553_v57 = vsub.f32 1.0, %v2489_v29  ;;  %v10353_v29 = vld [vmem:[#allocation100_spill] sm:$0xff] }
 0x29e   : > { %10349 = vst [vmem:[#allocation97_spill] sm:$0xff] %v8060_v44  ;;  %v2133_v45 = vsel %vm8047_vm1, %v7864_v61, %v2129_v33  ;;  %v2143_v19 = vsel %vm8066_vm3, %v7873_v18, %v2139_v9  ;;  %v8084_v26 = vpack.c.bf16 %v7851_v22, %v7807_v53  ;;  %v2149_v41 = vmul.f32 %v7909_v42, %v2148_v4  ;;  %v1267_v13 = vpop.f32.mrf.mxu0  ;;  %v1356_v18 = vpop.f32.mrf.mxu1 }
 0x29f   : > { %10350 = vst [vmem:[#allocation98_spill] sm:$0xff] %v8062_v50  ;;  %vm2151_vm4 = vweird.f32 %v7909_v42  ;;  %v2157_v0 = vmul.f32 0.5, %v2156_v48  ;;  %v2167_v12 = vmul.f32 0.5, %v2166_v3  ;;  %vm2150_vm5 = vweird.f32 %v7830_v24  ;;  %v1445_v58 = vpop.f32.mrf.mxu2  ;;  %v1534_v21 = vpop.f32.mrf.mxu3 }
 0x2a0   : > { %v2176_v28 = vmul.f32 %v8020_v25, %v2175_v30  ;;  %v2186_v61 = vmul.f32 %v8025_v51, %v2185_v38  ;;  %v1725_v37 = vadd.f32 %v1661_v10, %v10353_v29  ;;  %v2490_v53 = vmul.f32 %v6669_v27, %v2133_v45  ;;  %vm8111_vm6 = vmor %vm2150_vm5, %vm2151_vm4 }
 0x2a1   : > { %v8092_v33 = vpop.eup %5969  ;;  %5971 = vrsqrt.f32 %v8070_v15  ;;  %v1662_v22 = vmul.f32 %v7960_v6, %v7960_v6  ;;  %v8098_v9 = vadd.f32 %v1356_v18, %v1267_v13  ;;  %v8102_v24 = vmul.f32 %v8060_v44, %v7437_v36 }
 0x2a2   : > { %v8106_v30 = vmul.f32 %v8062_v50, %v7458_v16  ;;  %v2491_v48 = vmul.f32 %v6654_v31, %v2143_v19  ;;  %v1663_v54 = vmul.f32 %v7966_v63, %v7966_v63  ;;  %v8117_v4 = vmax.f32 %v2553_v57, 0.0  ;;  %v10358_v57 = vld [vmem:[#allocation101_spill] sm:$0xff] }
 0x2a3   : > { %10354 = vst [vmem:[#allocation126_spill] sm:$0xff] %v8098_v9  ;;  %v2153_v36 = vsel %vm8111_vm6, %v7909_v42, %v2149_v41  ;;  %v2158_v3 = vsub.f32 1.5, %v2157_v0  ;;  %v2168_v16 = vsub.f32 1.5, %v2167_v12  ;;  %v2177_v39 = vmul.f32 0.5, %v2176_v28  ;;  %v10359_v41 = vld [vmem:[#allocation102_spill] sm:$0xff] }
 0x2a4   : > { %10357 = vst [vmem:[#allocation99_spill] sm:$0xff] %v8117_v4  ;;  %v2187_v38 = vmul.f32 0.5, %v2186_v61  ;;  %v2195_v10 = vmul.f32 %v8092_v33, %v8018_v49  ;;  %v8124_v56 = vadd.f32 1.1754944e-38, %v1725_v37  ;;  %v2554_v45 = vsub.f32 1.0, %v2490_v53 }
 0x2a5   : > { %vm2160_vm7 = vweird.f32 %v7900_v32  ;;  %v1726_v19 = vadd.f32 %v1662_v22, %v10358_v57  ;;  %v8128_v29 = vadd.f32 %v1534_v21, %v1445_v58  ;;  %3095 = vmatmul.bf16.gmra.mxu0 %v2851_v2  ;;  %v2555_v42 = vsub.f32 1.0, %v2491_v48  ;;  %v5524_v32 = vld [vmem:[#allocation6 + $0xd8] sm:$0xf0] }
 0x2a6   : > { %vm2161_vm8 = vweird.f32 %v7968_v23  ;;  %vm2170_vm9 = vweird.f32 %v7904_v62  ;;  %v1727_v0 = vadd.f32 %v1663_v54, %v10359_v41  ;;  %3273 = vmatmul.bf16.gmra.mxu2 %v2851_v2  ;;  %v2492_v28 = vmul.f32 %v6669_v27, %v2153_v36  ;;  %v1270_v17 = vpop.f32.mrf.mxu0  ;;  %v1359_v54 = vpop.f32.mrf.mxu1  ;;  %v10366_v62 = vld [vmem:[#allocation103_spill] sm:$0xff] }
 0x2a7   : > { %v8133_v12 = vpop.eup %5971  ;;  %v2159_v61 = vmul.f32 %v7968_v23, %v2158_v3  ;;  %v2169_v37 = vmul.f32 %v7973_v59, %v2168_v16  ;;  %vm2171_vm10 = vweird.f32 %v7973_v59  ;;  %v2178_v13 = vsub.f32 1.5, %v2177_v39  ;;  %vm8154_vm12 = vmor %vm2160_vm7, %vm2161_vm8 }
 0x2a8   : > { %v2188_v18 = vsub.f32 1.5, %v2187_v38  ;;  %v2196_v53 = vmul.f32 %v8092_v33, %v2195_v10  ;;  %5973 = vrsqrt.f32 %v8124_v56  ;;  %v8141_v22 = vmax.f32 %v2554_v45, 0.0  ;;  %vm8170_vm14 = vmor %vm2170_vm9, %vm2171_vm10 }
 0x2a9   : > { %vm2180_vm11 = vweird.f32 %v7937_v47  ;;  %v8144_v2 = vadd.f32 1.1754944e-38, %v1726_v19  ;;  %v1664_v48 = vmul.f32 %v7995_v7, %v7995_v7  ;;  %v8148_v36 = vmax.f32 %v2555_v42, 0.0  ;;  %v10369_v47 = vld [vmem:[#allocation89_spill] sm:$0xff] }
 0x2aa   : > { %10360 = vst [vmem:[#allocation79_spill] sm:$0xff] %v8141_v22  ;;  %vm2190_vm13 = vweird.f32 %v7950_v20  ;;  %v2205_v16 = vmul.f32 %v8133_v12, %v8070_v15  ;;  %v8161_v58 = vadd.f32 1.1754944e-38, %v1727_v0  ;;  %v2556_v21 = vsub.f32 1.0, %v2492_v28  ;;  %v5652_v20 = vld [vmem:[#allocation6 + $0xd4] sm:$0xf] }
 0x2ab   : > { %10361 = vst [vmem:[#allocation85_spill] sm:$0xff] %v8148_v36  ;;  %v2163_v39 = vsel %vm8154_vm12, %v7968_v23, %v2159_v61  ;;  %vm2181_vm15 = vweird.f32 %v8020_v25  ;;  %vm2191_vm0 = vweird.f32 %v8025_v51  ;;  %v2173_v38 = vsel %vm8170_vm14, %v7973_v59, %v2169_v37 }
 0x2ac   : > { %v2179_v10 = vmul.f32 %v8020_v25, %v2178_v13  ;;  %v2189_v23 = vmul.f32 %v8025_v51, %v2188_v18  ;;  %v2197_v45 = vmul.f32 0.5, %v2196_v53  ;;  %3184 = vmatmul.bf16.gmra.mxu1 %v8058_v52  ;;  %3362 = vmatmul.bf16.gmra.mxu3 %v8058_v52  ;;  %5975 = vrsqrt.f32 %v8144_v2  ;;  %vm8193_vm1 = vmor %vm2180_vm11, %vm2181_vm15  ;;  %v10370_v13 = vld [vmem:[#allocation83_spill] sm:$0xff] }
 0x2ad   : > { %v1728_v57 = vadd.f32 %v1664_v48, %v10366_v62  ;;  %v1665_v19 = vmul.f32 %v8032_v46, %v8032_v46  ;;  %v8187_v42 = vadd.f32 %v1359_v54, %v1270_v17  ;;  %v2206_v0 = vmul.f32 %v8133_v12, %v2205_v16  ;;  %vm8222_vm2 = vmor %vm2190_vm13, %vm2191_vm0  ;;  %v1448_v48 = vpop.f32.mrf.mxu2  ;;  %v1537_v17 = vpop.f32.mrf.mxu3 }
 0x2ae   : > { %v8189_v41 = vpop.eup %5973  ;;  %5977 = vrsqrt.f32 %v8161_v58  ;;  %v1666_v52 = vmul.f32 %v8039_v1, %v8039_v1  ;;  %v8203_v28 = vpack.c.bf16 %v8016_v55, %v8004_v8  ;;  %v8207_v61 = vmul.f32 %v8117_v4, %v7622_v60  ;;  %v5636_v60 = vld [vmem:[#allocation6 + $0x54] sm:$0xf]  ;;  %v5460_v55 = vld [vmem:[#allocation6 + $0x58] sm:$0xf0]  ;;  %v1361_v44 = vpop.f32.mrf.mxu1 }
 0x2af   : > { %v8211_v37 = vmul.f32 %v8141_v22, %v10369_v47  ;;  %v8215_v18 = vmul.f32 %v8148_v36, %v10370_v13  ;;  %v2493_v53 = vmul.f32 %v6654_v31, %v2163_v39  ;;  %v2494_v54 = vmul.f32 %v6669_v27, %v2173_v38  ;;  %v10373_v13 = vld [vmem:[#allocation104_spill] sm:$0xff] }
 0x2b0   : > { %v2183_v3 = vsel %vm8193_vm1, %v8020_v25, %v2179_v10  ;;  %v2193_v16 = vsel %vm8222_vm2, %v8025_v51, %v2189_v23  ;;  %v2198_v39 = vsub.f32 1.5, %v2197_v45  ;;  %v2215_v62 = vmul.f32 %v8189_v41, %v8124_v56  ;;  %v10375_v10 = vld [vmem:[#allocation105_spill] sm:$0xff] }
 0x2b1   : > { %v8235_v47 = vadd.f32 1.1754944e-38, %v1728_v57  ;;  %v1729_v36 = vadd.f32 %v1665_v19, %v10373_v13  ;;  %v5463_v50 = vor.u32 %v5636_v60, %v5460_v55  ;;  %v8238_v38 = vmax.f32 %v2556_v21, 0.0  ;;  %v1272_v57 = vpop.f32.mrf.mxu0  ;;  %v5522_v13 = vld [vmem:[#allocation6 + $0xd0] sm:$0xf] }
 0x2b2   : > { %vm2200_vm3 = vweird.f32 %v8018_v49  ;;  %v2207_v25 = vmul.f32 0.5, %v2206_v0  ;;  %v1730_v59 = vadd.f32 %v1666_v52, %v10375_v10  ;;  %v8242_v8 = vpop.eup %5975  ;;  %v2557_v51 = vsub.f32 1.0, %v2493_v53 }
 0x2b3   : > { %10374 = vst [vmem:[#allocation100_spill] sm:$0xff] %v8238_v38  ;;  %v2495_v23 = vmul.f32 %v6654_v31, %v2183_v3  ;;  %3763 = vmatpush.bf16.msrb.mxu2 %v5463_v50  ;;  %v5527_v45 = vor.u32 %v5652_v20, %v5524_v32  ;;  %v8245_v22 = vadd.f32 %v1537_v17, %v1448_v48  ;;  %v2558_v21 = vsub.f32 1.0, %v2494_v54  ;;  %v5458_v3 = vld [vmem:[#allocation6 + $0x50] sm:$0xf] }
 0x2b4   : > { %v8247_v19 = vpop.eup %5977  ;;  %v2496_v60 = vmul.f32 %v6669_v27, %v2193_v16  ;;  %v2199_v0 = vmul.f32 %v8092_v33, %v2198_v39  ;;  %vm2201_vm4 = vweird.f32 %v8092_v33  ;;  %v2216_v52 = vmul.f32 %v8189_v41, %v2215_v62  ;;  %v5637_v16 = vld [vmem:[#allocation6 + $0x54] sm:$0xf0] }
 0x2b5   : > { %10376 = vst [vmem:[#allocation101_spill] sm:$0xff] %v8245_v22  ;;  %5979 = vrsqrt.f32 %v8235_v47  ;;  %v8254_v53 = vadd.f32 1.1754944e-38, %v1729_v36  ;;  %3852 = vmatpush.bf16.msrb.mxu3 %v5527_v45  ;;  %v8256_v50 = vadd.f32 %v1361_v44, %v1272_v57  ;;  %v2208_v55 = vsub.f32 1.5, %v2207_v25  ;;  %3100 = vmatmul.bf16.gmra.mxu0 %v8074_v14  ;;  %v10378_v36 = vld [vmem:[#allocation86_spill] sm:$0xff]  ;;  %vm8276_vm5 = vmor %vm2200_vm3, %vm2201_vm4  ;;  %v1450_v25 = vpop.f32.mrf.mxu2  ;;  %v1539_v10 = vpop.f32.mrf.mxu3 }
 0x2b6   : > { %v2225_v48 = vmul.f32 %v8242_v8, %v8144_v2  ;;  %v8260_v17 = vadd.f32 1.1754944e-38, %v1730_v59  ;;  %v1667_v54 = vmul.f32 %v8098_v9, %v8098_v9  ;;  %3278 = vmatmul.bf16.gmra.mxu2 %v8074_v14  ;;  %v8268_v39 = vmul.f32 %v8238_v38, %v10378_v36  ;;  %v5653_v14 = vld [vmem:[#allocation6 + $0xd4] sm:$0xf0] }
 0x2b7   : > { %10377 = vst [vmem:[#allocation102_spill] sm:$0xff] %v8256_v50  ;;  %v8270_v44 = vmax.f32 %v2557_v51, 0.0  ;;  %v2559_v20 = vsub.f32 1.0, %v2495_v23  ;;  %v2235_v62 = vmul.f32 %v8247_v19, %v8161_v58  ;;  %v8282_v59 = vmax.f32 %v2558_v21, 0.0  ;;  %v10383_v21 = vld [vmem:[#allocation106_spill] sm:$0xff] }
 0x2b8   : > { %v2560_v51 = vsub.f32 1.0, %v2496_v60  ;;  %v2203_v23 = vsel %vm8276_vm5, %v8092_v33, %v2199_v0  ;;  %vm2211_vm6 = vweird.f32 %v8133_v12  ;;  %v2217_v49 = vmul.f32 0.5, %v2216_v52 }
 0x2b9   : > { %10379 = vst [vmem:[#allocation103_spill] sm:$0xff] %v8270_v44  ;;  %5981 = vrsqrt.f32 %v8254_v53  ;;  %v5459_v45 = vor.u32 %v5637_v16, %v5458_v3  ;;  %v5523_v57 = vor.u32 %v5653_v14, %v5522_v13  ;;  %v2209_v36 = vmul.f32 %v8133_v12, %v2208_v55  ;;  %v1275_v55 = vpop.f32.mrf.mxu0  ;;  %v1364_v3 = vpop.f32.mrf.mxu1 }
 0x2ba   : > { %10382 = vst [vmem:[#allocation89_spill] sm:$0xff] %v8282_v59  ;;  %v2226_v38 = vmul.f32 %v8242_v8, %v2225_v48  ;;  %5983 = vrsqrt.f32 %v8260_v17  ;;  %v1731_v4 = vadd.f32 %v1667_v54, %v10383_v21  ;;  %v8295_v9 = vmax.f32 %v2559_v20, 0.0  ;;  %v10386_v48 = vld [vmem:[#allocation92_spill] sm:$0xff] }
 0x2bb   : > { %v8293_v60 = vpop.eup %5979  ;;  %v2236_v33 = vmul.f32 %v8247_v19, %v2235_v62  ;;  %v1668_v0 = vmul.f32 %v8128_v29, %v8128_v29  ;;  %3585 = vmatpush.bf16.msrb.mxu0 %v5459_v45  ;;  %3674 = vmatpush.bf16.msrb.mxu1 %v5523_v57  ;;  %v8300_v52 = vadd.f32 %v1539_v10, %v1450_v25  ;;  %vm2210_vm7 = vweird.f32 %v8070_v15  ;;  %v10392_v45 = vld [vmem:[#allocation107_spill] sm:$0xff] }
 0x2bc   : > { %10384 = vst [vmem:[#allocation83_spill] sm:$0xff] %v8295_v9  ;;  %v8304_v16 = vmul.f32 %v8270_v44, %v10386_v48  ;;  %v2497_v54 = vmul.f32 %v6654_v31, %v2203_v23  ;;  %v8308_v20 = vadd.f32 %v1364_v3, %v1275_v55  ;;  %3189 = vmatmul.bf16.gmra.mxu1 %v8084_v26  ;;  %v8312_v32 = vmax.f32 %v2560_v51, 0.0  ;;  %vm8316_vm8 = vmor %vm2210_vm7, %vm2211_vm6 }
 0x2bd   : > { %10385 = vst [vmem:[#allocation104_spill] sm:$0xff] %v8300_v52  ;;  %3367 = vmatmul.bf16.gmra.mxu3 %v8084_v26  ;;  %v2218_v13 = vsub.f32 1.5, %v2217_v49  ;;  %vm2220_vm9 = vweird.f32 %v8124_v56  ;;  %v8323_v15 = vpack.c.bf16 %v8211_v37, %v8106_v30  ;;  %v2213_v14 = vsel %vm8316_vm8, %v8133_v12, %v2209_v36  ;;  %v10391_v49 = vld [vmem:[#allocation88_spill] sm:$0xff]  ;;  %v1453_v12 = vpop.f32.mrf.mxu2 }
 0x2be   : > { %10387 = vst [vmem:[#allocation105_spill] sm:$0xff] %v8308_v20  ;;  %v2227_v26 = vmul.f32 0.5, %v2226_v38  ;;  %v2245_v25 = vmul.f32 %v8293_v60, %v8235_v47  ;;  %v8330_v10 = vadd.f32 1.1754944e-38, %v1731_v4  ;;  %v8336_v23 = vmul.f32 %v8282_v59, %v7799_v34  ;;  %v1542_v38 = vpop.f32.mrf.mxu3  ;;  %v10394_v34 = vld [vmem:[#allocation130_spill] sm:$0xff] }
 0x2bf   : > { %10388 = vst [vmem:[#allocation86_spill] sm:$0xff] %v8312_v32  ;;  %v8332_v51 = vpop.eup %5981  ;;  %v8340_v30 = vmul.f32 %v8295_v9, %v10391_v49  ;;  %v2237_v37 = vmul.f32 0.5, %v2236_v33  ;;  %v1732_v57 = vadd.f32 %v1668_v0, %v10392_v45  ;;  %v2561_v21 = vsub.f32 1.0, %v2497_v54  ;;  %v10399_v59 = vld [vmem:[#allocation110_spill] sm:$0xff] }
 0x2c0   : > { %v8343_v36 = vpop.eup %5983  ;;  %vm2221_vm10 = vweird.f32 %v8189_v41  ;;  %v1669_v4 = vmul.f32 %v8187_v42, %v8187_v42  ;;  %v8348_v55 = vadd.f32 %v1542_v38, %v1453_v12  ;;  %v8352_v3 = vmul.f32 %v8312_v32, %v10394_v34 }
 0x2c1   : > { %v2498_v33 = vmul.f32 %v6669_v27, %v2213_v14  ;;  %v2219_v0 = vmul.f32 %v8189_v41, %v2218_v13  ;;  %v1671_v48 = vmul.f32 %v8256_v50, %v8256_v50  ;;  %v2228_v62 = vsub.f32 1.5, %v2227_v26  ;;  %v1277_v13 = vpop.f32.mrf.mxu0  ;;  %v1366_v38 = vpop.f32.mrf.mxu1  ;;  %vm8373_vm12 = vmor %vm2220_vm9, %vm2221_vm10 }
 0x2c2   : > { %10393 = vst [vmem:[#allocation106_spill] sm:$0xff] %v8348_v55  ;;  %v2246_v54 = vmul.f32 %v8293_v60, %v2245_v25  ;;  %v2255_v49 = vmul.f32 %v8332_v51, %v8254_v53  ;;  %5985 = vrsqrt.f32 %v8330_v10  ;;  %vm2230_vm11 = vweird.f32 %v8144_v2  ;;  %v10398_v25 = vld [vmem:[#allocation108_spill] sm:$0xff] }
 0x2c3   : > { %v2238_v45 = vsub.f32 1.5, %v2237_v37  ;;  %v2265_v12 = vmul.f32 %v8343_v36, %v8260_v17  ;;  %v8365_v14 = vadd.f32 1.1754944e-38, %v1732_v57  ;;  %v8367_v34 = vmax.f32 %v2561_v21, 0.0 }
 0x2c4   : > { %v1733_v32 = vadd.f32 %v1669_v4, %v10398_v25  ;;  %v1670_v37 = vmul.f32 %v8245_v22, %v8245_v22  ;;  %v2855_v57 = vpack.c.bf16 %v8012_v40, %v7989_v35  ;;  %v2562_v9 = vsub.f32 1.0, %v2498_v33 }
 0x2c5   : > { %10395 = vst [vmem:[#allocation92_spill] sm:$0xff] %v8367_v34  ;;  %v2223_v21 = vsel %vm8373_vm12, %v8189_v41, %v2219_v0  ;;  %v1735_v44 = vadd.f32 %v1671_v48, %v10399_v59  ;;  %v8386_v56 = vadd.f32 %v1366_v38, %v1277_v13  ;;  %v2229_v50 = vmul.f32 %v8242_v8, %v2228_v62  ;;  %v1455_v41 = vpop.f32.mrf.mxu2  ;;  %v10401_v62 = vld [vmem:[#allocation109_spill] sm:$0xff] }
 0x2c6   : > { %vm2231_vm13 = vweird.f32 %v8242_v8  ;;  %v2247_v4 = vmul.f32 0.5, %v2246_v54  ;;  %v2256_v25 = vmul.f32 %v8332_v51, %v2255_v49  ;;  %3105 = vmatmul.bf16.gmra.mxu0 %v2855_v57  ;;  %3283 = vmatmul.bf16.gmra.mxu2 %v2855_v57  ;;  %v2239_v35 = vmul.f32 %v8247_v19, %v2238_v45  ;;  %v1544_v59 = vpop.f32.mrf.mxu3 }
 0x2c7   : > { %10400 = vst [vmem:[#allocation88_spill] sm:$0xff] %v8386_v56  ;;  %vm2241_vm14 = vweird.f32 %v8247_v19  ;;  %v2266_v40 = vmul.f32 %v8343_v36, %v2265_v12  ;;  %5987 = vrsqrt.f32 %v8365_v14  ;;  %v2499_v0 = vmul.f32 %v6654_v31, %v2223_v21  ;;  %vm8413_vm15 = vmor %vm2230_vm11, %vm2231_vm13 }
 0x2c8   : > { %v8395_v33 = vpop.eup %5985  ;;  %v8398_v48 = vadd.f32 1.1754944e-38, %v1733_v32  ;;  %v1734_v54 = vadd.f32 %v1670_v37, %v10401_v62  ;;  %v8401_v49 = vadd.f32 %v1544_v59, %v1455_v41  ;;  %v8405_v45 = vmul.f32 %v8367_v34, %v7916_v11 }
 0x2c9   : > { %v8407_v13 = vmax.f32 %v2562_v9, 0.0  ;;  %vm2240_vm0 = vweird.f32 %v8161_v58  ;;  %v8418_v32 = vadd.f32 1.1754944e-38, %v1735_v44  ;;  %v2233_v38 = vsel %vm8413_vm15, %v8242_v8, %v2229_v50  ;;  %v1369_v41 = vpop.f32.mrf.mxu1 }
 0x2ca   : > { %vm8425_vm1 = vmor %vm2240_vm0, %vm2241_vm14  ;;  %v2248_v9 = vsub.f32 1.5, %v2247_v4  ;;  %v2257_v2 = vmul.f32 0.5, %v2256_v25  ;;  %v1672_v26 = vmul.f32 %v8300_v52, %v8300_v52  ;;  %v2267_v44 = vmul.f32 0.5, %v2266_v40 }
 0x2cb   : > { %10402 = vst [vmem:[#allocation107_spill] sm:$0xff] %v8407_v13  ;;  %v2243_v58 = vsel %vm8425_vm1, %v8247_v19, %v2239_v35  ;;  %v2275_v37 = vmul.f32 %v8395_v33, %v8330_v10  ;;  %v8438_v8 = vpack.c.bf16 %v8336_v23, %v8268_v39  ;;  %v2563_v50 = vsub.f32 1.0, %v2499_v0  ;;  %v10407_v35 = vld [vmem:[#allocation111_spill] sm:$0xff] }
 0x2cc   : > { %vm2250_vm2 = vweird.f32 %v8235_v47  ;;  %5989 = vrsqrt.f32 %v8398_v48  ;;  %v8442_v57 = vadd.f32 1.1754944e-38, %v1734_v54  ;;  %3194 = vmatmul.bf16.gmra.mxu1 %v8203_v28  ;;  %v8450_v21 = vmul.f32 %v8407_v13, %v7964_v5 }
 0x2cd   : > { %3372 = vmatmul.bf16.gmra.mxu3 %v8203_v28  ;;  %v8446_v19 = vpop.eup %5987  ;;  %v2500_v39 = vmul.f32 %v6669_v27, %v2233_v38  ;;  %vm2251_vm3 = vweird.f32 %v8293_v60  ;;  %5991 = vrsqrt.f32 %v8418_v32  ;;  %v2501_v23 = vmul.f32 %v6654_v31, %v2243_v58  ;;  %v1280_v28 = vpop.f32.mrf.mxu0 }
 0x2ce   : > { %v2249_v4 = vmul.f32 %v8293_v60, %v2248_v9  ;;  %v2258_v25 = vsub.f32 1.5, %v2257_v2  ;;  %v1736_v40 = vadd.f32 %v1672_v26, %v10407_v35  ;;  %vm2260_vm4 = vweird.f32 %v8254_v53  ;;  %vm8472_vm6 = vmor %vm2250_vm2, %vm2251_vm3  ;;  %v1458_v13 = vpop.f32.mrf.mxu2  ;;  %v1547_v34 = vpop.f32.mrf.mxu3 }
 0x2cf   : > { %v2268_v59 = vsub.f32 1.5, %v2267_v44  ;;  %v2276_v5 = vmul.f32 %v8395_v33, %v2275_v37  ;;  %v1673_v0 = vmul.f32 %v8308_v20, %v8308_v20  ;;  %v8462_v62 = vmax.f32 %v2563_v50, 0.0 }
 0x2d0   : > { %vm2270_vm5 = vweird.f32 %v8260_v17  ;;  %v2285_v54 = vmul.f32 %v8446_v19, %v8365_v14  ;;  %5993 = vrsqrt.f32 %v8442_v57  ;;  %v2564_v12 = vsub.f32 1.0, %v2500_v39  ;;  %v10411_v39 = vld [vmem:[#allocation112_spill] sm:$0xff]  ;;  %v10418_v17 = vld [vmem:[#allocation113_spill] sm:$0xff] }
 0x2d1   : > { %10408 = vst [vmem:[#allocation130_spill] sm:$0xff] %v8462_v62  ;;  %vm2261_vm7 = vweird.f32 %v8332_v51  ;;  %vm2271_vm8 = vweird.f32 %v8343_v36  ;;  %v8478_v11 = vadd.f32 %v1369_v41, %v1280_v28  ;;  %v2565_v2 = vsub.f32 1.0, %v2501_v23  ;;  %v5634_v41 = vld [vmem:[#allocation6 + $0x44] sm:$0xf]  ;;  %v5452_v23 = vld [vmem:[#allocation6 + $0x48] sm:$0xf0]  ;;  %v1371_v22 = vpop.f32.mrf.mxu1 }
 0x2d2   : > { %v8480_v9 = vpop.eup %5989  ;;  %v2253_v26 = vsel %vm8472_vm6, %v8293_v60, %v2249_v4  ;;  %v2259_v58 = vmul.f32 %v8332_v51, %v2258_v25  ;;  %v8486_v47 = vadd.f32 1.1754944e-38, %v1736_v40  ;;  %v2269_v37 = vmul.f32 %v8343_v36, %v2268_v59  ;;  %vm8510_vm9 = vmor %vm2260_vm4, %vm2261_vm7 }
 0x2d3   : > { %v8488_v44 = vpop.eup %5991  ;;  %v2277_v50 = vmul.f32 0.5, %v2276_v5  ;;  %v1737_v35 = vadd.f32 %v1673_v0, %v10411_v39  ;;  %v1674_v28 = vmul.f32 %v8348_v55, %v8348_v55  ;;  %v2286_v60 = vmul.f32 %v8446_v19, %v2285_v54  ;;  %vm8527_vm10 = vmor %vm2270_vm5, %vm2271_vm8  ;;  %v10419_v54 = vld [vmem:[#allocation114_spill] sm:$0xff] }
 0x2d4   : > { %v1675_v4 = vmul.f32 %v8386_v56, %v8386_v56  ;;  %v5455_v25 = vor.u32 %v5634_v41, %v5452_v23  ;;  %v2857_v40 = vpack.c.bf16 %v8207_v61, %v8102_v24  ;;  %v8501_v59 = vmul.f32 %v8462_v62, %v7834_v43  ;;  %v5650_v24 = vld [vmem:[#allocation6 + $0xc4] sm:$0xf]  ;;  %v5516_v61 = vld [vmem:[#allocation6 + $0xc8] sm:$0xf0] }
 0x2d5   : > { %v8503_v5 = vmax.f32 %v2564_v12, 0.0  ;;  %v2502_v0 = vmul.f32 %v6669_v27, %v2253_v26  ;;  %v2295_v38 = vmul.f32 %v8480_v9, %v8398_v48  ;;  %v8518_v43 = vmax.f32 %v2565_v2, 0.0  ;;  %v1282_v20 = vpop.f32.mrf.mxu0 }
 0x2d6   : > { %v8516_v39 = vpop.eup %5993  ;;  %v2263_v12 = vsel %vm8510_vm9, %v8332_v51, %v2259_v58  ;;  %vm2280_vm11 = vweird.f32 %v8330_v10  ;;  %v2315_v26 = vmul.f32 %v8488_v44, %v8418_v32  ;;  %5995 = vrsqrt.f32 %v8486_v47  ;;  %3764 = vmatpush.bf16.msrb.mxu2 %v5455_v25  ;;  %3110 = vmatmul.bf16.gmra.mxu0 %v2857_v40 }
 0x2d7   : > { %10412 = vst [vmem:[#allocation108_spill] sm:$0xff] %v8503_v5  ;;  %v2273_v51 = vsel %vm8527_vm10, %v8343_v36, %v2269_v37  ;;  %v2278_v2 = vsub.f32 1.5, %v2277_v50  ;;  %v8538_v58 = vadd.f32 1.1754944e-38, %v1737_v35  ;;  %v1738_v41 = vadd.f32 %v1674_v28, %v10418_v17  ;;  %3288 = vmatmul.bf16.gmra.mxu2 %v2857_v40 }
 0x2d8   : > { %10415 = vst [vmem:[#allocation110_spill] sm:$0xff] %v8518_v43  ;;  %v2287_v23 = vmul.f32 0.5, %v2286_v60  ;;  %v1739_v62 = vadd.f32 %v1675_v4, %v10419_v54  ;;  %v5519_v55 = vor.u32 %v5650_v24, %v5516_v61  ;;  %v8542_v56 = vadd.f32 %v1547_v34, %v1458_v13  ;;  %v5635_v60 = vld [vmem:[#allocation6 + $0x44] sm:$0xf0]  ;;  %v1549_v4 = vpop.f32.mrf.mxu3  ;;  %v5514_v24 = vld [vmem:[#allocation6 + $0xc0] sm:$0xf] }
 0x2d9   : > { %v2566_v25 = vsub.f32 1.0, %v2502_v0  ;;  %v2296_v52 = vmul.f32 %v8480_v9, %v2295_v38  ;;  %v2305_v36 = vmul.f32 %v8516_v39, %v8442_v57  ;;  %v8547_v37 = vadd.f32 %v1371_v22, %v1282_v20  ;;  %v5450_v20 = vld [vmem:[#allocation6 + $0x40] sm:$0xf]  ;;  %v5651_v61 = vld [vmem:[#allocation6 + $0xc4] sm:$0xf0] }
 0x2da   : > { %v8551_v50 = vmul.f32 %v8503_v5, %v7960_v6  ;;  %v2503_v35 = vmul.f32 %v6654_v31, %v2263_v12  ;;  %v2316_v28 = vmul.f32 %v8488_v44, %v2315_v26  ;;  %v1676_v34 = vmul.f32 %v8401_v49, %v8401_v49  ;;  %3853 = vmatpush.bf16.msrb.mxu3 %v5519_v55  ;;  %v1460_v6 = vpop.f32.mrf.mxu2 }
 0x2db   : > { %v2504_v13 = vmul.f32 %v6669_v27, %v2273_v51  ;;  %vm2290_vm12 = vweird.f32 %v8365_v14  ;;  %5997 = vrsqrt.f32 %v8538_v58  ;;  %v8560_v22 = vadd.f32 1.1754944e-38, %v1738_v41  ;;  %v10421_v41 = vld [vmem:[#allocation115_spill] sm:$0xff] }
 0x2dc   : > { %v8562_v40 = vpop.eup %5995  ;;  %v2279_v0 = vmul.f32 %v8395_v33, %v2278_v2  ;;  %vm2281_vm13 = vweird.f32 %v8395_v33  ;;  %v2288_v38 = vsub.f32 1.5, %v2287_v23  ;;  %v8566_v55 = vadd.f32 1.1754944e-38, %v1739_v62  ;;  %3199 = vmatmul.bf16.gmra.mxu1 %v8323_v15 }
 0x2dd   : > { %3377 = vmatmul.bf16.gmra.mxu3 %v8323_v15  ;;  %v2821_v12 = vmul.f32 %v8518_v43, %v7966_v63  ;;  %v8572_v53 = vmax.f32 %v2566_v25, 0.0  ;;  %v2297_v26 = vmul.f32 0.5, %v2296_v52  ;;  %v2306_v51 = vmul.f32 %v8516_v39, %v2305_v36  ;;  %vm8580_vm14 = vmor %vm2280_vm11, %vm2281_vm13 }
 0x2de   : > { %v2567_v2 = vsub.f32 1.0, %v2503_v35  ;;  %v2317_v17 = vmul.f32 0.5, %v2316_v28  ;;  %v1740_v23 = vadd.f32 %v1676_v34, %v10421_v41  ;;  %v5451_v62 = vor.u32 %v5635_v60, %v5450_v20  ;;  %v1374_v20 = vpop.f32.mrf.mxu1 }
 0x2df   : > { %10420 = vst [vmem:[#allocation109_spill] sm:$0xff] %v8572_v53  ;;  %v2568_v54 = vsub.f32 1.0, %v2504_v13  ;;  %v2325_v63 = vmul.f32 %v8562_v40, %v8486_v47  ;;  %5999 = vrsqrt.f32 %v8560_v22  ;;  %v5515_v52 = vor.u32 %v5651_v61, %v5514_v24  ;;  %v1285_v13 = vpop.f32.mrf.mxu0 }
 0x2e0   : > { %v2283_v25 = vsel %vm8580_vm14, %v8395_v33, %v2279_v0  ;;  %v2289_v36 = vmul.f32 %v8446_v19, %v2288_v38  ;;  %vm2291_vm15 = vweird.f32 %v8446_v19  ;;  %6001 = vrsqrt.f32 %v8566_v55  ;;  %3586 = vmatpush.bf16.msrb.mxu0 %v5451_v62 }
 0x2e1   : > { %v8593_v10 = vpop.eup %5997  ;;  %v2298_v35 = vsub.f32 1.5, %v2297_v26  ;;  %v2307_v28 = vmul.f32 0.5, %v2306_v51  ;;  %3675 = vmatpush.bf16.msrb.mxu1 %v5515_v52  ;;  %v8595_v34 = vadd.f32 %v1549_v4, %v1460_v6  ;;  %v8599_v60 = vpack.c.bf16 %v8450_v21, %v8352_v3  ;;  %vm8619_vm0 = vmor %vm2290_vm12, %vm2291_vm15  ;;  %v1552_v51 = vpop.f32.mrf.mxu3 }
 0x2e2   : > { %v8603_v33 = vmul.f32 %v8572_v53, %v7995_v7  ;;  %v8605_v0 = vmax.f32 %v2567_v2, 0.0  ;;  %v2318_v38 = vsub.f32 1.5, %v2317_v17  ;;  %v8607_v24 = vadd.f32 1.1754944e-38, %v1740_v23  ;;  %v1463_v21 = vpop.f32.mrf.mxu2  ;;  %v5647_v53 = vld [vmem:[#allocation6 + $0xa4] sm:$0xf0] }
 0x2e3   : > { %v8609_v61 = vmax.f32 %v2568_v54, 0.0  ;;  %v2505_v6 = vmul.f32 %v6654_v31, %v2283_v25  ;;  %v2326_v4 = vmul.f32 %v8562_v40, %v2325_v63  ;;  %v8613_v26 = vadd.f32 %v1374_v20, %v1285_v13 }
 0x2e4   : > { %10424 = vst [vmem:[#allocation111_spill] sm:$0xff] %v8605_v0  ;;  %vm2301_vm1 = vweird.f32 %v8480_v9  ;;  %v2335_v3 = vmul.f32 %v8593_v10, %v8538_v58  ;;  %v2859_v2 = vpack.c.bf16 %v8304_v16, %v8215_v18  ;;  %v8629_v17 = vpack.c.bf16 %v2821_v12, %v8501_v59 }
 0x2e5   : > { %10425 = vst [vmem:[#allocation112_spill] sm:$0xff] %v8609_v61  ;;  %v8631_v41 = vpop.eup %5999  ;;  %v2293_v14 = vsel %vm8619_vm0, %v8446_v19, %v2289_v36  ;;  %v2299_v23 = vmul.f32 %v8480_v9, %v2298_v35  ;;  %v2308_v62 = vsub.f32 1.5, %v2307_v28  ;;  %v8637_v54 = vadd.f32 %v1552_v51, %v1463_v21 }
 0x2e6   : > { %v8639_v15 = vpop.eup %6001  ;;  %v2319_v63 = vmul.f32 %v8488_v44, %v2318_v38  ;;  %vm2321_vm2 = vweird.f32 %v8488_v44  ;;  %6003 = vrsqrt.f32 %v8607_v24  ;;  %v1677_v18 = vmul.f32 %v8478_v11, %v8478_v11  ;;  %3115 = vmatmul.bf16.gmra.mxu0 %v2859_v2  ;;  %v1376_v20 = vpop.f32.mrf.mxu1 }
 0x2e7   : > { %v2569_v16 = vsub.f32 1.0, %v2505_v6  ;;  %vm2300_vm3 = vweird.f32 %v8398_v48  ;;  %vm2320_vm4 = vweird.f32 %v8418_v32  ;;  %v2327_v19 = vmul.f32 0.5, %v2326_v4  ;;  %3293 = vmatmul.bf16.gmra.mxu2 %v2859_v2  ;;  %v1287_v13 = vpop.f32.mrf.mxu0  ;;  %v10432_v4 = vld [vmem:[#allocation116_spill] sm:$0xff] }
 0x2e8   : > { %v2506_v59 = vmul.f32 %v6669_v27, %v2293_v14  ;;  %vm8651_vm5 = vmor %vm2300_vm3, %vm2301_vm1  ;;  %vm2311_vm6 = vweird.f32 %v8516_v39  ;;  %v2336_v52 = vmul.f32 %v8593_v10, %v2335_v3  ;;  %v1679_v25 = vmul.f32 %v8547_v37, %v8547_v37 }
 0x2e9   : > { %v2303_v48 = vsel %vm8651_vm5, %v8480_v9, %v2299_v23  ;;  %v2309_v32 = vmul.f32 %v8516_v39, %v2308_v62  ;;  %vm8665_vm7 = vmor %vm2320_vm4, %vm2321_vm2  ;;  %v2345_v35 = vmul.f32 %v8631_v41, %v8560_v22  ;;  %v2355_v28 = vmul.f32 %v8639_v15, %v8566_v55  ;;  %v10436_v23 = vld [vmem:[#allocation118_spill] sm:$0xff] }
 0x2ea   : > { %v8675_v38 = vmul.f32 %v8605_v0, %v8032_v46  ;;  %v8679_v9 = vmul.f32 %v8609_v61, %v8039_v1  ;;  %v2323_v6 = vsel %vm8665_vm7, %v8488_v44, %v2319_v63  ;;  %v1741_v7 = vadd.f32 %v1677_v18, %v10432_v4  ;;  %v1465_v63 = vpop.f32.mrf.mxu2  ;;  %v1554_v18 = vpop.f32.mrf.mxu3  ;;  %v5646_v61 = vld [vmem:[#allocation6 + $0xa4] sm:$0xf]  ;;  %v5434_v0 = vld [vmem:[#allocation6 + $0x20] sm:$0xf] }
 0x2eb   : > { %v8685_v3 = vmax.f32 %v2569_v16, 0.0  ;;  %vm2310_vm8 = vweird.f32 %v8442_v57  ;;  %v2328_v21 = vsub.f32 1.5, %v2327_v19  ;;  %v8688_v51 = vadd.f32 %v1376_v20, %v1287_v13 }
 0x2ec   : > { %v8690_v2 = vpop.eup %6003  ;;  %v2570_v46 = vsub.f32 1.0, %v2506_v59  ;;  %v2507_v14 = vmul.f32 %v6654_v31, %v2303_v48  ;;  %vm8695_vm9 = vmor %vm2310_vm8, %vm2311_vm6  ;;  %v2337_v44 = vmul.f32 0.5, %v2336_v52  ;;  %v1743_v62 = vadd.f32 %v1679_v25, %v10436_v23  ;;  %3204 = vmatmul.bf16.gmra.mxu1 %v8438_v8 }
 0x2ed   : > { %10433 = vst [vmem:[#allocation113_spill] sm:$0xff] %v8685_v3  ;;  %3382 = vmatmul.bf16.gmra.mxu3 %v8438_v8  ;;  %v2313_v57 = vsel %vm8695_vm9, %v8516_v39, %v2309_v32  ;;  %v2509_v16 = vmul.f32 %v6654_v31, %v2323_v6  ;;  %v2346_v19 = vmul.f32 %v8631_v41, %v2345_v35  ;;  %v8708_v12 = vadd.f32 1.1754944e-38, %v1741_v7 }
 0x2ee   : > { %v2356_v59 = vmul.f32 %v8639_v15, %v2355_v28  ;;  %v1680_v52 = vmul.f32 %v8595_v34, %v8595_v34  ;;  %v8712_v25 = vadd.f32 %v1554_v18, %v1465_v63  ;;  %v8716_v8 = vpack.c.bf16 %v8603_v33, %v8551_v50  ;;  %v3165_v4 = vpop.f32.mrf.mxu1  ;;  %v10441_v63 = vld [vmem:[#allocation117_spill] sm:$0xff] }
 0x2ef   : > { %v2329_v48 = vmul.f32 %v8562_v40, %v2328_v21  ;;  %vm2331_vm10 = vweird.f32 %v8562_v40  ;;  %v2365_v39 = vmul.f32 %v8690_v2, %v8607_v24  ;;  %v1678_v32 = vmul.f32 %v8542_v56, %v8542_v56  ;;  %v3076_v6 = vpop.f32.mrf.mxu0 }
 0x2f0   : > { %v8724_v36 = vmax.f32 %v2570_v46, 0.0  ;;  %vm2330_vm11 = vweird.f32 %v8486_v47  ;;  %v2338_v35 = vsub.f32 1.5, %v2337_v44  ;;  %v8727_v28 = vadd.f32 1.1754944e-38, %v1743_v62  ;;  %v10440_v47 = vld [vmem:[#allocation119_spill] sm:$0xff]  ;;  %v5444_v44 = vld [vmem:[#allocation6 + $0x38] sm:$0xf0] }
 0x2f1   : > { %v2571_v13 = vsub.f32 1.0, %v2507_v14  ;;  %v8730_v50 = vmul.f32 %v6669_v27, %v2313_v57  ;;  %v2573_v33 = vsub.f32 1.0, %v2509_v16  ;;  %v8732_v20 = vmul.f32 0.5, %v2346_v19  ;;  %vm8734_vm12 = vmor %vm2330_vm11, %vm2331_vm10  ;;  %v5632_v14 = vld [vmem:[#allocation6 + $0x34] sm:$0xf] }
 0x2f2   : > { %10437 = vst [vmem:[#allocation114_spill] sm:$0xff] %v8724_v36  ;;  %v8738_v21 = vmul.f32 0.5, %v2356_v59  ;;  %6005 = vrsqrt.f32 %v8708_v12  ;;  %v1744_v46 = vadd.f32 %v1680_v52, %v10440_v47  ;;  %v8742_v1 = vadd.f32 %v3165_v4, %v3076_v6  ;;  %v5648_v16 = vld [vmem:[#allocation6 + $0xb4] sm:$0xf]  ;;  %v5508_v19 = vld [vmem:[#allocation6 + $0xb8] sm:$0xf0]  ;;  %v3254_v59 = vpop.f32.mrf.mxu2  ;;  %v3343_v52 = vpop.f32.mrf.mxu3 }
 0x2f3   : > { %v2333_v23 = vsel %vm8734_vm12, %v8562_v40, %v2329_v48  ;;  %vm2340_vm13 = vweird.f32 %v8538_v58  ;;  %v2366_v62 = vmul.f32 %v8690_v2, %v2365_v39  ;;  %v1742_v18 = vadd.f32 %v1678_v32, %v10441_v63  ;;  %v5506_v63 = vld [vmem:[#allocation6 + $0xb0] sm:$0xf] }
 0x2f4   : > { %v2339_v57 = vmul.f32 %v8593_v10, %v2338_v35  ;;  %vm2341_vm14 = vweird.f32 %v8593_v10  ;;  %6007 = vrsqrt.f32 %v8727_v28  ;;  %v2861_v6 = vpack.c.bf16 %v8405_v45, %v8340_v30 }
 0x2f5   : > { %v8755_v40 = vmax.f32 %v2571_v13, 0.0  ;;  %v2572_v48 = vsub.f32 1.0, %v8730_v50  ;;  %v8758_v39 = vmax.f32 %v2573_v33, 0.0  ;;  %v5447_v32 = vor.u32 %v5632_v14, %v5444_v44  ;;  %vm8771_vm15 = vmor %vm2340_vm13, %vm2341_vm14 }
 0x2f6   : > { %v8761_v35 = vmul.f32 %v6669_v27, %v2333_v23  ;;  %v2358_v7 = vsub.f32 1.5, %v8738_v21  ;;  %v8765_v47 = vadd.f32 1.1754944e-38, %v1744_v46  ;;  %3120 = vmatmul.bf16.gmra.mxu0 %v2861_v6  ;;  %v8775_v45 = vmul.f32 0.5, %v2366_v62  ;;  %v10446_v46 = vld [vmem:[#allocation126_spill] sm:$0xff]  ;;  %v5442_v23 = vld [vmem:[#allocation6 + $0x30] sm:$0xf] }
 0x2f7   : > { %10442 = vst [vmem:[#allocation115_spill] sm:$0xff] %v8755_v40  ;;  %v8777_v13 = vadd.f32 1.1754944e-38, %v1742_v18  ;;  %v1683_v50 = vmul.f32 %v8688_v51, %v8688_v51  ;;  %3765 = vmatpush.bf16.msrb.mxu2 %v5447_v32  ;;  %v5511_v33 = vor.u32 %v5648_v16, %v5508_v19  ;;  %v8785_v14 = vmul.f32 %v8685_v3, %v10446_v46  ;;  %v5633_v62 = vld [vmem:[#allocation6 + $0x34] sm:$0xf0]  ;;  %v3078_v16 = vpop.f32.mrf.mxu0  ;;  %v3167_v19 = vpop.f32.mrf.mxu1  ;;  %v5436_v32 = vld [vmem:[#allocation6 + $0x28] sm:$0xf0] }
 0x2f8   : > { %10443 = vst [vmem:[#allocation116_spill] sm:$0xff] %v8758_v39  ;;  %v8781_v21 = vpop.eup %6005  ;;  %v8789_v58 = vmul.f32 %v8724_v36, %v8128_v29  ;;  %v2343_v44 = vsel %vm8771_vm15, %v8593_v10, %v2339_v57  ;;  %vm2360_vm0 = vweird.f32 %v8566_v55  ;;  %3298 = vmatmul.bf16.gmra.mxu2 %v2861_v6  ;;  %v8797_v18 = vmul.f32 %v8755_v40, %v8187_v42  ;;  %v5649_v10 = vld [vmem:[#allocation6 + $0xb4] sm:$0xf0]  ;;  %v5630_v57 = vld [vmem:[#allocation6 + $0x24] sm:$0xf] }
 0x2f9   : > { %vm2351_vm1 = vweird.f32 %v8631_v41  ;;  %vm2361_vm2 = vweird.f32 %v8639_v15  ;;  %3854 = vmatpush.bf16.msrb.mxu3 %v5511_v33  ;;  %v8801_v29 = vadd.f32 %v3343_v52, %v3254_v59  ;;  %v2574_v6 = vsub.f32 1.0, %v8761_v35  ;;  %v10449_v59 = vld [vmem:[#allocation102_spill] sm:$0xff]  ;;  %v10450_v35 = vld [vmem:[#allocation123_spill] sm:$0xff] }
 0x2fa   : > { %v8803_v30 = vpop.eup %6007  ;;  %vm2350_vm3 = vweird.f32 %v8560_v22  ;;  %6009 = vrsqrt.f32 %v8765_v47  ;;  %v1681_v42 = vmul.f32 %v8613_v26, %v8613_v26  ;;  %v8810_v46 = vadd.f32 %v3167_v19, %v3078_v16  ;;  %v5500_v36 = vld [vmem:[#allocation6 + $0xa8] sm:$0xf0]  ;;  %v3256_v19 = vpop.f32.mrf.mxu2  ;;  %vm8850_vm4 = vmor %vm2360_vm0, %vm2361_vm2 }
 0x2fb   : > { %10447 = vst [vmem:[#allocation118_spill] sm:$0xff] %v8801_v29  ;;  %v8814_v52 = vmul.f32 %v8758_v39, %v10449_v59  ;;  %v8817_v33 = vmul.f32 %v6654_v31, %v2343_v44  ;;  %v2375_v4 = vmul.f32 %v8781_v21, %v8708_v12  ;;  %v1747_v40 = vadd.f32 %v1683_v50, %v10450_v35  ;;  %v3345_v5 = vpop.f32.mrf.mxu3  ;;  %v5631_v59 = vld [vmem:[#allocation6 + $0x24] sm:$0xf0]  ;;  %v5498_v39 = vld [vmem:[#allocation6 + $0xa0] sm:$0xf]  ;;  %vm8881_vm6 = vmor %vm2350_vm3, %vm2351_vm1 }
 0x2fc   : > { %10448 = vst [vmem:[#allocation119_spill] sm:$0xff] %v8810_v46  ;;  %6011 = vrsqrt.f32 %v8777_v13  ;;  %v5443_v3 = vor.u32 %v5633_v62, %v5442_v23  ;;  %v5507_v16 = vor.u32 %v5649_v10, %v5506_v63  ;;  %3209 = vmatmul.bf16.gmra.mxu1 %v8599_v60  ;;  %v5439_v44 = vor.u32 %v5630_v57, %v5436_v32  ;;  %v10451_v62 = vld [vmem:[#allocation120_spill] sm:$0xff] }
 0x2fd   : > { %3387 = vmatmul.bf16.gmra.mxu3 %v8599_v60  ;;  %v2359_v43 = vmul.f32 %v8639_v15, %v2358_v7  ;;  %v2368_v50 = vsub.f32 1.5, %v8775_v45  ;;  %v2395_v35 = vmul.f32 %v8803_v30, %v8727_v28  ;;  %v8829_v46 = vadd.f32 %v3345_v5, %v3256_v19 }
 0x2fe   : > { %v8831_v23 = vmax.f32 %v2572_v48, 0.0  ;;  %v1745_v63 = vadd.f32 %v1681_v42, %v10451_v62  ;;  %v1684_v60 = vmul.f32 %v8712_v25, %v8712_v25  ;;  %3587 = vmatpush.bf16.msrb.mxu0 %v5443_v3  ;;  %3676 = vmatpush.bf16.msrb.mxu1 %v5507_v16  ;;  %v5503_v10 = vor.u32 %v5646_v61, %v5500_v36 }
 0x2ff   : > { %v2376_v57 = vmul.f32 %v8781_v21, %v2375_v4  ;;  %v8837_v7 = vadd.f32 1.1754944e-38, %v1747_v40  ;;  %3766 = vmatpush.bf16.msrb.mxu2 %v5439_v44  ;;  %v5435_v45 = vor.u32 %v5631_v59, %v5434_v0  ;;  %v5499_v32 = vor.u32 %v5647_v53, %v5498_v39  ;;  %v3170_v55 = vpop.f32.mrf.mxu1  ;;  %v10458_v44 = vld [vmem:[#allocation122_spill] sm:$0xff] }
 0x300   : > { %v8839_v29 = vpop.eup %6009  ;;  %v8841_v5 = vmax.f32 %v2574_v6, 0.0  ;;  %v10452_v48 = vsub.f32 1.5, %v8732_v20  ;;  %vm2371_vm5 = vweird.f32 %v8690_v2  ;;  %v1682_v53 = vmul.f32 %v8637_v54, %v8637_v54  ;;  %3855 = vmatpush.bf16.msrb.mxu3 %v5503_v10  ;;  %v3081_v20 = vpop.f32.mrf.mxu0  ;;  %v10455_v6 = vld [vmem:[#allocation124_spill] sm:$0xff] }
 0x301   : > { %v2363_v0 = vsel %vm8850_vm4, %v8639_v15, %v2359_v43  ;;  %v2369_v3 = vmul.f32 %v8690_v2, %v2368_v50  ;;  %v2396_v36 = vmul.f32 %v8803_v30, %v2395_v35  ;;  %v8864_v40 = vpack.c.bf16 %v8785_v14, %v8675_v38  ;;  %v10461_v10 = vld [vmem:[#allocation104_spill] sm:$0xff] }
 0x302   : > { %v2349_v42 = vmul.f32 %v8631_v41, %v10452_v48  ;;  %v8866_v39 = vpop.eup %6011  ;;  %v8868_v4 = vadd.f32 1.1754944e-38, %v1745_v63  ;;  %v1748_v16 = vadd.f32 %v1684_v60, %v10455_v6  ;;  %v8871_v19 = vadd.f32 %v3170_v55, %v3081_v20  ;;  %3588 = vmatpush.bf16.msrb.mxu0 %v5435_v45  ;;  %3677 = vmatpush.bf16.msrb.mxu1 %v5499_v32  ;;  %v3259_v59 = vpop.f32.mrf.mxu2  ;;  %v10462_v48 = vld [vmem:[#allocation101_spill] sm:$0xff] }
 0x303   : > { %v8875_v43 = vpack.c.bf16 %v8789_v58, %v8679_v9  ;;  %vm2370_vm7 = vweird.f32 %v8607_v24  ;;  %v2377_v38 = vmul.f32 0.5, %v2376_v57  ;;  %v2405_v14 = vmul.f32 %v8839_v29, %v8765_v47  ;;  %v3348_v50 = vpop.f32.mrf.mxu3 }
 0x304   : > { %6013 = vrsqrt.f32 %v8837_v7  ;;  %v2353_v9 = vsel %vm8881_vm6, %v8631_v41, %v2349_v42  ;;  %v2513_v58 = vmul.f32 %v6654_v31, %v2363_v0  ;;  %v1746_v22 = vadd.f32 %v1682_v53, %v10458_v44  ;;  %vm8901_vm8 = vmor %vm2370_vm7, %vm2371_vm5 }
 0x305   : > { %v8896_v35 = vpack.c.bf16 %v8814_v52, %v8797_v18  ;;  %v2575_v24 = vsub.f32 1.0, %v8817_v33  ;;  %v2385_v41 = vmul.f32 %v8866_v39, %v8777_v13  ;;  %v2397_v63 = vmul.f32 0.5, %v2396_v36 }
 0x306   : > { %v8907_v60 = vadd.f32 %v3348_v50, %v3259_v59  ;;  %v2830_v57 = vmul.f32 %v8841_v5, %v10461_v10  ;;  %v2373_v18 = vsel %vm8901_vm8, %v8690_v2, %v2369_v3  ;;  %6015 = vrsqrt.f32 %v8868_v4  ;;  %3125 = vmatmul.bf16.gmra.mxu0 %v8629_v17 }
 0x307   : > { %v8915_v52 = vadd.f32 1.1754944e-38, %v1748_v16  ;;  %v2512_v33 = vmul.f32 %v6669_v27, %v2353_v9  ;;  %v2378_v45 = vsub.f32 1.5, %v2377_v38  ;;  %v2406_v32 = vmul.f32 %v8839_v29, %v2405_v14  ;;  %v3172_v6 = vpop.f32.mrf.mxu1 }
 0x308   : > { %v2828_v42 = vmul.f32 %v8831_v23, %v10462_v48  ;;  %v2577_v61 = vsub.f32 1.0, %v2513_v58  ;;  %v8922_v53 = vadd.f32 1.1754944e-38, %v1746_v22  ;;  %3303 = vmatmul.bf16.gmra.mxu2 %v8629_v17  ;;  %v8927_v0 = vmax.f32 %v2575_v24, 0.0  ;;  %v3083_v55 = vpop.f32.mrf.mxu0 }
 0x309   : > { %v2514_v3 = vmul.f32 %v6669_v27, %v2373_v18  ;;  %v2386_v36 = vmul.f32 %v8866_v39, %v2385_v41  ;;  %v2398_v20 = vsub.f32 1.5, %v2397_v63  ;;  %vm2380_vm9 = vweird.f32 %v8708_v12  ;;  %v10466_v12 = vld [vmem:[#allocation88_spill] sm:$0xff] }
 0x30a   : > { %v8925_v2 = vpop.eup %6013  ;;  %6017 = vrsqrt.f32 %v8915_v52  ;;  %v8933_v16 = vadd.f32 %v3172_v6, %v3083_v55  ;;  %v8935_v15 = vpack.c.bf16 %v2830_v57, %v2828_v42  ;;  %v2576_v17 = vsub.f32 1.0, %v2512_v33  ;;  %v3261_v22 = vpop.f32.mrf.mxu2  ;;  %v10465_v33 = vld [vmem:[#allocation105_spill] sm:$0xff] }
 0x30b   : > { %v2379_v38 = vmul.f32 %v8781_v21, %v2378_v45  ;;  %vm2381_vm10 = vweird.f32 %v8781_v21  ;;  %v2407_v14 = vmul.f32 0.5, %v2406_v32  ;;  %v8941_v58 = vmax.f32 %v2577_v61, 0.0  ;;  %v3350_v59 = vpop.f32.mrf.mxu3 }
 0x30c   : > { %v8939_v9 = vpop.eup %6015  ;;  %vm2401_vm11 = vweird.f32 %v8803_v30  ;;  %6019 = vrsqrt.f32 %v8922_v53  ;;  %v2435_v44 = vmul.f32 %v8925_v2, %v8837_v7  ;;  %3214 = vmatmul.bf16.gmra.mxu1 %v8716_v8  ;;  %v2578_v50 = vsub.f32 1.0, %v2514_v3  ;;  %vm8956_vm12 = vmor %vm2380_vm9, %vm2381_vm10 }
 0x30d   : > { %3392 = vmatmul.bf16.gmra.mxu3 %v8716_v8  ;;  %v2387_v24 = vmul.f32 0.5, %v2386_v36  ;;  %v2399_v62 = vmul.f32 %v8803_v30, %v2398_v20  ;;  %v8950_v41 = vadd.f32 %v3350_v59, %v3261_v22  ;;  %v2383_v10 = vsel %vm8956_vm12, %v8781_v21, %v2379_v38  ;;  %v5628_v38 = vld [vmem:[#allocation6 + $0x14] sm:$0xf] }
 0x30e   : > { %vm2400_vm13 = vweird.f32 %v8727_v28  ;;  %v2408_v8 = vsub.f32 1.5, %v2407_v14  ;;  %v2415_v57 = vmul.f32 %v8939_v9, %v8868_v4  ;;  %v2831_v45 = vmul.f32 %v8927_v0, %v10465_v33  ;;  %v5428_v14 = vld [vmem:[#allocation6 + $0x18] sm:$0xf0] }
 0x30f   : > { %v2833_v32 = vmul.f32 %v8941_v58, %v10466_v12  ;;  %vm8974_vm14 = vmor %vm2400_vm13, %vm2401_vm11  ;;  %v2436_v28 = vmul.f32 %v8925_v2, %v2435_v44  ;;  %v8979_v21 = vmax.f32 %v2576_v17, 0.0  ;;  %v8981_v42 = vmax.f32 %v2578_v50, 0.0  ;;  %v3175_v20 = vpop.f32.mrf.mxu1  ;;  %v5644_v44 = vld [vmem:[#allocation6 + $0x94] sm:$0xf] }
 0x310   : > { %v8966_v18 = vpop.eup %6017  ;;  %v2388_v61 = vsub.f32 1.5, %v2387_v24  ;;  %v2403_v3 = vsel %vm8974_vm14, %v8803_v30, %v2399_v62  ;;  %v3086_v36 = vpop.f32.mrf.mxu0  ;;  %v8989_v6 = vmul.f32 %v6654_v31, %v2383_v10  ;;  %vm2391_vm15 = vweird.f32 %v8866_v39  ;;  %v5492_v24 = vld [vmem:[#allocation6 + $0x98] sm:$0xf0] }
 0x311   : > { %vm2411_vm0 = vweird.f32 %v8839_v29  ;;  %v8993_v17 = vadd.f32 %v3175_v20, %v3086_v36  ;;  %v2409_v22 = vmul.f32 %v8839_v29, %v2408_v8  ;;  %v2416_v30 = vmul.f32 %v8939_v9, %v2415_v57 }
 0x312   : > { %v8986_v55 = vpop.eup %6019  ;;  %v2445_v59 = vmul.f32 %v8966_v18, %v8915_v52  ;;  %v5431_v50 = vor.u32 %v5628_v38, %v5428_v14  ;;  %v2517_v62 = vmul.f32 %v6654_v31, %v2403_v3  ;;  %v2437_v63 = vmul.f32 0.5, %v2436_v28  ;;  %v3264_v10 = vpop.f32.mrf.mxu2 }
 0x313   : > { %v3353_v33 = vpop.f32.mrf.mxu3  ;;  %v5495_v12 = vor.u32 %v5644_v44, %v5492_v24  ;;  %v9000_v48 = vpack.c.bf16 %v2833_v32, %v2831_v45  ;;  %v2389_v36 = vmul.f32 %v8866_v39, %v2388_v61  ;;  %vm2410_vm1 = vweird.f32 %v8765_v47  ;;  %v10471_v61 = vld [vmem:[#allocation106_spill] sm:$0xff] }
 0x314   : > { %v2425_v8 = vmul.f32 %v8986_v55, %v8922_v53  ;;  %v9006_v57 = vadd.f32 %v3353_v33, %v3264_v10  ;;  %3767 = vmatpush.bf16.msrb.mxu2 %v5431_v50  ;;  %v2834_v20 = vmul.f32 %v8981_v42, %v8401_v49  ;;  %vm9012_vm2 = vmor %vm2410_vm1, %vm2411_vm0  ;;  %vm2390_vm3 = vweird.f32 %v8777_v13  ;;  %v5490_v50 = vld [vmem:[#allocation6 + $0x90] sm:$0xf] }
 0x315   : > { %3856 = vmatpush.bf16.msrb.mxu3 %v5495_v12  ;;  %v2413_v47 = vsel %vm9012_vm2, %v8839_v29, %v2409_v22  ;;  %v2417_v45 = vmul.f32 0.5, %v2416_v30  ;;  %v2446_v32 = vmul.f32 %v8966_v18, %v2445_v59  ;;  %v2832_v49 = vmul.f32 %v8979_v21, %v10471_v61  ;;  %vm9027_vm4 = vmor %vm2390_vm3, %vm2391_vm15  ;;  %v5426_v59 = vld [vmem:[#allocation6 + $0x10] sm:$0xf] }
 0x316   : > { %3130 = vmatmul.bf16.gmra.mxu0 %v8864_v40  ;;  %v2579_v3 = vsub.f32 1.0, %v8989_v6  ;;  %v2581_v14 = vsub.f32 1.0, %v2517_v62  ;;  %v2438_v13 = vsub.f32 1.5, %v2437_v63  ;;  %v2393_v29 = vsel %vm9027_vm4, %v8866_v39, %v2389_v36  ;;  %v5629_v6 = vld [vmem:[#allocation6 + $0x14] sm:$0xf0] }
 0x317   : > { %v2426_v44 = vmul.f32 %v8986_v55, %v2425_v8  ;;  %v3177_v30 = vpop.f32.mrf.mxu1  ;;  %v2518_v24 = vmul.f32 %v6669_v27, %v2413_v47  ;;  %v5427_v33 = vor.u32 %v5629_v6, %v5426_v59  ;;  %v5645_v62 = vld [vmem:[#allocation6 + $0x94] sm:$0xf0]  ;;  %v9039_v63 = vpack.c.bf16 %v2834_v20, %v2832_v49 }
 0x318   : > { %3308 = vmatmul.bf16.gmra.mxu2 %v8864_v40  ;;  %v3088_v22 = vpop.f32.mrf.mxu0  ;;  %v2418_v40 = vsub.f32 1.5, %v2417_v45  ;;  %v2447_v12 = vmul.f32 0.5, %v2446_v32  ;;  %v5491_v28 = vor.u32 %v5645_v62, %v5490_v50  ;;  %v2516_v39 = vmul.f32 %v6669_v27, %v2393_v29 }
 0x319   : > { %v9037_v10 = vadd.f32 %v3177_v30, %v3088_v22  ;;  %v9042_v36 = vmax.f32 %v2581_v14, 0.0  ;;  %v2427_v47 = vmul.f32 0.5, %v2426_v44  ;;  %v2439_v38 = vmul.f32 %v8925_v2, %v2438_v13  ;;  %3589 = vmatpush.bf16.msrb.mxu0 %v5427_v33 }
 0x31a   : > { %v3266_v8 = vpop.f32.mrf.mxu2  ;;  %vm2441_vm5 = vweird.f32 %v8925_v2  ;;  %3678 = vmatpush.bf16.msrb.mxu1 %v5491_v28  ;;  %v9050_v45 = vmax.f32 %v2579_v3, 0.0  ;;  %v2582_v32 = vsub.f32 1.0, %v2518_v24  ;;  %v2419_v49 = vmul.f32 %v8939_v9, %v2418_v40 }
 0x31b   : > { %v3355_v61 = vpop.f32.mrf.mxu3  ;;  %vm2421_vm6 = vweird.f32 %v8939_v9  ;;  %vm2440_vm7 = vweird.f32 %v8837_v7  ;;  %v2448_v14 = vsub.f32 1.5, %v2447_v12  ;;  %v2837_v13 = vmul.f32 %v9042_v36, %v8547_v37 }
 0x31c   : > { %3219 = vmatmul.bf16.gmra.mxu1 %v8875_v43  ;;  %v9048_v20 = vadd.f32 %v3355_v61, %v3266_v8  ;;  %vm2442_vm8 = vmor %vm2440_vm7, %vm2441_vm5  ;;  %vm2420_vm9 = vweird.f32 %v8868_v4  ;;  %v2428_v29 = vsub.f32 1.5, %v2427_v47  ;;  %v2835_v30 = vmul.f32 %v9050_v45, %v8478_v11 }
 0x31d   : > { %3397 = vmatmul.bf16.gmra.mxu3 %v8875_v43  ;;  %v2580_v43 = vsub.f32 1.0, %v2516_v39  ;;  %v2443_v44 = vsel %vm2442_vm8, %v8925_v2, %v2439_v38  ;;  %v9061_v59 = vmax.f32 %v2582_v32, 0.0  ;;  %vm2422_vm10 = vmor %vm2420_vm9, %vm2421_vm6  ;;  %v2449_v37 = vmul.f32 %v8966_v18, %v2448_v14 }
 0x31e   : > { %v2423_v6 = vsel %vm2422_vm10, %v8939_v9, %v2419_v49  ;;  %vm2451_vm11 = vweird.f32 %v8966_v18  ;;  %v2521_v2 = vmul.f32 %v6654_v31, %v2443_v44  ;;  %v9071_v33 = vpack.c.bf16 %v2837_v13, %v2835_v30  ;;  %v5420_v44 = vld [vmem:[#allocation6 + $0x8] sm:$0xf0] }
 0x31f   : > { %v3180_v22 = vpop.f32.mrf.mxu1  ;;  %v9068_v4 = vmax.f32 %v2580_v43, 0.0  ;;  %v2429_v11 = vmul.f32 %v8986_v55, %v2428_v29  ;;  %vm2431_vm12 = vweird.f32 %v8986_v55  ;;  %vm2450_vm13 = vweird.f32 %v8915_v52 }
 0x320   : > { %v3091_v3 = vpop.f32.mrf.mxu0  ;;  %v2838_v9 = vmul.f32 %v9061_v59, %v8595_v34  ;;  %v2519_v40 = vmul.f32 %v6654_v31, %v2423_v6  ;;  %vm2452_vm14 = vmor %vm2450_vm13, %vm2451_vm11  ;;  %vm2430_vm15 = vweird.f32 %v8922_v53  ;;  %v2585_v39 = vsub.f32 1.0, %v2521_v2 }
 0x321   : > { %v9063_v7 = vadd.f32 %v3180_v22, %v3091_v3  ;;  %v2453_v12 = vsel %vm2452_vm14, %v8966_v18, %v2449_v37  ;;  %v2836_v28 = vmul.f32 %v9068_v4, %v8542_v56  ;;  %vm2432_vm0 = vmor %vm2430_vm15, %vm2431_vm12  ;;  %v5642_v3 = vld [vmem:[#allocation6 + $0x84] sm:$0xf]  ;;  %v5484_v37 = vld [vmem:[#allocation6 + $0x88] sm:$0xf0]  ;;  %vm4166_vm1 = vcmask 523264  }
 0x322   : > { %v3269_v50 = vpop.f32.mrf.mxu2  ;;  %v2433_v52 = vsel %vm2432_vm0, %v8986_v55, %v2429_v11  ;;  %v2583_v61 = vsub.f32 1.0, %v2519_v40  ;;  %v2522_v31 = vmul.f32 %v6669_v27, %v2453_v12  ;;  %v9092_v18 = vmax.f32 %v2585_v39, 0.0  ;;  %v5418_v39 = vld [vmem:[#allocation6] sm:$0xf] }
 0x323   : > { %v3358_v24 = vpop.f32.mrf.mxu3  ;;  %v2872_v38 = vpack.c.bf16 %v2838_v9, %v2836_v28  ;;  %v2520_v53 = vmul.f32 %v6669_v27, %v2433_v52  ;;  %v5626_v27 = vld [vmem:[#allocation6 + $0x4] sm:$0xf]  ;;  %v5487_v2 = vor.u32 %v5642_v3, %v5484_v37  ;;  %v5627_v52 = vld [vmem:[#allocation6 + $0x4] sm:$0xf0] }
 0x324   : > { %v9076_v62 = vadd.f32 %v3358_v24, %v3269_v50  ;;  %v9098_v55 = vmax.f32 %v2583_v61, 0.0  ;;  %v2586_v49 = vsub.f32 1.0, %v2522_v31  ;;  %v2841_v43 = vmul.f32 %v9092_v18, %v8688_v51  ;;  %v5643_v61 = vld [vmem:[#allocation6 + $0x84] sm:$0xf0] }
 0x325   : > { %v2584_v14 = vsub.f32 1.0, %v2520_v53  ;;  %v5423_v6 = vor.u32 %v5626_v27, %v5420_v44  ;;  %3857 = vmatpush.bf16.msrb.mxu3 %v5487_v2 }
 0x326   : > { %3135 = vmatmul.bf16.gmra.mxu0 %v8896_v35  ;;  %v2839_v22 = vmul.f32 %v9098_v55, %v8613_v26  ;;  %v9104_v30 = vmax.f32 %v2586_v49, 0.0 }
 0x327   : > { %v3182_v34 = vpop.f32.mrf.mxu1  ;;  %v9108_v50 = vmax.f32 %v2584_v14, 0.0  ;;  %3768 = vmatpush.bf16.msrb.mxu2 %v5423_v6 }
 0x328   : > { %3313 = vmatmul.bf16.gmra.mxu2 %v8896_v35  ;;  %v3093_v8 = vpop.f32.mrf.mxu0  ;;  %v2873_v51 = vpack.c.bf16 %v2841_v43, %v2839_v22  ;;  %v2842_v40 = vmul.f32 %v9104_v30, %v8712_v25 }
 0x329   : > { %v9089_v47 = vadd.f32 %v3182_v34, %v3093_v8  ;;  %v2840_v26 = vmul.f32 %v9108_v50, %v8637_v54  ;;  %v5482_v8 = vld [vmem:[#allocation6 + $0x80] sm:$0xf]  ;;  %v5419_v34 = vor.u32 %v5627_v52, %v5418_v39 }
 0x32a   : > { %v3271_v32 = vpop.f32.mrf.mxu2  ;;  %v5483_v53 = vor.u32 %v5643_v61, %v5482_v8  ;;  %v10475_v52 = vld [vmem:[#allocation81_spill] sm:$0xff]  ;;  %v10477_v8 = vld [vmem:[#allocation76_spill] sm:$0xff] }
 0x32b   : > { %v3360_v56 = vpop.f32.mrf.mxu3  ;;  %v2874_v31 = vpack.c.bf16 %v2842_v40, %v2840_v26  ;;  %3590 = vmatpush.bf16.msrb.mxu0 %v5419_v34  ;;  %v10474_v26 = vld [vmem:[#allocation77_spill] sm:$0xff] }
 0x32c   : > { %3224 = vmatmul.bf16.gmra.mxu1 %v8935_v15  ;;  %v9096_v35 = vadd.f32 %v3360_v56, %v3271_v32 }
 0x32d   : > { %3402 = vmatmul.bf16.gmra.mxu3 %v8935_v15  ;;  %3679 = vmatpush.bf16.msrb.mxu1 %v5483_v53  ;;  %v10478_v53 = vld [vmem:[#allocation9_spill] sm:$0xff] }
 0x32f   : > { %v3185_v29 = vpop.f32.mrf.mxu1 }
 0x330   : > { %v3096_v13 = vpop.f32.mrf.mxu0 }
 0x331   : > { %v9106_v15 = vadd.f32 %v3185_v29, %v3096_v13 }
 0x332   : > { %v3274_v24 = vpop.f32.mrf.mxu2 }
 0x333   : > { %v3363_v11 = vpop.f32.mrf.mxu3 }
 0x334   : > { %v9110_v9 = vadd.f32 %v3363_v11, %v3274_v24 }
 0x336   : > { %3140 = vmatmul.bf16.gmra.mxu0 %v9000_v48 }
 0x337   : > { %v3187_v28 = vpop.f32.mrf.mxu1 }
 0x338   : > { %3318 = vmatmul.bf16.gmra.mxu2 %v9000_v48  ;;  %v3098_v12 = vpop.f32.mrf.mxu0 }
 0x33a   : > { %v3276_v32 = vpop.f32.mrf.mxu2 }
 0x33b   : > { %v3365_v56 = vpop.f32.mrf.mxu3  ;;  %v10479_v32 = vld [vmem:[#allocation75_spill] sm:$0xff] }
 0x33c   : > { %3229 = vmatmul.bf16.gmra.mxu1 %v9039_v63  ;;  %v2655_v56 = vmul.f32 %v10479_v32, %v10478_v53 }
 0x33d   : > { %3407 = vmatmul.bf16.gmra.mxu3 %v9039_v63 }
 0x33f   : > { %v3190_v25 = vpop.f32.mrf.mxu1 }
 0x340   : > { %v3101_v54 = vpop.f32.mrf.mxu0 }
 0x342   : > { %v3279_v48 = vpop.f32.mrf.mxu2 }
 0x343   : > { %v3368_v49 = vpop.f32.mrf.mxu3 }
 0x344   : > { %v10480_v49 = vld [vmem:[#allocation12_spill] sm:$0xff] }
 0x346   : > { %3145 = vmatmul.bf16.gmra.mxu0 %v9071_v33 }
 0x347   : > { %v3192_v43 = vpop.f32.mrf.mxu1 }
 0x348   : > { %3323 = vmatmul.bf16.gmra.mxu2 %v9071_v33  ;;  %v3103_v14 = vpop.f32.mrf.mxu0 }
 0x349   : > { %v10481_v14 = vld [vmem:[#allocation31_spill] sm:$0xff] }
 0x34a   : > { %v3281_v13 = vpop.f32.mrf.mxu2  ;;  %v2658_v43 = vmul.f32 %v10481_v14, %v10480_v49  ;;  %v10493_v49 = vld [vmem:[#allocation80_spill] sm:$0xff] }
 0x34b   : > { %v3370_v29 = vpop.f32.mrf.mxu3  ;;  %v10482_v13 = vld [vmem:[#allocation10_spill] sm:$0xff] }
 0x34c   : > { %3234 = vmatmul.bf16.gmra.mxu1 %v2872_v38  ;;  %v10483_v29 = vld [vmem:[#allocation74_spill] sm:$0xff] }
 0x34d   : > { %3412 = vmatmul.bf16.gmra.mxu3 %v2872_v38 }
 0x34f   : > { %v3195_v44 = vpop.f32.mrf.mxu1 }
 0x350   : > { %v3106_v27 = vpop.f32.mrf.mxu0 }
 0x351   : > { %v2656_v27 = vmul.f32 %v10483_v29, %v10482_v13  ;;  %v10494_v29 = vld [vmem:[#allocation17_spill] sm:$0xff] }
 0x352   : > { %v3284_v3 = vpop.f32.mrf.mxu2 }
 0x353   : > { %v3373_v63 = vpop.f32.mrf.mxu3 }
 0x354   : > { %v2718_v63 = vpack.c.bf16 %v2658_v43, %v2656_v27  ;;  %v10495_v27 = vld [vmem:[#allocation129_spill] sm:$0xff] }
 0x356   : > { %3150 = vmatmul.bf16.gmra.mxu0 %v2873_v51 }
 0x357   : > { %v3197_v6 = vpop.f32.mrf.mxu1 }
 0x358   : > { %3328 = vmatmul.bf16.gmra.mxu2 %v2873_v51  ;;  %v3108_v22 = vpop.f32.mrf.mxu0  ;;  %v10476_v51 = vld [vmem:[#allocation11_spill] sm:$0xff] }
 0x359   : > { %v2657_v34 = vmul.f32 %v10477_v8, %v10476_v51  ;;  %v10489_v51 = vld [vmem:[#allocation128_spill] sm:$0xff] }
 0x35a   : > { %v3286_v37 = vpop.f32.mrf.mxu2 }
 0x35b   : > { %v3375_v2 = vpop.f32.mrf.mxu3  ;;  %v2717_v48 = vpack.c.bf16 %v2657_v34, %v2655_v56  ;;  %v10484_v37 = vld [vmem:[#allocation15_spill] sm:$0xff]  ;;  %v10490_v34 = vld [vmem:[#allocation14_spill] sm:$0xff] }
 0x35c   : > { %3239 = vmatmul.bf16.gmra.mxu1 %v2874_v31  ;;  %v10485_v2 = vld [vmem:[#allocation127_spill] sm:$0xff] }
 0x35d   : > { %3417 = vmatmul.bf16.gmra.mxu3 %v2874_v31 }
 0x35f   : > { %v3200_v33 = vpop.f32.mrf.mxu1 }
 0x360   : > { %v3111_v24 = vpop.f32.mrf.mxu0 }
 0x361   : > { %v2661_v24 = vmul.f32 %v10485_v2, %v10484_v37  ;;  %v10497_v37 = vld [vmem:[#allocation82_spill] sm:$0xff] }
 0x362   : > { %v3289_v11 = vpop.f32.mrf.mxu2 }
 0x363   : > { %v3378_v40 = vpop.f32.mrf.mxu3 }
 0x364   : > { %v10486_v40 = vld [vmem:[#allocation13_spill] sm:$0xff] }
 0x366   : > { %3591 = vmatmul.bf16.vlgmr.msrb.gmra.mxu0 %v10474_v26 }
 0x367   : > { %v3202_v12 = vpop.f32.mrf.mxu1 }
 0x368   : > { %3769 = vmatmul.bf16.vlgmr.msrb.gmra.mxu2 %v10474_v26  ;;  %v3113_v38 = vpop.f32.mrf.mxu0  ;;  %v10487_v26 = vld [vmem:[#allocation125_spill] sm:$0xff] }
 0x369   : > { %v2659_v38 = vmul.f32 %v10487_v26, %v10486_v40 }
 0x36a   : > { %v3291_v28 = vpop.f32.mrf.mxu2 }
 0x36b   : > { %v3380_v39 = vpop.f32.mrf.mxu3 }
 0x36c   : > { %3680 = vmatmul.bf16.vlgmr.msrb.gmra.mxu1 %v10475_v52  ;;  %v2719_v39 = vpack.c.bf16 %v2661_v24, %v2659_v38  ;;  %v10498_v24 = vld [vmem:[#allocation18_spill] sm:$0xff] }
 0x36d   : > { %3858 = vmatmul.bf16.vlgmr.msrb.gmra.mxu3 %v10475_v52  ;;  %v10488_v52 = vld [vmem:[#allocation16_spill] sm:$0xff] }
 0x36e   : > { %v2662_v8 = vmul.f32 %v10489_v51, %v10488_v52  ;;  %v10501_v52 = vld [vmem:[#allocation87_spill] sm:$0xff] }
 0x36f   : > { %v3205_v31 = vpop.f32.mrf.mxu1 }
 0x370   : > { %v3116_v61 = vpop.f32.mrf.mxu0 }
 0x371   : > { %v10491_v61 = vld [vmem:[#allocation36_spill] sm:$0xff] }
 0x372   : > { %v3294_v54 = vpop.f32.mrf.mxu2  ;;  %v2660_v31 = vmul.f32 %v10491_v61, %v10490_v34  ;;  %v10502_v61 = vld [vmem:[#allocation22_spill] sm:$0xff] }
 0x373   : > { %v3383_v25 = vpop.f32.mrf.mxu3 }
 0x374   : > { %v2720_v56 = vpack.c.bf16 %v2662_v8, %v2660_v31  ;;  %v10503_v31 = vld [vmem:[#allocation84_spill] sm:$0xff] }
 0x376   : > { %3596 = vmatmul.bf16.gmra.mxu0 %v2717_v48 }
 0x377   : > { %v3207_v3 = vpop.f32.mrf.mxu1 }
 0x378   : > { %3774 = vmatmul.bf16.gmra.mxu2 %v2717_v48  ;;  %v3118_v44 = vpop.f32.mrf.mxu0  ;;  %v10492_v48 = vld [vmem:[#allocation19_spill] sm:$0xff] }
 0x379   : > { %v2665_v14 = vmul.f32 %v10493_v49, %v10492_v48  ;;  %v2663_v44 = vmul.f32 %v10495_v27, %v10494_v29  ;;  %v10504_v48 = vld [vmem:[#allocation25_spill] sm:$0xff]  ;;  %v10505_v49 = vld [vmem:[#allocation90_spill] sm:$0xff] }
 0x37a   : > { %v3296_v22 = vpop.f32.mrf.mxu2 }
 0x37b   : > { %v3385_v6 = vpop.f32.mrf.mxu3  ;;  %v2721_v22 = vpack.c.bf16 %v2665_v14, %v2663_v44  ;;  %v2670_v14 = vmul.f32 %v10505_v49, %v10504_v48  ;;  %v10516_v48 = vld [vmem:[#allocation34_spill] sm:$0xff]  ;;  %v10517_v49 = vld [vmem:[#allocation95_spill] sm:$0xff] }
 0x37c   : > { %3685 = vmatmul.bf16.gmra.mxu1 %v2718_v63  ;;  %v10496_v6 = vld [vmem:[#allocation20_spill] sm:$0xff] }
 0x37d   : > { %3863 = vmatmul.bf16.gmra.mxu3 %v2718_v63  ;;  %v2666_v2 = vmul.f32 %v10497_v37, %v10496_v6  ;;  %v10508_v6 = vld [vmem:[#allocation29_spill] sm:$0xff] }
 0x37e   : > { %v10509_v37 = vld [vmem:[#allocation121_spill] sm:$0xff] }
 0x37f   : > { %v3210_v11 = vpop.f32.mrf.mxu1 }
 0x380   : > { %v3121_v33 = vpop.f32.mrf.mxu0 }
 0x381   : > { %v10499_v33 = vld [vmem:[#allocation78_spill] sm:$0xff] }
 0x382   : > { %v3299_v12 = vpop.f32.mrf.mxu2  ;;  %v2664_v11 = vmul.f32 %v10499_v33, %v10498_v24 }
 0x383   : > { %v3388_v28 = vpop.f32.mrf.mxu3 }
 0x384   : > { %v2722_v38 = vpack.c.bf16 %v2666_v2, %v2664_v11  ;;  %v2673_v2 = vmul.f32 %v10509_v37, %v10508_v6  ;;  %v10510_v11 = vld [vmem:[#allocation27_spill] sm:$0xff]  ;;  %v10521_v37 = vld [vmem:[#allocation96_spill] sm:$0xff] }
 0x385   : > { %v10520_v6 = vld [vmem:[#allocation35_spill] sm:$0xff] }
 0x386   : > { %3601 = vmatmul.bf16.gmra.mxu0 %v2719_v39 }
 0x387   : > { %v3212_v32 = vpop.f32.mrf.mxu1 }
 0x388   : > { %3779 = vmatmul.bf16.gmra.mxu2 %v2719_v39  ;;  %v3123_v53 = vpop.f32.mrf.mxu0  ;;  %v10500_v39 = vld [vmem:[#allocation24_spill] sm:$0xff] }
 0x389   : > { %v2669_v51 = vmul.f32 %v10501_v52, %v10500_v39  ;;  %v2667_v53 = vmul.f32 %v10503_v31, %v10502_v61  ;;  %v10512_v39 = vld [vmem:[#allocation30_spill] sm:$0xff]  ;;  %v10513_v52 = vld [vmem:[#allocation73_spill] sm:$0xff] }
 0x38a   : > { %v3301_v54 = vpop.f32.mrf.mxu2 }
 0x38b   : > { %v3390_v25 = vpop.f32.mrf.mxu3  ;;  %v2723_v54 = vpack.c.bf16 %v2669_v51, %v2667_v53  ;;  %v2674_v51 = vmul.f32 %v10513_v52, %v10512_v39  ;;  %v10524_v39 = vld [vmem:[#allocation39_spill] sm:$0xff] }
 0x38c   : > { %3690 = vmatmul.bf16.gmra.mxu1 %v2720_v56  ;;  %v6180_v25 = vmov 0.0   ;;  %v10525_v52 = vld [vmem:[#allocation99_spill] sm:$0xff] }
 0x38d   : > { %3868 = vmatmul.bf16.gmra.mxu3 %v2720_v56  ;;  %5779 = vrot.lane.b32.xlu0 %v6180_v25, %s6181_s27  ;;  %4167 = vst.msk [vmem:[%s9207_s28] sm:$0xff] %vm4166_vm1, %v6180_v25 }
 0x38e   : > { %5784 = vrot.lane.b32.xlu1 %v6180_v25, %s6181_s27  ;;  %5789 = vrot.lane.b32.xlu2 %v6180_v25, %s6181_s27  ;;  %4168 = vst.msk [vmem:[%s9207_s28 + $0x8] sm:$0xff] %vm4166_vm1, %v6180_v25 }
 0x38f   : > { %v3215_v13 = vpop.f32.mrf.mxu1  ;;  %4169 = vst.msk [vmem:[%s9207_s28 + $0x10] sm:$0xff] %vm4166_vm1, %v6180_v25 }
 0x390   : > { %v3126_v43 = vpop.f32.mrf.mxu0  ;;  %v10507_v13 = vld [vmem:[#allocation21_spill] sm:$0xff]  ;;  %4170 = vst.msk [vmem:[%s9207_s28 + $0x18] sm:$0xff] %vm4166_vm1, %v6180_v25 }
 0x391   : > { %v10506_v43 = vld [vmem:[#allocation23_spill] sm:$0xff]  ;;  %4171 = vst.msk [vmem:[%s9207_s28 + $0x20] sm:$0xff] %vm4166_vm1, %v6180_v25 }
 0x392   : > { %v3304_v3 = vpop.f32.mrf.mxu2  ;;  %v2668_v29 = vmul.f32 %v10507_v13, %v10506_v43  ;;  %4172 = vst.msk [vmem:[%s9207_s28 + $0x28] sm:$0xff] %vm4166_vm1, %v6180_v25 }
 0x393   : > { %v3393_v63 = vpop.f32.mrf.mxu3  ;;  %4173 = vst.msk [vmem:[%s9207_s28 + $0x30] sm:$0xff] %vm4166_vm1, %v6180_v25 }
 0x394   : > { %v2724_v3 = vpack.c.bf16 %v2670_v14, %v2668_v29  ;;  %v2677_v14 = vmul.f32 %v10517_v49, %v10516_v48  ;;  %v10518_v29 = vld [vmem:[#allocation32_spill] sm:$0xff]  ;;  %v10529_v49 = vld [vmem:[#allocation79_spill] sm:$0xff]  ;;  %4174 = vst.msk [vmem:[%s9207_s28 + $0x38] sm:$0xff] %vm4166_vm1, %v6180_v25 }
 0x395   : > { %5794 = vrot.lane.b32.xlu0 %v6180_v25, %s6181_s27  ;;  %v10528_v48 = vld [vmem:[#allocation40_spill] sm:$0xff]  ;;  %4175 = vst.msk [vmem:[%s9207_s28 + $0x40] sm:$0xff] %vm4166_vm1, %v6180_v25 }
 0x396   : > { %3606 = vmatmul.bf16.gmra.mxu0 %v2721_v22  ;;  %5799 = vrot.lane.b32.xlu1 %v6180_v25, %s6181_s27  ;;  %4176 = vst.msk [vmem:[%s9207_s28 + $0x48] sm:$0xff] %vm4166_vm1, %v6180_v25 }
 0x397   : > { %v3217_v26 = vpop.f32.mrf.mxu1  ;;  %5804 = vrot.lane.b32.xlu2 %v6180_v25, %s6181_s27  ;;  %4177 = vst.msk [vmem:[%s9207_s28 + $0x50] sm:$0xff] %vm4166_vm1, %v6180_v25 }
 0x398   : > { %3784 = vmatmul.bf16.gmra.mxu2 %v2721_v22  ;;  %v3128_v40 = vpop.f32.mrf.mxu0  ;;  %4178 = vst.msk [vmem:[%s9207_s28 + $0x58] sm:$0xff] %vm4166_vm1, %v6180_v25 }
 0x399   : > { %v10511_v40 = vld [vmem:[#allocation26_spill] sm:$0xff]  ;;  %4179 = vst.msk [vmem:[%s9207_s28 + $0x60] sm:$0xff] %vm4166_vm1, %v6180_v25 }
 0x39a   : > { %v3306_v12 = vpop.f32.mrf.mxu2  ;;  %v2671_v26 = vmul.f32 %v10511_v40, %v10510_v11  ;;  %4180 = vst.msk [vmem:[%s9207_s28 + $0x68] sm:$0xff] %vm4166_vm1, %v6180_v25 }
 0x39b   : > { %v3395_v28 = vpop.f32.mrf.mxu3  ;;  %4181 = vst.msk [vmem:[%s9207_s28 + $0x70] sm:$0xff] %vm4166_vm1, %v6180_v25 }
 0x39c   : > { %3695 = vmatmul.bf16.gmra.mxu1 %v2722_v38  ;;  %v2725_v28 = vpack.c.bf16 %v2673_v2, %v2671_v26  ;;  %v2678_v2 = vmul.f32 %v10521_v37, %v10520_v6  ;;  %v10532_v6 = vld [vmem:[#allocation43_spill] sm:$0xff]  ;;  %4182 = vst.msk [vmem:[%s9207_s28 + $0x78] sm:$0xff] %vm4166_vm1, %v6180_v25 }
 0x39d   : > { %3873 = vmatmul.bf16.gmra.mxu3 %v2722_v38  ;;  %5809 = vrot.lane.b32.xlu0 %v6180_v25, %s6181_s27  ;;  %v10533_v37 = vld [vmem:[#allocation103_spill] sm:$0xff]  ;;  %4183 = vst.msk [vmem:[%s9207_s28 + $0x80] sm:$0xff] %vm4166_vm1, %v6180_v25 }
 0x39e   : > { %5814 = vrot.lane.b32.xlu1 %v6180_v25, %s6181_s27  ;;  %4184 = vst.msk [vmem:[%s9207_s28 + $0x88] sm:$0xff] %vm4166_vm1, %v6180_v25 }
 0x39f   : > { %v3220_v34 = vpop.f32.mrf.mxu1  ;;  %5819 = vrot.lane.b32.xlu2 %v6180_v25, %s6181_s27  ;;  %4185 = vst.msk [vmem:[%s9207_s28 + $0x90] sm:$0xff] %vm4166_vm1, %v6180_v25 }
 0x3a0   : > { %v3131_v8 = vpop.f32.mrf.mxu0  ;;  %v10515_v34 = vld [vmem:[#allocation91_spill] sm:$0xff]  ;;  %4186 = vst.msk [vmem:[%s9207_s28 + $0x98] sm:$0xff] %vm4166_vm1, %v6180_v25 }
 0x3a1   : > { %v10514_v8 = vld [vmem:[#allocation28_spill] sm:$0xff]  ;;  %4187 = vst.msk [vmem:[%s9207_s28 + $0xa0] sm:$0xff] %vm4166_vm1, %v6180_v25 }
 0x3a2   : > { %v3309_v32 = vpop.f32.mrf.mxu2  ;;  %v2672_v61 = vmul.f32 %v10515_v34, %v10514_v8  ;;  %4188 = vst.msk [vmem:[%s9207_s28 + $0xa8] sm:$0xff] %vm4166_vm1, %v6180_v25 }
 0x3a3   : > { %v3398_v56 = vpop.f32.mrf.mxu3  ;;  %4189 = vst.msk [vmem:[%s9207_s28 + $0xb0] sm:$0xff] %vm4166_vm1, %v6180_v25 }
 0x3a4   : > { %v2726_v32 = vpack.c.bf16 %v2674_v51, %v2672_v61  ;;  %v2681_v51 = vmul.f32 %v10525_v52, %v10524_v39  ;;  %v10526_v61 = vld [vmem:[#allocation37_spill] sm:$0xff]  ;;  %v10536_v39 = vld [vmem:[#allocation44_spill] sm:$0xff]  ;;  %4190 = vst.msk [vmem:[%s9207_s28 + $0xb8] sm:$0xff] %vm4166_vm1, %v6180_v25 }
 0x3a5   : > { %5824 = vrot.lane.b32.xlu0 %v6180_v25, %s6181_s27  ;;  %v10537_v52 = vld [vmem:[#allocation89_spill] sm:$0xff]  ;;  %4191 = vst.msk [vmem:[%s9207_s28 + $0xc0] sm:$0xff] %vm4166_vm1, %v6180_v25 }
 0x3a6   : > { %3611 = vmatmul.bf16.gmra.mxu0 %v2723_v54  ;;  %5829 = vrot.lane.b32.xlu1 %v6180_v25, %s6181_s27  ;;  %4192 = vst.msk [vmem:[%s9207_s28 + $0xc8] sm:$0xff] %vm4166_vm1, %v6180_v25 }
 0x3a7   : > { %v3222_v44 = vpop.f32.mrf.mxu1  ;;  %5834 = vrot.lane.b32.xlu2 %v6180_v25, %s6181_s27  ;;  %4193 = vst.msk [vmem:[%s9207_s28 + $0xd0] sm:$0xff] %vm4166_vm1, %v6180_v25 }
 0x3a8   : > { %3789 = vmatmul.bf16.gmra.mxu2 %v2723_v54  ;;  %v3133_v27 = vpop.f32.mrf.mxu0  ;;  %4194 = vst.msk [vmem:[%s9207_s28 + $0xd8] sm:$0xff] %vm4166_vm1, %v6180_v25 }
 0x3a9   : > { %v10519_v27 = vld [vmem:[#allocation93_spill] sm:$0xff]  ;;  %4195 = vst.msk [vmem:[%s9207_s28 + $0xe0] sm:$0xff] %vm4166_vm1, %v6180_v25 }
 0x3aa   : > { %v3311_v63 = vpop.f32.mrf.mxu2  ;;  %v2675_v44 = vmul.f32 %v10519_v27, %v10518_v29  ;;  %4196 = vst.msk [vmem:[%s9207_s28 + $0xe8] sm:$0xff] %vm4166_vm1, %v6180_v25 }
 0x3ab   : > { %v3400_v22 = vpop.f32.mrf.mxu3  ;;  %4197 = vst.msk [vmem:[%s9207_s28 + $0xf0] sm:$0xff] %vm4166_vm1, %v6180_v25 }
 0x3ac   : > { %3700 = vmatmul.bf16.gmra.mxu1 %v2724_v3  ;;  %v2727_v22 = vpack.c.bf16 %v2677_v14, %v2675_v44  ;;  %v2682_v14 = vmul.f32 %v10529_v49, %v10528_v48  ;;  %v10540_v48 = vld [vmem:[#allocation47_spill] sm:$0xff]  ;;  %v10541_v49 = vld [vmem:[#allocation92_spill] sm:$0xff]  ;;  %4198 = vst.msk [vmem:[%s9207_s28 + $0xf8] sm:$0xff] %vm4166_vm1, %v6180_v25 }
 0x3ad   : > { %3878 = vmatmul.bf16.gmra.mxu3 %v2724_v3  ;;  %5839 = vrot.lane.b32.xlu0 %v6180_v25, %s6181_s27  ;;  %4199 = vst.msk [vmem:[%s9207_s28 + $0x100] sm:$0xff] %vm4166_vm1, %v6180_v25 }
 0x3ae   : > { %5844 = vrot.lane.b32.xlu1 %v6180_v25, %s6181_s27 }
 0x3af   : > { %v3225_v33 = vpop.f32.mrf.mxu1  ;;  %5849 = vrot.lane.b32.xlu2 %v6180_v25, %s6181_s27 }
 0x3b0   : > { %v3136_v24 = vpop.f32.mrf.mxu0  ;;  %v10523_v33 = vld [vmem:[#allocation94_spill] sm:$0xff] }
 0x3b1   : > { %v10522_v24 = vld [vmem:[#allocation33_spill] sm:$0xff] }
 0x3b2   : > { %v3314_v38 = vpop.f32.mrf.mxu2  ;;  %v2676_v11 = vmul.f32 %v10523_v33, %v10522_v24 }
 0x3b3   : > { %v3403_v12 = vpop.f32.mrf.mxu3 }
 0x3b4   : > { %v2728_v38 = vpack.c.bf16 %v2678_v2, %v2676_v11  ;;  %v2685_v2 = vmul.f32 %v10533_v37, %v10532_v6  ;;  %v10534_v11 = vld [vmem:[#allocation41_spill] sm:$0xff] }
 0x3b5   : > { %5854 = vrot.lane.b32.xlu0 %v6180_v25, %s6181_s27 }
 0x3b6   : > { %3616 = vmatmul.bf16.gmra.mxu0 %v2725_v28  ;;  %5859 = vrot.lane.b32.xlu1 %v6180_v25, %s6181_s27 }
 0x3b7   : > { %v3227_v53 = vpop.f32.mrf.mxu1 }
 0x3b8   : > { %3794 = vmatmul.bf16.gmra.mxu2 %v2725_v28  ;;  %v3138_v31 = vpop.f32.mrf.mxu0 }
 0x3b9   : > { %v10527_v31 = vld [vmem:[#allocation97_spill] sm:$0xff] }
 0x3ba   : > { %v3316_v56 = vpop.f32.mrf.mxu2  ;;  %v2679_v53 = vmul.f32 %v10527_v31, %v10526_v61 }
 0x3bb   : > { %v3405_v54 = vpop.f32.mrf.mxu3 }
 0x3bc   : > { %3705 = vmatmul.bf16.gmra.mxu1 %v2726_v32  ;;  %v2729_v54 = vpack.c.bf16 %v2681_v51, %v2679_v53  ;;  %v2686_v51 = vmul.f32 %v10537_v52, %v10536_v39 }
 0x3bd   : > { %3883 = vmatmul.bf16.gmra.mxu3 %v2726_v32 }
 0x3bf   : > { %v3230_v13 = vpop.f32.mrf.mxu1 }
 0x3c0   : > { %v3141_v43 = vpop.f32.mrf.mxu0  ;;  %v10531_v13 = vld [vmem:[#allocation98_spill] sm:$0xff] }
 0x3c1   : > { %v10530_v43 = vld [vmem:[#allocation38_spill] sm:$0xff] }
 0x3c2   : > { %v3319_v3 = vpop.f32.mrf.mxu2  ;;  %v2680_v29 = vmul.f32 %v10531_v13, %v10530_v43 }
 0x3c3   : > { %v3408_v63 = vpop.f32.mrf.mxu3 }
 0x3c4   : > { %v2730_v3 = vpack.c.bf16 %v2682_v14, %v2680_v29  ;;  %v2689_v14 = vmul.f32 %v10541_v49, %v10540_v48 }
 0x3c6   : > { %3621 = vmatmul.bf16.gmra.mxu0 %v2727_v22 }
 0x3c7   : > { %v3232_v26 = vpop.f32.mrf.mxu1 }
 0x3c8   : > { %3799 = vmatmul.bf16.gmra.mxu2 %v2727_v22  ;;  %v3143_v40 = vpop.f32.mrf.mxu0 }
 0x3c9   : > { %v10535_v40 = vld [vmem:[#allocation85_spill] sm:$0xff] }
 0x3ca   : > { %v3321_v12 = vpop.f32.mrf.mxu2  ;;  %v2683_v26 = vmul.f32 %v10535_v40, %v10534_v11  ;;  %v10546_v40 = vld [vmem:[#allocation118_spill] sm:$0xff] }
 0x3cb   : > { %v3410_v28 = vpop.f32.mrf.mxu3 }
 0x3cc   : > { %3710 = vmatmul.bf16.gmra.mxu1 %v2728_v38  ;;  %v2731_v28 = vpack.c.bf16 %v2685_v2, %v2683_v26 }
 0x3cd   : > { %3888 = vmatmul.bf16.gmra.mxu3 %v2728_v38 }
 0x3cf   : > { %v3235_v34 = vpop.f32.mrf.mxu1 }
 0x3d0   : > { %v3146_v8 = vpop.f32.mrf.mxu0  ;;  %v10539_v34 = vld [vmem:[#allocation100_spill] sm:$0xff] }
 0x3d1   : > { %v10538_v8 = vld [vmem:[#allocation42_spill] sm:$0xff] }
 0x3d2   : > { %v3324_v32 = vpop.f32.mrf.mxu2  ;;  %v2684_v61 = vmul.f32 %v10539_v34, %v10538_v8 }
 0x3d3   : > { %v3413_v56 = vpop.f32.mrf.mxu3 }
 0x3d4   : > { %v2732_v32 = vpack.c.bf16 %v2686_v51, %v2684_v61  ;;  %v10549_v51 = vld [vmem:[#allocation119_spill] sm:$0xff]  ;;  %v4201_v61 = vld [vmem:[%s9207_s28 + $0x8] sm:$0xff] }
 0x3d6   : > { %3626 = vmatmul.bf16.gmra.mxu0 %v2729_v54 }
 0x3d7   : > { %v3237_v44 = vpop.f32.mrf.mxu1 }
 0x3d8   : > { %3804 = vmatmul.bf16.gmra.mxu2 %v2729_v54  ;;  %v3148_v27 = vpop.f32.mrf.mxu0  ;;  %v10543_v44 = vld [vmem:[#allocation83_spill] sm:$0xff] }
 0x3d9   : > { %v10542_v27 = vld [vmem:[#allocation45_spill] sm:$0xff] }
 0x3da   : > { %v3326_v63 = vpop.f32.mrf.mxu2 }
 0x3db   : > { %v3415_v22 = vpop.f32.mrf.mxu3  ;;  %v4200_v63 = vld [vmem:[%s9207_s28] sm:$0xff] }
 0x3dc   : > { %3715 = vmatmul.bf16.gmra.mxu1 %v2730_v3 }
 0x3dd   : > { %3893 = vmatmul.bf16.gmra.mxu3 %v2730_v3  ;;  %v2687_v3 = vmul.f32 %v10543_v44, %v10542_v27 }
 0x3df   : > { %v3240_v33 = vpop.f32.mrf.mxu1  ;;  %v2733_v2 = vpack.c.bf16 %v2689_v14, %v2687_v3  ;;  %v10550_v14 = vld [vmem:[#allocation51_spill] sm:$0xff]  ;;  %v10553_v3 = vld [vmem:[#allocation130_spill] sm:$0xff] }
 0x3e0   : > { %v3151_v24 = vpop.f32.mrf.mxu0  ;;  %v10545_v33 = vld [vmem:[#allocation107_spill] sm:$0xff] }
 0x3e1   : > { %v10544_v24 = vld [vmem:[#allocation48_spill] sm:$0xff] }
 0x3e2   : > { %v3329_v38 = vpop.f32.mrf.mxu2  ;;  %v2690_v11 = vmul.f32 %v10545_v33, %v10544_v24 }
 0x3e3   : > { %v3418_v12 = vpop.f32.mrf.mxu3  ;;  %v10547_v38 = vld [vmem:[#allocation46_spill] sm:$0xff] }
 0x3e4   : > { %v10548_v12 = vld [vmem:[#allocation86_spill] sm:$0xff] }
 0x3e6   : > { %3631 = vmatmul.bf16.gmra.mxu0 %v2731_v28 }
 0x3e7   : > { %v3242_v53 = vpop.f32.mrf.mxu1 }
 0x3e8   : > { %3809 = vmatmul.bf16.gmra.mxu2 %v2731_v28  ;;  %v3153_v31 = vpop.f32.mrf.mxu0  ;;  %v2688_v28 = vmul.f32 %v10548_v12, %v10547_v38  ;;  %v10557_v12 = vld [vmem:[#allocation108_spill] sm:$0xff] }
 0x3ea   : > { %v3331_v56 = vpop.f32.mrf.mxu2  ;;  %v2734_v34 = vpack.c.bf16 %v2690_v11, %v2688_v28  ;;  %v10554_v11 = vld [vmem:[#allocation52_spill] sm:$0xff] }
 0x3eb   : > { %v3420_v54 = vpop.f32.mrf.mxu3 }
 0x3ec   : > { %3720 = vmatmul.bf16.gmra.mxu1 %v2732_v32 }
 0x3ed   : > { %3898 = vmatmul.bf16.gmra.mxu3 %v2732_v32 }
 0x3ef   : > { %v3681_v13 = vpop.f32.mrf.mxu1 }
 0x3f0   : > { %v3592_v43 = vpop.f32.mrf.mxu0 }
 0x3f1   : > { %v3593_v29 = vadd.f32 %v3592_v43, %v8742_v1  ;;  %v10551_v43 = vld [vmem:[#allocation110_spill] sm:$0xff] }
 0x3f2   : > { %v3770_v6 = vpop.f32.mrf.mxu2 }
 0x3f3   : > { %v3682_v22 = vadd.f32 %v3681_v13, %v3593_v29  ;;  %v3859_v37 = vpop.f32.mrf.mxu3  ;;  %v3771_v26 = vadd.f32 %v3770_v6, %v10546_v40  ;;  %v2693_v13 = vmul.f32 %v10551_v43, %v10550_v14  ;;  %v10555_v40 = vld [vmem:[#allocation109_spill] sm:$0xff] }
 0x3f4   : > { %v10559_v14 = vld [vmem:[#allocation113_spill] sm:$0xff] }
 0x3f5   : > { %v4232_v1 = vadd.f32 %v4200_v63, %v3682_v22  ;;  %4360 = vrot.lane.b32.xlu0 %v3682_v22, %s6181_s27  ;;  %v9346_v31 = vadd.f32 %v3859_v37, %v3771_v26  ;;  %v4202_v22 = vld [vmem:[%s9207_s28 + $0x10] sm:$0xff]  ;;  %v2694_v26 = vmul.f32 %v10555_v40, %v10554_v11  ;;  %v10565_v40 = vld [vmem:[#allocation112_spill] sm:$0xff] }
 0x3f6   : > { %3636 = vmatmul.bf16.gmra.mxu0 %v2733_v2  ;;  %v10564_v11 = vld [vmem:[#allocation54_spill] sm:$0xff] }
 0x3f7   : > { %4264 = vst.msk [vmem:[%s9207_s28] sm:$0xff] %vm4166_vm1, %v4232_v1  ;;  %v3683_v52 = vpop.f32.mrf.mxu1 }
 0x3f8   : > { %3814 = vmatmul.bf16.gmra.mxu2 %v2733_v2  ;;  %v3594_v39 = vpop.f32.mrf.mxu0 }
 0x3f9   : > { %v3595_v8 = vadd.f32 %v3594_v39, %v10549_v51 }
 0x3fa   : > { %v3772_v32 = vpop.f32.mrf.mxu2 }
 0x3fb   : > { %v3684_v53 = vadd.f32 %v3683_v52, %v3595_v8  ;;  %v3861_v56 = vpop.f32.mrf.mxu3  ;;  %v3773_v54 = vadd.f32 %v3772_v32, %v8829_v46  ;;  %v10552_v46 = vld [vmem:[#allocation49_spill] sm:$0xff]  ;;  %v4203_v8 = vld [vmem:[%s9207_s28 + $0x18] sm:$0xff] }
 0x3fc   : > { %3725 = vmatmul.bf16.gmra.mxu1 %v2734_v34  ;;  %v2691_v63 = vmul.f32 %v10553_v3, %v10552_v46  ;;  %v4204_v46 = vld [vmem:[%s9207_s28 + $0x20] sm:$0xff] }
 0x3fd   : > { %3903 = vmatmul.bf16.gmra.mxu3 %v2734_v34  ;;  %v4233_v48 = vadd.f32 %v4201_v61, %v3684_v53  ;;  %4680 = vrot.lane.b32.xlu0 %v9346_v31, %s6181_s27  ;;  %v9351_v49 = vadd.f32 %v3861_v56, %v3773_v54 }
 0x3fe   : > { %v2735_v1 = vpack.c.bf16 %v2693_v13, %v2691_v63 }
 0x3ff   : > { %4265 = vst.msk [vmem:[%s9207_s28 + $0x8] sm:$0xff] %vm4166_vm1, %v4233_v48  ;;  %v3686_v27 = vpop.f32.mrf.mxu1  ;;  %4682 = vrot.lane.b32.xlu1 %v9351_v49, %s6181_s27  ;;  %v10558_v48 = vld [vmem:[#allocation55_spill] sm:$0xff] }
 0x400   : > { %v3597_v29 = vpop.f32.mrf.mxu0  ;;  %v2697_v43 = vmul.f32 %v10559_v14, %v10558_v48  ;;  %v5790_v48 = vpop.permute.xlu2 %5789 }
 0x401   : > { %v3598_v44 = vadd.f32 %v3597_v29, %v8871_v19  ;;  %v10556_v19 = vld [vmem:[#allocation50_spill] sm:$0xff] }
 0x402   : > { %v3775_v37 = vpop.f32.mrf.mxu2  ;;  %v2692_v28 = vmul.f32 %v10557_v12, %v10556_v19  ;;  %v4209_v12 = vld [vmem:[%s9207_s28 + $0x48] sm:$0xff] }
 0x403   : > { %v3687_v6 = vadd.f32 %v3686_v27, %v3598_v44  ;;  %v3864_v2 = vpop.f32.mrf.mxu3  ;;  %v3776_v24 = vadd.f32 %v3775_v37, %v8907_v60  ;;  %v10560_v27 = vld [vmem:[#allocation53_spill] sm:$0xff]  ;;  %4273 = vst.msk [vmem:[%s9207_s28 + $0x48] sm:$0xff] %vm4166_vm1, %v4209_v12 }
 0x404   : > { %v2736_v51 = vpack.c.bf16 %v2694_v26, %v2692_v28  ;;  %v2696_v26 = vmul.f32 %v10565_v40, %v10564_v11  ;;  %v4210_v28 = vld [vmem:[%s9207_s28 + $0x50] sm:$0xff] }
 0x405   : > { %v4234_v33 = vadd.f32 %v4202_v22, %v3687_v6  ;;  %4362 = vrot.lane.b32.xlu0 %v3684_v53, %s6181_s27  ;;  %v9367_v38 = vadd.f32 %v3864_v2, %v3776_v24  ;;  %4274 = vst.msk [vmem:[%s9207_s28 + $0x50] sm:$0xff] %vm4166_vm1, %v4210_v28 }
 0x406   : > { %3641 = vmatmul.bf16.gmra.mxu0 %v2735_v1 }
 0x407   : > { %4266 = vst.msk [vmem:[%s9207_s28 + $0x10] sm:$0xff] %vm4166_vm1, %v4234_v33  ;;  %v3688_v52 = vpop.f32.mrf.mxu1  ;;  %4684 = vrot.lane.b32.xlu2 %v9367_v38, %s6181_s27  ;;  %4364 = vrot.lane.b32.xlu1 %v3687_v6, %s6181_s27 }
 0x408   : > { %3819 = vmatmul.bf16.gmra.mxu2 %v2735_v1  ;;  %v3599_v39 = vpop.f32.mrf.mxu0  ;;  %v10562_v1 = vld [vmem:[#allocation56_spill] sm:$0xff] }
 0x409   : > { %v3600_v60 = vadd.f32 %v3599_v39, %v8933_v16  ;;  %v4211_v39 = vld [vmem:[%s9207_s28 + $0x58] sm:$0xff] }
 0x40a   : > { %v3777_v61 = vpop.f32.mrf.mxu2  ;;  %4275 = vst.msk [vmem:[%s9207_s28 + $0x58] sm:$0xff] %vm4166_vm1, %v4211_v39 }
 0x40b   : > { %v3689_v34 = vadd.f32 %v3688_v52, %v3600_v60  ;;  %v3866_v53 = vpop.f32.mrf.mxu3  ;;  %v3778_v32 = vadd.f32 %v3777_v61, %v8950_v41  ;;  %v10561_v41 = vld [vmem:[#allocation111_spill] sm:$0xff]  ;;  %v4214_v61 = vld [vmem:[%s9207_s28 + $0x70] sm:$0xff] }
 0x40c   : > { %3730 = vmatmul.bf16.gmra.mxu1 %v2736_v51  ;;  %v2695_v44 = vmul.f32 %v10561_v41, %v10560_v27  ;;  %4278 = vst.msk [vmem:[%s9207_s28 + $0x70] sm:$0xff] %vm4166_vm1, %v4214_v61 }
 0x40d   : > { %3908 = vmatmul.bf16.gmra.mxu3 %v2736_v51  ;;  %v4235_v56 = vadd.f32 %v4203_v8, %v3689_v34  ;;  %v9379_v54 = vadd.f32 %v3866_v53, %v3778_v32  ;;  %v5780_v51 = vpop.permute.xlu0 %5779  ;;  %v4213_v8 = vld [vmem:[%s9207_s28 + $0x68] sm:$0xff] }
 0x40e   : > { %v2737_v6 = vpack.c.bf16 %v2697_v43, %v2695_v44  ;;  %4277 = vst.msk [vmem:[%s9207_s28 + $0x68] sm:$0xff] %vm4166_vm1, %v4213_v8  ;;  %v5781_v43 = vunpack.i.l.bf16 %v5780_v51  ;;  %v5782_v27 = vunpack.i.h.bf16 %v5780_v51  ;;  %v10570_v8 = vld [vmem:[#allocation60_spill] sm:$0xff] }
 0x40f   : > { %4267 = vst.msk [vmem:[%s9207_s28 + $0x18] sm:$0xff] %vm4166_vm1, %v4235_v56  ;;  %v3691_v16 = vpop.f32.mrf.mxu1  ;;  %4366 = vrot.lane.b32.xlu1 %v3689_v34, %s6181_s27  ;;  %4686 = vrot.lane.b32.xlu0 %v9379_v54, %s6181_s27  ;;  %v4205_v34 = vld [vmem:[%s9207_s28 + $0x28] sm:$0xff] }
 0x410   : > { %v3602_v13 = vpop.f32.mrf.mxu0 }
 0x411   : > { %v3603_v29 = vadd.f32 %v3602_v13, %v8993_v17  ;;  %v10563_v17 = vld [vmem:[#allocation114_spill] sm:$0xff]  ;;  %v4216_v13 = vld [vmem:[%s9207_s28 + $0x80] sm:$0xff] }
 0x412   : > { %v3780_v63 = vpop.f32.mrf.mxu2  ;;  %v2698_v24 = vmul.f32 %v10563_v17, %v10562_v1  ;;  %4280 = vst.msk [vmem:[%s9207_s28 + $0x80] sm:$0xff] %vm4166_vm1, %v4216_v13  ;;  %v5791_v1 = vunpack.i.l.bf16 %v5790_v48  ;;  %v10568_v17 = vld [vmem:[#allocation57_spill] sm:$0xff]  ;;  %v4306_v40 = vld [vmem:[%s9207_s28 + $0x51] sm:$0xff] }
 0x413   : > { %v3692_v3 = vadd.f32 %v3691_v16, %v3603_v29  ;;  %v3869_v22 = vpop.f32.mrf.mxu3  ;;  %v3781_v37 = vadd.f32 %v3780_v63, %v9006_v57  ;;  %v4217_v16 = vld [vmem:[%s9207_s28 + $0x88] sm:$0xff] }
 0x414   : > { %v2738_v60 = vpack.c.bf16 %v2698_v24, %v2696_v26  ;;  %4281 = vst.msk [vmem:[%s9207_s28 + $0x88] sm:$0xff] %vm4166_vm1, %v4217_v16  ;;  %v10569_v24 = vld [vmem:[#allocation115_spill] sm:$0xff]  ;;  %v10571_v16 = vld [vmem:[#allocation58_spill] sm:$0xff] }
 0x415   : > { %v4236_v2 = vadd.f32 %v4204_v46, %v3692_v3  ;;  %4368 = vrot.lane.b32.xlu2 %v3692_v3, %s6181_s27  ;;  %v9396_v33 = vadd.f32 %v3869_v22, %v3781_v37  ;;  %v10566_v46 = vld [vmem:[#allocation59_spill] sm:$0xff]  ;;  %v10567_v3 = vld [vmem:[#allocation116_spill] sm:$0xff]  ;;  %v2699_v11 = vmul.f32 %v10569_v24, %v10568_v17  ;;  %v4309_v61 = vld [vmem:[%s9207_s28 + $0x69] sm:$0xff]  ;;  %v5785_v17 = vpop.permute.xlu1 %5784 }
 0x416   : > { %3646 = vmatmul.bf16.gmra.mxu0 %v2737_v6  ;;  %v2701_v63 = vmul.f32 %v10567_v3, %v10566_v46  ;;  %v4219_v22 = vld [vmem:[%s9207_s28 + $0x98] sm:$0xff] }
 0x417   : > { %4268 = vst.msk [vmem:[%s9207_s28 + $0x20] sm:$0xff] %vm4166_vm1, %v4236_v2  ;;  %v3693_v19 = vpop.f32.mrf.mxu1  ;;  %4688 = vrot.lane.b32.xlu1 %v9396_v33, %s6181_s27  ;;  %v4305_v2 = vld [vmem:[%s9207_s28 + $0x49] sm:$0xff] }
 0x418   : > { %3824 = vmatmul.bf16.gmra.mxu2 %v2737_v6  ;;  %v3604_v57 = vpop.f32.mrf.mxu0  ;;  %v4220_v6 = vld [vmem:[%s9207_s28 + $0xa0] sm:$0xff]  ;;  %v4465_v26 = vadd.f32 %v5781_v43, %v4305_v2  ;;  %4283 = vst.msk [vmem:[%s9207_s28 + $0x98] sm:$0xff] %vm4166_vm1, %v4219_v22  ;;  %v2739_v51 = vpack.c.bf16 %v2701_v63, %v2699_v11  ;;  %v5805_v43 = vpop.permute.xlu2 %5804 }
 0x419   : > { %v3605_v52 = vadd.f32 %v3604_v57, %v9037_v10  ;;  %v4215_v10 = vld [vmem:[%s9207_s28 + $0x78] sm:$0xff]  ;;  %v5792_v57 = vunpack.i.h.bf16 %v5790_v48  ;;  %4284 = vst.msk [vmem:[%s9207_s28 + $0xa0] sm:$0xff] %vm4166_vm1, %v4220_v6 }
 0x41a   : > { %v3782_v32 = vpop.f32.mrf.mxu2  ;;  %4279 = vst.msk [vmem:[%s9207_s28 + $0x78] sm:$0xff] %vm4166_vm1, %v4215_v10  ;;  %v4469_v10 = vadd.f32 %v5791_v1, %v4309_v61  ;;  %v5807_v1 = vunpack.i.h.bf16 %v5805_v43 }
 0x41b   : > { %v3694_v53 = vadd.f32 %v3693_v19, %v3605_v52  ;;  %v3871_v56 = vpop.f32.mrf.mxu3  ;;  %v3783_v29 = vadd.f32 %v3782_v32, %v9048_v20  ;;  %v4206_v20 = vld [vmem:[%s9207_s28 + $0x30] sm:$0xff]  ;;  %v5795_v19 = vpop.permute.xlu0 %5794  ;;  %v4466_v52 = vadd.f32 %v5782_v27, %v4306_v40  ;;  %4497 = vst.msk [vmem:[%s9207_s28 + $0x49] sm:$0xff] %vm4166_vm1, %v4465_v26  ;;  %v4312_v3 = vld [vmem:[%s9207_s28 + $0x81] sm:$0xff] }
 0x41c   : > { %3735 = vmatmul.bf16.gmra.mxu1 %v2738_v60  ;;  %v5797_v48 = vunpack.i.h.bf16 %v5795_v19  ;;  %4501 = vst.msk [vmem:[%s9207_s28 + $0x69] sm:$0xff] %vm4166_vm1, %v4469_v10  ;;  %v4222_v10 = vld [vmem:[%s9207_s28 + $0xb0] sm:$0xff] }
 0x41d   : > { %3913 = vmatmul.bf16.gmra.mxu3 %v2738_v60  ;;  %v4237_v14 = vadd.f32 %v4205_v34, %v3694_v53  ;;  %4370 = vrot.lane.b32.xlu2 %v3694_v53, %s6181_s27  ;;  %v4221_v60 = vld [vmem:[%s9207_s28 + $0xa8] sm:$0xff]  ;;  %v2702_v34 = vmul.f32 %v8841_v5, %v10570_v8  ;;  %v5796_v53 = vunpack.i.l.bf16 %v5795_v19  ;;  %4498 = vst.msk [vmem:[%s9207_s28 + $0x51] sm:$0xff] %vm4166_vm1, %v4466_v52  ;;  %v3940_v5 = vlaneseq }
 0x41e   : > { %4285 = vst.msk [vmem:[%s9207_s28 + $0xa8] sm:$0xff] %vm4166_vm1, %v4221_v60 }
 0x41f   : > { %4269 = vst.msk [vmem:[%s9207_s28 + $0x28] sm:$0xff] %vm4166_vm1, %v4237_v14  ;;  %v3696_v44 = vpop.f32.mrf.mxu1  ;;  %v3941_v2 = vshrl.u32 %v3940_v5, 7 }
 0x420   : > { %v3607_v41 = vpop.f32.mrf.mxu0  ;;  %4286 = vst.msk [vmem:[%s9207_s28 + $0xb0] sm:$0xff] %vm4166_vm1, %v4222_v10 }
 0x421   : > { %v3608_v37 = vadd.f32 %v3607_v41, %v9063_v7  ;;  %v9446_v7 = vadd.f32 %v3871_v56, %v3783_v29  ;;  %v4310_v56 = vld [vmem:[%s9207_s28 + $0x71] sm:$0xff]  ;;  %v2700_v29 = vmul.f32 %v8831_v23, %v10571_v16  ;;  %v4311_v27 = vld [vmem:[%s9207_s28 + $0x79] sm:$0xff]  ;;  %v5806_v41 = vunpack.i.l.bf16 %v5805_v43 }
 0x422   : > { %v3785_v28 = vpop.f32.mrf.mxu2  ;;  %v4470_v14 = vadd.f32 %v5792_v57, %v4310_v56  ;;  %v4471_v63 = vadd.f32 %v5796_v53, %v4311_v27  ;;  %v4212_v23 = vld [vmem:[%s9207_s28 + $0x60] sm:$0xff]  ;;  %v5787_v53 = vunpack.i.h.bf16 %v5785_v17 }
 0x423   : > { %v3697_v12 = vadd.f32 %v3696_v44, %v3608_v37  ;;  %v3874_v39 = vpop.f32.mrf.mxu3  ;;  %v3786_v13 = vadd.f32 %v3785_v28, %v9076_v62  ;;  %v2740_v6 = vpack.c.bf16 %v2702_v34, %v2700_v29  ;;  %v4472_v62 = vadd.f32 %v5797_v48, %v4312_v3  ;;  %v4207_v37 = vld [vmem:[%s9207_s28 + $0x38] sm:$0xff]  ;;  %4276 = vst.msk [vmem:[%s9207_s28 + $0x60] sm:$0xff] %vm4166_vm1, %v4212_v23  ;;  %v4208_v29 = vld [vmem:[%s9207_s28 + $0x40] sm:$0xff] }
 0x424   : > { %4502 = vst.msk [vmem:[%s9207_s28 + $0x71] sm:$0xff] %vm4166_vm1, %v4470_v14  ;;  %v4529_v57 = vld [vmem:[%s9207_s28 + $0x4a] sm:$0xff]  ;;  %v9494_v28 = vadd.s32 64, %v3941_v2  ;;  %v10572_v34 = vld [vmem:[#allocation63_spill] sm:$0xff] }
 0x425   : > { %v4238_v32 = vadd.f32 %v4206_v20, %v3697_v12  ;;  %4690 = vrot.lane.b32.xlu2 %v9446_v7, %s6181_s27  ;;  %4372 = vrot.lane.b32.xlu0 %v3697_v12, %s6181_s27  ;;  %4503 = vst.msk [vmem:[%s9207_s28 + $0x79] sm:$0xff] %vm4166_vm1, %v4471_v63  ;;  %v4315_v20 = vld [vmem:[%s9207_s28 + $0x99] sm:$0xff]  ;;  %v9481_v24 = vadd.f32 %v3874_v39, %v3786_v13 }
 0x426   : > { %3651 = vmatmul.bf16.gmra.mxu0 %v2739_v51  ;;  %4504 = vst.msk [vmem:[%s9207_s28 + $0x81] sm:$0xff] %vm4166_vm1, %v4472_v62  ;;  %v4475_v26 = vadd.f32 %v5806_v41, %v4315_v20  ;;  %v4316_v12 = vld [vmem:[%s9207_s28 + $0xa1] sm:$0xff]  ;;  %v2705_v61 = vmul.f32 %v8941_v58, %v10572_v34  ;;  %vm4014_vm2 = vcmp.lt.s32.totalorder %v9494_v28, 65  ;;  %v4223_v14 = vld [vmem:[%s9207_s28 + $0xb8] sm:$0xff]  ;;  %v9539_v62 = vpop.permute.xlu1 %5799 }
 0x427   : > { %4270 = vst.msk [vmem:[%s9207_s28 + $0x30] sm:$0xff] %vm4166_vm1, %v4238_v32  ;;  %v3698_v46 = vpop.f32.mrf.mxu1  ;;  %v4476_v39 = vadd.f32 %v5807_v1, %v4316_v12  ;;  %v5786_v32 = vunpack.i.l.bf16 %v5785_v17  ;;  %v10573_v58 = vld [vmem:[#allocation61_spill] sm:$0xff]  ;;  %v10574_v63 = vld [vmem:[#allocation64_spill] sm:$0xff]  ;;  %v5820_v1 = vpop.permute.xlu2 %5819 }
 0x428   : > { %3829 = vmatmul.bf16.gmra.mxu2 %v2739_v51  ;;  %v3609_v44 = vpop.f32.mrf.mxu0  ;;  %4593 = vst.msk [vmem:[%s9207_s28 + $0x4a] sm:$0xff] %vm4166_vm1, %v4529_v57  ;;  %v2703_v5 = vmul.f32 %v8927_v0, %v10573_v58  ;;  %v4225_v20 = vld [vmem:[%s9207_s28 + $0xc8] sm:$0xff]  ;;  %v5822_v58 = vunpack.i.h.bf16 %v5820_v1 }
 0x429   : > { %v3610_v22 = vadd.f32 %v3609_v44, %v9089_v47  ;;  %4507 = vst.msk [vmem:[%s9207_s28 + $0x99] sm:$0xff] %vm4166_vm1, %v4475_v26  ;;  %v4227_v26 = vld [vmem:[%s9207_s28 + $0xd8] sm:$0xff] }
 0x42a   : > { %v3787_v11 = vpop.f32.mrf.mxu2  ;;  %4508 = vst.msk [vmem:[%s9207_s28 + $0xa1] sm:$0xff] %vm4166_vm1, %v4476_v39  ;;  %v4307_v27 = vld [vmem:[%s9207_s28 + $0x59] sm:$0xff]  ;;  %v4308_v41 = vld [vmem:[%s9207_s28 + $0x61] sm:$0xff]  ;;  %v2741_v44 = vpack.c.bf16 %v2705_v61, %v2703_v5 }
 0x42b   : > { %v3699_v47 = vadd.f32 %v3698_v46, %v3610_v22  ;;  %v3876_v40 = vpop.f32.mrf.mxu3  ;;  %v3788_v52 = vadd.f32 %v3787_v11, %v9096_v35  ;;  %v4533_v8 = vld [vmem:[%s9207_s28 + $0x6a] sm:$0xff]  ;;  %v4467_v46 = vadd.f32 %v5786_v32, %v4307_v27  ;;  %v4468_v3 = vadd.f32 %v5787_v53, %v4308_v41  ;;  %4287 = vst.msk [vmem:[%s9207_s28 + $0xb8] sm:$0xff] %vm4166_vm1, %v4223_v14  ;;  %v4228_v5 = vld [vmem:[%s9207_s28 + $0xe0] sm:$0xff]  ;;  %v10576_v14 = vld [vmem:[#allocation67_spill] sm:$0xff] }
 0x42c   : > { %3740 = vmatmul.bf16.gmra.mxu1 %v2740_v6  ;;  %4597 = vst.msk [vmem:[%s9207_s28 + $0x6a] sm:$0xff] %vm4166_vm1, %v4533_v8  ;;  %v4534_v35 = vld [vmem:[%s9207_s28 + $0x72] sm:$0xff]  ;;  %v2706_v22 = vmul.f32 %v8981_v42, %v10574_v63  ;;  %v5821_v32 = vunpack.i.l.bf16 %v5820_v1  ;;  %v5801_v27 = vunpack.i.l.bf16 %v9539_v62  ;;  %v4229_v41 = vld [vmem:[%s9207_s28 + $0xe8] sm:$0xff] }
 0x42d   : > { %3918 = vmatmul.bf16.gmra.mxu3 %v2740_v6  ;;  %v4239_v19 = vadd.f32 %v4207_v37, %v3699_v47  ;;  %4374 = vrot.lane.b32.xlu1 %v3699_v47, %s6181_s27  ;;  %v4535_v48 = vld [vmem:[%s9207_s28 + $0x7a] sm:$0xff]  ;;  %4598 = vst.msk [vmem:[%s9207_s28 + $0x72] sm:$0xff] %vm4166_vm1, %v4534_v35  ;;  %v9518_v43 = vadd.f32 %v3876_v40, %v3788_v52  ;;  %v5810_v6 = vpop.permute.xlu0 %5809  ;;  %v10575_v37 = vld [vmem:[#allocation62_spill] sm:$0xff] }
 0x42e   : > { %4692 = vrot.lane.b32.xlu0 %v9481_v24, %s6181_s27  ;;  %4599 = vst.msk [vmem:[%s9207_s28 + $0x7a] sm:$0xff] %vm4166_vm1, %v4535_v48  ;;  %v2704_v2 = vmul.f32 %v8979_v21, %v10575_v37  ;;  %v4226_v11 = vld [vmem:[%s9207_s28 + $0xd0] sm:$0xff]  ;;  %v5811_v21 = vunpack.i.l.bf16 %v5810_v6  ;;  %v5812_v57 = vunpack.i.h.bf16 %v5810_v6  ;;  %v9583_v35 = vpop.permute.xlu1 %5814 }
 0x42f   : > { %4271 = vst.msk [vmem:[%s9207_s28 + $0x38] sm:$0xff] %vm4166_vm1, %v4239_v19  ;;  %v3701_v51 = vpop.f32.mrf.mxu1  ;;  %v4218_v19 = vld [vmem:[%s9207_s28 + $0x90] sm:$0xff] }
 0x430   : > { %v3612_v60 = vpop.f32.mrf.mxu0  ;;  %4499 = vst.msk [vmem:[%s9207_s28 + $0x59] sm:$0xff] %vm4166_vm1, %v4467_v46  ;;  %v2742_v40 = vpack.c.bf16 %v2706_v22, %v2704_v2  ;;  %v4317_v52 = vld [vmem:[%s9207_s28 + $0xa9] sm:$0xff] }
 0x431   : > { %v3613_v56 = vadd.f32 %v3612_v60, %v9106_v15  ;;  %v4539_v42 = vld [vmem:[%s9207_s28 + $0x9a] sm:$0xff]  ;;  %4500 = vst.msk [vmem:[%s9207_s28 + $0x61] sm:$0xff] %vm4166_vm1, %v4468_v3  ;;  %v4477_v34 = vadd.f32 %v5811_v21, %v4317_v52  ;;  %v10577_v46 = vld [vmem:[#allocation65_spill] sm:$0xff] }
 0x432   : > { %v3790_v15 = vpop.f32.mrf.mxu2  ;;  %4603 = vst.msk [vmem:[%s9207_s28 + $0x9a] sm:$0xff] %vm4166_vm1, %v4539_v42  ;;  %v4318_v60 = vld [vmem:[%s9207_s28 + $0xb1] sm:$0xff]  ;;  %v2707_v3 = vmul.f32 %v9050_v45, %v10577_v46 }
 0x433   : > { %v3702_v13 = vadd.f32 %v3701_v51, %v3613_v56  ;;  %v9520_v16 = vpop.f32.mrf.mxu3  ;;  %4289 = vst.msk [vmem:[%s9207_s28 + $0xc8] sm:$0xff] %vm4166_vm1, %v4225_v20  ;;  %v3791_v51 = vadd.f32 %v3790_v15, %v9110_v9  ;;  %v4478_v9 = vadd.f32 %v5812_v57, %v4318_v60  ;;  %v10578_v20 = vld [vmem:[#allocation68_spill] sm:$0xff]  ;;  %v4231_v57 = vld [vmem:[%s9207_s28 + $0xf8] sm:$0xff] }
 0x434   : > { %4290 = vst.msk [vmem:[%s9207_s28 + $0xd0] sm:$0xff] %vm4166_vm1, %v4226_v11  ;;  %v10579_v11 = vld [vmem:[#allocation66_spill] sm:$0xff] }
 0x435   : > { %4694 = vrot.lane.b32.xlu1 %v9518_v43, %s6181_s27  ;;  %v4118_v0 = vsel %vm4014_vm2, %v3702_v13, 0.0  ;;  %4291 = vst.msk [vmem:[%s9207_s28 + $0xd8] sm:$0xff] %vm4166_vm1, %v4227_v26  ;;  %v9581_v56 = vpop.permute.xlu0 %5824  ;;  %v2709_v13 = vmul.f32 %v9042_v36, %v10576_v14  ;;  %v3880_v15 = vadd.f32 %v9520_v16, %v3791_v51  ;;  %v9601_v36 = vpop.permute.xlu2 %5834 }
 0x436   : > { %5869 = vrot.lane.b32.xlu0 %v6180_v25, %s6181_s27  ;;  %v4240_v23 = vadd.f32 %v4208_v29, %v4118_v0  ;;  %4376 = vrot.lane.b32.xlu2 %v4118_v0, %s6181_s27  ;;  %4282 = vst.msk [vmem:[%s9207_s28 + $0x90] sm:$0xff] %vm4166_vm1, %v4218_v19  ;;  %v5802_v29 = vunpack.i.h.bf16 %v9539_v62  ;;  %v5837_v45 = vunpack.i.h.bf16 %v9601_v36  ;;  %v5826_v28 = vunpack.i.l.bf16 %v9581_v56  ;;  %v9642_v51 = vpop.permute.xlu1 %5829 }
 0x437   : > { %3656 = vmatmul.bf16.gmra.mxu0 %v2741_v44  ;;  %v3703_v47 = vpop.f32.mrf.mxu1  ;;  %v4530_v8 = vld [vmem:[%s9207_s28 + $0x52] sm:$0xff]  ;;  %4509 = vst.msk [vmem:[%s9207_s28 + $0xa9] sm:$0xff] %vm4166_vm1, %v4477_v34  ;;  %v2743_v37 = vpack.c.bf16 %v2709_v13, %v2707_v3  ;;  %v9615_v2 = vsel %vm4014_vm2, %v3880_v15, 0.0  ;;  %v5836_v14 = vunpack.i.l.bf16 %v9601_v36 }
 0x438   : > { %3834 = vmatmul.bf16.gmra.mxu2 %v2741_v44  ;;  %4272 = vst.msk [vmem:[%s9207_s28 + $0x40] sm:$0xff] %vm4166_vm1, %v4240_v23  ;;  %v3614_v17 = vpop.f32.mrf.mxu0  ;;  %v4531_v61 = vld [vmem:[%s9207_s28 + $0x5a] sm:$0xff]  ;;  %v4532_v53 = vld [vmem:[%s9207_s28 + $0x62] sm:$0xff] }
 0x439   : > { %4594 = vst.msk [vmem:[%s9207_s28 + $0x52] sm:$0xff] %vm4166_vm1, %v4530_v8  ;;  %v2710_v17 = vmul.f32 %v9061_v59, %v10578_v20  ;;  %v10580_v3 = vld [vmem:[#allocation71_spill] sm:$0xff] }
 0x43a   : > { %v3792_v12 = vpop.f32.mrf.mxu2  ;;  %4595 = vst.msk [vmem:[%s9207_s28 + $0x5a] sm:$0xff] %vm4166_vm1, %v4531_v61 }
 0x43b   : > { %v3881_v39 = vpop.f32.mrf.mxu3  ;;  %4596 = vst.msk [vmem:[%s9207_s28 + $0x62] sm:$0xff] %vm4166_vm1, %v4532_v53  ;;  %v4321_v44 = vld [vmem:[%s9207_s28 + $0xc9] sm:$0xff] }
 0x43c   : > { %3745 = vmatmul.bf16.gmra.mxu1 %v2742_v40  ;;  %4510 = vst.msk [vmem:[%s9207_s28 + $0xb1] sm:$0xff] %vm4166_vm1, %v4478_v9  ;;  %v4322_v63 = vld [vmem:[%s9207_s28 + $0xd1] sm:$0xff]  ;;  %v4481_v22 = vadd.f32 %v5821_v32, %v4321_v44 }
 0x43d   : > { %3923 = vmatmul.bf16.gmra.mxu3 %v2742_v40  ;;  %5874 = vrot.lane.b32.xlu1 %v6180_v25, %s6181_s27  ;;  %4292 = vst.msk [vmem:[%s9207_s28 + $0xe0] sm:$0xff] %vm4166_vm1, %v4228_v5  ;;  %v4482_v6 = vadd.f32 %v5822_v58, %v4322_v63  ;;  %v4313_v62 = vld [vmem:[%s9207_s28 + $0x89] sm:$0xff]  ;;  %v4314_v23 = vld [vmem:[%s9207_s28 + $0x91] sm:$0xff]  ;;  %v2708_v40 = vmul.f32 %v9068_v4, %v10579_v11  ;;  %v5840_v52 = vpop.permute.xlu0 %5839  ;;  %v5827_v4 = vunpack.i.h.bf16 %v9581_v56  ;;  %v5850_v15 = vpop.permute.xlu2 %5849 }
 0x43e   : > { %5884 = vrot.lane.b32.xlu0 %v6180_v25, %s6181_s27  ;;  %5864 = vrot.lane.b32.xlu2 %v6180_v25, %s6181_s27  ;;  %4293 = vst.msk [vmem:[%s9207_s28 + $0xe8] sm:$0xff] %vm4166_vm1, %v4229_v41  ;;  %v4473_v42 = vadd.f32 %v5801_v27, %v4313_v62  ;;  %v4474_v1 = vadd.f32 %v5802_v29, %v4314_v23  ;;  %v4540_v21 = vld [vmem:[%s9207_s28 + $0xa2] sm:$0xff]  ;;  %v5841_v9 = vunpack.i.l.bf16 %v5840_v52  ;;  %v5842_v13 = vunpack.i.h.bf16 %v5840_v52  ;;  %v5845_v62 = vpop.permute.xlu1 %5844 }
 0x43f   : > { %v3706_v48 = vpop.f32.mrf.mxu1  ;;  %4513 = vst.msk [vmem:[%s9207_s28 + $0xc9] sm:$0xff] %vm4166_vm1, %v4481_v22  ;;  %v2744_v39 = vpack.c.bf16 %v2710_v17, %v2708_v40  ;;  %v4224_v41 = vld [vmem:[%s9207_s28 + $0xc0] sm:$0xff]  ;;  %v10581_v22 = vld [vmem:[#allocation69_spill] sm:$0xff]  ;;  %v5817_v40 = vunpack.i.h.bf16 %v9583_v35 }
 0x440   : > { %v3617_v10 = vpop.f32.mrf.mxu0  ;;  %v4625_v47 = vld [vmem:[%s9207_s28 + $0x4b] sm:$0xff]  ;;  %4514 = vst.msk [vmem:[%s9207_s28 + $0xd1] sm:$0xff] %vm4166_vm1, %v4482_v6  ;;  %v2711_v6 = vmul.f32 %v9098_v55, %v10581_v22  ;;  %v10582_v55 = vld [vmem:[#allocation72_spill] sm:$0xff] }
 0x441   : > { %4505 = vst.msk [vmem:[%s9207_s28 + $0x89] sm:$0xff] %vm4166_vm1, %v4473_v42  ;;  %v4785_v19 = vadd.f32 %v5837_v45, %v4625_v47  ;;  %v4626_v56 = vld [vmem:[%s9207_s28 + $0x53] sm:$0xff]  ;;  %v5852_v42 = vunpack.i.h.bf16 %v5850_v15 }
 0x442   : > { %v3795_v0 = vpop.f32.mrf.mxu2  ;;  %4506 = vst.msk [vmem:[%s9207_s28 + $0x91] sm:$0xff] %vm4166_vm1, %v4474_v1  ;;  %v4627_v44 = vld [vmem:[%s9207_s28 + $0x5b] sm:$0xff]  ;;  %v4786_v46 = vadd.f32 %v5841_v9, %v4626_v56  ;;  %v4628_v9 = vld [vmem:[%s9207_s28 + $0x63] sm:$0xff] }
 0x443   : > { %v3884_v16 = vpop.f32.mrf.mxu3  ;;  %v4541_v12 = vld [vmem:[%s9207_s28 + $0xaa] sm:$0xff]  ;;  %4604 = vst.msk [vmem:[%s9207_s28 + $0xa2] sm:$0xff] %vm4166_vm1, %v4540_v21  ;;  %v2713_v0 = vmul.f32 %v9092_v18, %v10580_v3  ;;  %v4787_v45 = vadd.f32 %v5842_v13, %v4627_v44  ;;  %v5816_v21 = vunpack.i.l.bf16 %v9583_v35 }
 0x444   : > { %4605 = vst.msk [vmem:[%s9207_s28 + $0xaa] sm:$0xff] %vm4166_vm1, %v4541_v12  ;;  %v4323_v60 = vld [vmem:[%s9207_s28 + $0xd9] sm:$0xff] }
 0x445   : > { %5889 = vrot.lane.b32.xlu1 %v6180_v25, %s6181_s27  ;;  %v4324_v61 = vld [vmem:[%s9207_s28 + $0xe1] sm:$0xff]  ;;  %v4483_v53 = vadd.f32 %v5826_v28, %v4323_v60  ;;  %4295 = vst.msk [vmem:[%s9207_s28 + $0xf8] sm:$0xff] %vm4166_vm1, %v4231_v57  ;;  %v4630_v16 = vld [vmem:[%s9207_s28 + $0x73] sm:$0xff]  ;;  %v5855_v63 = vpop.permute.xlu0 %5854  ;;  %v2745_v47 = vpack.c.bf16 %v2713_v0, %v2711_v6  ;;  %v2714_v28 = vmul.f32 %v9104_v30, %v10582_v55 }
 0x446   : > { %4696 = vrot.lane.b32.xlu2 %v9615_v2, %s6181_s27  ;;  %4817 = vst.msk [vmem:[%s9207_s28 + $0x4b] sm:$0xff] %vm4166_vm1, %v4785_v19  ;;  %v4484_v48 = vadd.f32 %v5827_v4, %v4324_v61  ;;  %v5856_v17 = vunpack.i.l.bf16 %v5855_v63  ;;  %v10583_v57 = vld [vmem:[#allocation70_spill] sm:$0xff]  ;;  %v5857_v52 = vunpack.i.h.bf16 %v5855_v63  ;;  %v5832_v63 = vunpack.i.h.bf16 %v9642_v51 }
 0x447   : > { %3661 = vmatmul.bf16.gmra.mxu0 %v2743_v37  ;;  %v3708_v26 = vpop.f32.mrf.mxu1  ;;  %v4545_v32 = vld [vmem:[%s9207_s28 + $0xca] sm:$0xff]  ;;  %4515 = vst.msk [vmem:[%s9207_s28 + $0xd9] sm:$0xff] %vm4166_vm1, %v4483_v53  ;;  %v2712_v30 = vmul.f32 %v9108_v50, %v10583_v57  ;;  %v5847_v53 = vunpack.i.h.bf16 %v5845_v62 }
 0x448   : > { %3839 = vmatmul.bf16.gmra.mxu2 %v2743_v37  ;;  %v3619_v59 = vpop.f32.mrf.mxu0  ;;  %4609 = vst.msk [vmem:[%s9207_s28 + $0xca] sm:$0xff] %vm4166_vm1, %v4545_v32  ;;  %v4536_v10 = vld [vmem:[%s9207_s28 + $0x82] sm:$0xff]  ;;  %v5860_v32 = vpop.permute.xlu1 %5859 }
 0x449   : > { %v4537_v58 = vld [vmem:[%s9207_s28 + $0x8a] sm:$0xff]  ;;  %v4538_v5 = vld [vmem:[%s9207_s28 + $0x92] sm:$0xff]  ;;  %4600 = vst.msk [vmem:[%s9207_s28 + $0x82] sm:$0xff] %vm4166_vm1, %v4536_v10 }
 0x44a   : > { %v3797_v8 = vpop.f32.mrf.mxu2  ;;  %4601 = vst.msk [vmem:[%s9207_s28 + $0x8a] sm:$0xff] %vm4166_vm1, %v4537_v58  ;;  %v4635_v44 = vld [vmem:[%s9207_s28 + $0x9b] sm:$0xff] }
 0x44b   : > { %v3886_v34 = vpop.f32.mrf.mxu3  ;;  %4602 = vst.msk [vmem:[%s9207_s28 + $0x92] sm:$0xff] %vm4166_vm1, %v4538_v5  ;;  %v2746_v8 = vpack.c.bf16 %v2714_v28, %v2712_v30  ;;  %v4629_v5 = vld [vmem:[%s9207_s28 + $0x6b] sm:$0xff] }
 0x44c   : > { %3750 = vmatmul.bf16.gmra.mxu1 %v2744_v39  ;;  %4516 = vst.msk [vmem:[%s9207_s28 + $0xe1] sm:$0xff] %vm4166_vm1, %v4484_v48  ;;  %v4327_v36 = vld [vmem:[%s9207_s28 + $0xf9] sm:$0xff]  ;;  %v5846_v34 = vunpack.i.l.bf16 %v5845_v62 }
 0x44d   : > { %3928 = vmatmul.bf16.gmra.mxu3 %v2744_v39  ;;  %v4487_v23 = vadd.f32 %v5836_v14, %v4327_v36  ;;  %4288 = vst.msk [vmem:[%s9207_s28 + $0xc0] sm:$0xff] %vm4166_vm1, %v4224_v41  ;;  %v4230_v39 = vld [vmem:[%s9207_s28 + $0xf0] sm:$0xff]  ;;  %v5861_v14 = vunpack.i.l.bf16 %v5860_v32 }
 0x44e   : > { %5879 = vrot.lane.b32.xlu2 %v6180_v25, %s6181_s27  ;;  %v5851_v25 = vunpack.i.l.bf16 %v5850_v15  ;;  %v4546_v1 = vld [vmem:[%s9207_s28 + $0xd2] sm:$0xff]  ;;  %4818 = vst.msk [vmem:[%s9207_s28 + $0x53] sm:$0xff] %vm4166_vm1, %v4786_v46  ;;  %v5862_v15 = vunpack.i.h.bf16 %v5860_v32  ;;  %v4788_v41 = vadd.f32 %v5846_v34, %v4628_v9  ;;  %v4789_v46 = vadd.f32 %v5847_v53, %v4629_v5 }
 0x44f   : > { %v3711_v27 = vpop.f32.mrf.mxu1  ;;  %4610 = vst.msk [vmem:[%s9207_s28 + $0xd2] sm:$0xff] %vm4166_vm1, %v4546_v1 }
 0x450   : > { %v3622_v29 = vpop.f32.mrf.mxu0  ;;  %v4790_v20 = vadd.f32 %v5851_v25, %v4630_v16  ;;  %4519 = vst.msk [vmem:[%s9207_s28 + $0xf9] sm:$0xff] %vm4166_vm1, %v4487_v23  ;;  %v4631_v11 = vld [vmem:[%s9207_s28 + $0x7b] sm:$0xff]  ;;  %v5831_v25 = vunpack.i.l.bf16 %v9642_v51  ;;  %v4795_v36 = vadd.f32 %v5862_v15, %v4635_v44 }
 0x451   : > { %4819 = vst.msk [vmem:[%s9207_s28 + $0x5b] sm:$0xff] %vm4166_vm1, %v4787_v45  ;;  %v4791_v59 = vadd.f32 %v5852_v42, %v4631_v11  ;;  %v4632_v26 = vld [vmem:[%s9207_s28 + $0x83] sm:$0xff] }
 0x452   : > { %v3800_v37 = vpop.f32.mrf.mxu2  ;;  %4822 = vst.msk [vmem:[%s9207_s28 + $0x73] sm:$0xff] %vm4166_vm1, %v4790_v20  ;;  %v4792_v35 = vadd.f32 %v5856_v17, %v4632_v26  ;;  %v4633_v60 = vld [vmem:[%s9207_s28 + $0x8b] sm:$0xff]  ;;  %v4634_v29 = vld [vmem:[%s9207_s28 + $0x93] sm:$0xff]  ;;  %v4296_v17 = vld [vmem:[%s9207_s28 + $0x1] sm:$0xff] }
 0x453   : > { %v3889_v18 = vpop.f32.mrf.mxu3  ;;  %v4547_v4 = vld [vmem:[%s9207_s28 + $0xda] sm:$0xff]  ;;  %4823 = vst.msk [vmem:[%s9207_s28 + $0x7b] sm:$0xff] %vm4166_vm1, %v4791_v59  ;;  %v4793_v13 = vadd.f32 %v5857_v52, %v4633_v60  ;;  %v4794_v3 = vadd.f32 %v5861_v14, %v4634_v29 }
 0x454   : > { %4611 = vst.msk [vmem:[%s9207_s28 + $0xda] sm:$0xff] %vm4166_vm1, %v4547_v4  ;;  %v4319_v50 = vld [vmem:[%s9207_s28 + $0xb9] sm:$0xff]  ;;  %v4320_v61 = vld [vmem:[%s9207_s28 + $0xc1] sm:$0xff] }
 0x455   : > { %v4479_v56 = vadd.f32 %v5816_v21, %v4319_v50  ;;  %v4480_v10 = vadd.f32 %v5817_v40, %v4320_v61  ;;  %4294 = vst.msk [vmem:[%s9207_s28 + $0xf0] sm:$0xff] %vm4166_vm1, %v4230_v39  ;;  %v4300_v26 = vld [vmem:[%s9207_s28 + $0x21] sm:$0xff]  ;;  %v4297_v50 = vld [vmem:[%s9207_s28 + $0x9] sm:$0xff] }
 0x456   : > { %4824 = vst.msk [vmem:[%s9207_s28 + $0x83] sm:$0xff] %vm4166_vm1, %v4792_v35 }
 0x457   : > { %3666 = vmatmul.bf16.gmra.mxu0 %v2745_v47  ;;  %v3713_v12 = vpop.f32.mrf.mxu1  ;;  %v4551_v27 = vld [vmem:[%s9207_s28 + $0xfa] sm:$0xff]  ;;  %4511 = vst.msk [vmem:[%s9207_s28 + $0xb9] sm:$0xff] %vm4166_vm1, %v4479_v56 }
 0x458   : > { %3844 = vmatmul.bf16.gmra.mxu2 %v2745_v47  ;;  %v3624_v19 = vpop.f32.mrf.mxu0  ;;  %4615 = vst.msk [vmem:[%s9207_s28 + $0xfa] sm:$0xff] %vm4166_vm1, %v4551_v27 }
 0x459   : > { %4512 = vst.msk [vmem:[%s9207_s28 + $0xc1] sm:$0xff] %vm4166_vm1, %v4480_v10 }
 0x45a   : > { %v3802_v48 = vpop.f32.mrf.mxu2  ;;  %4825 = vst.msk [vmem:[%s9207_s28 + $0x8b] sm:$0xff] %vm4166_vm1, %v4793_v13 }
 0x45b   : > { %v3891_v58 = vpop.f32.mrf.mxu3  ;;  %4820 = vst.msk [vmem:[%s9207_s28 + $0x63] sm:$0xff] %vm4166_vm1, %v4788_v41  ;;  %v4298_v48 = vld [vmem:[%s9207_s28 + $0x11] sm:$0xff]  ;;  %v4299_v41 = vld [vmem:[%s9207_s28 + $0x19] sm:$0xff] }
 0x45c   : > { %3755 = vmatmul.bf16.gmra.mxu1 %v2746_v8  ;;  %v4325_v22 = vld [vmem:[%s9207_s28 + $0xe9] sm:$0xff]  ;;  %v4326_v6 = vld [vmem:[%s9207_s28 + $0xf1] sm:$0xff]  ;;  %4821 = vst.msk [vmem:[%s9207_s28 + $0x6b] sm:$0xff] %vm4166_vm1, %v4789_v46 }
 0x45d   : > { %3933 = vmatmul.bf16.gmra.mxu3 %v2746_v8  ;;  %v4485_v62 = vadd.f32 %v5831_v25, %v4325_v22  ;;  %4826 = vst.msk [vmem:[%s9207_s28 + $0x93] sm:$0xff] %vm4166_vm1, %v4794_v3  ;;  %v4486_v51 = vadd.f32 %v5832_v63, %v4326_v6  ;;  %v4301_v8 = vld [vmem:[%s9207_s28 + $0x29] sm:$0xff] }
 0x45e   : > { %v4542_v18 = vld [vmem:[%s9207_s28 + $0xb2] sm:$0xff]  ;;  %4827 = vst.msk [vmem:[%s9207_s28 + $0x9b] sm:$0xff] %vm4166_vm1, %v4795_v36 }
 0x45f   : > { %v3716_v16 = vpop.f32.mrf.mxu1  ;;  %4606 = vst.msk [vmem:[%s9207_s28 + $0xb2] sm:$0xff] %vm4166_vm1, %v4542_v18 }
 0x460   : > { %v3627_v0 = vpop.f32.mrf.mxu0  ;;  %v4543_v45 = vld [vmem:[%s9207_s28 + $0xba] sm:$0xff]  ;;  %v4544_v42 = vld [vmem:[%s9207_s28 + $0xc2] sm:$0xff]  ;;  %4517 = vst.msk [vmem:[%s9207_s28 + $0xe9] sm:$0xff] %vm4166_vm1, %v4485_v62 }
 0x461   : > { %4607 = vst.msk [vmem:[%s9207_s28 + $0xba] sm:$0xff] %vm4166_vm1, %v4543_v45  ;;  %v9745_v1 = vpop.permute.xlu2 %4684 }
 0x462   : > { %v3805_v23 = vpop.f32.mrf.mxu2  ;;  %4608 = vst.msk [vmem:[%s9207_s28 + $0xc2] sm:$0xff] %vm4166_vm1, %v4544_v42 }
 0x463   : > { %v3894_v37 = vpop.f32.mrf.mxu3  ;;  %4518 = vst.msk [vmem:[%s9207_s28 + $0xf1] sm:$0xff] %vm4166_vm1, %v4486_v51 }
 0x467   : > { %v4361_v20 = vpop.permute.xlu0 %4360  ;;  %v3718_v28 = vpop.f32.mrf.mxu1  ;;  %v4548_v21 = vld [vmem:[%s9207_s28 + $0xe2] sm:$0xff] }
 0x468   : > { %v4456_v47 = vadd.f32 %v4361_v20, %v4296_v17  ;;  %v3629_v55 = vpop.f32.mrf.mxu0  ;;  %4612 = vst.msk [vmem:[%s9207_s28 + $0xe2] sm:$0xff] %vm4166_vm1, %v4548_v21  ;;  %v4302_v21 = vld [vmem:[%s9207_s28 + $0x31] sm:$0xff] }
 0x46a   : > { %4488 = vst.msk [vmem:[%s9207_s28 + $0x1] sm:$0xff] %vm4166_vm1, %v4456_v47  ;;  %v3807_v11 = vpop.f32.mrf.mxu2  ;;  %v4549_v30 = vld [vmem:[%s9207_s28 + $0xea] sm:$0xff]  ;;  %v4550_v19 = vld [vmem:[%s9207_s28 + $0xf2] sm:$0xff]  ;;  %v4304_v47 = vld [vmem:[%s9207_s28 + $0x41] sm:$0xff] }
 0x46b   : > { %v3896_v40 = vpop.f32.mrf.mxu3  ;;  %4613 = vst.msk [vmem:[%s9207_s28 + $0xea] sm:$0xff] %vm4166_vm1, %v4549_v30 }
 0x46c   : > { %4614 = vst.msk [vmem:[%s9207_s28 + $0xf2] sm:$0xff] %vm4166_vm1, %v4550_v19 }
 0x46f   : > { %v4369_v59 = vpop.permute.xlu2 %4368  ;;  %v4681_v57 = vpop.permute.xlu0 %4680 }
 0x470   : > { %v4460_v12 = vadd.f32 %v4369_v59, %v4300_v26  ;;  %v3632_v39 = vpop.f32.mrf.mxu0  ;;  %v3721_v52 = vpop.f32.mrf.mxu1 }
 0x471   : > { %v9764_v35 = vpop.permute.xlu1 %4682 }
 0x472   : > { %4492 = vst.msk [vmem:[%s9207_s28 + $0x21] sm:$0xff] %vm4166_vm1, %v4460_v12  ;;  %v3810_v4 = vpop.f32.mrf.mxu2  ;;  %v4636_v12 = vld [vmem:[%s9207_s28 + $0xa3] sm:$0xff] }
 0x473   : > { %v3899_v60 = vpop.f32.mrf.mxu3  ;;  %v4637_v4 = vld [vmem:[%s9207_s28 + $0xab] sm:$0xff] }
 0x477   : > { %v4371_v34 = vpop.permute.xlu2 %4370  ;;  %v4363_v61 = vpop.permute.xlu0 %4362 }
 0x478   : > { %v4461_v53 = vadd.f32 %v4371_v34, %v4301_v8  ;;  %v4457_v9 = vadd.f32 %v4363_v61, %v4297_v50  ;;  %v3634_v32 = vpop.f32.mrf.mxu0  ;;  %v3723_v56 = vpop.f32.mrf.mxu1 }
 0x479   : > { %v4365_v10 = vpop.permute.xlu1 %4364 }
 0x47a   : > { %4493 = vst.msk [vmem:[%s9207_s28 + $0x29] sm:$0xff] %vm4166_vm1, %v4461_v53  ;;  %v4458_v58 = vadd.f32 %v4365_v10, %v4298_v48  ;;  %v3812_v5 = vpop.f32.mrf.mxu2 }
 0x47b   : > { %4489 = vst.msk [vmem:[%s9207_s28 + $0x9] sm:$0xff] %vm4166_vm1, %v4457_v9  ;;  %v3901_v14 = vpop.f32.mrf.mxu3 }
 0x47c   : > { %4490 = vst.msk [vmem:[%s9207_s28 + $0x11] sm:$0xff] %vm4166_vm1, %v4458_v58 }
 0x47f   : > { %v9792_v22 = vpop.permute.xlu2 %4690 }
 0x480   : > { %v3637_v13 = vpop.f32.mrf.mxu0  ;;  %v3726_v15 = vpop.f32.mrf.mxu1 }
 0x481   : > { %v4524_v29 = vld [vmem:[%s9207_s28 + $0x22] sm:$0xff]  ;;  %v4367_v44 = vpop.permute.xlu1 %4366  ;;  %v4687_v42 = vpop.permute.xlu0 %4686 }
 0x482   : > { %v4520_v27 = vld [vmem:[%s9207_s28 + $0x2] sm:$0xff]  ;;  %v4556_v46 = vadd.f32 %v4524_v29, %v9396_v33  ;;  %v4459_v3 = vadd.f32 %v4367_v44, %v4299_v41  ;;  %v3815_v0 = vpop.f32.mrf.mxu2 }
 0x483   : > { %v4552_v25 = vadd.f32 %v4520_v27, %v9346_v31  ;;  %v3904_v16 = vpop.f32.mrf.mxu3  ;;  %v4521_v36 = vld [vmem:[%s9207_s28 + $0xa] sm:$0xff] }
 0x484   : > { %4588 = vst.msk [vmem:[%s9207_s28 + $0x22] sm:$0xff] %vm4166_vm1, %v4556_v46  ;;  %v4553_v63 = vadd.f32 %v4521_v36, %v9351_v49 }
 0x485   : > { %4584 = vst.msk [vmem:[%s9207_s28 + $0x2] sm:$0xff] %vm4166_vm1, %v4552_v25 }
 0x486   : > { %4491 = vst.msk [vmem:[%s9207_s28 + $0x19] sm:$0xff] %vm4166_vm1, %v4459_v3 }
 0x487   : > { %4585 = vst.msk [vmem:[%s9207_s28 + $0xa] sm:$0xff] %vm4166_vm1, %v4553_v63 }
 0x488   : > { %v3639_v33 = vpop.f32.mrf.mxu0  ;;  %v3728_v31 = vpop.f32.mrf.mxu1 }
 0x489   : > { %v9809_v40 = vpop.permute.xlu1 %4688  ;;  %v4639_v31 = vld [vmem:[%s9207_s28 + $0xbb] sm:$0xff] }
 0x48a   : > { %v3817_v6 = vpop.f32.mrf.mxu2 }
 0x48b   : > { %v3906_v62 = vpop.f32.mrf.mxu3 }
 0x48d   : > { %v4522_v23 = vld [vmem:[%s9207_s28 + $0x12] sm:$0xff]  ;;  %v4523_v37 = vld [vmem:[%s9207_s28 + $0x1a] sm:$0xff] }
 0x48e   : > { %v4616_v18 = vld [vmem:[%s9207_s28 + $0x3] sm:$0xff]  ;;  %v4554_v49 = vadd.f32 %v4522_v23, %v9367_v38  ;;  %v4555_v51 = vadd.f32 %v4523_v37, %v9379_v54 }
 0x48f   : > { %v4776_v45 = vadd.f32 %v4681_v57, %v4616_v18  ;;  %v4643_v18 = vld [vmem:[%s9207_s28 + $0xdb] sm:$0xff] }
 0x490   : > { %4586 = vst.msk [vmem:[%s9207_s28 + $0x12] sm:$0xff] %vm4166_vm1, %v4554_v49  ;;  %v3642_v20 = vpop.f32.mrf.mxu0  ;;  %v3731_v17 = vpop.f32.mrf.mxu1  ;;  %v4638_v49 = vld [vmem:[%s9207_s28 + $0xb3] sm:$0xff] }
 0x491   : > { %4808 = vst.msk [vmem:[%s9207_s28 + $0x3] sm:$0xff] %vm4166_vm1, %v4776_v45  ;;  %v4377_v55 = vpop.permute.xlu2 %4376 }
 0x492   : > { %4587 = vst.msk [vmem:[%s9207_s28 + $0x1a] sm:$0xff] %vm4166_vm1, %v4555_v51  ;;  %v4464_v38 = vadd.f32 %v4377_v55, %v4304_v47  ;;  %v3820_v28 = vpop.f32.mrf.mxu2  ;;  %v4642_v51 = vld [vmem:[%s9207_s28 + $0xd3] sm:$0xff] }
 0x493   : > { %v3909_v54 = vpop.f32.mrf.mxu3 }
 0x494   : > { %4496 = vst.msk [vmem:[%s9207_s28 + $0x41] sm:$0xff] %vm4166_vm1, %v4464_v38 }
 0x497   : > { %v4617_v11 = vld [vmem:[%s9207_s28 + $0xb] sm:$0xff]  ;;  %v4373_v59 = vpop.permute.xlu0 %4372 }
 0x498   : > { %v4777_v26 = vadd.f32 %v9764_v35, %v4617_v11  ;;  %v4462_v57 = vadd.f32 %v4373_v59, %v4302_v21  ;;  %v3644_v30 = vpop.f32.mrf.mxu0  ;;  %v3733_v19 = vpop.f32.mrf.mxu1 }
 0x499   : > { %v4618_v39 = vld [vmem:[%s9207_s28 + $0x13] sm:$0xff]  ;;  %v4619_v52 = vld [vmem:[%s9207_s28 + $0x1b] sm:$0xff]  ;;  %v5865_v60 = vpop.permute.xlu2 %5864 }
 0x49a   : > { %4809 = vst.msk [vmem:[%s9207_s28 + $0xb] sm:$0xff] %vm4166_vm1, %v4777_v26  ;;  %v4778_v8 = vadd.f32 %v9745_v1, %v4618_v39  ;;  %v4779_v34 = vadd.f32 %v4687_v42, %v4619_v52  ;;  %v5867_v35 = vunpack.i.h.bf16 %v5865_v60  ;;  %v5866_v50 = vunpack.i.l.bf16 %v5865_v60  ;;  %v3822_v61 = vpop.f32.mrf.mxu2  ;;  %v4303_v1 = vld [vmem:[%s9207_s28 + $0x39] sm:$0xff]  ;;  %v4640_v26 = vld [vmem:[%s9207_s28 + $0xc3] sm:$0xff] }
 0x49b   : > { %4494 = vst.msk [vmem:[%s9207_s28 + $0x31] sm:$0xff] %vm4166_vm1, %v4462_v57  ;;  %v3911_v53 = vpop.f32.mrf.mxu3  ;;  %v4528_v9 = vld [vmem:[%s9207_s28 + $0x42] sm:$0xff]  ;;  %v4641_v57 = vld [vmem:[%s9207_s28 + $0xcb] sm:$0xff] }
 0x49c   : > { %4810 = vst.msk [vmem:[%s9207_s28 + $0x13] sm:$0xff] %vm4166_vm1, %v4778_v8  ;;  %v4797_v32 = vadd.f32 %v5867_v35, %v4637_v4  ;;  %v4796_v56 = vadd.f32 %v5866_v50, %v4636_v12  ;;  %v4560_v10 = vadd.f32 %v4528_v9, %v9615_v2  ;;  %v4645_v50 = vld [vmem:[%s9207_s28 + $0xeb] sm:$0xff]  ;;  %v4644_v9 = vld [vmem:[%s9207_s28 + $0xe3] sm:$0xff] }
 0x49d   : > { %4811 = vst.msk [vmem:[%s9207_s28 + $0x1b] sm:$0xff] %vm4166_vm1, %v4779_v34 }
 0x49e   : > { %4829 = vst.msk [vmem:[%s9207_s28 + $0xab] sm:$0xff] %vm4166_vm1, %v4797_v32 }
 0x49f   : > { %4828 = vst.msk [vmem:[%s9207_s28 + $0xa3] sm:$0xff] %vm4166_vm1, %v4796_v56  ;;  %v4375_v48 = vpop.permute.xlu1 %4374 }
 0x4a0   : > { %v9833_v58 = vpop.permute.xlu0 %4692  ;;  %v4463_v5 = vadd.f32 %v4375_v48, %v4303_v1  ;;  %v3647_v14 = vpop.f32.mrf.mxu0  ;;  %4592 = vst.msk [vmem:[%s9207_s28 + $0x42] sm:$0xff] %vm4166_vm1, %v4560_v10 }
 0x4a1   : > { %v3736_v13 = vpop.f32.mrf.mxu1  ;;  %v4697_v15 = vpop.permute.xlu2 %4696  ;;  %v4647_v14 = vld [vmem:[%s9207_s28 + $0xfb] sm:$0xff] }
 0x4a2   : > { %v4525_v2 = vld [vmem:[%s9207_s28 + $0x2a] sm:$0xff]  ;;  %4495 = vst.msk [vmem:[%s9207_s28 + $0x39] sm:$0xff] %vm4166_vm1, %v4463_v5  ;;  %v3825_v27 = vpop.f32.mrf.mxu2  ;;  %v4646_v5 = vld [vmem:[%s9207_s28 + $0xf3] sm:$0xff] }
 0x4a3   : > { %v4557_v29 = vadd.f32 %v4525_v2, %v9446_v7  ;;  %v3914_v41 = vpop.f32.mrf.mxu3 }
 0x4a5   : > { %4589 = vst.msk [vmem:[%s9207_s28 + $0x2a] sm:$0xff] %vm4166_vm1, %v4557_v29 }
 0x4a7   : > { %v4624_v44 = vld [vmem:[%s9207_s28 + $0x43] sm:$0xff]  ;;  %v4695_v46 = vpop.permute.xlu1 %4694 }
 0x4a8   : > { %v5870_v25 = vpop.permute.xlu0 %5869  ;;  %v4784_v3 = vadd.f32 %v4697_v15, %v4624_v44  ;;  %v3649_v36 = vpop.f32.mrf.mxu0 }
 0x4a9   : > { %v5872_v0 = vunpack.i.h.bf16 %v5870_v25  ;;  %v5871_v16 = vunpack.i.l.bf16 %v5870_v25  ;;  %v3738_v63 = vpop.f32.mrf.mxu1  ;;  %v4526_v33 = vld [vmem:[%s9207_s28 + $0x32] sm:$0xff]  ;;  %v4527_v7 = vld [vmem:[%s9207_s28 + $0x3a] sm:$0xff]  ;;  %v5880_v6 = vpop.permute.xlu2 %5879 }
 0x4aa   : > { %v4558_v62 = vadd.f32 %v4526_v33, %v9481_v24  ;;  %v4559_v23 = vadd.f32 %v4527_v7, %v9518_v43  ;;  %4816 = vst.msk [vmem:[%s9207_s28 + $0x43] sm:$0xff] %vm4166_vm1, %v4784_v3  ;;  %v5882_v45 = vunpack.i.h.bf16 %v5880_v6  ;;  %v5881_v42 = vunpack.i.l.bf16 %v5880_v6  ;;  %v3827_v20 = vpop.f32.mrf.mxu2 }
 0x4ab   : > { %v4799_v37 = vadd.f32 %v5872_v0, %v4639_v31  ;;  %v3916_v17 = vpop.f32.mrf.mxu3  ;;  %v4798_v24 = vadd.f32 %v5871_v16, %v4638_v49 }
 0x4ac   : > { %v4620_v47 = vld [vmem:[%s9207_s28 + $0x23] sm:$0xff]  ;;  %4590 = vst.msk [vmem:[%s9207_s28 + $0x32] sm:$0xff] %vm4166_vm1, %v4558_v62  ;;  %v4803_v55 = vadd.f32 %v5882_v45, %v4643_v18  ;;  %v4802_v38 = vadd.f32 %v5881_v42, %v4642_v51 }
 0x4ad   : > { %v4780_v43 = vadd.f32 %v9809_v40, %v4620_v47  ;;  %4591 = vst.msk [vmem:[%s9207_s28 + $0x3a] sm:$0xff] %vm4166_vm1, %v4559_v23 }
 0x4ae   : > { %4831 = vst.msk [vmem:[%s9207_s28 + $0xbb] sm:$0xff] %vm4166_vm1, %v4799_v37 }
 0x4af   : > { %4812 = vst.msk [vmem:[%s9207_s28 + $0x23] sm:$0xff] %vm4166_vm1, %v4780_v43  ;;  %v5875_v28 = vpop.permute.xlu1 %5874 }
 0x4b0   : > { %v5885_v54 = vpop.permute.xlu0 %5884  ;;  %4830 = vst.msk [vmem:[%s9207_s28 + $0xb3] sm:$0xff] %vm4166_vm1, %v4798_v24  ;;  %v5877_v11 = vunpack.i.h.bf16 %v5875_v28  ;;  %v5876_v21 = vunpack.i.l.bf16 %v5875_v28  ;;  %v3652_v59 = vpop.f32.mrf.mxu0 }
 0x4b1   : > { %v3741_v40 = vpop.f32.mrf.mxu1  ;;  %4835 = vst.msk [vmem:[%s9207_s28 + $0xdb] sm:$0xff] %vm4166_vm1, %v4803_v55  ;;  %v5887_v30 = vunpack.i.h.bf16 %v5885_v54  ;;  %v5886_v39 = vunpack.i.l.bf16 %v5885_v54 }
 0x4b2   : > { %4834 = vst.msk [vmem:[%s9207_s28 + $0xd3] sm:$0xff] %vm4166_vm1, %v4802_v38  ;;  %v4801_v19 = vadd.f32 %v5877_v11, %v4641_v57  ;;  %v4800_v12 = vadd.f32 %v5876_v21, %v4640_v26  ;;  %v3830_v4 = vpop.f32.mrf.mxu2 }
 0x4b3   : > { %v4621_v52 = vld [vmem:[%s9207_s28 + $0x2b] sm:$0xff]  ;;  %v3919_v60 = vpop.f32.mrf.mxu3  ;;  %v4805_v32 = vadd.f32 %v5887_v30, %v4645_v50  ;;  %v4804_v56 = vadd.f32 %v5886_v39, %v4644_v9 }
 0x4b4   : > { %v4622_v8 = vld [vmem:[%s9207_s28 + $0x33] sm:$0xff]  ;;  %v4781_v34 = vadd.f32 %v9792_v22, %v4621_v52  ;;  %v4623_v35 = vld [vmem:[%s9207_s28 + $0x3b] sm:$0xff]  ;;  %4833 = vst.msk [vmem:[%s9207_s28 + $0xcb] sm:$0xff] %vm4166_vm1, %v4801_v19 }
 0x4b5   : > { %v4782_v61 = vadd.f32 %v9833_v58, %v4622_v8  ;;  %v4783_v53 = vadd.f32 %v4695_v46, %v4623_v35  ;;  %4832 = vst.msk [vmem:[%s9207_s28 + $0xc3] sm:$0xff] %vm4166_vm1, %v4800_v12 }
 0x4b6   : > { %4813 = vst.msk [vmem:[%s9207_s28 + $0x2b] sm:$0xff] %vm4166_vm1, %v4781_v34 }
 0x4b7   : > { %4814 = vst.msk [vmem:[%s9207_s28 + $0x33] sm:$0xff] %vm4166_vm1, %v4782_v61  ;;  %v5890_v22 = vpop.permute.xlu1 %5889 }
 0x4b8   : > { %4815 = vst.msk [vmem:[%s9207_s28 + $0x3b] sm:$0xff] %vm4166_vm1, %v4783_v53  ;;  %v5892_v10 = vunpack.i.h.bf16 %v5890_v22  ;;  %v5891_v1 = vunpack.i.l.bf16 %v5890_v22  ;;  %v3654_v48 = vpop.f32.mrf.mxu0 }
 0x4b9   : > { %v3743_v58 = vpop.f32.mrf.mxu1  ;;  %4837 = vst.msk [vmem:[%s9207_s28 + $0xeb] sm:$0xff] %vm4166_vm1, %v4805_v32 }
 0x4ba   : > { %4836 = vst.msk [vmem:[%s9207_s28 + $0xe3] sm:$0xff] %vm4166_vm1, %v4804_v56  ;;  %v4807_v13 = vadd.f32 %v5892_v10, %v4647_v14  ;;  %v4806_v15 = vadd.f32 %v5891_v1, %v4646_v5  ;;  %v3832_v2 = vpop.f32.mrf.mxu2 }
 0x4bb   : > { %v3921_v29 = vpop.f32.mrf.mxu3 }
 0x4bc   : > { %4839 = vst.msk [vmem:[%s9207_s28 + $0xfb] sm:$0xff] %vm4166_vm1, %v4807_v13 }
 0x4bd   : > { %4838 = vst.msk [vmem:[%s9207_s28 + $0xf3] sm:$0xff] %vm4166_vm1, %v4806_v15 }
 0x4c0   : > { %v3657_v27 = vpop.f32.mrf.mxu0 }
 0x4c1   : > { %v3746_v41 = vpop.f32.mrf.mxu1 }
 0x4c2   : > { %v3835_v44 = vpop.f32.mrf.mxu2 }
 0x4c3   : > { %v3924_v46 = vpop.f32.mrf.mxu3 }
 0x4c8   : > { %v3659_v25 = vpop.f32.mrf.mxu0 }
 0x4c9   : > { %v3748_v3 = vpop.f32.mrf.mxu1 }
 0x4ca   : > { %v3837_v0 = vpop.f32.mrf.mxu2 }
 0x4cb   : > { %v3926_v16 = vpop.f32.mrf.mxu3 }
 0x4d0   : > { %v3662_v36 = vpop.f32.mrf.mxu0 }
 0x4d1   : > { %v3751_v63 = vpop.f32.mrf.mxu1 }
 0x4d2   : > { %v3840_v33 = vpop.f32.mrf.mxu2 }
 0x4d3   : > { %v3929_v7 = vpop.f32.mrf.mxu3 }
 0x4d8   : > { %v3664_v31 = vpop.f32.mrf.mxu0 }
 0x4d9   : > { %v3753_v6 = vpop.f32.mrf.mxu1 }
 0x4da   : > { %v3842_v62 = vpop.f32.mrf.mxu2 }
 0x4db   : > { %v3931_v23 = vpop.f32.mrf.mxu3 }
 0x4e0   : > { %v3667_v37 = vpop.f32.mrf.mxu0 }
 0x4e1   : > { %v3756_v18 = vpop.f32.mrf.mxu1 }
 0x4e2   : > { %v3845_v49 = vpop.f32.mrf.mxu2 }
 0x4e3   : > { %v3934_v51 = vpop.f32.mrf.mxu3 }
 0x4e8   : > { %v3669_v45 = vpop.f32.mrf.mxu0 }
 0x4e9   : > { %v3758_v42 = vpop.f32.mrf.mxu1 }
 0x4ea   : > { %v3847_v20 = vpop.f32.mrf.mxu2 }
 0x4eb   : > { %v3936_v17 = vpop.f32.mrf.mxu3 }
 0x4ec PF: > { %s18_s20 = sadd.s32 1, %s6170_s20   ;;  %s10584_s15 = smov %s6154_s16 }
 0x4ed   : > { %p15_p2 = scmp.ge.s32.totalorder %s18_s20, 4   ;;  %s10585_s16 = smov %s6158_s17 }
 0x4ee   : > { %s10586_s17 = smov %s6276_s26  ;;  %s10587_s18 = smov %s6166_s19 }
 0x4ef   : > { %s10588_s19 = smov %s10590_s13  ;;  %17 = sbr.rel (!%p15_p2) target bundleno = 5 (0x5), region = 84 }
 0x4f4   :  { %4869 = vsyncpa [#allocation3], 1 }
 0x4f5   :  { %4871 = vsyncpa [#allocation3 + $0x1], 1 }
 0x4f6   :  { %4872 = vsyncpa [#allocation5], 1 }

// kernel: tpu_custom_call.1
= control target key start
LH: loop header
LB: loop body
LE: loop exit
PB: predicated region body
PF: predicated region fallthrough
CT: control target
= control target key end

     0   :  { %9 = vsyncpa [#allocation3], 0  ;;  %s9917_s0 = inlined_call_operand.hbm [shape: bf16[2,1,264,128], index: 0, kind: input, shape index: {}]   ;;  %s9918_s1 = inlined_call_operand.hbm [shape: bf16[256,512], index: 1, kind: input, shape index: {}]   ;;  %s9919_s2 = inlined_call_operand.hbm [shape: bf16[512,256], index: 2, kind: input, shape index: {}]   ;;  %s9920_s3 = inlined_call_operand.vmem [shape: f32[1,256], index: 3, kind: input, shape index: {}]   ;;  %s9921_s4 = inlined_call_operand.vmem [shape: f32[2,1,264,64], index: 4, kind: output, shape index: {}]  }
   0x1   :  { %11 = vsyncpa [#allocation3 + $0x1], 0 }
   0x2   :  { %12 = vsyncpa [#allocation5], 0  ;;  %s6207_s15 = smov 0   ;;  %s6209_s16 = smov 0  }
   0x3   :  { %s6211_s17 = smov 0   ;;  %s6213_s18 = smov 0  }
   0x4   :  { %s6215_s19 = smov 0   ;;  %s6217_s20 = smov 0  }
   0x5 LB: > { %s4957_s21 = sadd.s32 4294967295, %s6170_s20   ;;  %p52_p0 = scmp.ne.s32.totalorder %s6154_s16, %s6150_s15  ;;  %s6170_s20 = sphi %s6217_s20, %s18_s20   ;;  %s6166_s19 = sphi %s6215_s19, %s10588_s19   ;;  %s6162_s18 = sphi %s6213_s18, %s10587_s18   ;;  %s6158_s17 = sphi %s6211_s17, %s10586_s17   ;;  %s6154_s16 = sphi %s6209_s16, %s10585_s16   ;;  %s6150_s15 = sphi %s6207_s15, %s10584_s15  }
   0x6   : > { %p6237_p1 = scmp.eq.s32.totalorder %s4957_s21, 0  ;;  %p4959_p2 = scmp.ge.s32.totalorder %s6170_s20, 1 }
   0x7   : > { %p154_p3 = scmp.lt.s32.totalorder %s6170_s20, 3  ;;  %s165_s26 = sshll.u32 %s9918_s1, 4  ;;  %s166_s26 = int_to_ptr.hbm [resolvable:$true] %s165_s26 }
   0x8   : > { %p6245_p4 = por %p6237_p1, %p52_p0  ;;  %s6172_s28 = smov [#allocation4]  }
   0x9   : > { %p6252_p5 = pnand %p4959_p2, %p154_p3  ;;  %s167_s29 = sshll.u32 %s6172_s28, 4  ;;  %s168_s29 = int_to_ptr.vmem [resolvable:$true] %s167_s29 }
   0xa   : > { %s179_s6 = sshll.u32 %s9919_s2, 4  ;;  %s6173_s7 = smov 256   ;;  %s180_s6 = int_to_ptr.hbm [resolvable:$true] %s179_s6 }
   0xb   : > { %p5704_p6 = pneg %p6252_p5  ;;  %s6174_s8 = smov 16  }
   0xc   : > { %s6175_s9 = smov [#allocation6]   ;;  %s6176_s11 = smov 128  }
   0xd   : > { %p5705_p7 = pnand %p5704_p6, %p6237_p1  ;;  %s181_s10 = sshll.u32 %s6175_s9, 4  ;;  %s182_s10 = int_to_ptr.vmem [resolvable:$true] %s181_s10 }
   0xe   : > { %s6177_s12 = smov 8   ;;  %s30_s13 = sadd.s32 1, %s6166_s19 }
   0xf   : > { %5707 = dma.hbm_to_vmem [thread:$0]  (!%p5705_p7), %s166_s26, 8192, %s168_s29, [#allocation5], %s6173_s7, %s6173_s7, %s6174_s8  }
  0x10   : > { %5710 = dma.hbm_to_vmem [thread:$0]  (!%p5705_p7), %s180_s6, 8192, %s182_s10, [#allocation5], %s6176_s11, %s6176_s11, %s6177_s12  }
  0x11   : > { %s39_s14 = sadd.s32 1, %s6158_s17  ;;  %p32_p8 = scmp.ge.s32.totalorder %s30_s13, 2 }
  0x12   : > { %p46_p9 = scmp.ne.s32.totalorder %s6158_s17, %s6154_s16  ;;  %p47_p10 = scmp.eq.s32.totalorder %s6170_s20, 0 }
  0x13   : > { %p5717_p11 = scmp.lt.s32.totalorder %s6170_s20, 2  ;;  %s10590_s13 = smov (%p32_p8, %s30_s13), 0 }
  0x14   : > { %p48_p12 = por %p47_p10, %p46_p9  ;;  %s198_s15 = sand.u32 1, %s6158_s17  }
  0x15   : > { %s34_s21 = ssub.s32 %s6166_s19, %s10590_s13  ;;  %s5690_s24 = smul.u32 132, %s198_s15 }
  0x16   : > { %p37_p13 = scmp.eq.s32.totalorder %s34_s21, 0  ;;  %s5691_s25 = smul.u32 132, %s6166_s19 }
  0x17   : > { %p5712_p0 = pnand %p5717_p11, %p48_p12  ;;  %s202_s6 = scalar_lea.vmem [#allocation2], %s5690_s24 }
  0x18   : > { %s6276_s26 = scalar_select %p37_p13, %s6158_s17, %s39_s14  }
  0x19   : > { %s209_s30 = scalar_lea.hbm %s9917_s0, %s5691_s25  ;;  %s212_s7 = sshll.u32 %s202_s6, 4  ;;  %s213_s7 = int_to_ptr.vmem [resolvable:$true] %s212_s7 }
  0x1a   : > { %s210_s5 = sshll.u32 %s209_s30, 4  ;;  %s199_s8 = scalar_lea.sflag [#allocation3], %s198_s15  ;;  %s211_s5 = int_to_ptr.hbm [resolvable:$true] %s210_s5 }
  0x1b   : > { %s6178_s9 = smov 64   ;;  %s6179_s10 = smov 4  }
  0x1c   : > { %5714 = dma.hbm_to_vmem [thread:$0]  (!%p5712_p0), %s211_s5, 2112, %s213_s7, %s199_s8, %s6178_s9, %s6178_s9, %s6179_s10  }
  0x1d   : > { %224 = sbr.rel (%p6252_p5) target bundleno = 1260 (0x4ec), region = 36 }
  0x22   : > { %s226_s11 = sand.u32 1, %s6154_s16  }
  0x23   : > { %s5692_s12 = smul.u32 132, %s226_s11  ;;  %s227_s14 = scalar_lea.sflag [#allocation3], %s226_s11 }
  0x25   : > { %s6284_s21 = scalar_lea.vmem [#allocation2], %s5692_s12 }
  0x26   : > { %6141 = dma.done.wait (%p6245_p4), %s227_s14, 2112  }
  0x27   : > { %6143 = vsyncadd (%p6245_p4), %s227_s14, 4294965184 }
  0x28   : > { %6145 = dma.done.wait (%p6237_p1), [#allocation5], 16384  }
  0x29   : > { %6147 = vsyncadd (%p6237_p1), [#allocation5], 4294950912  ;;  %v5090_v0 = vld [vmem:[#allocation4 + $0xe0] sm:$0xf]  ;;  %v5577_v1 = vld [vmem:[#allocation4 + $0xec] sm:$0xf0] }
  0x2a   : > { %v5154_v2 = vld [vmem:[#allocation4 + $0x1e0] sm:$0xf]  ;;  %v5091_v3 = vor.u32 %v5577_v1, %v5090_v0  ;;  %v5593_v4 = vld [vmem:[#allocation4 + $0x1ec] sm:$0xf0]  ;;  %v5576_v5 = vld [vmem:[#allocation4 + $0xe4] sm:$0xf] }
  0x2b   : > { %v5092_v6 = vld [vmem:[#allocation4 + $0xf0] sm:$0xf0]  ;;  %v5155_v7 = vor.u32 %v5593_v4, %v5154_v2  ;;  %v5592_v9 = vld [vmem:[#allocation4 + $0x1e4] sm:$0xf]  ;;  %v5082_v11 = vld [vmem:[#allocation4 + $0xc0] sm:$0xf] }
  0x2c   : > { %v5095_v8 = vor.u32 %v5576_v5, %v5092_v6  ;;  %v5156_v10 = vld [vmem:[#allocation4 + $0x1f0] sm:$0xf0]  ;;  %653 = vmatpush.bf16.msra.mxu0 %v5091_v3  ;;  %v5575_v13 = vld [vmem:[#allocation4 + $0xcc] sm:$0xf0]  ;;  %v5146_v14 = vld [vmem:[#allocation4 + $0x1c0] sm:$0xf] }
  0x2d   : > { %v5159_v12 = vor.u32 %v5592_v9, %v5156_v10  ;;  %v5591_v15 = vld [vmem:[#allocation4 + $0x1cc] sm:$0xf0]  ;;  %742 = vmatpush.bf16.msra.mxu1 %v5155_v7  ;;  %v5083_v16 = vor.u32 %v5575_v13, %v5082_v11  ;;  %v5574_v18 = vld [vmem:[#allocation4 + $0xc4] sm:$0xf]  ;;  %v5084_v19 = vld [vmem:[#allocation4 + $0xd0] sm:$0xf0] }
  0x2e   : > { %831 = vmatpush.bf16.msra.mxu2 %v5095_v8  ;;  %v5147_v17 = vor.u32 %v5591_v15, %v5146_v14  ;;  %v5590_v20 = vld [vmem:[#allocation4 + $0x1c4] sm:$0xf]  ;;  %v5087_v21 = vor.u32 %v5574_v18, %v5084_v19  ;;  %v5148_v22 = vld [vmem:[#allocation4 + $0x1d0] sm:$0xf0]  ;;  %v5074_v23 = vld [vmem:[#allocation4 + $0xa0] sm:$0xf] }
  0x2f   : > { %920 = vmatpush.bf16.msra.mxu3 %v5159_v12  ;;  %v5573_v24 = vld [vmem:[#allocation4 + $0xac] sm:$0xf0]  ;;  %v5151_v25 = vor.u32 %v5590_v20, %v5148_v22  ;;  %v5138_v26 = vld [vmem:[#allocation4 + $0x1a0] sm:$0xf]  ;;  %v5572_v28 = vld [vmem:[#allocation4 + $0xa4] sm:$0xf] }
  0x30   : > { %v5589_v27 = vld [vmem:[#allocation4 + $0x1ac] sm:$0xf0]  ;;  %654 = vmatpush.bf16.msra.mxu0 %v5083_v16  ;;  %v5075_v29 = vor.u32 %v5573_v24, %v5074_v23  ;;  %v5076_v30 = vld [vmem:[#allocation4 + $0xb0] sm:$0xf0]  ;;  %v5588_v31 = vld [vmem:[#allocation4 + $0x1a4] sm:$0xf] }
  0x31   : > { %v5140_v32 = vld [vmem:[#allocation4 + $0x1b0] sm:$0xf0]  ;;  %743 = vmatpush.bf16.msra.mxu1 %v5147_v17  ;;  %v5139_v33 = vor.u32 %v5589_v27, %v5138_v26  ;;  %v5079_v34 = vor.u32 %v5572_v28, %v5076_v30  ;;  %v5066_v35 = vld [vmem:[#allocation4 + $0x80] sm:$0xf]  ;;  %v5571_v36 = vld [vmem:[#allocation4 + $0x8c] sm:$0xf0] }
  0x32   : > { %832 = vmatpush.bf16.msra.mxu2 %v5087_v21  ;;  %v5130_v37 = vld [vmem:[#allocation4 + $0x180] sm:$0xf]  ;;  %v5143_v38 = vor.u32 %v5588_v31, %v5140_v32  ;;  %v5587_v39 = vld [vmem:[#allocation4 + $0x18c] sm:$0xf0]  ;;  %v5570_v40 = vld [vmem:[#allocation4 + $0x84] sm:$0xf]  ;;  %v5067_v44 = vor.u32 %v5571_v36, %v5066_v35 }
  0x33   : > { %921 = vmatpush.bf16.msra.mxu3 %v5151_v25  ;;  %v5068_v41 = vld [vmem:[#allocation4 + $0x90] sm:$0xf0]  ;;  %v5586_v42 = vld [vmem:[#allocation4 + $0x184] sm:$0xf]  ;;  %v5131_v45 = vor.u32 %v5587_v39, %v5130_v37  ;;  %v5058_v47 = vld [vmem:[#allocation4 + $0x60] sm:$0xf] }
  0x34   : > { %v5132_v43 = vld [vmem:[#allocation4 + $0x190] sm:$0xf0]  ;;  %655 = vmatpush.bf16.msra.mxu0 %v5075_v29  ;;  %v5071_v46 = vor.u32 %v5570_v40, %v5068_v41  ;;  %v5569_v48 = vld [vmem:[#allocation4 + $0x6c] sm:$0xf0]  ;;  %v5122_v49 = vld [vmem:[#allocation4 + $0x160] sm:$0xf] }
  0x35   : > { %744 = vmatpush.bf16.msra.mxu1 %v5139_v33  ;;  %v5135_v50 = vor.u32 %v5586_v42, %v5132_v43  ;;  %v5585_v51 = vld [vmem:[#allocation4 + $0x16c] sm:$0xf0]  ;;  %v5568_v52 = vld [vmem:[#allocation4 + $0x64] sm:$0xf]  ;;  %v5060_v53 = vld [vmem:[#allocation4 + $0x70] sm:$0xf0]  ;;  %v5059_v56 = vor.u32 %v5569_v48, %v5058_v47 }
  0x36   : > { %833 = vmatpush.bf16.msra.mxu2 %v5079_v34  ;;  %v5584_v54 = vld [vmem:[#allocation4 + $0x164] sm:$0xf]  ;;  %v5124_v55 = vld [vmem:[#allocation4 + $0x170] sm:$0xf0]  ;;  %v5123_v57 = vor.u32 %v5585_v51, %v5122_v49  ;;  %v5063_v58 = vor.u32 %v5568_v52, %v5060_v53  ;;  %v5050_v59 = vld [vmem:[#allocation4 + $0x40] sm:$0xf] }
  0x37   : > { %922 = vmatpush.bf16.msra.mxu3 %v5143_v38  ;;  %v5567_v60 = vld [vmem:[#allocation4 + $0x4c] sm:$0xf0]  ;;  %v5114_v61 = vld [vmem:[#allocation4 + $0x140] sm:$0xf]  ;;  %v5127_v62 = vor.u32 %v5584_v54, %v5124_v55  ;;  %v5566_v0 = vld [vmem:[#allocation4 + $0x44] sm:$0xf] }
  0x38   : > { %656 = vmatpush.bf16.msra.mxu0 %v5067_v44  ;;  %v5583_v63 = vld [vmem:[#allocation4 + $0x14c] sm:$0xf0]  ;;  %v5052_v1 = vld [vmem:[#allocation4 + $0x50] sm:$0xf0]  ;;  %v5582_v2 = vld [vmem:[#allocation4 + $0x144] sm:$0xf]  ;;  %v5051_v4 = vor.u32 %v5567_v60, %v5050_v59 }
  0x39   : > { %745 = vmatpush.bf16.msra.mxu1 %v5131_v45  ;;  %v5116_v3 = vld [vmem:[#allocation4 + $0x150] sm:$0xf0]  ;;  %v5115_v5 = vor.u32 %v5583_v63, %v5114_v61  ;;  %v5055_v6 = vor.u32 %v5566_v0, %v5052_v1  ;;  %v5042_v7 = vld [vmem:[#allocation4 + $0x20] sm:$0xf]  ;;  %v5565_v8 = vld [vmem:[#allocation4 + $0x2c] sm:$0xf0] }
  0x3a   : > { %834 = vmatpush.bf16.msra.mxu2 %v5071_v46  ;;  %v5106_v9 = vld [vmem:[#allocation4 + $0x120] sm:$0xf]  ;;  %v5119_v10 = vor.u32 %v5582_v2, %v5116_v3  ;;  %v5581_v11 = vld [vmem:[#allocation4 + $0x12c] sm:$0xf0]  ;;  %v5564_v12 = vld [vmem:[#allocation4 + $0x24] sm:$0xf]  ;;  %v5043_v16 = vor.u32 %v5565_v8, %v5042_v7 }
  0x3b   : > { %923 = vmatpush.bf16.msra.mxu3 %v5135_v50  ;;  %v5044_v13 = vld [vmem:[#allocation4 + $0x30] sm:$0xf0]  ;;  %v5580_v14 = vld [vmem:[#allocation4 + $0x124] sm:$0xf]  ;;  %v5034_v17 = vld [vmem:[#allocation4] sm:$0xf]  ;;  %v5107_v20 = vor.u32 %v5581_v11, %v5106_v9 }
  0x3c   : > { %657 = vmatpush.bf16.msra.mxu0 %v5059_v56  ;;  %v5108_v15 = vld [vmem:[#allocation4 + $0x130] sm:$0xf0]  ;;  %v5563_v18 = vld [vmem:[#allocation4 + $0xc] sm:$0xf0]  ;;  %v5098_v19 = vld [vmem:[#allocation4 + $0x100] sm:$0xf]  ;;  %v5047_v21 = vor.u32 %v5564_v12, %v5044_v13 }
  0x3d   : > { %746 = vmatpush.bf16.msra.mxu1 %v5123_v57  ;;  %v5579_v22 = vld [vmem:[#allocation4 + $0x10c] sm:$0xf0]  ;;  %v6295_v23 = vld [vmem:[%s6284_s21] sm:$0xff]  ;;  %v6298_v24 = vld [vmem:[%s6284_s21 + $0x8] sm:$0xff]  ;;  %v5111_v25 = vor.u32 %v5580_v14, %v5108_v15  ;;  %v5035_v32 = vor.u32 %v5563_v18, %v5034_v17  ;;  %vm411_vm0 = vcmask 1046528   ;;  %s6181_s27 = smov 64  }
  0x3e   : > { %835 = vmatpush.bf16.msra.mxu2 %v5063_v58  ;;  %v5562_v26 = vld [vmem:[#allocation4 + $0x4] sm:$0xf]  ;;  %v5036_v27 = vld [vmem:[#allocation4 + $0x10] sm:$0xf0]  ;;  %v5608_v30 = vld [vmem:[#allocation4 + $0xec] sm:$0xf]  ;;  %v5099_v35 = vor.u32 %v5579_v22, %v5098_v19 }
  0x3f   : > { %924 = vmatpush.bf16.msra.mxu3 %v5127_v62  ;;  %v5578_v28 = vld [vmem:[#allocation4 + $0x104] sm:$0xf]  ;;  %v5100_v29 = vld [vmem:[#allocation4 + $0x110] sm:$0xf0]  ;;  %v5220_v31 = vld [vmem:[#allocation4 + $0xf8] sm:$0xf0]  ;;  %v5039_v36 = vor.u32 %v5562_v26, %v5036_v27 }
  0x40   : > { %658 = vmatpush.bf16.msra.mxu0 %v5051_v4  ;;  %v5624_v33 = vld [vmem:[#allocation4 + $0x1ec] sm:$0xf]  ;;  %v5284_v34 = vld [vmem:[#allocation4 + $0x1f8] sm:$0xf0]  ;;  %v412_v37 = vrot.slane %v6295_v23, 1  ;;  %v413_v38 = vrot.slane %v6298_v24, 1  ;;  %v5103_v39 = vor.u32 %v5578_v28, %v5100_v29  ;;  %v5223_v40 = vor.u32 %v5608_v30, %v5220_v31 }
  0x41   : > { %747 = vmatpush.bf16.msra.mxu1 %v5115_v5  ;;  %v5218_v41 = vld [vmem:[#allocation4 + $0xe8] sm:$0xf]  ;;  %v5609_v42 = vld [vmem:[#allocation4 + $0xf4] sm:$0xf0]  ;;  %v5287_v43 = vor.u32 %v5624_v33, %v5284_v34  ;;  %v5606_v49 = vld [vmem:[#allocation4 + $0xcc] sm:$0xf] }
  0x42   : > { %836 = vmatpush.bf16.msra.mxu2 %v5055_v6  ;;  %v5282_v44 = vld [vmem:[#allocation4 + $0x1e8] sm:$0xf]  ;;  %v5625_v45 = vld [vmem:[#allocation4 + $0x1f4] sm:$0xf0]  ;;  %v6303_v46 = vsel %vm411_vm0, %v412_v37, %v413_v38  ;;  %v5219_v47 = vor.u32 %v5609_v42, %v5218_v41  ;;  %v5212_v50 = vld [vmem:[#allocation4 + $0xd8] sm:$0xf0] }
  0x43   : > { %925 = vmatpush.bf16.msra.mxu3 %v5119_v10  ;;  %v5283_v48 = vor.u32 %v5625_v45, %v5282_v44  ;;  %v5622_v51 = vld [vmem:[#allocation4 + $0x1cc] sm:$0xf]  ;;  %v5215_v52 = vor.u32 %v5606_v49, %v5212_v50  ;;  %v5276_v53 = vld [vmem:[#allocation4 + $0x1d8] sm:$0xf0]  ;;  %v5210_v54 = vld [vmem:[#allocation4 + $0xc8] sm:$0xf] }
  0x44   : > { %659 = vmatpush.bf16.msra.mxu0 %v5043_v16  ;;  %v5607_v55 = vld [vmem:[#allocation4 + $0xd4] sm:$0xf0]  ;;  %v5279_v56 = vor.u32 %v5622_v51, %v5276_v53  ;;  %v5274_v58 = vld [vmem:[#allocation4 + $0x1c8] sm:$0xf]  ;;  %v5604_v3 = vld [vmem:[#allocation4 + $0xac] sm:$0xf] }
  0x45   : > { %748 = vmatpush.bf16.msra.mxu1 %v5107_v20  ;;  %v5211_v57 = vor.u32 %v5607_v55, %v5210_v54  ;;  %v5623_v59 = vld [vmem:[#allocation4 + $0x1d4] sm:$0xf0]  ;;  %v6310_v61 = vld [vmem:[%s6284_s21 + $0x10] sm:$0xff]  ;;  %v5204_v4 = vld [vmem:[#allocation4 + $0xb8] sm:$0xf0]  ;;  %p270_p1 = scmp.lt.s32.totalorder %s6162_s18, 1 }
  0x46   : > { %837 = vmatpush.bf16.msra.mxu2 %v5047_v21  ;;  %v5275_v60 = vor.u32 %v5623_v59, %v5274_v58  ;;  %v415_v62 = vrot.slane %v6310_v61, 1  ;;  %v6321_v0 = vld [vmem:[%s6284_s21 + $0x18] sm:$0xff]  ;;  %v5620_v5 = vld [vmem:[#allocation4 + $0x1ac] sm:$0xf]  ;;  %v5207_v6 = vor.u32 %v5604_v3, %v5204_v4  ;;  %v5268_v7 = vld [vmem:[#allocation4 + $0x1b8] sm:$0xf0] }
  0x47   : > { %926 = vmatpush.bf16.msra.mxu3 %v5111_v25  ;;  %v417_v1 = vrot.slane %v6321_v0, 1  ;;  %v5202_v8 = vld [vmem:[#allocation4 + $0xa8] sm:$0xf]  ;;  %v5605_v9 = vld [vmem:[#allocation4 + $0xb4] sm:$0xf0]  ;;  %v5271_v10 = vor.u32 %v5620_v5, %v5268_v7  ;;  %s10592_s18 = smov (!%p270_p1, %s6162_s18), 1 }
  0x48   : > { %660 = vmatpush.bf16.msra.mxu0 %v5035_v32  ;;  %v6314_v63 = vsel %vm411_vm0, %v413_v38, %v415_v62  ;;  %v5203_v11 = vor.u32 %v5605_v9, %v5202_v8  ;;  %v5266_v12 = vld [vmem:[#allocation4 + $0x1a8] sm:$0xf]  ;;  %v5621_v13 = vld [vmem:[#allocation4 + $0x1b4] sm:$0xf0]  ;;  %v5602_v21 = vld [vmem:[#allocation4 + $0x8c] sm:$0xf] }
  0x49   : > { %749 = vmatpush.bf16.msra.mxu1 %v5099_v35  ;;  %v6325_v2 = vsel %vm411_vm0, %v415_v62, %v417_v1  ;;  %v5267_v14 = vor.u32 %v5621_v13, %v5266_v12  ;;  %v6332_v15 = vld [vmem:[%s6284_s21 + $0x20] sm:$0xff]  ;;  %v6343_v18 = vld [vmem:[%s6284_s21 + $0x28] sm:$0xff]  ;;  %v5618_v25 = vld [vmem:[#allocation4 + $0x18c] sm:$0xf]  ;;  %s5693_s15 = smul.u32 264, %s10592_s18 }
  0x4a   : > { %838 = vmatpush.bf16.msra.mxu2 %v5039_v36  ;;  %v419_v16 = vrot.slane %v6332_v15, 1  ;;  %v421_v19 = vrot.slane %v6343_v18, 1  ;;  %v5196_v22 = vld [vmem:[#allocation4 + $0x98] sm:$0xf0]  ;;  %v5194_v28 = vld [vmem:[#allocation4 + $0x88] sm:$0xf] }
  0x4b   : > { %927 = vmatpush.bf16.msra.mxu3 %v5103_v39  ;;  %661 = vmatmul.bf16.vlgmr.msra.gmra.mxu0 %v6295_v23  ;;  %v5199_v26 = vor.u32 %v5602_v21, %v5196_v22  ;;  %v5260_v27 = vld [vmem:[#allocation4 + $0x198] sm:$0xf0]  ;;  %v5603_v29 = vld [vmem:[#allocation4 + $0x94] sm:$0xf0]  ;;  %v5258_v32 = vld [vmem:[#allocation4 + $0x188] sm:$0xf]  ;;  %s9207_s28 = scalar_lea.vmem %s9921_s4, %s5693_s15 }
  0x4c   : > { %750 = vmatmul.bf16.vlgmr.msra.gmra.mxu1 %v6303_v46  ;;  %1201 = vmatpush.bf16.msrb.mxu0 %v5219_v47  ;;  %v6336_v17 = vsel %vm411_vm0, %v417_v1, %v419_v16  ;;  %v6347_v20 = vsel %vm411_vm0, %v419_v16, %v421_v19  ;;  %v5263_v30 = vor.u32 %v5618_v25, %v5260_v27  ;;  %v5619_v33 = vld [vmem:[#allocation4 + $0x194] sm:$0xf0]  ;;  %v6354_v35 = vld [vmem:[%s6284_s21 + $0x30] sm:$0xff]  ;;  %v5188_v42 = vld [vmem:[#allocation4 + $0x78] sm:$0xf0] }
  0x4d   : > { %839 = vmatmul.bf16.vlgmr.msra.gmra.mxu2 %v6295_v23  ;;  %1290 = vmatpush.bf16.msrb.mxu1 %v5283_v48  ;;  %v5195_v31 = vor.u32 %v5603_v29, %v5194_v28  ;;  %v5259_v34 = vor.u32 %v5619_v33, %v5258_v32  ;;  %v423_v36 = vrot.slane %v6354_v35, 1  ;;  %v6365_v38 = vld [vmem:[%s6284_s21 + $0x38] sm:$0xff]  ;;  %v5600_v41 = vld [vmem:[#allocation4 + $0x6c] sm:$0xf]  ;;  %v5252_v45 = vld [vmem:[#allocation4 + $0x178] sm:$0xf0] }
  0x4e   : > { %1379 = vmatpush.bf16.msrb.mxu2 %v5223_v40  ;;  %928 = vmatmul.bf16.vlgmr.msra.gmra.mxu3 %v6303_v46  ;;  %v425_v39 = vrot.slane %v6365_v38, 1  ;;  %v5191_v44 = vor.u32 %v5600_v41, %v5188_v42  ;;  %v6376_v48 = vld [vmem:[%s6284_s21 + $0x40] sm:$0xff]  ;;  %v5186_v49 = vld [vmem:[#allocation4 + $0x68] sm:$0xf]  ;;  %v5598_v3 = vld [vmem:[#allocation4 + $0x4c] sm:$0xf] }
  0x4f   : > { %1468 = vmatpush.bf16.msrb.mxu3 %v5287_v43  ;;  %v6358_v37 = vsel %vm411_vm0, %v421_v19, %v423_v36  ;;  %v5616_v43 = vld [vmem:[#allocation4 + $0x16c] sm:$0xf]  ;;  %v5601_v50 = vld [vmem:[#allocation4 + $0x74] sm:$0xf0]  ;;  %v5250_v51 = vld [vmem:[#allocation4 + $0x168] sm:$0xf] }
  0x50   : > { %1202 = vmatpush.bf16.msrb.mxu0 %v5211_v57  ;;  %v6369_v40 = vsel %vm411_vm0, %v423_v36, %v425_v39  ;;  %v5255_v47 = vor.u32 %v5616_v43, %v5252_v45  ;;  %v5187_v53 = vor.u32 %v5601_v50, %v5186_v49  ;;  %v5617_v54 = vld [vmem:[#allocation4 + $0x174] sm:$0xf0]  ;;  %v6387_v57 = vld [vmem:[%s6284_s21 + $0x48] sm:$0xff]  ;;  %v5180_v4 = vld [vmem:[#allocation4 + $0x58] sm:$0xf0] }
  0x51   : > { %1291 = vmatpush.bf16.msrb.mxu1 %v5275_v60  ;;  %v5251_v55 = vor.u32 %v5617_v54, %v5250_v51  ;;  %v429_v58 = vrot.slane %v6387_v57, 1  ;;  %v5614_v5 = vld [vmem:[#allocation4 + $0x14c] sm:$0xf]  ;;  %v5244_v7 = vld [vmem:[#allocation4 + $0x158] sm:$0xf0]  ;;  %v6421_v45 = vld [vmem:[%s6284_s21 + $0x58] sm:$0xff] }
  0x52   : > { %1380 = vmatpush.bf16.msrb.mxu2 %v5215_v52  ;;  %v427_v52 = vrot.slane %v6376_v48, 1  ;;  %v5247_v9 = vor.u32 %v5614_v5, %v5244_v7  ;;  %v5178_v19 = vld [vmem:[#allocation4 + $0x48] sm:$0xf]  ;;  %v5599_v21 = vld [vmem:[#allocation4 + $0x54] sm:$0xf0]  ;;  %v433_v49 = vrot.slane %v6421_v45, 1 }
  0x53   : > { %1469 = vmatpush.bf16.msrb.mxu3 %v5279_v56  ;;  %v5242_v22 = vld [vmem:[#allocation4 + $0x148] sm:$0xf]  ;;  %v5615_v27 = vld [vmem:[#allocation4 + $0x154] sm:$0xf0]  ;;  %v5236_v5 = vld [vmem:[#allocation4 + $0x138] sm:$0xf0] }
  0x54   : > { %1203 = vmatpush.bf16.msrb.mxu0 %v5203_v11  ;;  %v6380_v56 = vsel %vm411_vm0, %v425_v39, %v427_v52  ;;  %v6391_v62 = vsel %vm411_vm0, %v427_v52, %v429_v58  ;;  %v5243_v28 = vor.u32 %v5615_v27, %v5242_v22  ;;  %v5597_v22 = vld [vmem:[#allocation4 + $0x34] sm:$0xf0] }
  0x55   : > { %1292 = vmatpush.bf16.msrb.mxu1 %v5267_v14  ;;  %v6402_v14 = vld [vmem:[%s6284_s21 + $0x50] sm:$0xff] }
  0x56   : > { %1381 = vmatpush.bf16.msrb.mxu2 %v5207_v6  ;;  %v5183_v6 = vor.u32 %v5598_v3, %v5180_v4  ;;  %v431_v25 = vrot.slane %v6402_v14, 1  ;;  %v5612_v3 = vld [vmem:[#allocation4 + $0x12c] sm:$0xf] }
  0x57   : > { %1470 = vmatpush.bf16.msrb.mxu3 %v5271_v10  ;;  %v5239_v7 = vor.u32 %v5612_v3, %v5236_v5 }
  0x58   : > { %1204 = vmatpush.bf16.msrb.mxu0 %v5195_v31 }
  0x59   : > { %1293 = vmatpush.bf16.msrb.mxu1 %v5259_v34  ;;  %v6410_v34 = vsel %vm411_vm0, %v429_v58, %v431_v25 }
  0x5a   : > { %1382 = vmatpush.bf16.msrb.mxu2 %v5199_v26  ;;  %v5179_v26 = vor.u32 %v5599_v21, %v5178_v19  ;;  %v5170_v21 = vld [vmem:[#allocation4 + $0x28] sm:$0xf] }
  0x5b   : > { %666 = vmatmul.bf16.gmra.mxu0 %v6298_v24  ;;  %1471 = vmatpush.bf16.msrb.mxu3 %v5263_v30  ;;  %v5171_v27 = vor.u32 %v5597_v22, %v5170_v21  ;;  %v5594_v21 = vld [vmem:[#allocation4 + $0xc] sm:$0xf]  ;;  %v5164_v22 = vld [vmem:[#allocation4 + $0x18] sm:$0xf0] }
  0x5c   : > { %755 = vmatmul.bf16.gmra.mxu1 %v6314_v63  ;;  %1205 = vmatpush.bf16.msrb.mxu0 %v5187_v53 }
  0x5d   : > { %844 = vmatmul.bf16.gmra.mxu2 %v6298_v24  ;;  %1294 = vmatpush.bf16.msrb.mxu1 %v5251_v55  ;;  %v6429_v55 = vsel %vm411_vm0, %v431_v25, %v433_v49  ;;  %v5234_v25 = vld [vmem:[#allocation4 + $0x128] sm:$0xf] }
  0x5e   : > { %933 = vmatmul.bf16.gmra.mxu3 %v6314_v63  ;;  %1383 = vmatpush.bf16.msrb.mxu2 %v5191_v44 }
  0x5f   : > { %1472 = vmatpush.bf16.msrb.mxu3 %v5255_v47 }
  0x60   : > { %1206 = vmatpush.bf16.msrb.mxu0 %v5179_v26 }
  0x61   : > { %1295 = vmatpush.bf16.msrb.mxu1 %v5243_v28  ;;  %v5613_v28 = vld [vmem:[#allocation4 + $0x134] sm:$0xf0] }
  0x62   : > { %1384 = vmatpush.bf16.msrb.mxu2 %v5183_v6 }
  0x63   : > { %1473 = vmatpush.bf16.msrb.mxu3 %v5247_v9 }
  0x64   : > { %1207 = vmatpush.bf16.msrb.mxu0 %v5171_v27  ;;  %v5167_v27 = vor.u32 %v5594_v21, %v5164_v22 }
  0x67   : > { %1474 = vmatpush.bf16.msrb.mxu3 %v5239_v7 }
  0x6b   : > { %671 = vmatmul.bf16.gmra.mxu0 %v6310_v61 }
  0x6c   : > { %760 = vmatmul.bf16.gmra.mxu1 %v6325_v2 }
  0x6d   : > { %849 = vmatmul.bf16.gmra.mxu2 %v6310_v61 }
  0x6e   : > { %938 = vmatmul.bf16.gmra.mxu3 %v6325_v2 }
  0x7b   : > { %676 = vmatmul.bf16.gmra.mxu0 %v6321_v0 }
  0x7c   : > { %765 = vmatmul.bf16.gmra.mxu1 %v6336_v17 }
  0x7d   : > { %854 = vmatmul.bf16.gmra.mxu2 %v6321_v0 }
  0x7e   : > { %943 = vmatmul.bf16.gmra.mxu3 %v6336_v17 }
  0x8b   : > { %681 = vmatmul.bf16.gmra.mxu0 %v6332_v15 }
  0x8c   : > { %770 = vmatmul.bf16.gmra.mxu1 %v6347_v20 }
  0x8d   : > { %859 = vmatmul.bf16.gmra.mxu2 %v6332_v15 }
  0x8e   : > { %948 = vmatmul.bf16.gmra.mxu3 %v6347_v20 }
  0x9b   : > { %686 = vmatmul.bf16.gmra.mxu0 %v6343_v18 }
  0x9c   : > { %775 = vmatmul.bf16.gmra.mxu1 %v6358_v37 }
  0x9d   : > { %864 = vmatmul.bf16.gmra.mxu2 %v6343_v18 }
  0x9e   : > { %953 = vmatmul.bf16.gmra.mxu3 %v6358_v37 }
  0xab   : > { %691 = vmatmul.bf16.gmra.mxu0 %v6354_v35 }
  0xac   : > { %780 = vmatmul.bf16.gmra.mxu1 %v6369_v40 }
  0xad   : > { %869 = vmatmul.bf16.gmra.mxu2 %v6354_v35 }
  0xae   : > { %958 = vmatmul.bf16.gmra.mxu3 %v6369_v40 }
  0xbb   : > { %696 = vmatmul.bf16.gmra.mxu0 %v6365_v38 }
  0xbc   : > { %785 = vmatmul.bf16.gmra.mxu1 %v6380_v56 }
  0xbd   : > { %874 = vmatmul.bf16.gmra.mxu2 %v6365_v38 }
  0xbe   : > { %963 = vmatmul.bf16.gmra.mxu3 %v6380_v56 }
  0xc8   : > { %v662_v59 = vpop.f32.mrf.mxu0 }
  0xc9   : > { %v751_v60 = vpop.f32.mrf.mxu1 }
  0xca   : > { %v6393_v1 = vadd.f32 %v751_v60, %v662_v59  ;;  %v5596_v59 = vld [vmem:[#allocation4 + $0x2c] sm:$0xf]  ;;  %v5172_v60 = vld [vmem:[#allocation4 + $0x38] sm:$0xf0] }
  0xcb   : > { %701 = vmatmul.bf16.gmra.mxu0 %v6376_v48  ;;  %v5175_v4 = vor.u32 %v5596_v59, %v5172_v60  ;;  %v5559_v60 = vld [vmem:[%s6284_s21 + $0x68] sm:$0xff] }
  0xcc   : > { %790 = vmatmul.bf16.gmra.mxu1 %v6391_v62 }
  0xcd   : > { %879 = vmatmul.bf16.gmra.mxu2 %v6376_v48 }
  0xce   : > { %968 = vmatmul.bf16.gmra.mxu3 %v6391_v62  ;;  %1385 = vmatpush.bf16.msrb.mxu2 %v5175_v4 }
  0xd0   : > { %v840_v8 = vpop.f32.mrf.mxu2  ;;  %v664_v11 = vpop.f32.mrf.mxu0 }
  0xd1   : > { %v929_v10 = vpop.f32.mrf.mxu3  ;;  %v753_v13 = vpop.f32.mrf.mxu1 }
  0xd2   : > { %v6399_v12 = vadd.f32 %v929_v10, %v840_v8  ;;  %v6404_v16 = vadd.f32 %v753_v13, %v664_v11  ;;  %v5558_v13 = vld [vmem:[%s6284_s21 + $0x60] sm:$0xff]  ;;  %1386 = vmatpush.bf16.msrb.mxu2 %v5167_v27 }
  0xd3   : > { %v435_v26 = vrot.slane %v5558_v13, 1 }
  0xd8   : > { %v842_v29 = vpop.f32.mrf.mxu2  ;;  %v667_v31 = vpop.f32.mrf.mxu0 }
  0xd9   : > { %v931_v30 = vpop.f32.mrf.mxu3  ;;  %v756_v33 = vpop.f32.mrf.mxu1 }
  0xda   : > { %v6407_v32 = vadd.f32 %v931_v30, %v842_v29  ;;  %v6412_v36 = vadd.f32 %v756_v33, %v667_v31  ;;  %v5235_v29 = vor.u32 %v5613_v28, %v5234_v25  ;;  %v5610_v25 = vld [vmem:[#allocation4 + $0x10c] sm:$0xf]  ;;  %v5228_v28 = vld [vmem:[#allocation4 + $0x118] sm:$0xf0] }
  0xdb   : > { %706 = vmatmul.bf16.gmra.mxu0 %v6387_v57 }
  0xdc   : > { %10069 = vst [vmem:[#allocation9_spill] sm:$0xff] %v6412_v36  ;;  %795 = vmatmul.bf16.gmra.mxu1 %v6410_v34 }
  0xdd   : > { %884 = vmatmul.bf16.gmra.mxu2 %v6387_v57  ;;  %1296 = vmatpush.bf16.msrb.mxu1 %v5235_v29 }
  0xde   : > { %973 = vmatmul.bf16.gmra.mxu3 %v6410_v34 }
  0xe0   : > { %v845_v39 = vpop.f32.mrf.mxu2  ;;  %v669_v42 = vpop.f32.mrf.mxu0 }
  0xe1   : > { %v934_v41 = vpop.f32.mrf.mxu3  ;;  %v758_v44 = vpop.f32.mrf.mxu1 }
  0xe2   : > { %v6418_v43 = vadd.f32 %v934_v41, %v845_v39  ;;  %v6423_v47 = vadd.f32 %v758_v44, %v669_v42  ;;  %v6445_v42 = vsel %vm411_vm0, %v433_v49, %v435_v26  ;;  %v437_v49 = vrot.slane %v5559_v60, 1 }
  0xe4   : > { %10070 = vst [vmem:[#allocation10_spill] sm:$0xff] %v6418_v43 }
  0xe5   : > { %10071 = vst [vmem:[#allocation11_spill] sm:$0xff] %v6423_v47 }
  0xe8   : > { %v847_v50 = vpop.f32.mrf.mxu2  ;;  %v672_v52 = vpop.f32.mrf.mxu0 }
  0xe9   : > { %v936_v51 = vpop.f32.mrf.mxu3  ;;  %v761_v54 = vpop.f32.mrf.mxu1 }
  0xea   : > { %v6426_v53 = vadd.f32 %v936_v51, %v847_v50  ;;  %v6431_v58 = vadd.f32 %v761_v54, %v672_v52 }
  0xeb   : > { %711 = vmatmul.bf16.gmra.mxu0 %v6402_v14 }
  0xec   : > { %10072 = vst [vmem:[#allocation12_spill] sm:$0xff] %v6426_v53  ;;  %800 = vmatmul.bf16.gmra.mxu1 %v6429_v55 }
  0xed   : > { %10073 = vst [vmem:[#allocation13_spill] sm:$0xff] %v6431_v58  ;;  %889 = vmatmul.bf16.gmra.mxu2 %v6402_v14 }
  0xee   : > { %978 = vmatmul.bf16.gmra.mxu3 %v6429_v55 }
  0xf0   : > { %v850_v6 = vpop.f32.mrf.mxu2  ;;  %v674_v9 = vpop.f32.mrf.mxu0 }
  0xf1   : > { %v939_v8 = vpop.f32.mrf.mxu3  ;;  %v763_v11 = vpop.f32.mrf.mxu1 }
  0xf2   : > { %v6437_v10 = vadd.f32 %v939_v8, %v850_v6  ;;  %v6440_v19 = vadd.f32 %v763_v11, %v674_v9  ;;  %v6461_v9 = vsel %vm411_vm0, %v435_v26, %v437_v49 }
  0xf3   : > { %10081 = vst [vmem:[#allocation21_spill] sm:$0xff] %v6461_v9 }
  0xf4   : > { %10074 = vst [vmem:[#allocation14_spill] sm:$0xff] %v6437_v10 }
  0xf5   : > { %10075 = vst [vmem:[#allocation15_spill] sm:$0xff] %v6440_v19 }
  0xf8   : > { %v852_v30 = vpop.f32.mrf.mxu2  ;;  %v677_v33 = vpop.f32.mrf.mxu0 }
  0xf9   : > { %v941_v31 = vpop.f32.mrf.mxu3  ;;  %v766_v41 = vpop.f32.mrf.mxu1 }
  0xfa   : > { %v6442_v39 = vadd.f32 %v941_v31, %v852_v30  ;;  %v6447_v44 = vadd.f32 %v766_v41, %v677_v33  ;;  %v5231_v30 = vor.u32 %v5610_v25, %v5228_v28 }
  0xfb   : > { %716 = vmatmul.bf16.gmra.mxu0 %v6421_v45 }
  0xfc   : > { %10076 = vst [vmem:[#allocation16_spill] sm:$0xff] %v6442_v39  ;;  %805 = vmatmul.bf16.gmra.mxu1 %v6445_v42  ;;  %1475 = vmatpush.bf16.msrb.mxu3 %v5231_v30 }
  0xfd   : > { %10077 = vst [vmem:[#allocation17_spill] sm:$0xff] %v6447_v44  ;;  %894 = vmatmul.bf16.gmra.mxu2 %v6421_v45 }
  0xfe   : > { %983 = vmatmul.bf16.gmra.mxu3 %v6445_v42 }
 0x100   : > { %v855_v50 = vpop.f32.mrf.mxu2  ;;  %v679_v52 = vpop.f32.mrf.mxu0 }
 0x101   : > { %v944_v51 = vpop.f32.mrf.mxu3  ;;  %v768_v59 = vpop.f32.mrf.mxu1 }
 0x102   : > { %v6453_v54 = vadd.f32 %v944_v51, %v855_v50  ;;  %v6456_v3 = vadd.f32 %v768_v59, %v679_v52  ;;  %v5560_v50 = vld [vmem:[%s6284_s21 + $0x70] sm:$0xff]  ;;  %v5595_v52 = vld [vmem:[#allocation4 + $0x14] sm:$0xf0] }
 0x103   : > { %v5226_v59 = vld [vmem:[#allocation4 + $0x108] sm:$0xf] }
 0x104   : > { %10078 = vst [vmem:[#allocation18_spill] sm:$0xff] %v6453_v54 }
 0x105   : > { %10079 = vst [vmem:[#allocation19_spill] sm:$0xff] %v6456_v3 }
 0x108   : > { %v857_v4 = vpop.f32.mrf.mxu2  ;;  %v682_v6 = vpop.f32.mrf.mxu0 }
 0x109   : > { %v946_v5 = vpop.f32.mrf.mxu3  ;;  %v771_v8 = vpop.f32.mrf.mxu1 }
 0x10a   : > { %v6458_v7 = vadd.f32 %v946_v5, %v857_v4  ;;  %v6463_v11 = vadd.f32 %v771_v8, %v682_v6  ;;  %v439_v4 = vrot.slane %v5560_v50, 1  ;;  %v5611_v6 = vld [vmem:[#allocation4 + $0x114] sm:$0xf0] }
 0x10b   : > { %721 = vmatmul.bf16.gmra.mxu0 %v5558_v13  ;;  %v5227_v8 = vor.u32 %v5611_v6, %v5226_v59  ;;  %v5561_v59 = vld [vmem:[%s6284_s21 + $0x78] sm:$0xff] }
 0x10c   : > { %10080 = vst [vmem:[#allocation20_spill] sm:$0xff] %v6458_v7  ;;  %810 = vmatmul.bf16.gmra.mxu1 %v6461_v9 }
 0x10d   : > { %10082 = vst [vmem:[#allocation22_spill] sm:$0xff] %v6463_v11  ;;  %899 = vmatmul.bf16.gmra.mxu2 %v5558_v13  ;;  %v5162_v13 = vld [vmem:[#allocation4 + $0x8] sm:$0xf]  ;;  %1297 = vmatpush.bf16.msrb.mxu1 %v5227_v8 }
 0x10e   : > { %988 = vmatmul.bf16.gmra.mxu3 %v6461_v9  ;;  %v5163_v5 = vor.u32 %v5595_v52, %v5162_v13 }
 0x110   : > { %v860_v29 = vpop.f32.mrf.mxu2  ;;  %v684_v33 = vpop.f32.mrf.mxu0  ;;  %1208 = vmatpush.bf16.msrb.mxu0 %v5163_v5 }
 0x111   : > { %v949_v31 = vpop.f32.mrf.mxu3  ;;  %v773_v41 = vpop.f32.mrf.mxu1 }
 0x112   : > { %v6467_v26 = vadd.f32 %v949_v31, %v860_v29  ;;  %v6470_v51 = vadd.f32 %v773_v41, %v684_v33  ;;  %v6475_v29 = vsel %vm411_vm0, %v437_v49, %v439_v4  ;;  %v441_v49 = vrot.slane %v5561_v59, 1 }
 0x113   : > { %10086 = vst [vmem:[#allocation26_spill] sm:$0xff] %v6475_v29 }
 0x114   : > { %10083 = vst [vmem:[#allocation23_spill] sm:$0xff] %v6467_v26 }
 0x115   : > { %10084 = vst [vmem:[#allocation24_spill] sm:$0xff] %v6470_v51  ;;  %v5689_v51 = vld [vmem:[#allocation6 + $0x1f4] sm:$0xf0] }
 0x118   : > { %v862_v21 = vpop.f32.mrf.mxu2  ;;  %v687_v25 = vpop.f32.mrf.mxu0 }
 0x119   : > { %v951_v22 = vpop.f32.mrf.mxu3  ;;  %v776_v28 = vpop.f32.mrf.mxu1 }
 0x11a   : > { %v6472_v27 = vadd.f32 %v951_v22, %v862_v21  ;;  %v6477_v30 = vadd.f32 %v776_v28, %v687_v25 }
 0x11b   : > { %726 = vmatmul.bf16.gmra.mxu0 %v5559_v60 }
 0x11c   : > { %10085 = vst [vmem:[#allocation25_spill] sm:$0xff] %v6472_v27  ;;  %815 = vmatmul.bf16.gmra.mxu1 %v6475_v29 }
 0x11d   : > { %10087 = vst [vmem:[#allocation27_spill] sm:$0xff] %v6477_v30  ;;  %904 = vmatmul.bf16.gmra.mxu2 %v5559_v60  ;;  %v6489_v60 = vsel %vm411_vm0, %v439_v4, %v441_v49 }
 0x11e   : > { %993 = vmatmul.bf16.gmra.mxu3 %v6475_v29  ;;  %10091 = vst [vmem:[#allocation31_spill] sm:$0xff] %v6489_v60  ;;  %v311_v29 = vld [vmem:[%s6284_s21 + $0x80] sm:$0xf] }
 0x120   : > { %v865_v31 = vpop.f32.mrf.mxu2  ;;  %v689_v41 = vpop.f32.mrf.mxu0 }
 0x121   : > { %v954_v33 = vpop.f32.mrf.mxu3  ;;  %v778_v52 = vpop.f32.mrf.mxu1 }
 0x122   : > { %v6481_v13 = vadd.f32 %v954_v33, %v865_v31  ;;  %v6484_v5 = vadd.f32 %v778_v52, %v689_v41  ;;  %v409_v31 = vunpack.c.l.b16 %v311_v29  ;;  %v5672_v33 = vld [vmem:[#allocation6 + $0x174] sm:$0xf]  ;;  %v5348_v41 = vld [vmem:[#allocation6 + $0x178] sm:$0xf0]  ;;  %v5410_v29 = vld [vmem:[#allocation6 + $0x1f0] sm:$0xf] }
 0x123   : > { %v5688_v52 = vld [vmem:[#allocation6 + $0x1f4] sm:$0xf]  ;;  %v5351_v9 = vor.u32 %v5672_v33, %v5348_v41  ;;  %v5411_v33 = vor.u32 %v5689_v51, %v5410_v29 }
 0x124   : > { %10088 = vst [vmem:[#allocation28_spill] sm:$0xff] %v6481_v13 }
 0x125   : > { %10089 = vst [vmem:[#allocation29_spill] sm:$0xff] %v6484_v5  ;;  %3245 = vmatpush.bf16.msra.mxu2 %v5351_v9  ;;  %3156 = vmatpush.bf16.msra.mxu1 %v5411_v33 }
 0x128   : > { %v867_v6 = vpop.f32.mrf.mxu2  ;;  %v692_v21 = vpop.f32.mrf.mxu0 }
 0x129   : > { %v956_v8 = vpop.f32.mrf.mxu3  ;;  %v781_v25 = vpop.f32.mrf.mxu1 }
 0x12a   : > { %v6486_v22 = vadd.f32 %v956_v8, %v867_v6  ;;  %v6491_v28 = vadd.f32 %v781_v25, %v692_v21  ;;  %v5412_v6 = vld [vmem:[#allocation6 + $0x1f8] sm:$0xf0] }
 0x12b   : > { %731 = vmatmul.bf16.gmra.mxu0 %v5560_v50 }
 0x12c   : > { %10090 = vst [vmem:[#allocation30_spill] sm:$0xff] %v6486_v22  ;;  %820 = vmatmul.bf16.gmra.mxu1 %v6489_v60  ;;  %v5415_v22 = vor.u32 %v5688_v52, %v5412_v6 }
 0x12d   : > { %10092 = vst [vmem:[#allocation32_spill] sm:$0xff] %v6491_v28  ;;  %909 = vmatmul.bf16.gmra.mxu2 %v5560_v50  ;;  %v410_v28 = vpack.c.b16 %v409_v31, %v409_v31  ;;  %v5346_v50 = vld [vmem:[#allocation6 + $0x170] sm:$0xf] }
 0x12e   : > { %998 = vmatmul.bf16.gmra.mxu3 %v6489_v60  ;;  %v5673_v60 = vld [vmem:[#allocation6 + $0x174] sm:$0xf0] }
 0x12f   : > { %3334 = vmatpush.bf16.msra.mxu3 %v5415_v22  ;;  %v443_v30 = vrot.slane %v410_v28, 1  ;;  %v5347_v27 = vor.u32 %v5673_v60, %v5346_v50 }
 0x130   : > { %v870_v8 = vpop.f32.mrf.mxu2  ;;  %v694_v4 = vpop.f32.mrf.mxu0 }
 0x131   : > { %v959_v5 = vpop.f32.mrf.mxu3  ;;  %v783_v25 = vpop.f32.mrf.mxu1  ;;  %3067 = vmatpush.bf16.msra.mxu0 %v5347_v27  ;;  %v6503_v31 = vsel %vm411_vm0, %v441_v49, %v443_v30 }
 0x132   : > { %v6496_v21 = vadd.f32 %v959_v5, %v870_v8  ;;  %v6498_v13 = vadd.f32 %v783_v25, %v694_v4  ;;  %10096 = vst [vmem:[#allocation36_spill] sm:$0xff] %v6503_v31 }
 0x134   : > { %10093 = vst [vmem:[#allocation33_spill] sm:$0xff] %v6496_v21 }
 0x135   : > { %10094 = vst [vmem:[#allocation34_spill] sm:$0xff] %v6498_v13 }
 0x138   : > { %v872_v41 = vpop.f32.mrf.mxu2  ;;  %v697_v6 = vpop.f32.mrf.mxu0 }
 0x139   : > { %v961_v52 = vpop.f32.mrf.mxu3  ;;  %v786_v5 = vpop.f32.mrf.mxu1 }
 0x13a   : > { %v6500_v9 = vadd.f32 %v961_v52, %v872_v41  ;;  %v6505_v22 = vadd.f32 %v786_v5, %v697_v6  ;;  %v5340_v41 = vld [vmem:[#allocation6 + $0x168] sm:$0xf0]  ;;  %v5686_v52 = vld [vmem:[#allocation6 + $0x1e4] sm:$0xf] }
 0x13b   : > { %736 = vmatmul.bf16.gmra.mxu0 %v5561_v59  ;;  %v5404_v5 = vld [vmem:[#allocation6 + $0x1e8] sm:$0xf0] }
 0x13c   : > { %10095 = vst [vmem:[#allocation35_spill] sm:$0xff] %v6500_v9  ;;  %825 = vmatmul.bf16.gmra.mxu1 %v6503_v31 }
 0x13d   : > { %10097 = vst [vmem:[#allocation37_spill] sm:$0xff] %v6505_v22  ;;  %914 = vmatmul.bf16.gmra.mxu2 %v5561_v59  ;;  %v5670_v59 = vld [vmem:[#allocation6 + $0x164] sm:$0xf] }
 0x13e   : > { %1003 = vmatmul.bf16.gmra.mxu3 %v6503_v31  ;;  %v5343_v6 = vor.u32 %v5670_v59, %v5340_v41  ;;  %v5402_v31 = vld [vmem:[#allocation6 + $0x1e0] sm:$0xf] }
 0x140   : > { %v875_v51 = vpop.f32.mrf.mxu2  ;;  %v699_v27 = vpop.f32.mrf.mxu0  ;;  %3246 = vmatpush.bf16.msra.mxu2 %v5343_v6 }
 0x141   : > { %v964_v60 = vpop.f32.mrf.mxu3  ;;  %v788_v8 = vpop.f32.mrf.mxu1 }
 0x142   : > { %v6509_v28 = vadd.f32 %v964_v60, %v875_v51  ;;  %v6511_v4 = vadd.f32 %v788_v8, %v699_v27  ;;  %v5407_v60 = vor.u32 %v5686_v52, %v5404_v5 }
 0x144   : > { %10098 = vst [vmem:[#allocation38_spill] sm:$0xff] %v6509_v28  ;;  %3335 = vmatpush.bf16.msra.mxu3 %v5407_v60 }
 0x145   : > { %10099 = vst [vmem:[#allocation39_spill] sm:$0xff] %v6511_v4 }
 0x148   : > { %v877_v25 = vpop.f32.mrf.mxu2  ;;  %v702_v30 = vpop.f32.mrf.mxu0 }
 0x149   : > { %v966_v50 = vpop.f32.mrf.mxu3  ;;  %v791_v29 = vpop.f32.mrf.mxu1 }
 0x14a   : > { %v6513_v49 = vadd.f32 %v966_v50, %v877_v25  ;;  %v6515_v33 = vadd.f32 %v791_v29, %v702_v30  ;;  %v5338_v29 = vld [vmem:[#allocation6 + $0x160] sm:$0xf] }
 0x14b   : > { %1209 = vmatmul.bf16.vlgmr.msrb.gmra.mxu0 %v6295_v23 }
 0x14c   : > { %10100 = vst [vmem:[#allocation40_spill] sm:$0xff] %v6513_v49  ;;  %1298 = vmatmul.bf16.vlgmr.msrb.gmra.mxu1 %v6303_v46 }
 0x14d   : > { %10101 = vst [vmem:[#allocation41_spill] sm:$0xff] %v6515_v33  ;;  %1387 = vmatmul.bf16.vlgmr.msrb.gmra.mxu2 %v6295_v23  ;;  %v5671_v23 = vld [vmem:[#allocation6 + $0x164] sm:$0xf0] }
 0x14e   : > { %1476 = vmatmul.bf16.vlgmr.msrb.gmra.mxu3 %v6303_v46  ;;  %v5339_v46 = vor.u32 %v5671_v23, %v5338_v29  ;;  %v5687_v33 = vld [vmem:[#allocation6 + $0x1e4] sm:$0xf0] }
 0x14f   : > { %v5403_v49 = vor.u32 %v5687_v33, %v5402_v31 }
 0x150   : > { %v880_v51 = vpop.f32.mrf.mxu2  ;;  %v704_v8 = vpop.f32.mrf.mxu0  ;;  %3068 = vmatpush.bf16.msra.mxu0 %v5339_v46 }
 0x151   : > { %v969_v27 = vpop.f32.mrf.mxu3  ;;  %v793_v50 = vpop.f32.mrf.mxu1  ;;  %3157 = vmatpush.bf16.msra.mxu1 %v5403_v49 }
 0x152   : > { %v6521_v25 = vadd.f32 %v969_v27, %v880_v51  ;;  %v6523_v30 = vadd.f32 %v793_v50, %v704_v8 }
 0x154   : > { %10102 = vst [vmem:[#allocation42_spill] sm:$0xff] %v6521_v25 }
 0x155   : > { %10103 = vst [vmem:[#allocation43_spill] sm:$0xff] %v6523_v30 }
 0x158   : > { %v882_v4 = vpop.f32.mrf.mxu2  ;;  %v707_v41 = vpop.f32.mrf.mxu0 }
 0x159   : > { %v971_v59 = vpop.f32.mrf.mxu3  ;;  %v796_v6 = vpop.f32.mrf.mxu1 }
 0x15a   : > { %v6525_v52 = vadd.f32 %v971_v59, %v882_v4  ;;  %v6527_v5 = vadd.f32 %v796_v6, %v707_v41  ;;  %v5684_v59 = vld [vmem:[#allocation6 + $0x1d4] sm:$0xf]  ;;  %v5396_v6 = vld [vmem:[#allocation6 + $0x1d8] sm:$0xf0] }
 0x15b   : > { %1214 = vmatmul.bf16.gmra.mxu0 %v6298_v24 }
 0x15c   : > { %10104 = vst [vmem:[#allocation44_spill] sm:$0xff] %v6525_v52  ;;  %1303 = vmatmul.bf16.gmra.mxu1 %v6314_v63 }
 0x15d   : > { %10105 = vst [vmem:[#allocation45_spill] sm:$0xff] %v6527_v5  ;;  %1392 = vmatmul.bf16.gmra.mxu2 %v6298_v24  ;;  %v5668_v24 = vld [vmem:[#allocation6 + $0x154] sm:$0xf] }
 0x15e   : > { %1481 = vmatmul.bf16.gmra.mxu3 %v6314_v63  ;;  %v5332_v63 = vld [vmem:[#allocation6 + $0x158] sm:$0xf0] }
 0x15f   : > { %v5335_v41 = vor.u32 %v5668_v24, %v5332_v63 }
 0x160   : > { %v885_v51 = vpop.f32.mrf.mxu2  ;;  %v709_v33 = vpop.f32.mrf.mxu0 }
 0x161   : > { %v974_v31 = vpop.f32.mrf.mxu3  ;;  %v798_v27 = vpop.f32.mrf.mxu1  ;;  %3247 = vmatpush.bf16.msra.mxu2 %v5335_v41 }
 0x162   : > { %v6533_v60 = vadd.f32 %v974_v31, %v885_v51  ;;  %v6535_v49 = vadd.f32 %v798_v27, %v709_v33  ;;  %v5399_v31 = vor.u32 %v5684_v59, %v5396_v6 }
 0x164   : > { %10106 = vst [vmem:[#allocation46_spill] sm:$0xff] %v6533_v60  ;;  %3336 = vmatpush.bf16.msra.mxu3 %v5399_v31 }
 0x165   : > { %10107 = vst [vmem:[#allocation47_spill] sm:$0xff] %v6535_v49 }
 0x168   : > { %v887_v4 = vpop.f32.mrf.mxu2  ;;  %v712_v50 = vpop.f32.mrf.mxu0 }
 0x169   : > { %v976_v8 = vpop.f32.mrf.mxu3  ;;  %v801_v23 = vpop.f32.mrf.mxu1 }
 0x16a   : > { %v6537_v29 = vadd.f32 %v976_v8, %v887_v4  ;;  %v6539_v46 = vadd.f32 %v801_v23, %v712_v50  ;;  %v5330_v23 = vld [vmem:[#allocation6 + $0x150] sm:$0xf] }
 0x16b   : > { %1219 = vmatmul.bf16.gmra.mxu0 %v6310_v61 }
 0x16c   : > { %10108 = vst [vmem:[#allocation48_spill] sm:$0xff] %v6537_v29  ;;  %1308 = vmatmul.bf16.gmra.mxu1 %v6325_v2  ;;  %v5685_v29 = vld [vmem:[#allocation6 + $0x1d4] sm:$0xf0] }
 0x16d   : > { %10109 = vst [vmem:[#allocation49_spill] sm:$0xff] %v6539_v46  ;;  %1397 = vmatmul.bf16.gmra.mxu2 %v6310_v61  ;;  %v5669_v61 = vld [vmem:[#allocation6 + $0x154] sm:$0xf0]  ;;  %v5394_v46 = vld [vmem:[#allocation6 + $0x1d0] sm:$0xf] }
 0x16e   : > { %1486 = vmatmul.bf16.gmra.mxu3 %v6325_v2  ;;  %v5331_v2 = vor.u32 %v5669_v61, %v5330_v23  ;;  %v5395_v49 = vor.u32 %v5685_v29, %v5394_v46 }
 0x170   : > { %v890_v51 = vpop.f32.mrf.mxu2  ;;  %v714_v27 = vpop.f32.mrf.mxu0  ;;  %3069 = vmatpush.bf16.msra.mxu0 %v5331_v2  ;;  %3158 = vmatpush.bf16.msra.mxu1 %v5395_v49 }
 0x171   : > { %v979_v33 = vpop.f32.mrf.mxu3  ;;  %v803_v8 = vpop.f32.mrf.mxu1 }
 0x172   : > { %v6545_v4 = vadd.f32 %v979_v33, %v890_v51  ;;  %v6547_v50 = vadd.f32 %v803_v8, %v714_v27 }
 0x174   : > { %10110 = vst [vmem:[#allocation50_spill] sm:$0xff] %v6545_v4 }
 0x175   : > { %10111 = vst [vmem:[#allocation51_spill] sm:$0xff] %v6547_v50 }
 0x178   : > { %v892_v60 = vpop.f32.mrf.mxu2  ;;  %v717_v63 = vpop.f32.mrf.mxu0 }
 0x179   : > { %v981_v24 = vpop.f32.mrf.mxu3  ;;  %v806_v41 = vpop.f32.mrf.mxu1 }
 0x17a   : > { %v6549_v59 = vadd.f32 %v981_v24, %v892_v60  ;;  %v6551_v6 = vadd.f32 %v806_v41, %v717_v63  ;;  %v5682_v24 = vld [vmem:[#allocation6 + $0x1c4] sm:$0xf]  ;;  %v5388_v41 = vld [vmem:[#allocation6 + $0x1c8] sm:$0xf0] }
 0x17b   : > { %1224 = vmatmul.bf16.gmra.mxu0 %v6321_v0 }
 0x17c   : > { %10112 = vst [vmem:[#allocation52_spill] sm:$0xff] %v6549_v59  ;;  %1313 = vmatmul.bf16.gmra.mxu1 %v6336_v17 }
 0x17d   : > { %10113 = vst [vmem:[#allocation53_spill] sm:$0xff] %v6551_v6  ;;  %1402 = vmatmul.bf16.gmra.mxu2 %v6321_v0  ;;  %v5666_v0 = vld [vmem:[#allocation6 + $0x144] sm:$0xf] }
 0x17e   : > { %1491 = vmatmul.bf16.gmra.mxu3 %v6336_v17  ;;  %v5324_v17 = vld [vmem:[#allocation6 + $0x148] sm:$0xf0] }
 0x17f   : > { %v5327_v63 = vor.u32 %v5666_v0, %v5324_v17 }
 0x180   : > { %v895_v51 = vpop.f32.mrf.mxu2  ;;  %v719_v46 = vpop.f32.mrf.mxu0 }
 0x181   : > { %v984_v29 = vpop.f32.mrf.mxu3  ;;  %v808_v33 = vpop.f32.mrf.mxu1  ;;  %3248 = vmatpush.bf16.msra.mxu2 %v5327_v63 }
 0x182   : > { %v6557_v31 = vadd.f32 %v984_v29, %v895_v51  ;;  %v6559_v49 = vadd.f32 %v808_v33, %v719_v46  ;;  %v5391_v29 = vor.u32 %v5682_v24, %v5388_v41 }
 0x184   : > { %10114 = vst [vmem:[#allocation54_spill] sm:$0xff] %v6557_v31  ;;  %3337 = vmatpush.bf16.msra.mxu3 %v5391_v29 }
 0x185   : > { %10115 = vst [vmem:[#allocation55_spill] sm:$0xff] %v6559_v49 }
 0x188   : > { %v897_v60 = vpop.f32.mrf.mxu2  ;;  %v722_v8 = vpop.f32.mrf.mxu0 }
 0x189   : > { %v986_v27 = vpop.f32.mrf.mxu3  ;;  %v811_v61 = vpop.f32.mrf.mxu1 }
 0x18a   : > { %v6561_v23 = vadd.f32 %v986_v27, %v897_v60  ;;  %v6563_v2 = vadd.f32 %v811_v61, %v722_v8  ;;  %v5322_v61 = vld [vmem:[#allocation6 + $0x140] sm:$0xf] }
 0x18b   : > { %1229 = vmatmul.bf16.gmra.mxu0 %v6332_v15 }
 0x18c   : > { %10116 = vst [vmem:[#allocation56_spill] sm:$0xff] %v6561_v23  ;;  %1318 = vmatmul.bf16.gmra.mxu1 %v6347_v20  ;;  %v5683_v23 = vld [vmem:[#allocation6 + $0x1c4] sm:$0xf0] }
 0x18d   : > { %10117 = vst [vmem:[#allocation57_spill] sm:$0xff] %v6563_v2  ;;  %1407 = vmatmul.bf16.gmra.mxu2 %v6332_v15  ;;  %v5667_v15 = vld [vmem:[#allocation6 + $0x144] sm:$0xf0]  ;;  %v5386_v2 = vld [vmem:[#allocation6 + $0x1c0] sm:$0xf] }
 0x18e   : > { %1496 = vmatmul.bf16.gmra.mxu3 %v6347_v20  ;;  %v5323_v20 = vor.u32 %v5667_v15, %v5322_v61  ;;  %v5387_v49 = vor.u32 %v5683_v23, %v5386_v2 }
 0x190   : > { %v900_v51 = vpop.f32.mrf.mxu2  ;;  %v724_v33 = vpop.f32.mrf.mxu0  ;;  %3070 = vmatpush.bf16.msra.mxu0 %v5323_v20  ;;  %3159 = vmatpush.bf16.msra.mxu1 %v5387_v49 }
 0x191   : > { %v989_v46 = vpop.f32.mrf.mxu3  ;;  %v813_v27 = vpop.f32.mrf.mxu1 }
 0x192   : > { %v6569_v60 = vadd.f32 %v989_v46, %v900_v51  ;;  %v6571_v8 = vadd.f32 %v813_v27, %v724_v33 }
 0x194   : > { %10118 = vst [vmem:[#allocation58_spill] sm:$0xff] %v6569_v60 }
 0x195   : > { %10119 = vst [vmem:[#allocation59_spill] sm:$0xff] %v6571_v8 }
 0x198   : > { %v902_v31 = vpop.f32.mrf.mxu2  ;;  %v727_v17 = vpop.f32.mrf.mxu0 }
 0x199   : > { %v991_v0 = vpop.f32.mrf.mxu3  ;;  %v816_v63 = vpop.f32.mrf.mxu1 }
 0x19a   : > { %v6573_v24 = vadd.f32 %v991_v0, %v902_v31  ;;  %v6575_v41 = vadd.f32 %v816_v63, %v727_v17 }
 0x19b   : > { %1234 = vmatmul.bf16.gmra.mxu0 %v6343_v18 }
 0x19c   : > { %10120 = vst [vmem:[#allocation60_spill] sm:$0xff] %v6573_v24  ;;  %1323 = vmatmul.bf16.gmra.mxu1 %v6358_v37 }
 0x19d   : > { %10121 = vst [vmem:[#allocation61_spill] sm:$0xff] %v6575_v41  ;;  %1412 = vmatmul.bf16.gmra.mxu2 %v6343_v18 }
 0x19e   : > { %1501 = vmatmul.bf16.gmra.mxu3 %v6358_v37 }
 0x1a0   : > { %v905_v51 = vpop.f32.mrf.mxu2  ;;  %v729_v2 = vpop.f32.mrf.mxu0 }
 0x1a1   : > { %v994_v23 = vpop.f32.mrf.mxu3  ;;  %v818_v46 = vpop.f32.mrf.mxu1 }
 0x1a2   : > { %v6581_v29 = vadd.f32 %v994_v23, %v905_v51  ;;  %v6583_v49 = vadd.f32 %v818_v46, %v729_v2 }
 0x1a4   : > { %10122 = vst [vmem:[#allocation62_spill] sm:$0xff] %v6581_v29 }
 0x1a5   : > { %10123 = vst [vmem:[#allocation63_spill] sm:$0xff] %v6583_v49 }
 0x1a8   : > { %v907_v31 = vpop.f32.mrf.mxu2  ;;  %v732_v27 = vpop.f32.mrf.mxu0 }
 0x1a9   : > { %v996_v33 = vpop.f32.mrf.mxu3  ;;  %v821_v15 = vpop.f32.mrf.mxu1 }
 0x1aa   : > { %v6585_v61 = vadd.f32 %v996_v33, %v907_v31  ;;  %v6587_v20 = vadd.f32 %v821_v15, %v732_v27 }
 0x1ab   : > { %1239 = vmatmul.bf16.gmra.mxu0 %v6354_v35 }
 0x1ac   : > { %10124 = vst [vmem:[#allocation64_spill] sm:$0xff] %v6585_v61  ;;  %1328 = vmatmul.bf16.gmra.mxu1 %v6369_v40 }
 0x1ad   : > { %10125 = vst [vmem:[#allocation65_spill] sm:$0xff] %v6587_v20  ;;  %1417 = vmatmul.bf16.gmra.mxu2 %v6354_v35 }
 0x1ae   : > { %1506 = vmatmul.bf16.gmra.mxu3 %v6369_v40 }
 0x1b0   : > { %v910_v18 = vpop.f32.mrf.mxu2  ;;  %v734_v0 = vpop.f32.mrf.mxu0 }
 0x1b1   : > { %v999_v37 = vpop.f32.mrf.mxu3  ;;  %v823_v63 = vpop.f32.mrf.mxu1 }
 0x1b2   : > { %v6593_v17 = vadd.f32 %v999_v37, %v910_v18  ;;  %v6595_v51 = vadd.f32 %v823_v63, %v734_v0 }
 0x1b4   : > { %10126 = vst [vmem:[#allocation66_spill] sm:$0xff] %v6593_v17  ;;  %v5380_v17 = vld [vmem:[#allocation6 + $0x1b8] sm:$0xf0] }
 0x1b5   : > { %10127 = vst [vmem:[#allocation67_spill] sm:$0xff] %v6595_v51  ;;  %v5680_v51 = vld [vmem:[#allocation6 + $0x1b4] sm:$0xf] }
 0x1b8   : > { %v912_v23 = vpop.f32.mrf.mxu2  ;;  %v737_v46 = vpop.f32.mrf.mxu0 }
 0x1b9   : > { %v1001_v2 = vpop.f32.mrf.mxu3  ;;  %v826_v33 = vpop.f32.mrf.mxu1 }
 0x1ba   : > { %v6597_v31 = vadd.f32 %v1001_v2, %v912_v23  ;;  %v6599_v27 = vadd.f32 %v826_v33, %v737_v46 }
 0x1bb   : > { %1244 = vmatmul.bf16.gmra.mxu0 %v6365_v38 }
 0x1bc   : > { %10128 = vst [vmem:[#allocation68_spill] sm:$0xff] %v6597_v31  ;;  %1333 = vmatmul.bf16.gmra.mxu1 %v6380_v56  ;;  %v5664_v31 = vld [vmem:[#allocation6 + $0x134] sm:$0xf] }
 0x1bd   : > { %10129 = vst [vmem:[#allocation69_spill] sm:$0xff] %v6599_v27  ;;  %1422 = vmatmul.bf16.gmra.mxu2 %v6365_v38  ;;  %v5316_v38 = vld [vmem:[#allocation6 + $0x138] sm:$0xf0] }
 0x1be   : > { %1511 = vmatmul.bf16.gmra.mxu3 %v6380_v56  ;;  %v5319_v56 = vor.u32 %v5664_v31, %v5316_v38 }
 0x1c0   : > { %v915_v35 = vpop.f32.mrf.mxu2  ;;  %v739_v15 = vpop.f32.mrf.mxu0  ;;  %3249 = vmatpush.bf16.msra.mxu2 %v5319_v56  ;;  %v5665_v56 = vld [vmem:[#allocation6 + $0x134] sm:$0xf0] }
 0x1c1   : > { %v1004_v40 = vpop.f32.mrf.mxu3  ;;  %v828_v37 = vpop.f32.mrf.mxu1 }
 0x1c2   : > { %v6605_v18 = vadd.f32 %v1004_v40, %v915_v35  ;;  %v6607_v0 = vadd.f32 %v828_v37, %v739_v15  ;;  %v1557_v35 = vmul.f32 %v6393_v1, %v6393_v1  ;;  %v5383_v15 = vor.u32 %v5680_v51, %v5380_v17  ;;  %v5314_v51 = vld [vmem:[#allocation6 + $0x130] sm:$0xf] }
 0x1c4   : > { %10130 = vst [vmem:[#allocation70_spill] sm:$0xff] %v6605_v18  ;;  %3338 = vmatpush.bf16.msra.mxu3 %v5383_v15  ;;  %v5315_v15 = vor.u32 %v5665_v56, %v5314_v51 }
 0x1c5   : > { %10131 = vst [vmem:[#allocation71_spill] sm:$0xff] %v6607_v0 }
 0x1c6   : > { %3071 = vmatpush.bf16.msra.mxu0 %v5315_v15 }
 0x1c8   : > { %v917_v63 = vpop.f32.mrf.mxu2  ;;  %v1210_v2 = vpop.f32.mrf.mxu0 }
 0x1c9   : > { %v1006_v23 = vpop.f32.mrf.mxu3  ;;  %v1299_v33 = vpop.f32.mrf.mxu1 }
 0x1ca   : > { %v6609_v46 = vadd.f32 %v1006_v23, %v917_v63  ;;  %v6611_v27 = vadd.f32 %v1299_v33, %v1210_v2 }
 0x1cb   : > { %1249 = vmatmul.bf16.gmra.mxu0 %v6376_v48 }
 0x1cc   : > { %10132 = vst [vmem:[#allocation72_spill] sm:$0xff] %v6609_v46  ;;  %v1621_v40 = vmul.f32 %v6611_v27, %v6611_v27  ;;  %1338 = vmatmul.bf16.gmra.mxu1 %v6391_v62 }
 0x1cd   : > { %10133 = vst [vmem:[#allocation73_spill] sm:$0xff] %v6611_v27  ;;  %1427 = vmatmul.bf16.gmra.mxu2 %v6376_v48  ;;  %v1558_v27 = vmul.f32 %v6399_v12, %v6399_v12 }
 0x1ce   : > { %1516 = vmatmul.bf16.gmra.mxu3 %v6391_v62  ;;  %v1685_v37 = vadd.f32 %v1621_v40, %v1557_v35  ;;  %v1559_v62 = vmul.f32 %v6404_v16, %v6404_v16  ;;  %v5378_v35 = vld [vmem:[#allocation6 + $0x1b0] sm:$0xf] }
 0x1d0   : > { %v1388_v63 = vpop.f32.mrf.mxu2  ;;  %v1750_v23 = vadd.f32 1.1754944e-38, %v1685_v37  ;;  %v1212_v2 = vpop.f32.mrf.mxu0  ;;  %v5681_v37 = vld [vmem:[#allocation6 + $0x1b4] sm:$0xf0] }
 0x1d1   : > { %v1477_v31 = vpop.f32.mrf.mxu3  ;;  %v1301_v38 = vpop.f32.mrf.mxu1 }
 0x1d2   : > { %v6621_v33 = vadd.f32 %v1477_v31, %v1388_v63  ;;  %5893 = vrsqrt.f32 %v1750_v23  ;;  %v6623_v46 = vadd.f32 %v1301_v38, %v1212_v2  ;;  %v5379_v31 = vor.u32 %v5681_v37, %v5378_v35 }
 0x1d3   : > { %vm1820_vm2 = vweird.f32 %v1750_v23 }
 0x1d4   : > { %10134 = vst [vmem:[#allocation74_spill] sm:$0xff] %v6621_v33  ;;  %v1622_v48 = vmul.f32 %v6621_v33, %v6621_v33  ;;  %v1623_v17 = vmul.f32 %v6623_v46, %v6623_v46  ;;  %3160 = vmatpush.bf16.msra.mxu1 %v5379_v31 }
 0x1d5   : > { %10135 = vst [vmem:[#allocation75_spill] sm:$0xff] %v6623_v46 }
 0x1d6   : > { %v1686_v40 = vadd.f32 %v1622_v48, %v1558_v27  ;;  %v1687_v63 = vadd.f32 %v1623_v17, %v1559_v62  ;;  %v1560_v27 = vmul.f32 %v6407_v32, %v6407_v32 }
 0x1d8   : > { %v1751_v2 = vadd.f32 1.1754944e-38, %v1686_v40  ;;  %v1390_v38 = vpop.f32.mrf.mxu2  ;;  %v5894_v0 = vpop.eup %5893  ;;  %v1752_v18 = vadd.f32 1.1754944e-38, %v1687_v63 }
 0x1d9   : > { %v1479_v33 = vpop.f32.mrf.mxu3  ;;  %v1215_v20 = vpop.f32.mrf.mxu0  ;;  %v1815_v61 = vmul.f32 %v5894_v0, %v1750_v23  ;;  %vm1821_vm1 = vweird.f32 %v5894_v0 }
 0x1da   : > { %5895 = vrsqrt.f32 %v1751_v2  ;;  %v1304_v49 = vpop.f32.mrf.mxu1  ;;  %v6633_v46 = vadd.f32 %v1479_v33, %v1390_v38  ;;  %vm1822_vm3 = vmor %vm1820_vm2, %vm1821_vm1  ;;  %vm1830_vm6 = vweird.f32 %v1751_v2  ;;  %vm1840_vm8 = vweird.f32 %v1752_v18 }
 0x1db   : > { %5897 = vrsqrt.f32 %v1752_v18  ;;  %v1816_v29 = vmul.f32 %v5894_v0, %v1815_v61  ;;  %1254 = vmatmul.bf16.gmra.mxu0 %v6387_v57  ;;  %v1749_v61 = vld [vmem:[%s9920_s3] sm:$0x3] }
 0x1dc   : > { %10136 = vst [vmem:[#allocation76_spill] sm:$0xff] %v6633_v46  ;;  %v1624_v48 = vmul.f32 %v6633_v46, %v6633_v46  ;;  %1343 = vmatmul.bf16.gmra.mxu1 %v6410_v34  ;;  %v6654_v31 = vperm.slane %v1749_v61, 0 }
 0x1dd   : > { %1432 = vmatmul.bf16.gmra.mxu2 %v6387_v57  ;;  %v1817_v62 = vmul.f32 0.5, %v1816_v29 }
 0x1de   : > { %1521 = vmatmul.bf16.gmra.mxu3 %v6410_v34  ;;  %v1688_v17 = vadd.f32 %v1624_v48, %v1560_v27 }
 0x1df   : > { %v1818_v33 = vsub.f32 1.5, %v1817_v62 }
 0x1e0   : > { %v5896_v51 = vpop.eup %5895  ;;  %v6646_v56 = vpop.f32.mrf.mxu2  ;;  %v6648_v15 = vadd.f32 1.1754944e-38, %v1688_v17 }
 0x1e1   : > { %v5898_v35 = vpop.eup %5897  ;;  %v1825_v40 = vmul.f32 %v5896_v51, %v1751_v2  ;;  %v1482_v37 = vpop.f32.mrf.mxu3  ;;  %v1819_v57 = vmul.f32 %v5894_v0, %v1818_v33  ;;  %vm1831_vm4 = vweird.f32 %v5896_v51 }
 0x1e2   : > { %v6650_v63 = vpop.f32.mrf.mxu0  ;;  %v1835_v34 = vmul.f32 %v5898_v35, %v1752_v18  ;;  %v6652_v29 = vpop.f32.mrf.mxu1  ;;  %5899 = vrsqrt.f32 %v6648_v15  ;;  %vm1841_vm5 = vweird.f32 %v5898_v35  ;;  %vm6662_vm7 = vmor %vm1830_vm6, %vm1831_vm4  ;;  %vm1850_vm11 = vweird.f32 %v6648_v15 }
 0x1e3   : > { %v1826_v38 = vmul.f32 %v5896_v51, %v1825_v40  ;;  %v1823_v27 = vsel %vm1822_vm3, %v5894_v0, %v1819_v57  ;;  %vm1842_vm9 = vmor %vm1840_vm8, %vm1841_vm5 }
 0x1e4   : > { %v1836_v48 = vmul.f32 %v5898_v35, %v1835_v34  ;;  %v2459_v17 = vmul.f32 %v6654_v31, %v1823_v27  ;;  %v6667_v34 = vadd.f32 %v1304_v49, %v1215_v20  ;;  %v6669_v27 = vperm.slane %v1749_v61, 1 }
 0x1e5   : > { %v1827_v62 = vmul.f32 0.5, %v1826_v38  ;;  %v1561_v61 = vmul.f32 %v6412_v36, %v6412_v36 }
 0x1e6   : > { %v1837_v46 = vmul.f32 0.5, %v1836_v48  ;;  %v2523_v38 = vsub.f32 1.0, %v2459_v17  ;;  %v1625_v20 = vmul.f32 %v6667_v34, %v6667_v34  ;;  %v5662_v17 = vld [vmem:[#allocation6 + $0x124] sm:$0xf] }
 0x1e7   : > { %v1828_v41 = vsub.f32 1.5, %v1827_v62 }
 0x1e8   : > { %v1838_v24 = vsub.f32 1.5, %v1837_v46  ;;  %v6658_v23 = vpop.f32.mrf.mxu2  ;;  %v5900_v33 = vpop.eup %5899  ;;  %v6683_v6 = vmax.f32 %v2523_v38, 0.0  ;;  %v6692_v38 = vadd.f32 %v1482_v37, %v6646_v56 }
 0x1e9   : > { %v1829_v8 = vmul.f32 %v5896_v51, %v1828_v41  ;;  %v6660_v60 = vpop.f32.mrf.mxu3  ;;  %v1845_v57 = vmul.f32 %v5900_v33, %v6648_v15  ;;  %vm1851_vm10 = vweird.f32 %v5900_v33 }
 0x1ea   : > { %v1220_v40 = vpop.f32.mrf.mxu0  ;;  %v1839_v0 = vmul.f32 %v5898_v35, %v1838_v24  ;;  %v1309_v46 = vpop.f32.mrf.mxu1  ;;  %vm1852_vm12 = vmor %vm1850_vm11, %vm1851_vm10  ;;  %v1626_v37 = vmul.f32 %v6692_v38, %v6692_v38 }
 0x1eb   : > { %v1833_v41 = vsel %vm6662_vm7, %v5896_v51, %v1829_v8  ;;  %v1846_v48 = vmul.f32 %v5900_v33, %v1845_v57  ;;  %1259 = vmatmul.bf16.gmra.mxu0 %v6402_v14  ;;  %v6680_v18 = vadd.f32 %v1309_v46, %v1220_v40 }
 0x1ec   : > { %v1843_v2 = vsel %vm1842_vm9, %v5898_v35, %v1839_v0  ;;  %1348 = vmatmul.bf16.gmra.mxu1 %v6429_v55  ;;  %v2460_v8 = vmul.f32 %v6669_v27, %v1833_v41  ;;  %v5308_v0 = vld [vmem:[#allocation6 + $0x128] sm:$0xf0] }
 0x1ed   : > { %v2461_v24 = vmul.f32 %v6654_v31, %v1843_v2  ;;  %1437 = vmatmul.bf16.gmra.mxu2 %v6402_v14  ;;  %v1847_v49 = vmul.f32 0.5, %v1846_v48  ;;  %v2651_v2 = vmul.f32 %v6683_v6, %v6393_v1 }
 0x1ee   : > { %1526 = vmatmul.bf16.gmra.mxu3 %v6429_v55  ;;  %v1689_v55 = vadd.f32 %v1625_v20, %v1561_v61  ;;  %v2524_v48 = vsub.f32 1.0, %v2460_v8  ;;  %v5678_v20 = vld [vmem:[#allocation6 + $0x1a4] sm:$0xf]  ;;  %v5372_v61 = vld [vmem:[#allocation6 + $0x1a8] sm:$0xf0] }
 0x1ef   : > { %v2525_v51 = vsub.f32 1.0, %v2461_v24  ;;  %v1848_v35 = vsub.f32 1.5, %v1847_v49 }
 0x1f0   : > { %v1398_v62 = vpop.f32.mrf.mxu2  ;;  %v6702_v56 = vadd.f32 1.1754944e-38, %v1689_v55  ;;  %v6706_v1 = vmax.f32 %v2524_v48, 0.0 }
 0x1f1   : > { %v6688_v14 = vmax.f32 %v2525_v51, 0.0  ;;  %v1487_v57 = vpop.f32.mrf.mxu3  ;;  %v1849_v46 = vmul.f32 %v5900_v33, %v1848_v35  ;;  %v5311_v51 = vor.u32 %v5662_v17, %v5308_v0  ;;  %v5375_v35 = vor.u32 %v5678_v20, %v5372_v61  ;;  %v5663_v20 = vld [vmem:[#allocation6 + $0x124] sm:$0xf0]  ;;  %v6021_v61 = vld [vmem:[%s6284_s21 + $0x58] sm:$0xff] }
 0x1f2   : > { %v1222_v40 = vpop.f32.mrf.mxu0  ;;  %v1311_v41 = vpop.f32.mrf.mxu1  ;;  %5901 = vrsqrt.f32 %v6702_v56  ;;  %vm1860_vm14 = vweird.f32 %v6702_v56 }
 0x1f3   : > { %v2653_v24 = vmul.f32 %v6688_v14, %v6404_v16  ;;  %v1853_v49 = vsel %vm1852_vm12, %v5900_v33, %v1849_v46  ;;  %3250 = vmatpush.bf16.msra.mxu2 %v5311_v51  ;;  %v6710_v16 = vadd.f32 %v6652_v29, %v6650_v63  ;;  %v1562_v33 = vmul.f32 %v6418_v43, %v6418_v43 }
 0x1f4   : > { %v2462_v15 = vmul.f32 %v6669_v27, %v1853_v49  ;;  %v6716_v46 = vadd.f32 %v1487_v57, %v1398_v62  ;;  %3339 = vmatpush.bf16.msra.mxu3 %v5375_v35  ;;  %v2652_v29 = vmul.f32 %v6706_v1, %v6399_v12  ;;  %v6731_v51 = vadd.f32 %v6660_v60, %v6658_v23 }
 0x1f5   : > { %v6699_v36 = vpack.c.bf16 %v2653_v24, %v2651_v2  ;;  %v1690_v48 = vadd.f32 %v1626_v37, %v1562_v33  ;;  %v6719_v24 = vadd.f32 %v1311_v41, %v1222_v40  ;;  %v1627_v62 = vmul.f32 %v6710_v16, %v6710_v16  ;;  %v5370_v41 = vld [vmem:[#allocation6 + $0x1a0] sm:$0xf] }
 0x1f6   : > { %v2526_v8 = vsub.f32 1.0, %v2462_v15  ;;  %10140 = vst [vmem:[#allocation78_spill] sm:$0xff] %v6716_v46  ;;  %v5306_v15 = vld [vmem:[#allocation6 + $0x120] sm:$0xf]  ;;  %v1563_v40 = vmul.f32 %v6423_v47, %v6423_v47 }
 0x1f7   : > { %10139 = vst [vmem:[#allocation77_spill] sm:$0xff] %v6699_v36  ;;  %v6741_v37 = vadd.f32 1.1754944e-38, %v1690_v48  ;;  %v5307_v23 = vor.u32 %v5663_v20, %v5306_v15  ;;  %v6753_v48 = vmul.f32 %v6437_v10, %v6437_v10  ;;  %v6780_v10 = vmul.f32 %v6453_v54, %v6453_v54  ;;  %v10163_v36 = vld [vmem:[#allocation41_spill] sm:$0xff] }
 0x1f8   : > { %v1400_v17 = vpop.f32.mrf.mxu2  ;;  %v6714_v0 = vmax.f32 %v2526_v8, 0.0  ;;  %10141 = vst [vmem:[#allocation79_spill] sm:$0xff] %v6719_v24  ;;  %v1691_v60 = vadd.f32 %v1627_v62, %v1563_v40  ;;  %v6743_v33 = vpop.eup %5901  ;;  %v6761_v62 = vmul.f32 %v6442_v39, %v6442_v39 }
 0x1f9   : > { %v1489_v55 = vpop.f32.mrf.mxu3  ;;  %3072 = vmatpush.bf16.msra.mxu0 %v5307_v23  ;;  %5903 = vrsqrt.f32 %v6741_v37  ;;  %vm1861_vm13 = vweird.f32 %v6743_v33  ;;  %vm1870_vm1 = vweird.f32 %v6741_v37 }
 0x1fa   : > { %v1225_v2 = vpop.f32.mrf.mxu0  ;;  %v1314_v63 = vpop.f32.mrf.mxu1  ;;  %v2654_v49 = vmul.f32 %v6714_v0, %v6407_v32  ;;  %v6727_v57 = vadd.f32 %v1489_v55, %v1400_v17  ;;  %v5679_v32 = vld [vmem:[#allocation6 + $0x1a4] sm:$0xf0]  ;;  %v1564_v17 = vmul.f32 %v6426_v53, %v6426_v53  ;;  %v6764_v20 = vadd.f32 1.1754944e-38, %v1691_v60  ;;  %vm7011_vm15 = vmor %vm1860_vm14, %vm1861_vm13 }
 0x1fb   : > { %1264 = vmatmul.bf16.gmra.mxu0 %v6421_v45  ;;  %v5371_v8 = vor.u32 %v5679_v32, %v5370_v41  ;;  %v1628_v45 = vmul.f32 %v6731_v51, %v6731_v51  ;;  %v6766_v40 = vadd.f32 %v1314_v63, %v1225_v2  ;;  %v6772_v32 = vmul.f32 %v6447_v44, %v6447_v44 }
 0x1fc   : > { %10142 = vst [vmem:[#allocation80_spill] sm:$0xff] %v6727_v57  ;;  %v6736_v12 = vpack.c.bf16 %v2654_v49, %v2652_v29  ;;  %1353 = vmatmul.bf16.gmra.mxu1 %v6445_v42  ;;  %v6757_v49 = vmul.f32 %v6440_v19, %v6440_v19  ;;  %v6784_v2 = vmul.f32 %v6456_v3, %v6456_v3  ;;  %5905 = vrsqrt.f32 %v6764_v20 }
 0x1fd   : > { %1442 = vmatmul.bf16.gmra.mxu2 %v6021_v61  ;;  %3161 = vmatpush.bf16.msra.mxu1 %v5371_v8  ;;  %10144 = vst [vmem:[#allocation82_spill] sm:$0xff] %v6766_v40  ;;  %v1855_v61 = vmul.f32 %v6743_v33, %v6702_v56  ;;  %v1692_v23 = vadd.f32 %v1628_v45, %v1564_v17  ;;  %vm1880_vm4 = vweird.f32 %v6764_v20 }
 0x1fe   : > { %10143 = vst [vmem:[#allocation81_spill] sm:$0xff] %v6736_v12  ;;  %1531 = vmatmul.bf16.gmra.mxu3 %v6445_v42  ;;  %v1565_v42 = vmul.f32 %v6431_v58, %v6431_v58  ;;  %v1629_v8 = vmul.f32 %v6680_v18, %v6680_v18  ;;  %v6788_v63 = vmul.f32 %v6458_v7, %v6458_v7  ;;  %v10149_v7 = vld [vmem:[#allocation27_spill] sm:$0xff] }
 0x1ff   : > { %v6792_v60 = vmul.f32 %v6463_v11, %v6463_v11  ;;  %v6796_v45 = vmul.f32 %v6467_v26, %v6467_v26  ;;  %v6810_v3 = vmul.f32 %v10149_v7, %v10149_v7  ;;  %v10150_v11 = vld [vmem:[#allocation28_spill] sm:$0xff]  ;;  %v10151_v26 = vld [vmem:[#allocation29_spill] sm:$0xff]  ;;  %v6828_v43 = vpop.eup %5903 }
 0x200   : > { %v1403_v35 = vpop.f32.mrf.mxu2  ;;  %v6814_v39 = vmul.f32 %v10150_v11, %v10150_v11  ;;  %v6818_v58 = vmul.f32 %v10151_v26, %v10151_v26  ;;  %v1693_v7 = vadd.f32 %v1629_v8, %v1565_v42  ;;  %v10153_v11 = vld [vmem:[#allocation32_spill] sm:$0xff]  ;;  %v6836_v26 = vmul.f32 %v6496_v21, %v6496_v21  ;;  %v10159_v21 = vld [vmem:[#allocation39_spill] sm:$0xff] }
 0x201   : > { %v1492_v55 = vpop.f32.mrf.mxu3  ;;  %v6832_v53 = vmul.f32 %v10153_v11, %v10153_v11  ;;  %v6848_v8 = vmul.f32 %v6505_v22, %v6505_v22  ;;  %v6852_v11 = vmul.f32 %v6509_v28, %v6509_v28  ;;  %v6856_v47 = vmul.f32 %v10159_v21, %v10159_v21 }
 0x202   : > { %v1227_v29 = vpop.f32.mrf.mxu0  ;;  %v1316_v15 = vpop.f32.mrf.mxu1  ;;  %v6768_v41 = vadd.f32 %v1492_v55, %v1403_v35  ;;  %v10146_v35 = vld [vmem:[#allocation24_spill] sm:$0xff]  ;;  %v10147_v55 = vld [vmem:[#allocation25_spill] sm:$0xff]  ;;  %10154 = vst [vmem:[#allocation85_spill] sm:$0xff] %v6836_v26  ;;  %v6868_v22 = vmul.f32 %v6521_v25, %v6521_v25  ;;  %v6872_v28 = vmul.f32 %v6523_v30, %v6523_v30  ;;  %v6876_v21 = vmul.f32 %v6525_v52, %v6525_v52 }
 0x203   : > { %v6800_v17 = vmul.f32 %v10146_v35, %v10146_v35  ;;  %v6804_v54 = vmul.f32 %v10147_v55, %v10147_v55  ;;  %v6806_v44 = vadd.f32 %v1316_v15, %v1227_v29  ;;  %v10152_v35 = vld [vmem:[#allocation30_spill] sm:$0xff]  ;;  %v1856_v29 = vmul.f32 %v6743_v33, %v1855_v61  ;;  %10157 = vst [vmem:[#allocation88_spill] sm:$0xff] %v6848_v8  ;;  %v6884_v25 = vpop.eup %5905  ;;  %v5300_v26 = vld [vmem:[#allocation6 + $0x118] sm:$0xf0] }
 0x204   : > { %10145 = vst [vmem:[#allocation83_spill] sm:$0xff] %v6768_v41  ;;  %v6823_v55 = vmul.f32 %v10152_v35, %v10152_v35  ;;  %v6826_v15 = vadd.f32 1.1754944e-38, %v1692_v23  ;;  %v6840_v35 = vmul.f32 %v6498_v13, %v6498_v13  ;;  %v6844_v61 = vmul.f32 %v6500_v9, %v6500_v9  ;;  %v10161_v13 = vld [vmem:[#allocation40_spill] sm:$0xff] }
 0x205   : > { %10148 = vst [vmem:[#allocation84_spill] sm:$0xff] %v6806_v44  ;;  %v6860_v12 = vmul.f32 %v10161_v13, %v10161_v13  ;;  %v1865_v13 = vmul.f32 %v6828_v43, %v6741_v37  ;;  %v6888_v30 = vmul.f32 %v6527_v5, %v6527_v5  ;;  %vm1871_vm0 = vweird.f32 %v6828_v43 }
 0x206   : > { %10155 = vst [vmem:[#allocation86_spill] sm:$0xff] %v6840_v35  ;;  %5907 = vrsqrt.f32 %v6826_v15  ;;  %vm7095_vm2 = vmor %vm1870_vm1, %vm1871_vm0  ;;  %vm1881_vm3 = vweird.f32 %v6884_v25  ;;  %vm1890_vm6 = vweird.f32 %v6826_v15 }
 0x207   : > { %10156 = vst [vmem:[#allocation87_spill] sm:$0xff] %v6844_v61  ;;  %v6864_v61 = vmul.f32 %v10163_v36, %v10163_v36  ;;  %v6881_v36 = vadd.f32 1.1754944e-38, %v1693_v7  ;;  %vm7126_vm5 = vmor %vm1880_vm4, %vm1881_vm3 }
 0x208   : > { %v1405_v19 = vpop.f32.mrf.mxu2  ;;  %10158 = vst [vmem:[#allocation89_spill] sm:$0xff] %v6852_v11  ;;  %v1630_v11 = vmul.f32 %v6716_v46, %v6716_v46 }
 0x209   : > { %v1494_v42 = vpop.f32.mrf.mxu3  ;;  %10160 = vst [vmem:[#allocation90_spill] sm:$0xff] %v6856_v47  ;;  %v1857_v47 = vmul.f32 0.5, %v1856_v29  ;;  %v10171_v29 = vld [vmem:[#allocation47_spill] sm:$0xff]  ;;  %5909 = vrsqrt.f32 %v6881_v36  ;;  %vm1900_vm7 = vweird.f32 %v6881_v36 }
 0x20a   : > { %v1230_v23 = vpop.f32.mrf.mxu0  ;;  %10162 = vst [vmem:[#allocation91_spill] sm:$0xff] %v6860_v12  ;;  %v1319_v9 = vpop.f32.mrf.mxu1  ;;  %v10175_v12 = vld [vmem:[#allocation21_spill] sm:$0xff]  ;;  %v6905_v8 = vadd.f32 %v1494_v42, %v1405_v19  ;;  %v6924_v19 = vmul.f32 %v6549_v59, %v6549_v59  ;;  %v10186_v59 = vld [vmem:[#allocation55_spill] sm:$0xff] }
 0x20b   : > { %10164 = vst [vmem:[#allocation92_spill] sm:$0xff] %v6864_v61  ;;  %v6022_v61 = vld [vmem:[%s6284_s21 + $0x60] sm:$0xff]  ;;  %v6907_v5 = vadd.f32 %v1319_v9, %v1230_v23  ;;  %v1858_v9 = vsub.f32 1.5, %v1857_v47  ;;  %v6942_v47 = vmul.f32 %v10186_v59, %v10186_v59  ;;  %v1694_v59 = vadd.f32 %v1630_v11, %v6753_v48 }
 0x20c   : > { %10165 = vst [vmem:[#allocation93_spill] sm:$0xff] %v6868_v22  ;;  %1269 = vmatmul.bf16.gmra.mxu0 %v6022_v61  ;;  %v10173_v22 = vld [vmem:[#allocation48_spill] sm:$0xff]  ;;  %1358 = vmatmul.bf16.gmra.mxu1 %v10175_v12  ;;  %v10182_v23 = vld [vmem:[#allocation53_spill] sm:$0xff] }
 0x20d   : > { %10166 = vst [vmem:[#allocation94_spill] sm:$0xff] %v6872_v28  ;;  %v10169_v28 = vld [vmem:[#allocation46_spill] sm:$0xff]  ;;  %v6900_v7 = vmul.f32 %v10173_v22, %v10173_v22  ;;  %1447 = vmatmul.bf16.gmra.mxu2 %v6022_v61  ;;  %v6916_v22 = vmul.f32 %v6545_v4, %v6545_v4  ;;  %v1866_v61 = vmul.f32 %v6828_v43, %v1865_v13 }
 0x20e   : > { %10167 = vst [vmem:[#allocation95_spill] sm:$0xff] %v6876_v21  ;;  %v6892_v52 = vmul.f32 %v10169_v28, %v10169_v28  ;;  %v6896_v21 = vmul.f32 %v10171_v29, %v10171_v29  ;;  %1536 = vmatmul.bf16.gmra.mxu3 %v10175_v12  ;;  %v10177_v28 = vld [vmem:[#allocation49_spill] sm:$0xff]  ;;  %v1875_v12 = vmul.f32 %v6884_v25, %v6764_v20  ;;  %v5362_v20 = vld [vmem:[#allocation6 + $0x190] sm:$0xf] }
 0x20f   : > { %10168 = vst [vmem:[#allocation96_spill] sm:$0xff] %v6888_v30  ;;  %v6912_v29 = vmul.f32 %v10177_v28, %v10177_v28  ;;  %v6934_v4 = vmul.f32 %v10182_v23, %v10182_v23  ;;  %v10184_v28 = vld [vmem:[#allocation54_spill] sm:$0xff]  ;;  %v1631_v13 = vmul.f32 %v6719_v24, %v6719_v24  ;;  %v10194_v30 = vld [vmem:[#allocation59_spill] sm:$0xff]  ;;  %v1859_v11 = vmul.f32 %v6743_v33, %v1858_v9 }
 0x210   : > { %10170 = vst [vmem:[#allocation97_spill] sm:$0xff] %v6892_v52  ;;  %v6930_v42 = vpop.f32.mrf.mxu2  ;;  %v6969_v35 = vmul.f32 %v10194_v30, %v10194_v30  ;;  %v1867_v48 = vmul.f32 0.5, %v1866_v61  ;;  %v6996_v61 = vadd.f32 1.1754944e-38, %v1694_v59  ;;  %v1634_v59 = vmul.f32 %v6768_v41, %v6768_v41 }
 0x211   : > { %10172 = vst [vmem:[#allocation98_spill] sm:$0xff] %v6896_v21  ;;  %v10192_v21 = vld [vmem:[#allocation58_spill] sm:$0xff]  ;;  %v1695_v9 = vadd.f32 %v1631_v13, %v6757_v49  ;;  %v1863_v13 = vsel %vm7011_vm15, %v6743_v33, %v1859_v11 }
 0x212   : > { %10174 = vst [vmem:[#allocation99_spill] sm:$0xff] %v6900_v7  ;;  %v6920_v7 = vmul.f32 %v6547_v50, %v6547_v50  ;;  %v6938_v50 = vmul.f32 %v10184_v28, %v10184_v28  ;;  %v6965_v52 = vmul.f32 %v10192_v21, %v10192_v21  ;;  %v1876_v21 = vmul.f32 %v6884_v25, %v1875_v12 }
 0x213   : > { %10176 = vst [vmem:[#allocation21_spill] sm:$0xff] %v6905_v8  ;;  %5911 = vrsqrt.f32 %v6996_v61  ;;  %vm1910_vm12 = vweird.f32 %v6996_v61 }
 0x214   : > { %10178 = vst [vmem:[#allocation100_spill] sm:$0xff] %v6912_v29  ;;  %v10188_v29 = vld [vmem:[#allocation56_spill] sm:$0xff] }
 0x215   : > { %10179 = vst [vmem:[#allocation101_spill] sm:$0xff] %v6916_v22  ;;  %v6950_v22 = vpop.eup %5907  ;;  %v6954_v23 = vmul.f32 %v10188_v29, %v10188_v29  ;;  %v10196_v29 = vld [vmem:[#allocation60_spill] sm:$0xff] }
 0x216   : > { %10180 = vst [vmem:[#allocation102_spill] sm:$0xff] %v6920_v7  ;;  %v6948_v7 = vpop.f32.mrf.mxu0  ;;  %vm1891_vm8 = vweird.f32 %v6950_v22 }
 0x217   : > { %10181 = vst [vmem:[#allocation103_spill] sm:$0xff] %v6924_v19  ;;  %v6946_v19 = vpop.f32.mrf.mxu3  ;;  %vm7161_vm9 = vmor %vm1890_vm6, %vm1891_vm8 }
 0x218   : > { %10183 = vst [vmem:[#allocation104_spill] sm:$0xff] %v6934_v4  ;;  %v10190_v4 = vld [vmem:[#allocation57_spill] sm:$0xff] }
 0x219   : > { %10185 = vst [vmem:[#allocation105_spill] sm:$0xff] %v6938_v50  ;;  %v6958_v28 = vmul.f32 %v10190_v4, %v10190_v4  ;;  %v1321_v50 = vpop.f32.mrf.mxu1  ;;  %v10198_v4 = vld [vmem:[#allocation61_spill] sm:$0xff] }
 0x21a   : > { %10187 = vst [vmem:[#allocation106_spill] sm:$0xff] %v6942_v47  ;;  %v1632_v47 = vmul.f32 %v6727_v57, %v6727_v57  ;;  %v10200_v57 = vld [vmem:[#allocation62_spill] sm:$0xff] }
 0x21b   : > { %10189 = vst [vmem:[#allocation107_spill] sm:$0xff] %v6954_v23  ;;  %v6973_v23 = vmul.f32 %v10196_v29, %v10196_v29  ;;  %v6984_v30 = vmul.f32 %v10200_v57, %v10200_v57  ;;  %v1633_v57 = vmul.f32 %v6766_v40, %v6766_v40 }
 0x21c   : > { %10191 = vst [vmem:[#allocation108_spill] sm:$0xff] %v6958_v28  ;;  %v6977_v28 = vmul.f32 %v10198_v4, %v10198_v4  ;;  %v1885_v4 = vmul.f32 %v6950_v22, %v6826_v15  ;;  %v1696_v12 = vadd.f32 %v1632_v47, %v6761_v62  ;;  %v10210_v62 = vld [vmem:[#allocation66_spill] sm:$0xff] }
 0x21d   : > { %10193 = vst [vmem:[#allocation109_spill] sm:$0xff] %v6965_v52  ;;  %v5660_v52 = vld [vmem:[#allocation6 + $0x114] sm:$0xf]  ;;  %v7019_v47 = vmul.f32 %v10210_v62, %v10210_v62 }
 0x21e   : > { %10195 = vst [vmem:[#allocation110_spill] sm:$0xff] %v6969_v35  ;;  %v10202_v35 = vld [vmem:[#allocation63_spill] sm:$0xff]  ;;  %v5303_v56 = vor.u32 %v5660_v52, %v5300_v26  ;;  %v1886_v24 = vmul.f32 %v6950_v22, %v1885_v4  ;;  %v7031_v52 = vadd.f32 1.1754944e-38, %v1695_v9  ;;  %v7033_v33 = vpop.f32.mrf.mxu0  ;;  %v1697_v4 = vadd.f32 %v1633_v57, %v6772_v32  ;;  %v10216_v9 = vld [vmem:[#allocation69_spill] sm:$0xff] }
 0x21f   : > { %10197 = vst [vmem:[#allocation111_spill] sm:$0xff] %v6973_v23  ;;  %v6988_v29 = vmul.f32 %v10202_v35, %v10202_v35  ;;  %v5676_v62 = vld [vmem:[#allocation6 + $0x194] sm:$0xf]  ;;  %v1499_v49 = vpop.f32.mrf.mxu3  ;;  %v6023_v32 = vld [vmem:[%s6284_s21 + $0x68] sm:$0xff] }
 0x220   : > { %10199 = vst [vmem:[#allocation112_spill] sm:$0xff] %v6977_v28  ;;  %v6993_v28 = vpop.eup %5909  ;;  %3251 = vmatpush.bf16.msra.mxu2 %v5303_v56  ;;  %v7047_v56 = vmul.f32 %v10216_v9, %v10216_v9  ;;  %1274 = vmatmul.bf16.gmra.mxu0 %v6023_v32  ;;  %v1887_v46 = vmul.f32 0.5, %v1886_v24  ;;  %5913 = vrsqrt.f32 %v7031_v52  ;;  %v10221_v24 = vld [vmem:[#allocation70_spill] sm:$0xff]  ;;  %vm1920_vm14 = vweird.f32 %v7031_v52 }
 0x221   : > { %10201 = vst [vmem:[#allocation113_spill] sm:$0xff] %v6984_v30  ;;  %v10204_v30 = vld [vmem:[#allocation64_spill] sm:$0xff]  ;;  %v1895_v26 = vmul.f32 %v6993_v28, %v6881_v36  ;;  %1452 = vmatmul.bf16.gmra.mxu2 %v6023_v32  ;;  %vm1901_vm10 = vweird.f32 %v6993_v28 }
 0x222   : > { %10203 = vst [vmem:[#allocation114_spill] sm:$0xff] %v6988_v29  ;;  %v7003_v35 = vmul.f32 %v10204_v30, %v10204_v30  ;;  %v10206_v29 = vld [vmem:[#allocation65_spill] sm:$0xff]  ;;  %v1877_v30 = vmul.f32 0.5, %v1876_v21  ;;  %v10214_v21 = vld [vmem:[#allocation68_spill] sm:$0xff]  ;;  %vm7211_vm11 = vmor %vm1900_vm7, %vm1901_vm10 }
 0x223   : > { %v7007_v23 = vmul.f32 %v10206_v29, %v10206_v29  ;;  %10211 = vst [vmem:[#allocation117_spill] sm:$0xff] %v7019_v47  ;;  %v1868_v29 = vsub.f32 1.5, %v1867_v48  ;;  %v5364_v47 = vld [vmem:[#allocation6 + $0x198] sm:$0xf0]  ;;  %v7037_v11 = vmul.f32 %v10214_v21, %v10214_v21  ;;  %v7040_v48 = vadd.f32 1.1754944e-38, %v1696_v12 }
 0x224   : > { %10205 = vst [vmem:[#allocation115_spill] sm:$0xff] %v7003_v35  ;;  %v10212_v35 = vld [vmem:[#allocation67_spill] sm:$0xff]  ;;  %v1698_v21 = vadd.f32 %v1634_v59, %v6780_v10  ;;  %v1878_v41 = vsub.f32 1.5, %v1877_v30  ;;  %v1635_v12 = vmul.f32 %v6806_v44, %v6806_v44  ;;  %v5367_v57 = vor.u32 %v5676_v62, %v5364_v47  ;;  %v7085_v47 = vpop.eup %5911 }
 0x225   : > { %10207 = vst [vmem:[#allocation116_spill] sm:$0xff] %v7007_v23  ;;  %v1410_v23 = vpop.f32.mrf.mxu2  ;;  %v7026_v40 = vmul.f32 %v10212_v35, %v10212_v35  ;;  %v7043_v35 = vpop.f32.mrf.mxu1  ;;  %v1896_v9 = vmul.f32 %v6993_v28, %v1895_v26  ;;  %5915 = vrsqrt.f32 %v7040_v48  ;;  %v7066_v10 = vadd.f32 1.1754944e-38, %v1697_v4  ;;  %v10223_v62 = vld [vmem:[#allocation71_spill] sm:$0xff] }
 0x226   : > { %10215 = vst [vmem:[#allocation119_spill] sm:$0xff] %v7037_v11  ;;  %v1869_v11 = vmul.f32 %v6828_v43, %v1868_v29  ;;  %3340 = vmatpush.bf16.msra.mxu3 %v5367_v57  ;;  %v7069_v30 = vadd.f32 %v1321_v50, %v6948_v7  ;;  %v7071_v29 = vadd.f32 %v1499_v49, %v1410_v23  ;;  %v10225_v50 = vld [vmem:[#allocation72_spill] sm:$0xff]  ;;  %v10227_v23 = vld [vmem:[#allocation75_spill] sm:$0xff]  ;;  %vm1911_vm13 = vweird.f32 %v7085_v47 }
 0x227   : > { %10213 = vst [vmem:[#allocation118_spill] sm:$0xff] %v7026_v40  ;;  %v7050_v40 = vmul.f32 %v6654_v31, %v1863_v13  ;;  %v7062_v13 = vadd.f32 %v6946_v19, %v6930_v42  ;;  %v7075_v59 = vmul.f32 %v10221_v24, %v10221_v24  ;;  %v7079_v19 = vmul.f32 %v10223_v62, %v10223_v62  ;;  %v1502_v32 = vpop.f32.mrf.mxu3  ;;  %v10230_v24 = vld [vmem:[#allocation73_spill] sm:$0xff]  ;;  %v5677_v49 = vld [vmem:[#allocation6 + $0x194] sm:$0xf0] }
 0x228   : > { %10217 = vst [vmem:[#allocation120_spill] sm:$0xff] %v7047_v56  ;;  %v10218_v56 = vld [vmem:[#allocation26_spill] sm:$0xff]  ;;  %v7082_v42 = vadd.f32 1.1754944e-38, %v1698_v21  ;;  %v7089_v7 = vmul.f32 %v10225_v50, %v10225_v50  ;;  %v2781_v26 = vmul.f32 %v6688_v14, %v10227_v23  ;;  %v1699_v37 = vadd.f32 %v1635_v12, %v6784_v2  ;;  %v1237_v23 = vpop.f32.mrf.mxu0  ;;  %v5298_v2 = vld [vmem:[#allocation6 + $0x110] sm:$0xf] }
 0x229   : > { %1363 = vmatmul.bf16.gmra.mxu1 %v10218_v56  ;;  %10219 = vst [vmem:[#allocation26_spill] sm:$0xff] %v7069_v30  ;;  %1541 = vmatmul.bf16.gmra.mxu3 %v10218_v56  ;;  %v2527_v4 = vsub.f32 1.0, %v7050_v40  ;;  %v1873_v56 = vsel %vm7095_vm2, %v6828_v43, %v1869_v11  ;;  %v1879_v57 = vmul.f32 %v6884_v25, %v1878_v41  ;;  %v1888_v62 = vsub.f32 1.5, %v1887_v46  ;;  %v5661_v40 = vld [vmem:[#allocation6 + $0x114] sm:$0xf0]  ;;  %v10231_v43 = vld [vmem:[#allocation74_spill] sm:$0xff]  ;;  %vm7269_vm2 = vmor %vm1910_vm12, %vm1911_vm13 }
 0x22a   : > { %10220 = vst [vmem:[#allocation121_spill] sm:$0xff] %v7071_v29  ;;  %v1636_v14 = vmul.f32 %v6905_v8, %v6905_v8  ;;  %v2779_v50 = vmul.f32 %v6683_v6, %v10230_v24  ;;  %5917 = vrsqrt.f32 %v7066_v10  ;;  %v2780_v41 = vmul.f32 %v6706_v1, %v10231_v43 }
 0x22b   : > { %10222 = vst [vmem:[#allocation122_spill] sm:$0xff] %v7075_v59  ;;  %v1897_v59 = vmul.f32 0.5, %v1896_v9  ;;  %v1905_v11 = vmul.f32 %v7085_v47, %v6996_v61  ;;  %5919 = vrsqrt.f32 %v7082_v42  ;;  %v2464_v9 = vmul.f32 %v6669_v27, %v1873_v56 }
 0x22c   : > { %10224 = vst [vmem:[#allocation123_spill] sm:$0xff] %v7079_v19  ;;  %v7121_v46 = vpack.c.bf16 %v2781_v26, %v2779_v50  ;;  %v7131_v1 = vadd.f32 1.1754944e-38, %v1699_v37  ;;  %v1883_v43 = vsel %vm7126_vm5, %v6884_v25, %v1879_v57  ;;  %v1700_v50 = vadd.f32 %v1636_v14, %v6788_v63 }
 0x22d   : > { %10226 = vst [vmem:[#allocation124_spill] sm:$0xff] %v7089_v7  ;;  %v1413_v21 = vpop.f32.mrf.mxu2  ;;  %v1326_v12 = vpop.f32.mrf.mxu1  ;;  %v1637_v26 = vmul.f32 %v6907_v5, %v6907_v5  ;;  %v5299_v56 = vor.u32 %v5661_v40, %v5298_v2  ;;  %v7140_v19 = vmax.f32 %v2527_v4, 0.0  ;;  %v1889_v8 = vmul.f32 %v6950_v22, %v1888_v62 }
 0x22e   : > { %v7111_v7 = vpop.eup %5913  ;;  %v1898_v37 = vsub.f32 1.5, %v1897_v59  ;;  %v1906_v44 = vmul.f32 %v7085_v47, %v1905_v11  ;;  %v5363_v63 = vor.u32 %v5677_v49, %v5362_v20  ;;  %v2528_v2 = vsub.f32 1.0, %v2464_v9 }
 0x22f   : > { %v7119_v6 = vpop.eup %5915  ;;  %10234 = vst [vmem:[#allocation75_spill] sm:$0xff] %v7140_v19  ;;  %v1915_v25 = vmul.f32 %v7111_v7, %v7031_v52  ;;  %3073 = vmatpush.bf16.msra.mxu0 %v5299_v56  ;;  %v2465_v4 = vmul.f32 %v6654_v31, %v1883_v43  ;;  %5921 = vrsqrt.f32 %v7131_v1  ;;  %v7155_v59 = vadd.f32 %v7043_v35, %v7033_v33  ;;  %v1504_v35 = vpop.f32.mrf.mxu3  ;;  %v10238_v43 = vld [vmem:[#allocation76_spill] sm:$0xff] }
 0x230   : > { %v1925_v57 = vmul.f32 %v7119_v6, %v7040_v48  ;;  %v7149_v14 = vpop.eup %5917  ;;  %v7165_v24 = vadd.f32 1.1754944e-38, %v1700_v50  ;;  %v1701_v9 = vadd.f32 %v1637_v26, %v6792_v60  ;;  %3162 = vmatpush.bf16.msra.mxu1 %v5363_v63  ;;  %v7168_v20 = vadd.f32 %v1502_v32, %v1413_v21  ;;  %v1240_v33 = vpop.f32.mrf.mxu0  ;;  %v10240_v63 = vld [vmem:[#allocation31_spill] sm:$0xff] }
 0x231   : > { %10235 = vst [vmem:[#allocation73_spill] sm:$0xff] %v7155_v59  ;;  %v7157_v40 = vpop.eup %5919  ;;  %v7170_v49 = vadd.f32 %v1326_v12, %v1237_v23  ;;  %v2782_v56 = vmul.f32 %v6714_v0, %v10238_v43  ;;  %v1893_v15 = vsel %vm7161_vm9, %v6950_v22, %v1889_v8  ;;  %v1899_v50 = vmul.f32 %v6993_v28, %v1898_v37  ;;  %v6024_v37 = vld [vmem:[%s6284_s21 + $0x70] sm:$0xff] }
 0x232   : > { %v1907_v26 = vmul.f32 0.5, %v1906_v44  ;;  %v1916_v21 = vmul.f32 %v7111_v7, %v1915_v25  ;;  %v1926_v32 = vmul.f32 %v7119_v6, %v1925_v57  ;;  %v1935_v12 = vmul.f32 %v7149_v14, %v7066_v10  ;;  %1279 = vmatmul.bf16.gmra.mxu0 %v6024_v37  ;;  %1457 = vmatmul.bf16.gmra.mxu2 %v6024_v37 }
 0x233   : > { %v1945_v0 = vmul.f32 %v7157_v40, %v7082_v42  ;;  %v1638_v22 = vmul.f32 %v7062_v13, %v7062_v13  ;;  %v7192_v44 = vmax.f32 %v2528_v2, 0.0  ;;  %v2529_v25 = vsub.f32 1.0, %v2465_v4 }
 0x234   : > { %5923 = vrsqrt.f32 %v7165_v24  ;;  %v7195_v57 = vadd.f32 1.1754944e-38, %v1701_v9  ;;  %v7200_v11 = vpack.c.bf16 %v2782_v56, %v2780_v41  ;;  %v1639_v4 = vmul.f32 %v7069_v30, %v7069_v30 }
 0x235   : > { %v1415_v62 = vpop.f32.mrf.mxu2  ;;  %v1329_v60 = vpop.f32.mrf.mxu1  ;;  %10239 = vst [vmem:[#allocation74_spill] sm:$0xff] %v7192_v44  ;;  %v1903_v41 = vsel %vm7211_vm11, %v6993_v28, %v1899_v50  ;;  %v1908_v9 = vsub.f32 1.5, %v1907_v26  ;;  %v1927_v43 = vmul.f32 0.5, %v1926_v32  ;;  %v1936_v36 = vmul.f32 %v7149_v14, %v1935_v12 }
 0x236   : > { %v7181_v23 = vadd.f32 %v1504_v35, %v1415_v62  ;;  %v7189_v8 = vadd.f32 %v1329_v60, %v1240_v33  ;;  %v7198_v62 = vpop.eup %5921  ;;  %v7204_v35 = vmul.f32 %v7140_v19, %v6667_v34  ;;  %v2466_v33 = vmul.f32 %v6669_v27, %v1893_v15 }
 0x237   : > { %v1917_v34 = vmul.f32 0.5, %v1916_v21  ;;  %v1946_v56 = vmul.f32 %v7157_v40, %v1945_v0  ;;  %v1702_v15 = vadd.f32 %v1638_v22, %v6796_v45  ;;  %v7227_v19 = vmul.f32 %v7192_v44, %v6692_v38  ;;  %v1507_v26 = vpop.f32.mrf.mxu3 }
 0x238   : > { %v7229_v28 = vmax.f32 %v2529_v25, 0.0  ;;  %v1955_v50 = vmul.f32 %v7198_v62, %v7131_v1  ;;  %5925 = vrsqrt.f32 %v7195_v57  ;;  %v7234_v21 = vpop.f32.mrf.mxu0  ;;  %v2530_v32 = vsub.f32 1.0, %v2466_v33 }
 0x239   : > { %1368 = vmatmul.bf16.gmra.mxu1 %v10240_v63  ;;  %1546 = vmatmul.bf16.gmra.mxu3 %v10240_v63  ;;  %v1703_v45 = vadd.f32 %v1639_v4, %v6800_v17  ;;  %v2467_v0 = vmul.f32 %v6654_v31, %v1903_v41  ;;  %v1909_v22 = vmul.f32 %v7085_v47, %v1908_v9  ;;  %v1918_v37 = vsub.f32 1.5, %v1917_v34  ;;  %v5658_v4 = vld [vmem:[#allocation6 + $0x104] sm:$0xf]  ;;  %v5292_v41 = vld [vmem:[#allocation6 + $0x108] sm:$0xf0] }
 0x23a   : > { %10243 = vst [vmem:[#allocation76_spill] sm:$0xff] %v7229_v28  ;;  %v7241_v38 = vpop.eup %5923  ;;  %v1928_v63 = vsub.f32 1.5, %v1927_v43  ;;  %v1937_v2 = vmul.f32 0.5, %v1936_v36  ;;  %v1947_v33 = vmul.f32 0.5, %v1946_v56  ;;  %v7247_v44 = vadd.f32 1.1754944e-38, %v1702_v15 }
 0x23b   : > { %v2785_v30 = vmul.f32 %v7229_v28, %v6710_v16  ;;  %vm1921_vm15 = vweird.f32 %v7111_v7  ;;  %vm1930_vm0 = vweird.f32 %v7040_v48  ;;  %v1956_v17 = vmul.f32 %v7198_v62, %v1955_v50  ;;  %v5674_v9 = vld [vmem:[#allocation6 + $0x184] sm:$0xf]  ;;  %v5356_v56 = vld [vmem:[#allocation6 + $0x188] sm:$0xf0]  ;;  %v10252_v48 = vld [vmem:[#allocation36_spill] sm:$0xff] }
 0x23c   : > { %vm1940_vm1 = vweird.f32 %v7066_v10  ;;  %v1965_v34 = vmul.f32 %v7241_v38, %v7165_v24  ;;  %v7257_v43 = vadd.f32 1.1754944e-38, %v1703_v45  ;;  %v1640_v36 = vmul.f32 %v7071_v29, %v7071_v29  ;;  %vm7298_vm4 = vmor %vm1920_vm14, %vm1921_vm15 }
 0x23d   : > { %v1418_v60 = vpop.f32.mrf.mxu2  ;;  %v7239_v12 = vpop.f32.mrf.mxu1  ;;  %v5295_v16 = vor.u32 %v5658_v4, %v5292_v41  ;;  %v2531_v50 = vsub.f32 1.0, %v2467_v0  ;;  %v1641_v45 = vmul.f32 %v7155_v59, %v7155_v59  ;;  %v5359_v28 = vor.u32 %v5674_v9, %v5356_v56 }
 0x23e   : > { %v7245_v25 = vadd.f32 %v1507_v26, %v1418_v60  ;;  %v7261_v15 = vpop.eup %5925  ;;  %v7263_v60 = vmax.f32 %v2530_v32, 0.0  ;;  %v1913_v4 = vsel %vm7269_vm2, %v7085_v47, %v1909_v22  ;;  %v1919_v32 = vmul.f32 %v7111_v7, %v1918_v37 }
 0x23f   : > { %v1929_v0 = vmul.f32 %v7119_v6, %v1928_v63  ;;  %vm1931_vm3 = vweird.f32 %v7119_v6  ;;  %3252 = vmatpush.bf16.msra.mxu2 %v5295_v16  ;;  %v1938_v61 = vsub.f32 1.5, %v1937_v2  ;;  %v1948_v41 = vsub.f32 1.5, %v1947_v33  ;;  %3341 = vmatpush.bf16.msra.mxu3 %v5359_v28  ;;  %v7289_v37 = vpop.f32.mrf.mxu3 }
 0x240   : > { %10244 = vst [vmem:[#allocation31_spill] sm:$0xff] %v7263_v60  ;;  %v1957_v29 = vmul.f32 0.5, %v1956_v17  ;;  %5927 = vrsqrt.f32 %v7247_v44  ;;  %v1966_v59 = vmul.f32 %v7241_v38, %v1965_v34  ;;  %v1975_v9 = vmul.f32 %v7261_v15, %v7195_v57  ;;  %v7304_v33 = vpop.f32.mrf.mxu0  ;;  %vm7319_vm6 = vmor %vm1930_vm0, %vm1931_vm3 }
 0x241   : > { %5929 = vrsqrt.f32 %v7257_v43  ;;  %v1704_v47 = vadd.f32 %v1640_v36, %v6804_v54  ;;  %v7291_v63 = vmax.f32 %v2531_v50, 0.0  ;;  %v2468_v2 = vmul.f32 %v6669_v27, %v1913_v4  ;;  %v5290_v4 = vld [vmem:[#allocation6 + $0x100] sm:$0xf] }
 0x242   : > { %vm1950_vm5 = vweird.f32 %v7082_v42  ;;  %v1705_v54 = vadd.f32 %v1641_v45, %v6810_v3  ;;  %v7310_v34 = vmul.f32 %v7263_v60, %v6731_v51  ;;  %v1923_v52 = vsel %vm7298_vm4, %v7111_v7, %v1919_v32  ;;  %v6025_v3 = vld [vmem:[%s6284_s21 + $0x78] sm:$0xff]  ;;  %v5659_v32 = vld [vmem:[#allocation6 + $0x104] sm:$0xf0] }
 0x243   : > { %10247 = vst [vmem:[#allocation125_spill] sm:$0xff] %v7291_v63  ;;  %vm1941_vm7 = vweird.f32 %v7149_v14  ;;  %vm1951_vm8 = vweird.f32 %v7157_v40  ;;  %1284 = vmatmul.bf16.gmra.mxu0 %v6025_v3  ;;  %v1933_v51 = vsel %vm7319_vm6, %v7119_v6, %v1929_v0  ;;  %v1939_v7 = vmul.f32 %v7149_v14, %v1938_v61  ;;  %v5675_v61 = vld [vmem:[#allocation6 + $0x184] sm:$0xf0]  ;;  %1462 = vmatmul.bf16.gmra.mxu2 %v6025_v3 }
 0x244   : > { %v1949_v16 = vmul.f32 %v7157_v40, %v1948_v41  ;;  %v1958_v56 = vsub.f32 1.5, %v1957_v29  ;;  %v1967_v50 = vmul.f32 0.5, %v1966_v59  ;;  %v1976_v26 = vmul.f32 %v7261_v15, %v1975_v9  ;;  %vm7348_vm9 = vmor %vm1940_vm1, %vm1941_vm7 }
 0x245   : > { %v7287_v22 = vpop.f32.mrf.mxu2  ;;  %v7306_v17 = vpop.f32.mrf.mxu1  ;;  %v7333_v45 = vadd.f32 1.1754944e-38, %v1704_v47  ;;  %v7336_v28 = vpack.c.bf16 %v2785_v30, %v7204_v35  ;;  %v7342_v6 = vmul.f32 %v7291_v63, %v6680_v18  ;;  %v2532_v0 = vsub.f32 1.0, %v2468_v2  ;;  %v5354_v35 = vld [vmem:[#allocation6 + $0x180] sm:$0xf]  ;;  %vm7365_vm10 = vmor %vm1950_vm5, %vm1951_vm8 }
 0x246   : > { %v7338_v60 = vpop.eup %5927  ;;  %v7352_v59 = vadd.f32 1.1754944e-38, %v1705_v54  ;;  %v1642_v30 = vmul.f32 %v7168_v20, %v7168_v20  ;;  %v2469_v41 = vmul.f32 %v6654_v31, %v1923_v52  ;;  %v2470_v10 = vmul.f32 %v6669_v27, %v1933_v51 }
 0x247   : > { %v7357_v18 = vpop.eup %5929  ;;  %vm1961_vm11 = vweird.f32 %v7198_v62  ;;  %v1643_v47 = vmul.f32 %v7170_v49, %v7170_v49  ;;  %v1943_v2 = vsel %vm7348_vm9, %v7149_v14, %v1939_v7  ;;  %v1953_v54 = vsel %vm7365_vm10, %v7157_v40, %v1949_v16 }
 0x248   : > { %v1959_v52 = vmul.f32 %v7198_v62, %v1958_v56  ;;  %v5291_v42 = vor.u32 %v5659_v32, %v5290_v4  ;;  %v1968_v36 = vsub.f32 1.5, %v1967_v50  ;;  %v1977_v3 = vmul.f32 0.5, %v1976_v26  ;;  %v1512_v50 = vpop.f32.mrf.mxu3 }
 0x249   : > { %1373 = vmatmul.bf16.gmra.mxu1 %v10252_v48  ;;  %1551 = vmatmul.bf16.gmra.mxu3 %v10252_v48  ;;  %5931 = vrsqrt.f32 %v7333_v45  ;;  %v5355_v51 = vor.u32 %v5675_v61, %v5354_v35  ;;  %v1985_v48 = vmul.f32 %v7338_v60, %v7247_v44  ;;  %v1995_v63 = vmul.f32 %v7357_v18, %v7257_v43 }
 0x24a   : > { %5933 = vrsqrt.f32 %v7352_v59  ;;  %v1706_v14 = vadd.f32 %v1642_v30, %v6814_v39  ;;  %3074 = vmatpush.bf16.msra.mxu0 %v5291_v42  ;;  %v2533_v40 = vsub.f32 1.0, %v2469_v41  ;;  %vm1960_vm12 = vweird.f32 %v7131_v1  ;;  %v7403_v1 = vpop.f32.mrf.mxu0  ;;  %v10267_v39 = vld [vmem:[#allocation79_spill] sm:$0xff] }
 0x24b   : > { %v1707_v7 = vadd.f32 %v1643_v47, %v6818_v58  ;;  %v1644_v16 = vmul.f32 %v7181_v23, %v7181_v23  ;;  %3163 = vmatpush.bf16.msra.mxu1 %v5355_v51  ;;  %v7390_v26 = vmax.f32 %v2532_v0, 0.0  ;;  %v2534_v4 = vsub.f32 1.0, %v2470_v10  ;;  %vm7395_vm13 = vmor %vm1960_vm12, %vm1961_vm11 }
 0x24c   : > { %v2471_v32 = vmul.f32 %v6654_v31, %v1943_v2  ;;  %v7401_v58 = vadd.f32 %v7289_v37, %v7287_v22  ;;  %v2472_v0 = vmul.f32 %v6669_v27, %v1953_v54  ;;  %v1963_v30 = vsel %vm7395_vm13, %v7198_v62, %v1959_v52 }
 0x24d   : > { %v1423_v56 = vpop.f32.mrf.mxu2  ;;  %10257 = vst [vmem:[#allocation36_spill] sm:$0xff] %v7390_v26  ;;  %v7405_v29 = vpop.f32.mrf.mxu1  ;;  %v1969_v35 = vmul.f32 %v7241_v38, %v1968_v36  ;;  %vm1971_vm14 = vweird.f32 %v7241_v38  ;;  %v1978_v61 = vsub.f32 1.5, %v1977_v3  ;;  %v1986_v41 = vmul.f32 %v7338_v60, %v1985_v48 }
 0x24e   : > { %10260 = vst [vmem:[#allocation126_spill] sm:$0xff] %v7401_v58  ;;  %v1996_v22 = vmul.f32 %v7357_v18, %v1995_v63  ;;  %v7415_v37 = vadd.f32 1.1754944e-38, %v1706_v14  ;;  %v7419_v9 = vmax.f32 %v2533_v40, 0.0  ;;  %vm1970_vm15 = vweird.f32 %v7165_v24 }
 0x24f   : > { %v7417_v10 = vpop.eup %5931  ;;  %v7422_v47 = vadd.f32 1.1754944e-38, %v1707_v7  ;;  %v1708_v62 = vadd.f32 %v1644_v16, %v6823_v55  ;;  %v7427_v54 = vmax.f32 %v2534_v4, 0.0  ;;  %v2535_v52 = vsub.f32 1.0, %v2471_v32  ;;  %vm7429_vm0 = vmor %vm1970_vm15, %vm1971_vm14  ;;  %v10266_v4 = vld [vmem:[#allocation78_spill] sm:$0xff] }
 0x250   : > { %10261 = vst [vmem:[#allocation127_spill] sm:$0xff] %v7419_v9  ;;  %v7425_v2 = vpop.eup %5933  ;;  %v1645_v63 = vmul.f32 %v7189_v8, %v7189_v8  ;;  %v7437_v36 = vadd.f32 %v7306_v17, %v7304_v33  ;;  %v2536_v24 = vsub.f32 1.0, %v2472_v0  ;;  %v2473_v3 = vmul.f32 %v6654_v31, %v1963_v30 }
 0x251   : > { %10262 = vst [vmem:[#allocation128_spill] sm:$0xff] %v7427_v54  ;;  %v1973_v55 = vsel %vm7429_vm0, %v7241_v38, %v1969_v35  ;;  %vm1981_vm1 = vweird.f32 %v7261_v15  ;;  %v1979_v51 = vmul.f32 %v7261_v15, %v1978_v61  ;;  %v1987_v48 = vmul.f32 0.5, %v1986_v41 }
 0x252   : > { %v1997_v14 = vmul.f32 0.5, %v1996_v22  ;;  %5935 = vrsqrt.f32 %v7415_v37  ;;  %v2005_v40 = vmul.f32 %v7417_v10, %v7333_v45  ;;  %v2015_v33 = vmul.f32 %v7425_v2, %v7352_v59 }
 0x253   : > { %5937 = vrsqrt.f32 %v7422_v47  ;;  %v7451_v17 = vadd.f32 1.1754944e-38, %v1708_v62  ;;  %3075 = vmatmul.bf16.vlgmr.msra.gmra.mxu0 %v7121_v46  ;;  %v7454_v38 = vmax.f32 %v2535_v52, 0.0  ;;  %vm1980_vm2 = vweird.f32 %v7195_v57  ;;  %v1250_v52 = vpop.f32.mrf.mxu0  ;;  %3253 = vmatmul.bf16.vlgmr.msra.gmra.mxu2 %v7121_v46 }
 0x254   : > { %v1709_v7 = vadd.f32 %v1645_v63, %v6832_v53  ;;  %v7458_v16 = vadd.f32 %v1512_v50, %v1423_v56  ;;  %v7463_v32 = vmul.f32 %v7390_v26, %v10266_v4  ;;  %v7467_v0 = vmul.f32 %v7419_v9, %v10267_v39  ;;  %vm7474_vm3 = vmor %vm1980_vm2, %vm1981_vm1  ;;  %v7480_v56 = vpop.f32.mrf.mxu3  ;;  %v10271_v50 = vld [vmem:[#allocation80_spill] sm:$0xff] }
 0x255   : > { %10265 = vst [vmem:[#allocation129_spill] sm:$0xff] %v7454_v38  ;;  %v7469_v30 = vmax.f32 %v2536_v24, 0.0  ;;  %v2474_v35 = vmul.f32 %v6669_v27, %v1973_v55  ;;  %v7478_v57 = vpop.f32.mrf.mxu2  ;;  %v7484_v61 = vmul.f32 %v7427_v54, %v10271_v50  ;;  %v2537_v41 = vsub.f32 1.0, %v2473_v3  ;;  %v1339_v42 = vpop.f32.mrf.mxu1  ;;  %v10272_v3 = vld [vmem:[#allocation82_spill] sm:$0xff]  ;;  %v5476_v9 = vld [vmem:[#allocation6 + $0x78] sm:$0xf0] }
 0x256   : > { %v1983_v22 = vsel %vm7474_vm3, %v7261_v15, %v1979_v51  ;;  %v1988_v62 = vsub.f32 1.5, %v1987_v48  ;;  %v1998_v63 = vsub.f32 1.5, %v1997_v14  ;;  %v2006_v24 = vmul.f32 %v7417_v10, %v2005_v40  ;;  %v10273_v14 = vld [vmem:[#allocation83_spill] sm:$0xff]  ;;  %v10284_v54 = vld [vmem:[#allocation86_spill] sm:$0xff] }
 0x257   : > { %10268 = vst [vmem:[#allocation78_spill] sm:$0xff] %v7469_v30  ;;  %v2016_v55 = vmul.f32 %v7425_v2, %v2015_v33  ;;  %5939 = vrsqrt.f32 %v7451_v17  ;;  %v7498_v39 = vmul.f32 %v7454_v38, %v10272_v3  ;;  %v7500_v15 = vadd.f32 1.1754944e-38, %v1709_v7 }
 0x258   : > { %v7494_v4 = vpop.eup %5935  ;;  %v1646_v46 = vmul.f32 %v7245_v25, %v7245_v25  ;;  %v7506_v51 = vadd.f32 %v7239_v12, %v7234_v21  ;;  %v2538_v40 = vsub.f32 1.0, %v2474_v35  ;;  %v2475_v33 = vmul.f32 %v6654_v31, %v1983_v22 }
 0x259   : > { %3164 = vmatmul.bf16.vlgmr.msra.gmra.mxu1 %v7200_v11  ;;  %3342 = vmatmul.bf16.vlgmr.msra.gmra.mxu3 %v7200_v11  ;;  %v7508_v48 = vpop.eup %5937  ;;  %v7512_v11 = vmul.f32 %v7469_v30, %v10273_v14  ;;  %vm1990_vm4 = vweird.f32 %v7247_v44  ;;  %v7516_v7 = vmax.f32 %v2537_v41, 0.0  ;;  %v1989_v53 = vmul.f32 %v7338_v60, %v1988_v62  ;;  %v10276_v41 = vld [vmem:[#allocation85_spill] sm:$0xff]  ;;  %v5656_v44 = vld [vmem:[#allocation6 + $0xf4] sm:$0xf] }
 0x25a   : > { %vm1991_vm5 = vweird.f32 %v7338_v60  ;;  %vm2001_vm6 = vweird.f32 %v7357_v18  ;;  %v1999_v21 = vmul.f32 %v7357_v18, %v1998_v63  ;;  %v2007_v12 = vmul.f32 0.5, %v2006_v24 }
 0x25b   : > { %10274 = vst [vmem:[#allocation79_spill] sm:$0xff] %v7512_v11  ;;  %v2017_v50 = vmul.f32 0.5, %v2016_v55  ;;  %v2025_v3 = vmul.f32 %v7494_v4, %v7415_v37  ;;  %v2035_v35 = vmul.f32 %v7508_v48, %v7422_v47  ;;  %5941 = vrsqrt.f32 %v7500_v15  ;;  %vm7536_vm7 = vmor %vm1990_vm4, %vm1991_vm5  ;;  %v7570_v11 = vpop.f32.mrf.mxu0 }
 0x25c   : > { %10275 = vst [vmem:[#allocation80_spill] sm:$0xff] %v7516_v7  ;;  %v1710_v22 = vadd.f32 %v1646_v46, %v10276_v41  ;;  %v1647_v62 = vmul.f32 %v7506_v51, %v7506_v51  ;;  %v7532_v30 = vmax.f32 %v2538_v40, 0.0  ;;  %v2539_v63 = vsub.f32 1.0, %v2475_v33  ;;  %v10280_v46 = vld [vmem:[#allocation84_spill] sm:$0xff] }
 0x25d   : > { %v7530_v14 = vpop.eup %5939  ;;  %vm2000_vm8 = vweird.f32 %v7257_v43  ;;  %v2846_v55 = vpack.c.bf16 %v7310_v34, %v7227_v19  ;;  %v7545_v41 = vmul.f32 %v7516_v7, %v10280_v46  ;;  %v1993_v40 = vsel %vm7536_vm7, %v7338_v60, %v1989_v53  ;;  %v1428_v60 = vpop.f32.mrf.mxu2 }
 0x25e   : > { %10277 = vst [vmem:[#allocation82_spill] sm:$0xff] %v7532_v30  ;;  %vm7552_vm9 = vmor %vm2000_vm8, %vm2001_vm6  ;;  %v1648_v43 = vmul.f32 %v7401_v58, %v7401_v58  ;;  %v7558_v33 = vadd.f32 %v1339_v42, %v1250_v52  ;;  %v2008_v34 = vsub.f32 1.5, %v2007_v12  ;;  %v2018_v46 = vsub.f32 1.5, %v2017_v50  ;;  %v1517_v53 = vpop.f32.mrf.mxu3  ;;  %v5640_v42 = vld [vmem:[#allocation6 + $0x74] sm:$0xf] }
 0x25f   : > { %v2003_v19 = vsel %vm7552_vm9, %v7357_v18, %v1999_v21  ;;  %v2026_v24 = vmul.f32 %v7494_v4, %v2025_v3  ;;  %v2036_v38 = vmul.f32 %v7508_v48, %v2035_v35  ;;  %v2045_v7 = vmul.f32 %v7530_v14, %v7451_v17  ;;  %v7572_v18 = vpop.f32.mrf.mxu1  ;;  %v10285_v21 = vld [vmem:[#allocation21_spill] sm:$0xff]  ;;  %v5540_v58 = vld [vmem:[#allocation6 + $0xf8] sm:$0xf0] }
 0x260   : > { %10283 = vst [vmem:[#allocation83_spill] sm:$0xff] %v7558_v33  ;;  %v7567_v26 = vadd.f32 1.1754944e-38, %v1710_v22  ;;  %v1711_v52 = vadd.f32 %v1647_v62, %v10284_v54  ;;  %v7576_v12 = vmul.f32 %v7532_v30, %v10285_v21  ;;  %v7578_v50 = vmax.f32 %v2539_v63, 0.0  ;;  %v10288_v54 = vld [vmem:[#allocation87_spill] sm:$0xff] }
 0x261   : > { %vm2010_vm10 = vweird.f32 %v7333_v45  ;;  %v5479_v3 = vor.u32 %v5640_v42, %v5476_v9  ;;  %v7581_v35 = vpop.eup %5941  ;;  %v2476_v22 = vmul.f32 %v6669_v27, %v1993_v40  ;;  %vm2011_vm11 = vweird.f32 %v7417_v10 }
 0x262   : > { %10286 = vst [vmem:[#allocation85_spill] sm:$0xff] %v7576_v12  ;;  %vm2021_vm12 = vweird.f32 %v7425_v2  ;;  %v1712_v62 = vadd.f32 %v1648_v43, %v10288_v54  ;;  %v2477_v21 = vmul.f32 %v6654_v31, %v2003_v19  ;;  %v2009_v63 = vmul.f32 %v7417_v10, %v2008_v34  ;;  %vm7615_vm14 = vmor %vm2010_vm10, %vm2011_vm11 }
 0x263   : > { %10287 = vst [vmem:[#allocation84_spill] sm:$0xff] %v7578_v50  ;;  %v2019_v30 = vmul.f32 %v7425_v2, %v2018_v46  ;;  %v2027_v12 = vmul.f32 0.5, %v2026_v24  ;;  %3761 = vmatpush.bf16.msrb.mxu2 %v5479_v3  ;;  %3080 = vmatmul.bf16.gmra.mxu0 %v7336_v28  ;;  %v2037_v9 = vmul.f32 0.5, %v2036_v38  ;;  %v2046_v40 = vmul.f32 %v7530_v14, %v2045_v7  ;;  %v10294_v3 = vld [vmem:[#allocation88_spill] sm:$0xff] }
 0x264   : > { %5943 = vrsqrt.f32 %v7567_v26  ;;  %v7593_v42 = vadd.f32 1.1754944e-38, %v1711_v52  ;;  %v2055_v43 = vmul.f32 %v7581_v35, %v7500_v15  ;;  %v1649_v19 = vmul.f32 %v7437_v36, %v7437_v36  ;;  %3258 = vmatmul.bf16.gmra.mxu2 %v7336_v28 }
 0x265   : > { %v5543_v34 = vor.u32 %v5656_v44, %v5540_v58  ;;  %v7599_v46 = vadd.f32 %v1517_v53, %v1428_v60  ;;  %v2540_v24 = vsub.f32 1.0, %v2476_v22  ;;  %vm2020_vm13 = vweird.f32 %v7352_v59 }
 0x266   : > { %v7602_v38 = vadd.f32 1.1754944e-38, %v1712_v62  ;;  %v1650_v7 = vmul.f32 %v7458_v16, %v7458_v16  ;;  %v7609_v52 = vmul.f32 %v7578_v50, %v6907_v5  ;;  %v2028_v59 = vsub.f32 1.5, %v2027_v12  ;;  %vm7629_vm0 = vmor %vm2020_vm13, %vm2021_vm12  ;;  %v7641_v54 = vpop.f32.mrf.mxu3 }
 0x267   : > { %10289 = vst [vmem:[#allocation86_spill] sm:$0xff] %v7599_v46  ;;  %vm2030_vm15 = vweird.f32 %v7415_v37  ;;  %v7622_v60 = vadd.f32 %v7405_v29, %v7403_v1  ;;  %3850 = vmatpush.bf16.msrb.mxu3 %v5543_v34  ;;  %v2541_v28 = vsub.f32 1.0, %v2477_v21  ;;  %v2013_v5 = vsel %vm7615_vm14, %v7417_v10, %v2009_v63  ;;  %v7639_v10 = vpop.f32.mrf.mxu2 }
 0x268   : > { %v2047_v53 = vmul.f32 0.5, %v2046_v40  ;;  %5945 = vrsqrt.f32 %v7593_v42  ;;  %v2023_v1 = vsel %vm7629_vm0, %v7425_v2, %v2019_v30  ;;  %v2038_v29 = vsub.f32 1.5, %v2037_v9  ;;  %v1255_v2 = vpop.f32.mrf.mxu0  ;;  %v1344_v30 = vpop.f32.mrf.mxu1 }
 0x269   : > { %3169 = vmatmul.bf16.gmra.mxu1 %v2846_v55  ;;  %3347 = vmatmul.bf16.gmra.mxu3 %v2846_v55  ;;  %v2056_v12 = vmul.f32 %v7581_v35, %v2055_v43  ;;  %v1713_v22 = vadd.f32 %v1649_v19, %v10294_v3  ;;  %v7645_v44 = vmax.f32 %v2540_v24, 0.0  ;;  %vm2040_vm1 = vweird.f32 %v7422_v47  ;;  %v10296_v55 = vld [vmem:[#allocation89_spill] sm:$0xff]  ;;  %v5657_v47 = vld [vmem:[#allocation6 + $0xf4] sm:$0xf0] }
 0x26a   : > { %v7643_v62 = vpop.eup %5943  ;;  %5947 = vrsqrt.f32 %v7602_v38  ;;  %v1714_v21 = vadd.f32 %v1650_v7, %v10296_v55  ;;  %v2478_v63 = vmul.f32 %v6669_v27, %v2013_v5  ;;  %v2029_v9 = vmul.f32 %v7494_v4, %v2028_v59  ;;  %v5641_v55 = vld [vmem:[#allocation6 + $0x74] sm:$0xf0] }
 0x26b   : > { %10295 = vst [vmem:[#allocation21_spill] sm:$0xff] %v7645_v44  ;;  %vm2031_vm2 = vweird.f32 %v7494_v4  ;;  %v1651_v40 = vmul.f32 %v7622_v60, %v7622_v60  ;;  %v7655_v43 = vmax.f32 %v2541_v28, 0.0  ;;  %v2479_v19 = vmul.f32 %v6654_v31, %v2023_v1 }
 0x26c   : > { %vm2041_vm3 = vweird.f32 %v7508_v48  ;;  %v2048_v34 = vsub.f32 1.5, %v2047_v53  ;;  %v2039_v24 = vmul.f32 %v7508_v48, %v2038_v29  ;;  %v2057_v7 = vmul.f32 0.5, %v2056_v12  ;;  %vm7672_vm4 = vmor %vm2030_vm15, %vm2031_vm2 }
 0x26d   : > { %10297 = vst [vmem:[#allocation87_spill] sm:$0xff] %v7655_v43  ;;  %v7660_v58 = vadd.f32 1.1754944e-38, %v1713_v22  ;;  %v7662_v5 = vadd.f32 %v1344_v30, %v1255_v2  ;;  %v7668_v45 = vmul.f32 %v7645_v44, %v7062_v13  ;;  %vm2050_vm5 = vweird.f32 %v7451_v17  ;;  %v10301_v13 = vld [vmem:[#allocation90_spill] sm:$0xff]  ;;  %v5474_v22 = vld [vmem:[#allocation6 + $0x70] sm:$0xf]  ;;  %vm7699_vm6 = vmor %vm2040_vm1, %vm2041_vm3 }
 0x26e   : > { %v7664_v59 = vpop.eup %5945  ;;  %v2065_v53 = vmul.f32 %v7643_v62, %v7567_v26  ;;  %v7679_v1 = vadd.f32 1.1754944e-38, %v1714_v21  ;;  %v2542_v29 = vsub.f32 1.0, %v2478_v63  ;;  %v2033_v12 = vsel %vm7672_vm4, %v7494_v4, %v2029_v9  ;;  %v10303_v30 = vld [vmem:[#allocation26_spill] sm:$0xff] }
 0x26f   : > { %10298 = vst [vmem:[#allocation88_spill] sm:$0xff] %v7662_v5  ;;  %v1715_v3 = vadd.f32 %v1651_v40, %v10301_v13  ;;  %v7687_v37 = vadd.f32 %v7480_v56, %v7478_v57  ;;  %v7693_v44 = vmul.f32 %v7655_v43, %v10303_v30  ;;  %v2543_v21 = vsub.f32 1.0, %v2479_v19  ;;  %v5538_v40 = vld [vmem:[#allocation6 + $0xf0] sm:$0xf]  ;;  %v1522_v30 = vpop.f32.mrf.mxu3 }
 0x270   : > { %v7689_v2 = vpop.eup %5947  ;;  %v2049_v57 = vmul.f32 %v7530_v14, %v2048_v34  ;;  %vm2051_vm7 = vweird.f32 %v7530_v14  ;;  %v2043_v56 = vsel %vm7699_vm6, %v7508_v48, %v2039_v24  ;;  %v2058_v63 = vsub.f32 1.5, %v2057_v7  ;;  %v7734_v4 = vpop.f32.mrf.mxu0 }
 0x271   : > { %10302 = vst [vmem:[#allocation89_spill] sm:$0xff] %v7687_v37  ;;  %v2075_v9 = vmul.f32 %v7664_v59, %v7593_v42  ;;  %5949 = vrsqrt.f32 %v7660_v58  ;;  %v2480_v19 = vmul.f32 %v6669_v27, %v2033_v12  ;;  %v2066_v28 = vmul.f32 %v7643_v62, %v2065_v53  ;;  %vm7718_vm8 = vmor %vm2050_vm5, %vm2051_vm7  ;;  %v1433_v53 = vpop.f32.mrf.mxu2 }
 0x272   : > { %5951 = vrsqrt.f32 %v7679_v1  ;;  %v5475_v34 = vor.u32 %v5641_v55, %v5474_v22  ;;  %v7714_v13 = vmax.f32 %v2542_v29, 0.0  ;;  %v2085_v24 = vmul.f32 %v7689_v2, %v7602_v38 }
 0x273   : > { %v7724_v7 = vadd.f32 1.1754944e-38, %v1715_v3  ;;  %v1652_v12 = vmul.f32 %v7687_v37, %v7687_v37  ;;  %v2481_v22 = vmul.f32 %v6654_v31, %v2043_v56  ;;  %v2053_v17 = vsel %vm7718_vm8, %v7530_v14, %v2049_v57  ;;  %v7736_v3 = vpop.f32.mrf.mxu1 }
 0x274   : > { %10306 = vst [vmem:[#allocation90_spill] sm:$0xff] %v7714_v13  ;;  %v1653_v29 = vmul.f32 %v7558_v33, %v7558_v33  ;;  %3583 = vmatpush.bf16.msrb.mxu0 %v5475_v34  ;;  %v5539_v55 = vor.u32 %v5657_v47, %v5538_v40  ;;  %v7738_v50 = vmax.f32 %v2543_v21, 0.0  ;;  %v2059_v43 = vmul.f32 %v7581_v35, %v2058_v63  ;;  %v10311_v63 = vld [vmem:[#allocation91_spill] sm:$0xff] }
 0x275   : > { %vm2061_vm9 = vweird.f32 %v7581_v35  ;;  %v2076_v56 = vmul.f32 %v7664_v59, %v2075_v9  ;;  %v2544_v37 = vsub.f32 1.0, %v2480_v19  ;;  %vm2060_vm10 = vweird.f32 %v7500_v15  ;;  %v10312_v9 = vld [vmem:[#allocation121_spill] sm:$0xff] }
 0x276   : > { %10309 = vst [vmem:[#allocation26_spill] sm:$0xff] %v7738_v50  ;;  %v2067_v14 = vmul.f32 0.5, %v2066_v28  ;;  %3672 = vmatpush.bf16.msrb.mxu1 %v5539_v55  ;;  %v7744_v57 = vadd.f32 %v1522_v30, %v1433_v53  ;;  %v2482_v47 = vmul.f32 %v6669_v27, %v2053_v17  ;;  %v2086_v21 = vmul.f32 %v7689_v2, %v2085_v24  ;;  %vm7760_vm11 = vmor %vm2060_vm10, %vm2061_vm9  ;;  %v10315_v24 = vld [vmem:[#allocation92_spill] sm:$0xff]  ;;  %v10316_v30 = vld [vmem:[#allocation73_spill] sm:$0xff] }
 0x277   : > { %v7746_v40 = vpop.eup %5949  ;;  %5953 = vrsqrt.f32 %v7724_v7  ;;  %v1716_v34 = vadd.f32 %v1652_v12, %v10311_v63  ;;  %v7756_v19 = vmul.f32 %v7714_v13, %v10312_v9  ;;  %v2545_v15 = vsub.f32 1.0, %v2481_v22 }
 0x278   : > { %10310 = vst [vmem:[#allocation130_spill] sm:$0xff] %v7744_v57  ;;  %v7752_v48 = vpop.eup %5951  ;;  %vm2070_vm12 = vweird.f32 %v7567_v26  ;;  %v1717_v53 = vadd.f32 %v1653_v29, %v10315_v24  ;;  %v7768_v12 = vmul.f32 %v7738_v50, %v10316_v30  ;;  %v2063_v17 = vsel %vm7760_vm11, %v7581_v35, %v2059_v43 }
 0x279   : > { %v2077_v55 = vmul.f32 0.5, %v2076_v56  ;;  %v1654_v22 = vmul.f32 %v7599_v46, %v7599_v46  ;;  %v7775_v63 = vmax.f32 %v2544_v37, 0.0  ;;  %v2068_v9 = vsub.f32 1.5, %v2067_v14 }
 0x27a   : > { %vm2071_vm13 = vweird.f32 %v7643_v62  ;;  %v2095_v29 = vmul.f32 %v7746_v40, %v7660_v58  ;;  %v2546_v24 = vsub.f32 1.0, %v2482_v47  ;;  %v2087_v13 = vmul.f32 0.5, %v2086_v21  ;;  %v10320_v47 = vld [vmem:[#allocation93_spill] sm:$0xff] }
 0x27b   : > { %10317 = vst [vmem:[#allocation91_spill] sm:$0xff] %v7775_v63  ;;  %v2105_v30 = vmul.f32 %v7752_v48, %v7679_v1  ;;  %v7782_v50 = vadd.f32 1.1754944e-38, %v1716_v34  ;;  %v7784_v35 = vmax.f32 %v2545_v15, 0.0  ;;  %v2483_v43 = vmul.f32 %v6654_v31, %v2063_v17  ;;  %v7801_v15 = vpop.f32.mrf.mxu2  ;;  %v7803_v17 = vpop.f32.mrf.mxu3  ;;  %vm7825_vm0 = vmor %vm2070_vm12, %vm2071_vm13 }
 0x27c   : > { %v7787_v56 = vadd.f32 1.1754944e-38, %v1717_v53  ;;  %v7791_v37 = vadd.f32 %v7572_v18, %v7570_v11  ;;  %v2078_v28 = vsub.f32 1.5, %v2077_v55  ;;  %vm2080_vm14 = vweird.f32 %v7593_v42  ;;  %v1260_v55 = vpop.f32.mrf.mxu0 }
 0x27d   : > { %10318 = vst [vmem:[#allocation121_spill] sm:$0xff] %v7784_v35  ;;  %v7793_v14 = vpop.eup %5953  ;;  %v1718_v21 = vadd.f32 %v1654_v22, %v10320_v47  ;;  %v7799_v34 = vadd.f32 %v7641_v54, %v7639_v10  ;;  %v7807_v53 = vmul.f32 %v7775_v63, %v7168_v20  ;;  %v2069_v11 = vmul.f32 %v7643_v62, %v2068_v9  ;;  %v1349_v22 = vpop.f32.mrf.mxu1 }
 0x27e   : > { %10319 = vst [vmem:[#allocation92_spill] sm:$0xff] %v7791_v37  ;;  %vm2081_vm15 = vweird.f32 %v7664_v59  ;;  %v2096_v18 = vmul.f32 %v7746_v40, %v2095_v29  ;;  %v7812_v47 = vmax.f32 %v2546_v24, 0.0  ;;  %v2088_v10 = vsub.f32 1.5, %v2087_v13 }
 0x27f   : > { %v2106_v54 = vmul.f32 %v7752_v48, %v2105_v30  ;;  %5955 = vrsqrt.f32 %v7782_v50  ;;  %v2547_v46 = vsub.f32 1.0, %v2483_v43  ;;  %v2115_v20 = vmul.f32 %v7793_v14, %v7724_v7  ;;  %vm7857_vm2 = vmor %vm2080_vm14, %vm2081_vm15 }
 0x280   : > { %10321 = vst [vmem:[#allocation73_spill] sm:$0xff] %v7812_v47  ;;  %5957 = vrsqrt.f32 %v7787_v56  ;;  %v1655_v9 = vmul.f32 %v7791_v37, %v7791_v37  ;;  %v2079_v13 = vmul.f32 %v7664_v59, %v2078_v28  ;;  %v7830_v24 = vadd.f32 1.1754944e-38, %v1718_v21 }
 0x281   : > { %v1656_v30 = vmul.f32 %v7799_v34, %v7799_v34  ;;  %v7834_v43 = vadd.f32 %v1349_v22, %v1260_v55  ;;  %v2073_v63 = vsel %vm7825_vm0, %v7643_v62, %v2069_v11  ;;  %v2097_v37 = vmul.f32 0.5, %v2096_v18  ;;  %v10327_v62 = vld [vmem:[#allocation95_spill] sm:$0xff] }
 0x282   : > { %v2847_v26 = vpack.c.bf16 %v7467_v0, %v7342_v6  ;;  %v2848_v33 = vpack.c.bf16 %v7484_v61, %v7463_v32  ;;  %v7845_v28 = vmul.f32 %v7784_v35, %v7170_v49  ;;  %v2089_v21 = vmul.f32 %v7689_v2, %v2088_v10  ;;  %v10326_v32 = vld [vmem:[#allocation94_spill] sm:$0xff] }
 0x283   : > { %vm2091_vm1 = vweird.f32 %v7689_v2  ;;  %v2107_v55 = vmul.f32 0.5, %v2106_v54  ;;  %v7851_v22 = vmul.f32 %v7812_v47, %v7181_v23  ;;  %vm2090_vm3 = vweird.f32 %v7602_v38  ;;  %v5468_v38 = vld [vmem:[#allocation6 + $0x68] sm:$0xf0]  ;;  %v1438_v29 = vpop.f32.mrf.mxu2 }
 0x284   : > { %v2116_v49 = vmul.f32 %v7793_v14, %v2115_v20  ;;  %v1719_v0 = vadd.f32 %v1655_v9, %v10326_v32  ;;  %3085 = vmatmul.bf16.gmra.mxu0 %v2847_v26  ;;  %3174 = vmatmul.bf16.gmra.mxu1 %v2848_v33  ;;  %v2484_v23 = vmul.f32 %v6669_v27, %v2073_v63  ;;  %vm2100_vm4 = vweird.f32 %v7660_v58  ;;  %vm7881_vm5 = vmor %vm2090_vm3, %vm2091_vm1  ;;  %v5638_v9 = vld [vmem:[#allocation6 + $0x64] sm:$0xf] }
 0x285   : > { %v7864_v61 = vpop.eup %5955  ;;  %v2083_v42 = vsel %vm7857_vm2, %v7664_v59, %v2079_v13  ;;  %5959 = vrsqrt.f32 %v7830_v24  ;;  %v1720_v11 = vadd.f32 %v1656_v30, %v10327_v62  ;;  %3263 = vmatmul.bf16.gmra.mxu2 %v2847_v26  ;;  %3352 = vmatmul.bf16.gmra.mxu3 %v2848_v33  ;;  %v7875_v10 = vmax.f32 %v2547_v46, 0.0  ;;  %v1527_v13 = vpop.f32.mrf.mxu3 }
 0x286   : > { %v7873_v18 = vpop.eup %5957  ;;  %v2098_v59 = vsub.f32 1.5, %v2097_v37  ;;  %vm2110_vm6 = vweird.f32 %v7679_v1  ;;  %v1657_v54 = vmul.f32 %v7662_v5, %v7662_v5  ;;  %v2093_v33 = vsel %vm7881_vm5, %v7689_v2, %v2089_v21  ;;  %v5654_v2 = vld [vmem:[#allocation6 + $0xe4] sm:$0xf]  ;;  %v5532_v21 = vld [vmem:[#allocation6 + $0xe8] sm:$0xf0]  ;;  %v1262_v1 = vpop.f32.mrf.mxu0 }
 0x287   : > { %10328 = vst [vmem:[#allocation93_spill] sm:$0xff] %v7875_v10  ;;  %v2108_v46 = vsub.f32 1.5, %v2107_v55  ;;  %v1658_v20 = vmul.f32 %v7744_v57, %v7744_v57  ;;  %v7895_v37 = vpack.c.bf16 %v7545_v41, %v7498_v39  ;;  %v2485_v30 = vmul.f32 %v6654_v31, %v2083_v42  ;;  %v10331_v41 = vld [vmem:[#allocation96_spill] sm:$0xff]  ;;  %v10332_v57 = vld [vmem:[#allocation97_spill] sm:$0xff] }
 0x288   : > { %v2117_v26 = vmul.f32 0.5, %v2116_v49  ;;  %v2125_v6 = vmul.f32 %v7864_v61, %v7782_v50  ;;  %v7900_v32 = vadd.f32 1.1754944e-38, %v1719_v0  ;;  %v2135_v55 = vmul.f32 %v7873_v18, %v7787_v56 }
 0x289   : > { %v7904_v62 = vadd.f32 1.1754944e-38, %v1720_v11  ;;  %v5471_v63 = vor.u32 %v5638_v9, %v5468_v38  ;;  %v5535_v47 = vor.u32 %v5654_v2, %v5532_v21  ;;  %v2548_v35 = vsub.f32 1.0, %v2484_v23  ;;  %v1351_v2 = vpop.f32.mrf.mxu1 }
 0x28a   : > { %v2486_v39 = vmul.f32 %v6669_v27, %v2093_v33  ;;  %vm2101_vm7 = vweird.f32 %v7746_v40  ;;  %v1721_v49 = vadd.f32 %v1657_v54, %v10331_v41  ;;  %v2099_v0 = vmul.f32 %v7746_v40, %v2098_v59  ;;  %v5639_v41 = vld [vmem:[#allocation6 + $0x64] sm:$0xf0] }
 0x28b   : > { %v7909_v42 = vpop.eup %5959  ;;  %vm2111_vm8 = vweird.f32 %v7752_v48  ;;  %v1722_v5 = vadd.f32 %v1658_v20, %v10332_v57  ;;  %v7916_v11 = vadd.f32 %v7736_v3, %v7734_v4  ;;  %3762 = vmatpush.bf16.msrb.mxu2 %v5471_v63  ;;  %3851 = vmatpush.bf16.msrb.mxu3 %v5535_v47  ;;  %v2549_v23 = vsub.f32 1.0, %v2485_v30  ;;  %vm7930_vm10 = vmor %vm2100_vm4, %vm2101_vm7 }
 0x28c   : > { %v2109_v33 = vmul.f32 %v7752_v48, %v2108_v46  ;;  %v2118_v9 = vsub.f32 1.5, %v2117_v26  ;;  %5961 = vrsqrt.f32 %v7900_v32  ;;  %vm2120_vm9 = vweird.f32 %v7724_v7  ;;  %vm7946_vm12 = vmor %vm2110_vm6, %vm2111_vm8 }
 0x28d   : > { %v2126_v59 = vmul.f32 %v7864_v61, %v2125_v6  ;;  %v2136_v54 = vmul.f32 %v7873_v18, %v2135_v55  ;;  %5963 = vrsqrt.f32 %v7904_v62  ;;  %v7924_v57 = vmax.f32 %v2548_v35, 0.0 }
 0x28e   : > { %vm2121_vm11 = vweird.f32 %v7793_v14  ;;  %v2145_v3 = vmul.f32 %v7909_v42, %v7830_v24  ;;  %v7937_v47 = vadd.f32 1.1754944e-38, %v1721_v49  ;;  %v2550_v46 = vsub.f32 1.0, %v2486_v39  ;;  %v5466_v39 = vld [vmem:[#allocation6 + $0x60] sm:$0xf]  ;;  %v1440_v49 = vpop.f32.mrf.mxu2 }
 0x28f   : > { %10333 = vst [vmem:[#allocation94_spill] sm:$0xff] %v7924_v57  ;;  %v2103_v35 = vsel %vm7930_vm10, %v7746_v40, %v2099_v0  ;;  %v7950_v20 = vadd.f32 1.1754944e-38, %v1722_v5  ;;  %v1659_v38 = vmul.f32 %v7916_v11, %v7916_v11  ;;  %v7954_v30 = vmax.f32 %v2549_v23, 0.0  ;;  %v1529_v0 = vpop.f32.mrf.mxu3  ;;  %vm7981_vm13 = vmor %vm2120_vm9, %vm2121_vm11 }
 0x290   : > { %v2113_v26 = vsel %vm7946_vm12, %v7752_v48, %v2109_v33  ;;  %v2119_v40 = vmul.f32 %v7793_v14, %v2118_v9  ;;  %v7960_v6 = vadd.f32 %v1527_v13, %v1438_v29  ;;  %v2127_v21 = vmul.f32 0.5, %v2126_v59  ;;  %v5530_v33 = vld [vmem:[#allocation6 + $0xe0] sm:$0xf]  ;;  %v5655_v9 = vld [vmem:[#allocation6 + $0xe4] sm:$0xf0] }
 0x291   : > { %10338 = vst [vmem:[#allocation95_spill] sm:$0xff] %v7954_v30  ;;  %v2137_v55 = vmul.f32 0.5, %v2136_v54  ;;  %v7964_v5 = vadd.f32 %v7803_v17, %v7801_v15  ;;  %v7966_v63 = vadd.f32 %v1351_v2, %v1262_v1  ;;  %v2487_v48 = vmul.f32 %v6654_v31, %v2103_v35  ;;  %v10342_v54 = vld [vmem:[#allocation98_spill] sm:$0xff]  ;;  %v10344_v17 = vld [vmem:[#allocation99_spill] sm:$0xff] }
 0x292   : > { %v7968_v23 = vpop.eup %5961  ;;  %v2146_v29 = vmul.f32 %v7909_v42, %v2145_v3  ;;  %5965 = vrsqrt.f32 %v7937_v47  ;;  %v5467_v13 = vor.u32 %v5639_v41, %v5466_v39  ;;  %v7975_v15 = vmax.f32 %v2550_v46, 0.0 }
 0x293   : > { %v7973_v59 = vpop.eup %5963  ;;  %5967 = vrsqrt.f32 %v7950_v20  ;;  %v1723_v4 = vadd.f32 %v1659_v38, %v10342_v54  ;;  %v5531_v3 = vor.u32 %v5655_v9, %v5530_v33  ;;  %v7989_v35 = vmul.f32 %v7875_v10, %v7189_v8 }
 0x294   : > { %10339 = vst [vmem:[#allocation96_spill] sm:$0xff] %v7975_v15  ;;  %v2488_v46 = vmul.f32 %v6669_v27, %v2113_v26  ;;  %v2123_v58 = vsel %vm7981_vm13, %v7793_v14, %v2119_v40  ;;  %3584 = vmatpush.bf16.msrb.mxu0 %v5467_v13  ;;  %v7995_v7 = vadd.f32 %v1529_v0, %v1440_v49  ;;  %v2128_v1 = vsub.f32 1.5, %v2127_v21  ;;  %v10343_v21 = vld [vmem:[#allocation126_spill] sm:$0xff]  ;;  %v1354_v13 = vpop.f32.mrf.mxu1 }
 0x295   : > { %v2138_v2 = vsub.f32 1.5, %v2137_v55  ;;  %v2155_v39 = vmul.f32 %v7968_v23, %v7900_v32  ;;  %v1660_v38 = vmul.f32 %v7964_v5, %v7964_v5  ;;  %3673 = vmatpush.bf16.msrb.mxu1 %v5531_v3  ;;  %3090 = vmatmul.bf16.gmra.mxu0 %v7895_v37  ;;  %v8004_v8 = vmul.f32 %v7924_v57, %v7245_v25 }
 0x296   : > { %vm2130_vm14 = vweird.f32 %v7782_v50  ;;  %v2147_v14 = vmul.f32 0.5, %v2146_v29  ;;  %v2165_v26 = vmul.f32 %v7973_v59, %v7904_v62  ;;  %3268 = vmatmul.bf16.gmra.mxu2 %v7895_v37  ;;  %v8012_v40 = vmul.f32 %v7954_v30, %v7506_v51  ;;  %v1265_v37 = vpop.f32.mrf.mxu0 }
 0x297   : > { %v8016_v55 = vmul.f32 %v7975_v15, %v10343_v21  ;;  %v2551_v41 = vsub.f32 1.0, %v2487_v48  ;;  %v8018_v49 = vadd.f32 1.1754944e-38, %v1723_v4  ;;  %v2552_v0 = vsub.f32 1.0, %v2488_v46  ;;  %v10346_v21 = vld [vmem:[#allocation85_spill] sm:$0xff]  ;;  %v1443_v15 = vpop.f32.mrf.mxu2  ;;  %v1532_v10 = vpop.f32.mrf.mxu3 }
 0x298   : > { %v8020_v25 = vpop.eup %5965  ;;  %v2489_v29 = vmul.f32 %v6654_v31, %v2123_v58  ;;  %vm2131_vm15 = vweird.f32 %v7864_v61  ;;  %vm2141_vm0 = vweird.f32 %v7873_v18  ;;  %v2129_v33 = vmul.f32 %v7864_v61, %v2128_v1  ;;  %v10345_v58 = vld [vmem:[#allocation79_spill] sm:$0xff] }
 0x299   : > { %v8025_v51 = vpop.eup %5967  ;;  %v2139_v9 = vmul.f32 %v7873_v18, %v2138_v2  ;;  %v2156_v48 = vmul.f32 %v7968_v23, %v2155_v39  ;;  %v1724_v54 = vadd.f32 %v1660_v38, %v10344_v17  ;;  %v2148_v4 = vsub.f32 1.5, %v2147_v14  ;;  %vm8047_vm1 = vmor %vm2130_vm14, %vm2131_vm15 }
 0x29a   : > { %v2166_v3 = vmul.f32 %v7973_v59, %v2165_v26  ;;  %v8032_v46 = vadd.f32 %v1354_v13, %v1265_v37  ;;  %v2850_v57 = vpack.c.bf16 %v10346_v21, %v10345_v58  ;;  %v2175_v30 = vmul.f32 %v8020_v25, %v7937_v47 }
 0x29b   : > { %5969 = vrsqrt.f32 %v8018_v49  ;;  %v8039_v1 = vadd.f32 %v1532_v10, %v1443_v15  ;;  %v2851_v2 = vpack.c.bf16 %v7693_v44, %v7609_v52  ;;  %vm2140_vm2 = vweird.f32 %v7787_v56 }
 0x29c   : > { %v2185_v38 = vmul.f32 %v8025_v51, %v7950_v20  ;;  %v1661_v10 = vmul.f32 %v7834_v43, %v7834_v43  ;;  %3179 = vmatmul.bf16.gmra.mxu1 %v2850_v57  ;;  %3357 = vmatmul.bf16.gmra.mxu3 %v2850_v57  ;;  %v8058_v52 = vpack.c.bf16 %v7756_v19, %v7668_v45  ;;  %v8060_v44 = vmax.f32 %v2551_v41, 0.0  ;;  %vm8066_vm3 = vmor %vm2140_vm2, %vm2141_vm0 }
 0x29d   : > { %v8062_v50 = vmax.f32 %v2552_v0, 0.0  ;;  %v8070_v15 = vadd.f32 1.1754944e-38, %v1724_v54  ;;  %v8074_v14 = vpack.c.bf16 %v7845_v28, %v7768_v12  ;;  %v2553_v57 = vsub.f32 1.0, %v2489_v29  ;;  %v10353_v29 = vld [vmem:[#allocation100_spill] sm:$0xff] }
 0x29e   : > { %10349 = vst [vmem:[#allocation97_spill] sm:$0xff] %v8060_v44  ;;  %v2133_v45 = vsel %vm8047_vm1, %v7864_v61, %v2129_v33  ;;  %v2143_v19 = vsel %vm8066_vm3, %v7873_v18, %v2139_v9  ;;  %v8084_v26 = vpack.c.bf16 %v7851_v22, %v7807_v53  ;;  %v2149_v41 = vmul.f32 %v7909_v42, %v2148_v4  ;;  %v1267_v13 = vpop.f32.mrf.mxu0  ;;  %v1356_v18 = vpop.f32.mrf.mxu1 }
 0x29f   : > { %10350 = vst [vmem:[#allocation98_spill] sm:$0xff] %v8062_v50  ;;  %vm2151_vm4 = vweird.f32 %v7909_v42  ;;  %v2157_v0 = vmul.f32 0.5, %v2156_v48  ;;  %v2167_v12 = vmul.f32 0.5, %v2166_v3  ;;  %vm2150_vm5 = vweird.f32 %v7830_v24  ;;  %v1445_v58 = vpop.f32.mrf.mxu2  ;;  %v1534_v21 = vpop.f32.mrf.mxu3 }
 0x2a0   : > { %v2176_v28 = vmul.f32 %v8020_v25, %v2175_v30  ;;  %v2186_v61 = vmul.f32 %v8025_v51, %v2185_v38  ;;  %v1725_v37 = vadd.f32 %v1661_v10, %v10353_v29  ;;  %v2490_v53 = vmul.f32 %v6669_v27, %v2133_v45  ;;  %vm8111_vm6 = vmor %vm2150_vm5, %vm2151_vm4 }
 0x2a1   : > { %v8092_v33 = vpop.eup %5969  ;;  %5971 = vrsqrt.f32 %v8070_v15  ;;  %v1662_v22 = vmul.f32 %v7960_v6, %v7960_v6  ;;  %v8098_v9 = vadd.f32 %v1356_v18, %v1267_v13  ;;  %v8102_v24 = vmul.f32 %v8060_v44, %v7437_v36 }
 0x2a2   : > { %v8106_v30 = vmul.f32 %v8062_v50, %v7458_v16  ;;  %v2491_v48 = vmul.f32 %v6654_v31, %v2143_v19  ;;  %v1663_v54 = vmul.f32 %v7966_v63, %v7966_v63  ;;  %v8117_v4 = vmax.f32 %v2553_v57, 0.0  ;;  %v10358_v57 = vld [vmem:[#allocation101_spill] sm:$0xff] }
 0x2a3   : > { %10354 = vst [vmem:[#allocation126_spill] sm:$0xff] %v8098_v9  ;;  %v2153_v36 = vsel %vm8111_vm6, %v7909_v42, %v2149_v41  ;;  %v2158_v3 = vsub.f32 1.5, %v2157_v0  ;;  %v2168_v16 = vsub.f32 1.5, %v2167_v12  ;;  %v2177_v39 = vmul.f32 0.5, %v2176_v28  ;;  %v10359_v41 = vld [vmem:[#allocation102_spill] sm:$0xff] }
 0x2a4   : > { %10357 = vst [vmem:[#allocation99_spill] sm:$0xff] %v8117_v4  ;;  %v2187_v38 = vmul.f32 0.5, %v2186_v61  ;;  %v2195_v10 = vmul.f32 %v8092_v33, %v8018_v49  ;;  %v8124_v56 = vadd.f32 1.1754944e-38, %v1725_v37  ;;  %v2554_v45 = vsub.f32 1.0, %v2490_v53 }
 0x2a5   : > { %vm2160_vm7 = vweird.f32 %v7900_v32  ;;  %v1726_v19 = vadd.f32 %v1662_v22, %v10358_v57  ;;  %v8128_v29 = vadd.f32 %v1534_v21, %v1445_v58  ;;  %3095 = vmatmul.bf16.gmra.mxu0 %v2851_v2  ;;  %v2555_v42 = vsub.f32 1.0, %v2491_v48  ;;  %v5524_v32 = vld [vmem:[#allocation6 + $0xd8] sm:$0xf0] }
 0x2a6   : > { %vm2161_vm8 = vweird.f32 %v7968_v23  ;;  %vm2170_vm9 = vweird.f32 %v7904_v62  ;;  %v1727_v0 = vadd.f32 %v1663_v54, %v10359_v41  ;;  %3273 = vmatmul.bf16.gmra.mxu2 %v2851_v2  ;;  %v2492_v28 = vmul.f32 %v6669_v27, %v2153_v36  ;;  %v1270_v17 = vpop.f32.mrf.mxu0  ;;  %v1359_v54 = vpop.f32.mrf.mxu1  ;;  %v10366_v62 = vld [vmem:[#allocation103_spill] sm:$0xff] }
 0x2a7   : > { %v8133_v12 = vpop.eup %5971  ;;  %v2159_v61 = vmul.f32 %v7968_v23, %v2158_v3  ;;  %v2169_v37 = vmul.f32 %v7973_v59, %v2168_v16  ;;  %vm2171_vm10 = vweird.f32 %v7973_v59  ;;  %v2178_v13 = vsub.f32 1.5, %v2177_v39  ;;  %vm8154_vm12 = vmor %vm2160_vm7, %vm2161_vm8 }
 0x2a8   : > { %v2188_v18 = vsub.f32 1.5, %v2187_v38  ;;  %v2196_v53 = vmul.f32 %v8092_v33, %v2195_v10  ;;  %5973 = vrsqrt.f32 %v8124_v56  ;;  %v8141_v22 = vmax.f32 %v2554_v45, 0.0  ;;  %vm8170_vm14 = vmor %vm2170_vm9, %vm2171_vm10 }
 0x2a9   : > { %vm2180_vm11 = vweird.f32 %v7937_v47  ;;  %v8144_v2 = vadd.f32 1.1754944e-38, %v1726_v19  ;;  %v1664_v48 = vmul.f32 %v7995_v7, %v7995_v7  ;;  %v8148_v36 = vmax.f32 %v2555_v42, 0.0  ;;  %v10369_v47 = vld [vmem:[#allocation89_spill] sm:$0xff] }
 0x2aa   : > { %10360 = vst [vmem:[#allocation79_spill] sm:$0xff] %v8141_v22  ;;  %vm2190_vm13 = vweird.f32 %v7950_v20  ;;  %v2205_v16 = vmul.f32 %v8133_v12, %v8070_v15  ;;  %v8161_v58 = vadd.f32 1.1754944e-38, %v1727_v0  ;;  %v2556_v21 = vsub.f32 1.0, %v2492_v28  ;;  %v5652_v20 = vld [vmem:[#allocation6 + $0xd4] sm:$0xf] }
 0x2ab   : > { %10361 = vst [vmem:[#allocation85_spill] sm:$0xff] %v8148_v36  ;;  %v2163_v39 = vsel %vm8154_vm12, %v7968_v23, %v2159_v61  ;;  %vm2181_vm15 = vweird.f32 %v8020_v25  ;;  %vm2191_vm0 = vweird.f32 %v8025_v51  ;;  %v2173_v38 = vsel %vm8170_vm14, %v7973_v59, %v2169_v37 }
 0x2ac   : > { %v2179_v10 = vmul.f32 %v8020_v25, %v2178_v13  ;;  %v2189_v23 = vmul.f32 %v8025_v51, %v2188_v18  ;;  %v2197_v45 = vmul.f32 0.5, %v2196_v53  ;;  %3184 = vmatmul.bf16.gmra.mxu1 %v8058_v52  ;;  %3362 = vmatmul.bf16.gmra.mxu3 %v8058_v52  ;;  %5975 = vrsqrt.f32 %v8144_v2  ;;  %vm8193_vm1 = vmor %vm2180_vm11, %vm2181_vm15  ;;  %v10370_v13 = vld [vmem:[#allocation83_spill] sm:$0xff] }
 0x2ad   : > { %v1728_v57 = vadd.f32 %v1664_v48, %v10366_v62  ;;  %v1665_v19 = vmul.f32 %v8032_v46, %v8032_v46  ;;  %v8187_v42 = vadd.f32 %v1359_v54, %v1270_v17  ;;  %v2206_v0 = vmul.f32 %v8133_v12, %v2205_v16  ;;  %vm8222_vm2 = vmor %vm2190_vm13, %vm2191_vm0  ;;  %v1448_v48 = vpop.f32.mrf.mxu2  ;;  %v1537_v17 = vpop.f32.mrf.mxu3 }
 0x2ae   : > { %v8189_v41 = vpop.eup %5973  ;;  %5977 = vrsqrt.f32 %v8161_v58  ;;  %v1666_v52 = vmul.f32 %v8039_v1, %v8039_v1  ;;  %v8203_v28 = vpack.c.bf16 %v8016_v55, %v8004_v8  ;;  %v8207_v61 = vmul.f32 %v8117_v4, %v7622_v60  ;;  %v5636_v60 = vld [vmem:[#allocation6 + $0x54] sm:$0xf]  ;;  %v5460_v55 = vld [vmem:[#allocation6 + $0x58] sm:$0xf0]  ;;  %v1361_v44 = vpop.f32.mrf.mxu1 }
 0x2af   : > { %v8211_v37 = vmul.f32 %v8141_v22, %v10369_v47  ;;  %v8215_v18 = vmul.f32 %v8148_v36, %v10370_v13  ;;  %v2493_v53 = vmul.f32 %v6654_v31, %v2163_v39  ;;  %v2494_v54 = vmul.f32 %v6669_v27, %v2173_v38  ;;  %v10373_v13 = vld [vmem:[#allocation104_spill] sm:$0xff] }
 0x2b0   : > { %v2183_v3 = vsel %vm8193_vm1, %v8020_v25, %v2179_v10  ;;  %v2193_v16 = vsel %vm8222_vm2, %v8025_v51, %v2189_v23  ;;  %v2198_v39 = vsub.f32 1.5, %v2197_v45  ;;  %v2215_v62 = vmul.f32 %v8189_v41, %v8124_v56  ;;  %v10375_v10 = vld [vmem:[#allocation105_spill] sm:$0xff] }
 0x2b1   : > { %v8235_v47 = vadd.f32 1.1754944e-38, %v1728_v57  ;;  %v1729_v36 = vadd.f32 %v1665_v19, %v10373_v13  ;;  %v5463_v50 = vor.u32 %v5636_v60, %v5460_v55  ;;  %v8238_v38 = vmax.f32 %v2556_v21, 0.0  ;;  %v1272_v57 = vpop.f32.mrf.mxu0  ;;  %v5522_v13 = vld [vmem:[#allocation6 + $0xd0] sm:$0xf] }
 0x2b2   : > { %vm2200_vm3 = vweird.f32 %v8018_v49  ;;  %v2207_v25 = vmul.f32 0.5, %v2206_v0  ;;  %v1730_v59 = vadd.f32 %v1666_v52, %v10375_v10  ;;  %v8242_v8 = vpop.eup %5975  ;;  %v2557_v51 = vsub.f32 1.0, %v2493_v53 }
 0x2b3   : > { %10374 = vst [vmem:[#allocation100_spill] sm:$0xff] %v8238_v38  ;;  %v2495_v23 = vmul.f32 %v6654_v31, %v2183_v3  ;;  %3763 = vmatpush.bf16.msrb.mxu2 %v5463_v50  ;;  %v5527_v45 = vor.u32 %v5652_v20, %v5524_v32  ;;  %v8245_v22 = vadd.f32 %v1537_v17, %v1448_v48  ;;  %v2558_v21 = vsub.f32 1.0, %v2494_v54  ;;  %v5458_v3 = vld [vmem:[#allocation6 + $0x50] sm:$0xf] }
 0x2b4   : > { %v8247_v19 = vpop.eup %5977  ;;  %v2496_v60 = vmul.f32 %v6669_v27, %v2193_v16  ;;  %v2199_v0 = vmul.f32 %v8092_v33, %v2198_v39  ;;  %vm2201_vm4 = vweird.f32 %v8092_v33  ;;  %v2216_v52 = vmul.f32 %v8189_v41, %v2215_v62  ;;  %v5637_v16 = vld [vmem:[#allocation6 + $0x54] sm:$0xf0] }
 0x2b5   : > { %10376 = vst [vmem:[#allocation101_spill] sm:$0xff] %v8245_v22  ;;  %5979 = vrsqrt.f32 %v8235_v47  ;;  %v8254_v53 = vadd.f32 1.1754944e-38, %v1729_v36  ;;  %3852 = vmatpush.bf16.msrb.mxu3 %v5527_v45  ;;  %v8256_v50 = vadd.f32 %v1361_v44, %v1272_v57  ;;  %v2208_v55 = vsub.f32 1.5, %v2207_v25  ;;  %3100 = vmatmul.bf16.gmra.mxu0 %v8074_v14  ;;  %v10378_v36 = vld [vmem:[#allocation86_spill] sm:$0xff]  ;;  %vm8276_vm5 = vmor %vm2200_vm3, %vm2201_vm4  ;;  %v1450_v25 = vpop.f32.mrf.mxu2  ;;  %v1539_v10 = vpop.f32.mrf.mxu3 }
 0x2b6   : > { %v2225_v48 = vmul.f32 %v8242_v8, %v8144_v2  ;;  %v8260_v17 = vadd.f32 1.1754944e-38, %v1730_v59  ;;  %v1667_v54 = vmul.f32 %v8098_v9, %v8098_v9  ;;  %3278 = vmatmul.bf16.gmra.mxu2 %v8074_v14  ;;  %v8268_v39 = vmul.f32 %v8238_v38, %v10378_v36  ;;  %v5653_v14 = vld [vmem:[#allocation6 + $0xd4] sm:$0xf0] }
 0x2b7   : > { %10377 = vst [vmem:[#allocation102_spill] sm:$0xff] %v8256_v50  ;;  %v8270_v44 = vmax.f32 %v2557_v51, 0.0  ;;  %v2559_v20 = vsub.f32 1.0, %v2495_v23  ;;  %v2235_v62 = vmul.f32 %v8247_v19, %v8161_v58  ;;  %v8282_v59 = vmax.f32 %v2558_v21, 0.0  ;;  %v10383_v21 = vld [vmem:[#allocation106_spill] sm:$0xff] }
 0x2b8   : > { %v2560_v51 = vsub.f32 1.0, %v2496_v60  ;;  %v2203_v23 = vsel %vm8276_vm5, %v8092_v33, %v2199_v0  ;;  %vm2211_vm6 = vweird.f32 %v8133_v12  ;;  %v2217_v49 = vmul.f32 0.5, %v2216_v52 }
 0x2b9   : > { %10379 = vst [vmem:[#allocation103_spill] sm:$0xff] %v8270_v44  ;;  %5981 = vrsqrt.f32 %v8254_v53  ;;  %v5459_v45 = vor.u32 %v5637_v16, %v5458_v3  ;;  %v5523_v57 = vor.u32 %v5653_v14, %v5522_v13  ;;  %v2209_v36 = vmul.f32 %v8133_v12, %v2208_v55  ;;  %v1275_v55 = vpop.f32.mrf.mxu0  ;;  %v1364_v3 = vpop.f32.mrf.mxu1 }
 0x2ba   : > { %10382 = vst [vmem:[#allocation89_spill] sm:$0xff] %v8282_v59  ;;  %v2226_v38 = vmul.f32 %v8242_v8, %v2225_v48  ;;  %5983 = vrsqrt.f32 %v8260_v17  ;;  %v1731_v4 = vadd.f32 %v1667_v54, %v10383_v21  ;;  %v8295_v9 = vmax.f32 %v2559_v20, 0.0  ;;  %v10386_v48 = vld [vmem:[#allocation92_spill] sm:$0xff] }
 0x2bb   : > { %v8293_v60 = vpop.eup %5979  ;;  %v2236_v33 = vmul.f32 %v8247_v19, %v2235_v62  ;;  %v1668_v0 = vmul.f32 %v8128_v29, %v8128_v29  ;;  %3585 = vmatpush.bf16.msrb.mxu0 %v5459_v45  ;;  %3674 = vmatpush.bf16.msrb.mxu1 %v5523_v57  ;;  %v8300_v52 = vadd.f32 %v1539_v10, %v1450_v25  ;;  %vm2210_vm7 = vweird.f32 %v8070_v15  ;;  %v10392_v45 = vld [vmem:[#allocation107_spill] sm:$0xff] }
 0x2bc   : > { %10384 = vst [vmem:[#allocation83_spill] sm:$0xff] %v8295_v9  ;;  %v8304_v16 = vmul.f32 %v8270_v44, %v10386_v48  ;;  %v2497_v54 = vmul.f32 %v6654_v31, %v2203_v23  ;;  %v8308_v20 = vadd.f32 %v1364_v3, %v1275_v55  ;;  %3189 = vmatmul.bf16.gmra.mxu1 %v8084_v26  ;;  %v8312_v32 = vmax.f32 %v2560_v51, 0.0  ;;  %vm8316_vm8 = vmor %vm2210_vm7, %vm2211_vm6 }
 0x2bd   : > { %10385 = vst [vmem:[#allocation104_spill] sm:$0xff] %v8300_v52  ;;  %3367 = vmatmul.bf16.gmra.mxu3 %v8084_v26  ;;  %v2218_v13 = vsub.f32 1.5, %v2217_v49  ;;  %vm2220_vm9 = vweird.f32 %v8124_v56  ;;  %v8323_v15 = vpack.c.bf16 %v8211_v37, %v8106_v30  ;;  %v2213_v14 = vsel %vm8316_vm8, %v8133_v12, %v2209_v36  ;;  %v10391_v49 = vld [vmem:[#allocation88_spill] sm:$0xff]  ;;  %v1453_v12 = vpop.f32.mrf.mxu2 }
 0x2be   : > { %10387 = vst [vmem:[#allocation105_spill] sm:$0xff] %v8308_v20  ;;  %v2227_v26 = vmul.f32 0.5, %v2226_v38  ;;  %v2245_v25 = vmul.f32 %v8293_v60, %v8235_v47  ;;  %v8330_v10 = vadd.f32 1.1754944e-38, %v1731_v4  ;;  %v8336_v23 = vmul.f32 %v8282_v59, %v7799_v34  ;;  %v1542_v38 = vpop.f32.mrf.mxu3  ;;  %v10394_v34 = vld [vmem:[#allocation130_spill] sm:$0xff] }
 0x2bf   : > { %10388 = vst [vmem:[#allocation86_spill] sm:$0xff] %v8312_v32  ;;  %v8332_v51 = vpop.eup %5981  ;;  %v8340_v30 = vmul.f32 %v8295_v9, %v10391_v49  ;;  %v2237_v37 = vmul.f32 0.5, %v2236_v33  ;;  %v1732_v57 = vadd.f32 %v1668_v0, %v10392_v45  ;;  %v2561_v21 = vsub.f32 1.0, %v2497_v54  ;;  %v10399_v59 = vld [vmem:[#allocation110_spill] sm:$0xff] }
 0x2c0   : > { %v8343_v36 = vpop.eup %5983  ;;  %vm2221_vm10 = vweird.f32 %v8189_v41  ;;  %v1669_v4 = vmul.f32 %v8187_v42, %v8187_v42  ;;  %v8348_v55 = vadd.f32 %v1542_v38, %v1453_v12  ;;  %v8352_v3 = vmul.f32 %v8312_v32, %v10394_v34 }
 0x2c1   : > { %v2498_v33 = vmul.f32 %v6669_v27, %v2213_v14  ;;  %v2219_v0 = vmul.f32 %v8189_v41, %v2218_v13  ;;  %v1671_v48 = vmul.f32 %v8256_v50, %v8256_v50  ;;  %v2228_v62 = vsub.f32 1.5, %v2227_v26  ;;  %v1277_v13 = vpop.f32.mrf.mxu0  ;;  %v1366_v38 = vpop.f32.mrf.mxu1  ;;  %vm8373_vm12 = vmor %vm2220_vm9, %vm2221_vm10 }
 0x2c2   : > { %10393 = vst [vmem:[#allocation106_spill] sm:$0xff] %v8348_v55  ;;  %v2246_v54 = vmul.f32 %v8293_v60, %v2245_v25  ;;  %v2255_v49 = vmul.f32 %v8332_v51, %v8254_v53  ;;  %5985 = vrsqrt.f32 %v8330_v10  ;;  %vm2230_vm11 = vweird.f32 %v8144_v2  ;;  %v10398_v25 = vld [vmem:[#allocation108_spill] sm:$0xff] }
 0x2c3   : > { %v2238_v45 = vsub.f32 1.5, %v2237_v37  ;;  %v2265_v12 = vmul.f32 %v8343_v36, %v8260_v17  ;;  %v8365_v14 = vadd.f32 1.1754944e-38, %v1732_v57  ;;  %v8367_v34 = vmax.f32 %v2561_v21, 0.0 }
 0x2c4   : > { %v1733_v32 = vadd.f32 %v1669_v4, %v10398_v25  ;;  %v1670_v37 = vmul.f32 %v8245_v22, %v8245_v22  ;;  %v2855_v57 = vpack.c.bf16 %v8012_v40, %v7989_v35  ;;  %v2562_v9 = vsub.f32 1.0, %v2498_v33 }
 0x2c5   : > { %10395 = vst [vmem:[#allocation92_spill] sm:$0xff] %v8367_v34  ;;  %v2223_v21 = vsel %vm8373_vm12, %v8189_v41, %v2219_v0  ;;  %v1735_v44 = vadd.f32 %v1671_v48, %v10399_v59  ;;  %v8386_v56 = vadd.f32 %v1366_v38, %v1277_v13  ;;  %v2229_v50 = vmul.f32 %v8242_v8, %v2228_v62  ;;  %v1455_v41 = vpop.f32.mrf.mxu2  ;;  %v10401_v62 = vld [vmem:[#allocation109_spill] sm:$0xff] }
 0x2c6   : > { %vm2231_vm13 = vweird.f32 %v8242_v8  ;;  %v2247_v4 = vmul.f32 0.5, %v2246_v54  ;;  %v2256_v25 = vmul.f32 %v8332_v51, %v2255_v49  ;;  %3105 = vmatmul.bf16.gmra.mxu0 %v2855_v57  ;;  %3283 = vmatmul.bf16.gmra.mxu2 %v2855_v57  ;;  %v2239_v35 = vmul.f32 %v8247_v19, %v2238_v45  ;;  %v1544_v59 = vpop.f32.mrf.mxu3 }
 0x2c7   : > { %10400 = vst [vmem:[#allocation88_spill] sm:$0xff] %v8386_v56  ;;  %vm2241_vm14 = vweird.f32 %v8247_v19  ;;  %v2266_v40 = vmul.f32 %v8343_v36, %v2265_v12  ;;  %5987 = vrsqrt.f32 %v8365_v14  ;;  %v2499_v0 = vmul.f32 %v6654_v31, %v2223_v21  ;;  %vm8413_vm15 = vmor %vm2230_vm11, %vm2231_vm13 }
 0x2c8   : > { %v8395_v33 = vpop.eup %5985  ;;  %v8398_v48 = vadd.f32 1.1754944e-38, %v1733_v32  ;;  %v1734_v54 = vadd.f32 %v1670_v37, %v10401_v62  ;;  %v8401_v49 = vadd.f32 %v1544_v59, %v1455_v41  ;;  %v8405_v45 = vmul.f32 %v8367_v34, %v7916_v11 }
 0x2c9   : > { %v8407_v13 = vmax.f32 %v2562_v9, 0.0  ;;  %vm2240_vm0 = vweird.f32 %v8161_v58  ;;  %v8418_v32 = vadd.f32 1.1754944e-38, %v1735_v44  ;;  %v2233_v38 = vsel %vm8413_vm15, %v8242_v8, %v2229_v50  ;;  %v1369_v41 = vpop.f32.mrf.mxu1 }
 0x2ca   : > { %vm8425_vm1 = vmor %vm2240_vm0, %vm2241_vm14  ;;  %v2248_v9 = vsub.f32 1.5, %v2247_v4  ;;  %v2257_v2 = vmul.f32 0.5, %v2256_v25  ;;  %v1672_v26 = vmul.f32 %v8300_v52, %v8300_v52  ;;  %v2267_v44 = vmul.f32 0.5, %v2266_v40 }
 0x2cb   : > { %10402 = vst [vmem:[#allocation107_spill] sm:$0xff] %v8407_v13  ;;  %v2243_v58 = vsel %vm8425_vm1, %v8247_v19, %v2239_v35  ;;  %v2275_v37 = vmul.f32 %v8395_v33, %v8330_v10  ;;  %v8438_v8 = vpack.c.bf16 %v8336_v23, %v8268_v39  ;;  %v2563_v50 = vsub.f32 1.0, %v2499_v0  ;;  %v10407_v35 = vld [vmem:[#allocation111_spill] sm:$0xff] }
 0x2cc   : > { %vm2250_vm2 = vweird.f32 %v8235_v47  ;;  %5989 = vrsqrt.f32 %v8398_v48  ;;  %v8442_v57 = vadd.f32 1.1754944e-38, %v1734_v54  ;;  %3194 = vmatmul.bf16.gmra.mxu1 %v8203_v28  ;;  %v8450_v21 = vmul.f32 %v8407_v13, %v7964_v5 }
 0x2cd   : > { %3372 = vmatmul.bf16.gmra.mxu3 %v8203_v28  ;;  %v8446_v19 = vpop.eup %5987  ;;  %v2500_v39 = vmul.f32 %v6669_v27, %v2233_v38  ;;  %vm2251_vm3 = vweird.f32 %v8293_v60  ;;  %5991 = vrsqrt.f32 %v8418_v32  ;;  %v2501_v23 = vmul.f32 %v6654_v31, %v2243_v58  ;;  %v1280_v28 = vpop.f32.mrf.mxu0 }
 0x2ce   : > { %v2249_v4 = vmul.f32 %v8293_v60, %v2248_v9  ;;  %v2258_v25 = vsub.f32 1.5, %v2257_v2  ;;  %v1736_v40 = vadd.f32 %v1672_v26, %v10407_v35  ;;  %vm2260_vm4 = vweird.f32 %v8254_v53  ;;  %vm8472_vm6 = vmor %vm2250_vm2, %vm2251_vm3  ;;  %v1458_v13 = vpop.f32.mrf.mxu2  ;;  %v1547_v34 = vpop.f32.mrf.mxu3 }
 0x2cf   : > { %v2268_v59 = vsub.f32 1.5, %v2267_v44  ;;  %v2276_v5 = vmul.f32 %v8395_v33, %v2275_v37  ;;  %v1673_v0 = vmul.f32 %v8308_v20, %v8308_v20  ;;  %v8462_v62 = vmax.f32 %v2563_v50, 0.0 }
 0x2d0   : > { %vm2270_vm5 = vweird.f32 %v8260_v17  ;;  %v2285_v54 = vmul.f32 %v8446_v19, %v8365_v14  ;;  %5993 = vrsqrt.f32 %v8442_v57  ;;  %v2564_v12 = vsub.f32 1.0, %v2500_v39  ;;  %v10411_v39 = vld [vmem:[#allocation112_spill] sm:$0xff]  ;;  %v10418_v17 = vld [vmem:[#allocation113_spill] sm:$0xff] }
 0x2d1   : > { %10408 = vst [vmem:[#allocation130_spill] sm:$0xff] %v8462_v62  ;;  %vm2261_vm7 = vweird.f32 %v8332_v51  ;;  %vm2271_vm8 = vweird.f32 %v8343_v36  ;;  %v8478_v11 = vadd.f32 %v1369_v41, %v1280_v28  ;;  %v2565_v2 = vsub.f32 1.0, %v2501_v23  ;;  %v5634_v41 = vld [vmem:[#allocation6 + $0x44] sm:$0xf]  ;;  %v5452_v23 = vld [vmem:[#allocation6 + $0x48] sm:$0xf0]  ;;  %v1371_v22 = vpop.f32.mrf.mxu1 }
 0x2d2   : > { %v8480_v9 = vpop.eup %5989  ;;  %v2253_v26 = vsel %vm8472_vm6, %v8293_v60, %v2249_v4  ;;  %v2259_v58 = vmul.f32 %v8332_v51, %v2258_v25  ;;  %v8486_v47 = vadd.f32 1.1754944e-38, %v1736_v40  ;;  %v2269_v37 = vmul.f32 %v8343_v36, %v2268_v59  ;;  %vm8510_vm9 = vmor %vm2260_vm4, %vm2261_vm7 }
 0x2d3   : > { %v8488_v44 = vpop.eup %5991  ;;  %v2277_v50 = vmul.f32 0.5, %v2276_v5  ;;  %v1737_v35 = vadd.f32 %v1673_v0, %v10411_v39  ;;  %v1674_v28 = vmul.f32 %v8348_v55, %v8348_v55  ;;  %v2286_v60 = vmul.f32 %v8446_v19, %v2285_v54  ;;  %vm8527_vm10 = vmor %vm2270_vm5, %vm2271_vm8  ;;  %v10419_v54 = vld [vmem:[#allocation114_spill] sm:$0xff] }
 0x2d4   : > { %v1675_v4 = vmul.f32 %v8386_v56, %v8386_v56  ;;  %v5455_v25 = vor.u32 %v5634_v41, %v5452_v23  ;;  %v2857_v40 = vpack.c.bf16 %v8207_v61, %v8102_v24  ;;  %v8501_v59 = vmul.f32 %v8462_v62, %v7834_v43  ;;  %v5650_v24 = vld [vmem:[#allocation6 + $0xc4] sm:$0xf]  ;;  %v5516_v61 = vld [vmem:[#allocation6 + $0xc8] sm:$0xf0] }
 0x2d5   : > { %v8503_v5 = vmax.f32 %v2564_v12, 0.0  ;;  %v2502_v0 = vmul.f32 %v6669_v27, %v2253_v26  ;;  %v2295_v38 = vmul.f32 %v8480_v9, %v8398_v48  ;;  %v8518_v43 = vmax.f32 %v2565_v2, 0.0  ;;  %v1282_v20 = vpop.f32.mrf.mxu0 }
 0x2d6   : > { %v8516_v39 = vpop.eup %5993  ;;  %v2263_v12 = vsel %vm8510_vm9, %v8332_v51, %v2259_v58  ;;  %vm2280_vm11 = vweird.f32 %v8330_v10  ;;  %v2315_v26 = vmul.f32 %v8488_v44, %v8418_v32  ;;  %5995 = vrsqrt.f32 %v8486_v47  ;;  %3764 = vmatpush.bf16.msrb.mxu2 %v5455_v25  ;;  %3110 = vmatmul.bf16.gmra.mxu0 %v2857_v40 }
 0x2d7   : > { %10412 = vst [vmem:[#allocation108_spill] sm:$0xff] %v8503_v5  ;;  %v2273_v51 = vsel %vm8527_vm10, %v8343_v36, %v2269_v37  ;;  %v2278_v2 = vsub.f32 1.5, %v2277_v50  ;;  %v8538_v58 = vadd.f32 1.1754944e-38, %v1737_v35  ;;  %v1738_v41 = vadd.f32 %v1674_v28, %v10418_v17  ;;  %3288 = vmatmul.bf16.gmra.mxu2 %v2857_v40 }
 0x2d8   : > { %10415 = vst [vmem:[#allocation110_spill] sm:$0xff] %v8518_v43  ;;  %v2287_v23 = vmul.f32 0.5, %v2286_v60  ;;  %v1739_v62 = vadd.f32 %v1675_v4, %v10419_v54  ;;  %v5519_v55 = vor.u32 %v5650_v24, %v5516_v61  ;;  %v8542_v56 = vadd.f32 %v1547_v34, %v1458_v13  ;;  %v5635_v60 = vld [vmem:[#allocation6 + $0x44] sm:$0xf0]  ;;  %v1549_v4 = vpop.f32.mrf.mxu3  ;;  %v5514_v24 = vld [vmem:[#allocation6 + $0xc0] sm:$0xf] }
 0x2d9   : > { %v2566_v25 = vsub.f32 1.0, %v2502_v0  ;;  %v2296_v52 = vmul.f32 %v8480_v9, %v2295_v38  ;;  %v2305_v36 = vmul.f32 %v8516_v39, %v8442_v57  ;;  %v8547_v37 = vadd.f32 %v1371_v22, %v1282_v20  ;;  %v5450_v20 = vld [vmem:[#allocation6 + $0x40] sm:$0xf]  ;;  %v5651_v61 = vld [vmem:[#allocation6 + $0xc4] sm:$0xf0] }
 0x2da   : > { %v8551_v50 = vmul.f32 %v8503_v5, %v7960_v6  ;;  %v2503_v35 = vmul.f32 %v6654_v31, %v2263_v12  ;;  %v2316_v28 = vmul.f32 %v8488_v44, %v2315_v26  ;;  %v1676_v34 = vmul.f32 %v8401_v49, %v8401_v49  ;;  %3853 = vmatpush.bf16.msrb.mxu3 %v5519_v55  ;;  %v1460_v6 = vpop.f32.mrf.mxu2 }
 0x2db   : > { %v2504_v13 = vmul.f32 %v6669_v27, %v2273_v51  ;;  %vm2290_vm12 = vweird.f32 %v8365_v14  ;;  %5997 = vrsqrt.f32 %v8538_v58  ;;  %v8560_v22 = vadd.f32 1.1754944e-38, %v1738_v41  ;;  %v10421_v41 = vld [vmem:[#allocation115_spill] sm:$0xff] }
 0x2dc   : > { %v8562_v40 = vpop.eup %5995  ;;  %v2279_v0 = vmul.f32 %v8395_v33, %v2278_v2  ;;  %vm2281_vm13 = vweird.f32 %v8395_v33  ;;  %v2288_v38 = vsub.f32 1.5, %v2287_v23  ;;  %v8566_v55 = vadd.f32 1.1754944e-38, %v1739_v62  ;;  %3199 = vmatmul.bf16.gmra.mxu1 %v8323_v15 }
 0x2dd   : > { %3377 = vmatmul.bf16.gmra.mxu3 %v8323_v15  ;;  %v2821_v12 = vmul.f32 %v8518_v43, %v7966_v63  ;;  %v8572_v53 = vmax.f32 %v2566_v25, 0.0  ;;  %v2297_v26 = vmul.f32 0.5, %v2296_v52  ;;  %v2306_v51 = vmul.f32 %v8516_v39, %v2305_v36  ;;  %vm8580_vm14 = vmor %vm2280_vm11, %vm2281_vm13 }
 0x2de   : > { %v2567_v2 = vsub.f32 1.0, %v2503_v35  ;;  %v2317_v17 = vmul.f32 0.5, %v2316_v28  ;;  %v1740_v23 = vadd.f32 %v1676_v34, %v10421_v41  ;;  %v5451_v62 = vor.u32 %v5635_v60, %v5450_v20  ;;  %v1374_v20 = vpop.f32.mrf.mxu1 }
 0x2df   : > { %10420 = vst [vmem:[#allocation109_spill] sm:$0xff] %v8572_v53  ;;  %v2568_v54 = vsub.f32 1.0, %v2504_v13  ;;  %v2325_v63 = vmul.f32 %v8562_v40, %v8486_v47  ;;  %5999 = vrsqrt.f32 %v8560_v22  ;;  %v5515_v52 = vor.u32 %v5651_v61, %v5514_v24  ;;  %v1285_v13 = vpop.f32.mrf.mxu0 }
 0x2e0   : > { %v2283_v25 = vsel %vm8580_vm14, %v8395_v33, %v2279_v0  ;;  %v2289_v36 = vmul.f32 %v8446_v19, %v2288_v38  ;;  %vm2291_vm15 = vweird.f32 %v8446_v19  ;;  %6001 = vrsqrt.f32 %v8566_v55  ;;  %3586 = vmatpush.bf16.msrb.mxu0 %v5451_v62 }
 0x2e1   : > { %v8593_v10 = vpop.eup %5997  ;;  %v2298_v35 = vsub.f32 1.5, %v2297_v26  ;;  %v2307_v28 = vmul.f32 0.5, %v2306_v51  ;;  %3675 = vmatpush.bf16.msrb.mxu1 %v5515_v52  ;;  %v8595_v34 = vadd.f32 %v1549_v4, %v1460_v6  ;;  %v8599_v60 = vpack.c.bf16 %v8450_v21, %v8352_v3  ;;  %vm8619_vm0 = vmor %vm2290_vm12, %vm2291_vm15  ;;  %v1552_v51 = vpop.f32.mrf.mxu3 }
 0x2e2   : > { %v8603_v33 = vmul.f32 %v8572_v53, %v7995_v7  ;;  %v8605_v0 = vmax.f32 %v2567_v2, 0.0  ;;  %v2318_v38 = vsub.f32 1.5, %v2317_v17  ;;  %v8607_v24 = vadd.f32 1.1754944e-38, %v1740_v23  ;;  %v1463_v21 = vpop.f32.mrf.mxu2  ;;  %v5647_v53 = vld [vmem:[#allocation6 + $0xa4] sm:$0xf0] }
 0x2e3   : > { %v8609_v61 = vmax.f32 %v2568_v54, 0.0  ;;  %v2505_v6 = vmul.f32 %v6654_v31, %v2283_v25  ;;  %v2326_v4 = vmul.f32 %v8562_v40, %v2325_v63  ;;  %v8613_v26 = vadd.f32 %v1374_v20, %v1285_v13 }
 0x2e4   : > { %10424 = vst [vmem:[#allocation111_spill] sm:$0xff] %v8605_v0  ;;  %vm2301_vm1 = vweird.f32 %v8480_v9  ;;  %v2335_v3 = vmul.f32 %v8593_v10, %v8538_v58  ;;  %v2859_v2 = vpack.c.bf16 %v8304_v16, %v8215_v18  ;;  %v8629_v17 = vpack.c.bf16 %v2821_v12, %v8501_v59 }
 0x2e5   : > { %10425 = vst [vmem:[#allocation112_spill] sm:$0xff] %v8609_v61  ;;  %v8631_v41 = vpop.eup %5999  ;;  %v2293_v14 = vsel %vm8619_vm0, %v8446_v19, %v2289_v36  ;;  %v2299_v23 = vmul.f32 %v8480_v9, %v2298_v35  ;;  %v2308_v62 = vsub.f32 1.5, %v2307_v28  ;;  %v8637_v54 = vadd.f32 %v1552_v51, %v1463_v21 }
 0x2e6   : > { %v8639_v15 = vpop.eup %6001  ;;  %v2319_v63 = vmul.f32 %v8488_v44, %v2318_v38  ;;  %vm2321_vm2 = vweird.f32 %v8488_v44  ;;  %6003 = vrsqrt.f32 %v8607_v24  ;;  %v1677_v18 = vmul.f32 %v8478_v11, %v8478_v11  ;;  %3115 = vmatmul.bf16.gmra.mxu0 %v2859_v2  ;;  %v1376_v20 = vpop.f32.mrf.mxu1 }
 0x2e7   : > { %v2569_v16 = vsub.f32 1.0, %v2505_v6  ;;  %vm2300_vm3 = vweird.f32 %v8398_v48  ;;  %vm2320_vm4 = vweird.f32 %v8418_v32  ;;  %v2327_v19 = vmul.f32 0.5, %v2326_v4  ;;  %3293 = vmatmul.bf16.gmra.mxu2 %v2859_v2  ;;  %v1287_v13 = vpop.f32.mrf.mxu0  ;;  %v10432_v4 = vld [vmem:[#allocation116_spill] sm:$0xff] }
 0x2e8   : > { %v2506_v59 = vmul.f32 %v6669_v27, %v2293_v14  ;;  %vm8651_vm5 = vmor %vm2300_vm3, %vm2301_vm1  ;;  %vm2311_vm6 = vweird.f32 %v8516_v39  ;;  %v2336_v52 = vmul.f32 %v8593_v10, %v2335_v3  ;;  %v1679_v25 = vmul.f32 %v8547_v37, %v8547_v37 }
 0x2e9   : > { %v2303_v48 = vsel %vm8651_vm5, %v8480_v9, %v2299_v23  ;;  %v2309_v32 = vmul.f32 %v8516_v39, %v2308_v62  ;;  %vm8665_vm7 = vmor %vm2320_vm4, %vm2321_vm2  ;;  %v2345_v35 = vmul.f32 %v8631_v41, %v8560_v22  ;;  %v2355_v28 = vmul.f32 %v8639_v15, %v8566_v55  ;;  %v10436_v23 = vld [vmem:[#allocation118_spill] sm:$0xff] }
 0x2ea   : > { %v8675_v38 = vmul.f32 %v8605_v0, %v8032_v46  ;;  %v8679_v9 = vmul.f32 %v8609_v61, %v8039_v1  ;;  %v2323_v6 = vsel %vm8665_vm7, %v8488_v44, %v2319_v63  ;;  %v1741_v7 = vadd.f32 %v1677_v18, %v10432_v4  ;;  %v1465_v63 = vpop.f32.mrf.mxu2  ;;  %v1554_v18 = vpop.f32.mrf.mxu3  ;;  %v5646_v61 = vld [vmem:[#allocation6 + $0xa4] sm:$0xf]  ;;  %v5434_v0 = vld [vmem:[#allocation6 + $0x20] sm:$0xf] }
 0x2eb   : > { %v8685_v3 = vmax.f32 %v2569_v16, 0.0  ;;  %vm2310_vm8 = vweird.f32 %v8442_v57  ;;  %v2328_v21 = vsub.f32 1.5, %v2327_v19  ;;  %v8688_v51 = vadd.f32 %v1376_v20, %v1287_v13 }
 0x2ec   : > { %v8690_v2 = vpop.eup %6003  ;;  %v2570_v46 = vsub.f32 1.0, %v2506_v59  ;;  %v2507_v14 = vmul.f32 %v6654_v31, %v2303_v48  ;;  %vm8695_vm9 = vmor %vm2310_vm8, %vm2311_vm6  ;;  %v2337_v44 = vmul.f32 0.5, %v2336_v52  ;;  %v1743_v62 = vadd.f32 %v1679_v25, %v10436_v23  ;;  %3204 = vmatmul.bf16.gmra.mxu1 %v8438_v8 }
 0x2ed   : > { %10433 = vst [vmem:[#allocation113_spill] sm:$0xff] %v8685_v3  ;;  %3382 = vmatmul.bf16.gmra.mxu3 %v8438_v8  ;;  %v2313_v57 = vsel %vm8695_vm9, %v8516_v39, %v2309_v32  ;;  %v2509_v16 = vmul.f32 %v6654_v31, %v2323_v6  ;;  %v2346_v19 = vmul.f32 %v8631_v41, %v2345_v35  ;;  %v8708_v12 = vadd.f32 1.1754944e-38, %v1741_v7 }
 0x2ee   : > { %v2356_v59 = vmul.f32 %v8639_v15, %v2355_v28  ;;  %v1680_v52 = vmul.f32 %v8595_v34, %v8595_v34  ;;  %v8712_v25 = vadd.f32 %v1554_v18, %v1465_v63  ;;  %v8716_v8 = vpack.c.bf16 %v8603_v33, %v8551_v50  ;;  %v3165_v4 = vpop.f32.mrf.mxu1  ;;  %v10441_v63 = vld [vmem:[#allocation117_spill] sm:$0xff] }
 0x2ef   : > { %v2329_v48 = vmul.f32 %v8562_v40, %v2328_v21  ;;  %vm2331_vm10 = vweird.f32 %v8562_v40  ;;  %v2365_v39 = vmul.f32 %v8690_v2, %v8607_v24  ;;  %v1678_v32 = vmul.f32 %v8542_v56, %v8542_v56  ;;  %v3076_v6 = vpop.f32.mrf.mxu0 }
 0x2f0   : > { %v8724_v36 = vmax.f32 %v2570_v46, 0.0  ;;  %vm2330_vm11 = vweird.f32 %v8486_v47  ;;  %v2338_v35 = vsub.f32 1.5, %v2337_v44  ;;  %v8727_v28 = vadd.f32 1.1754944e-38, %v1743_v62  ;;  %v10440_v47 = vld [vmem:[#allocation119_spill] sm:$0xff]  ;;  %v5444_v44 = vld [vmem:[#allocation6 + $0x38] sm:$0xf0] }
 0x2f1   : > { %v2571_v13 = vsub.f32 1.0, %v2507_v14  ;;  %v8730_v50 = vmul.f32 %v6669_v27, %v2313_v57  ;;  %v2573_v33 = vsub.f32 1.0, %v2509_v16  ;;  %v8732_v20 = vmul.f32 0.5, %v2346_v19  ;;  %vm8734_vm12 = vmor %vm2330_vm11, %vm2331_vm10  ;;  %v5632_v14 = vld [vmem:[#allocation6 + $0x34] sm:$0xf] }
 0x2f2   : > { %10437 = vst [vmem:[#allocation114_spill] sm:$0xff] %v8724_v36  ;;  %v8738_v21 = vmul.f32 0.5, %v2356_v59  ;;  %6005 = vrsqrt.f32 %v8708_v12  ;;  %v1744_v46 = vadd.f32 %v1680_v52, %v10440_v47  ;;  %v8742_v1 = vadd.f32 %v3165_v4, %v3076_v6  ;;  %v5648_v16 = vld [vmem:[#allocation6 + $0xb4] sm:$0xf]  ;;  %v5508_v19 = vld [vmem:[#allocation6 + $0xb8] sm:$0xf0]  ;;  %v3254_v59 = vpop.f32.mrf.mxu2  ;;  %v3343_v52 = vpop.f32.mrf.mxu3 }
 0x2f3   : > { %v2333_v23 = vsel %vm8734_vm12, %v8562_v40, %v2329_v48  ;;  %vm2340_vm13 = vweird.f32 %v8538_v58  ;;  %v2366_v62 = vmul.f32 %v8690_v2, %v2365_v39  ;;  %v1742_v18 = vadd.f32 %v1678_v32, %v10441_v63  ;;  %v5506_v63 = vld [vmem:[#allocation6 + $0xb0] sm:$0xf] }
 0x2f4   : > { %v2339_v57 = vmul.f32 %v8593_v10, %v2338_v35  ;;  %vm2341_vm14 = vweird.f32 %v8593_v10  ;;  %6007 = vrsqrt.f32 %v8727_v28  ;;  %v2861_v6 = vpack.c.bf16 %v8405_v45, %v8340_v30 }
 0x2f5   : > { %v8755_v40 = vmax.f32 %v2571_v13, 0.0  ;;  %v2572_v48 = vsub.f32 1.0, %v8730_v50  ;;  %v8758_v39 = vmax.f32 %v2573_v33, 0.0  ;;  %v5447_v32 = vor.u32 %v5632_v14, %v5444_v44  ;;  %vm8771_vm15 = vmor %vm2340_vm13, %vm2341_vm14 }
 0x2f6   : > { %v8761_v35 = vmul.f32 %v6669_v27, %v2333_v23  ;;  %v2358_v7 = vsub.f32 1.5, %v8738_v21  ;;  %v8765_v47 = vadd.f32 1.1754944e-38, %v1744_v46  ;;  %3120 = vmatmul.bf16.gmra.mxu0 %v2861_v6  ;;  %v8775_v45 = vmul.f32 0.5, %v2366_v62  ;;  %v10446_v46 = vld [vmem:[#allocation126_spill] sm:$0xff]  ;;  %v5442_v23 = vld [vmem:[#allocation6 + $0x30] sm:$0xf] }
 0x2f7   : > { %10442 = vst [vmem:[#allocation115_spill] sm:$0xff] %v8755_v40  ;;  %v8777_v13 = vadd.f32 1.1754944e-38, %v1742_v18  ;;  %v1683_v50 = vmul.f32 %v8688_v51, %v8688_v51  ;;  %3765 = vmatpush.bf16.msrb.mxu2 %v5447_v32  ;;  %v5511_v33 = vor.u32 %v5648_v16, %v5508_v19  ;;  %v8785_v14 = vmul.f32 %v8685_v3, %v10446_v46  ;;  %v5633_v62 = vld [vmem:[#allocation6 + $0x34] sm:$0xf0]  ;;  %v3078_v16 = vpop.f32.mrf.mxu0  ;;  %v3167_v19 = vpop.f32.mrf.mxu1  ;;  %v5436_v32 = vld [vmem:[#allocation6 + $0x28] sm:$0xf0] }
 0x2f8   : > { %10443 = vst [vmem:[#allocation116_spill] sm:$0xff] %v8758_v39  ;;  %v8781_v21 = vpop.eup %6005  ;;  %v8789_v58 = vmul.f32 %v8724_v36, %v8128_v29  ;;  %v2343_v44 = vsel %vm8771_vm15, %v8593_v10, %v2339_v57  ;;  %vm2360_vm0 = vweird.f32 %v8566_v55  ;;  %3298 = vmatmul.bf16.gmra.mxu2 %v2861_v6  ;;  %v8797_v18 = vmul.f32 %v8755_v40, %v8187_v42  ;;  %v5649_v10 = vld [vmem:[#allocation6 + $0xb4] sm:$0xf0]  ;;  %v5630_v57 = vld [vmem:[#allocation6 + $0x24] sm:$0xf] }
 0x2f9   : > { %vm2351_vm1 = vweird.f32 %v8631_v41  ;;  %vm2361_vm2 = vweird.f32 %v8639_v15  ;;  %3854 = vmatpush.bf16.msrb.mxu3 %v5511_v33  ;;  %v8801_v29 = vadd.f32 %v3343_v52, %v3254_v59  ;;  %v2574_v6 = vsub.f32 1.0, %v8761_v35  ;;  %v10449_v59 = vld [vmem:[#allocation102_spill] sm:$0xff]  ;;  %v10450_v35 = vld [vmem:[#allocation123_spill] sm:$0xff] }
 0x2fa   : > { %v8803_v30 = vpop.eup %6007  ;;  %vm2350_vm3 = vweird.f32 %v8560_v22  ;;  %6009 = vrsqrt.f32 %v8765_v47  ;;  %v1681_v42 = vmul.f32 %v8613_v26, %v8613_v26  ;;  %v8810_v46 = vadd.f32 %v3167_v19, %v3078_v16  ;;  %v5500_v36 = vld [vmem:[#allocation6 + $0xa8] sm:$0xf0]  ;;  %v3256_v19 = vpop.f32.mrf.mxu2  ;;  %vm8850_vm4 = vmor %vm2360_vm0, %vm2361_vm2 }
 0x2fb   : > { %10447 = vst [vmem:[#allocation118_spill] sm:$0xff] %v8801_v29  ;;  %v8814_v52 = vmul.f32 %v8758_v39, %v10449_v59  ;;  %v8817_v33 = vmul.f32 %v6654_v31, %v2343_v44  ;;  %v2375_v4 = vmul.f32 %v8781_v21, %v8708_v12  ;;  %v1747_v40 = vadd.f32 %v1683_v50, %v10450_v35  ;;  %v3345_v5 = vpop.f32.mrf.mxu3  ;;  %v5631_v59 = vld [vmem:[#allocation6 + $0x24] sm:$0xf0]  ;;  %v5498_v39 = vld [vmem:[#allocation6 + $0xa0] sm:$0xf]  ;;  %vm8881_vm6 = vmor %vm2350_vm3, %vm2351_vm1 }
 0x2fc   : > { %10448 = vst [vmem:[#allocation119_spill] sm:$0xff] %v8810_v46  ;;  %6011 = vrsqrt.f32 %v8777_v13  ;;  %v5443_v3 = vor.u32 %v5633_v62, %v5442_v23  ;;  %v5507_v16 = vor.u32 %v5649_v10, %v5506_v63  ;;  %3209 = vmatmul.bf16.gmra.mxu1 %v8599_v60  ;;  %v5439_v44 = vor.u32 %v5630_v57, %v5436_v32  ;;  %v10451_v62 = vld [vmem:[#allocation120_spill] sm:$0xff] }
 0x2fd   : > { %3387 = vmatmul.bf16.gmra.mxu3 %v8599_v60  ;;  %v2359_v43 = vmul.f32 %v8639_v15, %v2358_v7  ;;  %v2368_v50 = vsub.f32 1.5, %v8775_v45  ;;  %v2395_v35 = vmul.f32 %v8803_v30, %v8727_v28  ;;  %v8829_v46 = vadd.f32 %v3345_v5, %v3256_v19 }
 0x2fe   : > { %v8831_v23 = vmax.f32 %v2572_v48, 0.0  ;;  %v1745_v63 = vadd.f32 %v1681_v42, %v10451_v62  ;;  %v1684_v60 = vmul.f32 %v8712_v25, %v8712_v25  ;;  %3587 = vmatpush.bf16.msrb.mxu0 %v5443_v3  ;;  %3676 = vmatpush.bf16.msrb.mxu1 %v5507_v16  ;;  %v5503_v10 = vor.u32 %v5646_v61, %v5500_v36 }
 0x2ff   : > { %v2376_v57 = vmul.f32 %v8781_v21, %v2375_v4  ;;  %v8837_v7 = vadd.f32 1.1754944e-38, %v1747_v40  ;;  %3766 = vmatpush.bf16.msrb.mxu2 %v5439_v44  ;;  %v5435_v45 = vor.u32 %v5631_v59, %v5434_v0  ;;  %v5499_v32 = vor.u32 %v5647_v53, %v5498_v39  ;;  %v3170_v55 = vpop.f32.mrf.mxu1  ;;  %v10458_v44 = vld [vmem:[#allocation122_spill] sm:$0xff] }
 0x300   : > { %v8839_v29 = vpop.eup %6009  ;;  %v8841_v5 = vmax.f32 %v2574_v6, 0.0  ;;  %v10452_v48 = vsub.f32 1.5, %v8732_v20  ;;  %vm2371_vm5 = vweird.f32 %v8690_v2  ;;  %v1682_v53 = vmul.f32 %v8637_v54, %v8637_v54  ;;  %3855 = vmatpush.bf16.msrb.mxu3 %v5503_v10  ;;  %v3081_v20 = vpop.f32.mrf.mxu0  ;;  %v10455_v6 = vld [vmem:[#allocation124_spill] sm:$0xff] }
 0x301   : > { %v2363_v0 = vsel %vm8850_vm4, %v8639_v15, %v2359_v43  ;;  %v2369_v3 = vmul.f32 %v8690_v2, %v2368_v50  ;;  %v2396_v36 = vmul.f32 %v8803_v30, %v2395_v35  ;;  %v8864_v40 = vpack.c.bf16 %v8785_v14, %v8675_v38  ;;  %v10461_v10 = vld [vmem:[#allocation104_spill] sm:$0xff] }
 0x302   : > { %v2349_v42 = vmul.f32 %v8631_v41, %v10452_v48  ;;  %v8866_v39 = vpop.eup %6011  ;;  %v8868_v4 = vadd.f32 1.1754944e-38, %v1745_v63  ;;  %v1748_v16 = vadd.f32 %v1684_v60, %v10455_v6  ;;  %v8871_v19 = vadd.f32 %v3170_v55, %v3081_v20  ;;  %3588 = vmatpush.bf16.msrb.mxu0 %v5435_v45  ;;  %3677 = vmatpush.bf16.msrb.mxu1 %v5499_v32  ;;  %v3259_v59 = vpop.f32.mrf.mxu2  ;;  %v10462_v48 = vld [vmem:[#allocation101_spill] sm:$0xff] }
 0x303   : > { %v8875_v43 = vpack.c.bf16 %v8789_v58, %v8679_v9  ;;  %vm2370_vm7 = vweird.f32 %v8607_v24  ;;  %v2377_v38 = vmul.f32 0.5, %v2376_v57  ;;  %v2405_v14 = vmul.f32 %v8839_v29, %v8765_v47  ;;  %v3348_v50 = vpop.f32.mrf.mxu3 }
 0x304   : > { %6013 = vrsqrt.f32 %v8837_v7  ;;  %v2353_v9 = vsel %vm8881_vm6, %v8631_v41, %v2349_v42  ;;  %v2513_v58 = vmul.f32 %v6654_v31, %v2363_v0  ;;  %v1746_v22 = vadd.f32 %v1682_v53, %v10458_v44  ;;  %vm8901_vm8 = vmor %vm2370_vm7, %vm2371_vm5 }
 0x305   : > { %v8896_v35 = vpack.c.bf16 %v8814_v52, %v8797_v18  ;;  %v2575_v24 = vsub.f32 1.0, %v8817_v33  ;;  %v2385_v41 = vmul.f32 %v8866_v39, %v8777_v13  ;;  %v2397_v63 = vmul.f32 0.5, %v2396_v36 }
 0x306   : > { %v8907_v60 = vadd.f32 %v3348_v50, %v3259_v59  ;;  %v2830_v57 = vmul.f32 %v8841_v5, %v10461_v10  ;;  %v2373_v18 = vsel %vm8901_vm8, %v8690_v2, %v2369_v3  ;;  %6015 = vrsqrt.f32 %v8868_v4  ;;  %3125 = vmatmul.bf16.gmra.mxu0 %v8629_v17 }
 0x307   : > { %v8915_v52 = vadd.f32 1.1754944e-38, %v1748_v16  ;;  %v2512_v33 = vmul.f32 %v6669_v27, %v2353_v9  ;;  %v2378_v45 = vsub.f32 1.5, %v2377_v38  ;;  %v2406_v32 = vmul.f32 %v8839_v29, %v2405_v14  ;;  %v3172_v6 = vpop.f32.mrf.mxu1 }
 0x308   : > { %v2828_v42 = vmul.f32 %v8831_v23, %v10462_v48  ;;  %v2577_v61 = vsub.f32 1.0, %v2513_v58  ;;  %v8922_v53 = vadd.f32 1.1754944e-38, %v1746_v22  ;;  %3303 = vmatmul.bf16.gmra.mxu2 %v8629_v17  ;;  %v8927_v0 = vmax.f32 %v2575_v24, 0.0  ;;  %v3083_v55 = vpop.f32.mrf.mxu0 }
 0x309   : > { %v2514_v3 = vmul.f32 %v6669_v27, %v2373_v18  ;;  %v2386_v36 = vmul.f32 %v8866_v39, %v2385_v41  ;;  %v2398_v20 = vsub.f32 1.5, %v2397_v63  ;;  %vm2380_vm9 = vweird.f32 %v8708_v12  ;;  %v10466_v12 = vld [vmem:[#allocation88_spill] sm:$0xff] }
 0x30a   : > { %v8925_v2 = vpop.eup %6013  ;;  %6017 = vrsqrt.f32 %v8915_v52  ;;  %v8933_v16 = vadd.f32 %v3172_v6, %v3083_v55  ;;  %v8935_v15 = vpack.c.bf16 %v2830_v57, %v2828_v42  ;;  %v2576_v17 = vsub.f32 1.0, %v2512_v33  ;;  %v3261_v22 = vpop.f32.mrf.mxu2  ;;  %v10465_v33 = vld [vmem:[#allocation105_spill] sm:$0xff] }
 0x30b   : > { %v2379_v38 = vmul.f32 %v8781_v21, %v2378_v45  ;;  %vm2381_vm10 = vweird.f32 %v8781_v21  ;;  %v2407_v14 = vmul.f32 0.5, %v2406_v32  ;;  %v8941_v58 = vmax.f32 %v2577_v61, 0.0  ;;  %v3350_v59 = vpop.f32.mrf.mxu3 }
 0x30c   : > { %v8939_v9 = vpop.eup %6015  ;;  %vm2401_vm11 = vweird.f32 %v8803_v30  ;;  %6019 = vrsqrt.f32 %v8922_v53  ;;  %v2435_v44 = vmul.f32 %v8925_v2, %v8837_v7  ;;  %3214 = vmatmul.bf16.gmra.mxu1 %v8716_v8  ;;  %v2578_v50 = vsub.f32 1.0, %v2514_v3  ;;  %vm8956_vm12 = vmor %vm2380_vm9, %vm2381_vm10 }
 0x30d   : > { %3392 = vmatmul.bf16.gmra.mxu3 %v8716_v8  ;;  %v2387_v24 = vmul.f32 0.5, %v2386_v36  ;;  %v2399_v62 = vmul.f32 %v8803_v30, %v2398_v20  ;;  %v8950_v41 = vadd.f32 %v3350_v59, %v3261_v22  ;;  %v2383_v10 = vsel %vm8956_vm12, %v8781_v21, %v2379_v38  ;;  %v5628_v38 = vld [vmem:[#allocation6 + $0x14] sm:$0xf] }
 0x30e   : > { %vm2400_vm13 = vweird.f32 %v8727_v28  ;;  %v2408_v8 = vsub.f32 1.5, %v2407_v14  ;;  %v2415_v57 = vmul.f32 %v8939_v9, %v8868_v4  ;;  %v2831_v45 = vmul.f32 %v8927_v0, %v10465_v33  ;;  %v5428_v14 = vld [vmem:[#allocation6 + $0x18] sm:$0xf0] }
 0x30f   : > { %v2833_v32 = vmul.f32 %v8941_v58, %v10466_v12  ;;  %vm8974_vm14 = vmor %vm2400_vm13, %vm2401_vm11  ;;  %v2436_v28 = vmul.f32 %v8925_v2, %v2435_v44  ;;  %v8979_v21 = vmax.f32 %v2576_v17, 0.0  ;;  %v8981_v42 = vmax.f32 %v2578_v50, 0.0  ;;  %v3175_v20 = vpop.f32.mrf.mxu1  ;;  %v5644_v44 = vld [vmem:[#allocation6 + $0x94] sm:$0xf] }
 0x310   : > { %v8966_v18 = vpop.eup %6017  ;;  %v2388_v61 = vsub.f32 1.5, %v2387_v24  ;;  %v2403_v3 = vsel %vm8974_vm14, %v8803_v30, %v2399_v62  ;;  %v3086_v36 = vpop.f32.mrf.mxu0  ;;  %v8989_v6 = vmul.f32 %v6654_v31, %v2383_v10  ;;  %vm2391_vm15 = vweird.f32 %v8866_v39  ;;  %v5492_v24 = vld [vmem:[#allocation6 + $0x98] sm:$0xf0] }
 0x311   : > { %vm2411_vm0 = vweird.f32 %v8839_v29  ;;  %v8993_v17 = vadd.f32 %v3175_v20, %v3086_v36  ;;  %v2409_v22 = vmul.f32 %v8839_v29, %v2408_v8  ;;  %v2416_v30 = vmul.f32 %v8939_v9, %v2415_v57 }
 0x312   : > { %v8986_v55 = vpop.eup %6019  ;;  %v2445_v59 = vmul.f32 %v8966_v18, %v8915_v52  ;;  %v5431_v50 = vor.u32 %v5628_v38, %v5428_v14  ;;  %v2517_v62 = vmul.f32 %v6654_v31, %v2403_v3  ;;  %v2437_v63 = vmul.f32 0.5, %v2436_v28  ;;  %v3264_v10 = vpop.f32.mrf.mxu2 }
 0x313   : > { %v3353_v33 = vpop.f32.mrf.mxu3  ;;  %v5495_v12 = vor.u32 %v5644_v44, %v5492_v24  ;;  %v9000_v48 = vpack.c.bf16 %v2833_v32, %v2831_v45  ;;  %v2389_v36 = vmul.f32 %v8866_v39, %v2388_v61  ;;  %vm2410_vm1 = vweird.f32 %v8765_v47  ;;  %v10471_v61 = vld [vmem:[#allocation106_spill] sm:$0xff] }
 0x314   : > { %v2425_v8 = vmul.f32 %v8986_v55, %v8922_v53  ;;  %v9006_v57 = vadd.f32 %v3353_v33, %v3264_v10  ;;  %3767 = vmatpush.bf16.msrb.mxu2 %v5431_v50  ;;  %v2834_v20 = vmul.f32 %v8981_v42, %v8401_v49  ;;  %vm9012_vm2 = vmor %vm2410_vm1, %vm2411_vm0  ;;  %vm2390_vm3 = vweird.f32 %v8777_v13  ;;  %v5490_v50 = vld [vmem:[#allocation6 + $0x90] sm:$0xf] }
 0x315   : > { %3856 = vmatpush.bf16.msrb.mxu3 %v5495_v12  ;;  %v2413_v47 = vsel %vm9012_vm2, %v8839_v29, %v2409_v22  ;;  %v2417_v45 = vmul.f32 0.5, %v2416_v30  ;;  %v2446_v32 = vmul.f32 %v8966_v18, %v2445_v59  ;;  %v2832_v49 = vmul.f32 %v8979_v21, %v10471_v61  ;;  %vm9027_vm4 = vmor %vm2390_vm3, %vm2391_vm15  ;;  %v5426_v59 = vld [vmem:[#allocation6 + $0x10] sm:$0xf] }
 0x316   : > { %3130 = vmatmul.bf16.gmra.mxu0 %v8864_v40  ;;  %v2579_v3 = vsub.f32 1.0, %v8989_v6  ;;  %v2581_v14 = vsub.f32 1.0, %v2517_v62  ;;  %v2438_v13 = vsub.f32 1.5, %v2437_v63  ;;  %v2393_v29 = vsel %vm9027_vm4, %v8866_v39, %v2389_v36  ;;  %v5629_v6 = vld [vmem:[#allocation6 + $0x14] sm:$0xf0] }
 0x317   : > { %v2426_v44 = vmul.f32 %v8986_v55, %v2425_v8  ;;  %v3177_v30 = vpop.f32.mrf.mxu1  ;;  %v2518_v24 = vmul.f32 %v6669_v27, %v2413_v47  ;;  %v5427_v33 = vor.u32 %v5629_v6, %v5426_v59  ;;  %v5645_v62 = vld [vmem:[#allocation6 + $0x94] sm:$0xf0]  ;;  %v9039_v63 = vpack.c.bf16 %v2834_v20, %v2832_v49 }
 0x318   : > { %3308 = vmatmul.bf16.gmra.mxu2 %v8864_v40  ;;  %v3088_v22 = vpop.f32.mrf.mxu0  ;;  %v2418_v40 = vsub.f32 1.5, %v2417_v45  ;;  %v2447_v12 = vmul.f32 0.5, %v2446_v32  ;;  %v5491_v28 = vor.u32 %v5645_v62, %v5490_v50  ;;  %v2516_v39 = vmul.f32 %v6669_v27, %v2393_v29 }
 0x319   : > { %v9037_v10 = vadd.f32 %v3177_v30, %v3088_v22  ;;  %v9042_v36 = vmax.f32 %v2581_v14, 0.0  ;;  %v2427_v47 = vmul.f32 0.5, %v2426_v44  ;;  %v2439_v38 = vmul.f32 %v8925_v2, %v2438_v13  ;;  %3589 = vmatpush.bf16.msrb.mxu0 %v5427_v33 }
 0x31a   : > { %v3266_v8 = vpop.f32.mrf.mxu2  ;;  %vm2441_vm5 = vweird.f32 %v8925_v2  ;;  %3678 = vmatpush.bf16.msrb.mxu1 %v5491_v28  ;;  %v9050_v45 = vmax.f32 %v2579_v3, 0.0  ;;  %v2582_v32 = vsub.f32 1.0, %v2518_v24  ;;  %v2419_v49 = vmul.f32 %v8939_v9, %v2418_v40 }
 0x31b   : > { %v3355_v61 = vpop.f32.mrf.mxu3  ;;  %vm2421_vm6 = vweird.f32 %v8939_v9  ;;  %vm2440_vm7 = vweird.f32 %v8837_v7  ;;  %v2448_v14 = vsub.f32 1.5, %v2447_v12  ;;  %v2837_v13 = vmul.f32 %v9042_v36, %v8547_v37 }
 0x31c   : > { %3219 = vmatmul.bf16.gmra.mxu1 %v8875_v43  ;;  %v9048_v20 = vadd.f32 %v3355_v61, %v3266_v8  ;;  %vm2442_vm8 = vmor %vm2440_vm7, %vm2441_vm5  ;;  %vm2420_vm9 = vweird.f32 %v8868_v4  ;;  %v2428_v29 = vsub.f32 1.5, %v2427_v47  ;;  %v2835_v30 = vmul.f32 %v9050_v45, %v8478_v11 }
 0x31d   : > { %3397 = vmatmul.bf16.gmra.mxu3 %v8875_v43  ;;  %v2580_v43 = vsub.f32 1.0, %v2516_v39  ;;  %v2443_v44 = vsel %vm2442_vm8, %v8925_v2, %v2439_v38  ;;  %v9061_v59 = vmax.f32 %v2582_v32, 0.0  ;;  %vm2422_vm10 = vmor %vm2420_vm9, %vm2421_vm6  ;;  %v2449_v37 = vmul.f32 %v8966_v18, %v2448_v14 }
 0x31e   : > { %v2423_v6 = vsel %vm2422_vm10, %v8939_v9, %v2419_v49  ;;  %vm2451_vm11 = vweird.f32 %v8966_v18  ;;  %v2521_v2 = vmul.f32 %v6654_v31, %v2443_v44  ;;  %v9071_v33 = vpack.c.bf16 %v2837_v13, %v2835_v30  ;;  %v5420_v44 = vld [vmem:[#allocation6 + $0x8] sm:$0xf0] }
 0x31f   : > { %v3180_v22 = vpop.f32.mrf.mxu1  ;;  %v9068_v4 = vmax.f32 %v2580_v43, 0.0  ;;  %v2429_v11 = vmul.f32 %v8986_v55, %v2428_v29  ;;  %vm2431_vm12 = vweird.f32 %v8986_v55  ;;  %vm2450_vm13 = vweird.f32 %v8915_v52 }
 0x320   : > { %v3091_v3 = vpop.f32.mrf.mxu0  ;;  %v2838_v9 = vmul.f32 %v9061_v59, %v8595_v34  ;;  %v2519_v40 = vmul.f32 %v6654_v31, %v2423_v6  ;;  %vm2452_vm14 = vmor %vm2450_vm13, %vm2451_vm11  ;;  %vm2430_vm15 = vweird.f32 %v8922_v53  ;;  %v2585_v39 = vsub.f32 1.0, %v2521_v2 }
 0x321   : > { %v9063_v7 = vadd.f32 %v3180_v22, %v3091_v3  ;;  %v2453_v12 = vsel %vm2452_vm14, %v8966_v18, %v2449_v37  ;;  %v2836_v28 = vmul.f32 %v9068_v4, %v8542_v56  ;;  %vm2432_vm0 = vmor %vm2430_vm15, %vm2431_vm12  ;;  %v5642_v3 = vld [vmem:[#allocation6 + $0x84] sm:$0xf]  ;;  %v5484_v37 = vld [vmem:[#allocation6 + $0x88] sm:$0xf0]  ;;  %vm4166_vm1 = vcmask 523264  }
 0x322   : > { %v3269_v50 = vpop.f32.mrf.mxu2  ;;  %v2433_v52 = vsel %vm2432_vm0, %v8986_v55, %v2429_v11  ;;  %v2583_v61 = vsub.f32 1.0, %v2519_v40  ;;  %v2522_v31 = vmul.f32 %v6669_v27, %v2453_v12  ;;  %v9092_v18 = vmax.f32 %v2585_v39, 0.0  ;;  %v5418_v39 = vld [vmem:[#allocation6] sm:$0xf] }
 0x323   : > { %v3358_v24 = vpop.f32.mrf.mxu3  ;;  %v2872_v38 = vpack.c.bf16 %v2838_v9, %v2836_v28  ;;  %v2520_v53 = vmul.f32 %v6669_v27, %v2433_v52  ;;  %v5626_v27 = vld [vmem:[#allocation6 + $0x4] sm:$0xf]  ;;  %v5487_v2 = vor.u32 %v5642_v3, %v5484_v37  ;;  %v5627_v52 = vld [vmem:[#allocation6 + $0x4] sm:$0xf0] }
 0x324   : > { %v9076_v62 = vadd.f32 %v3358_v24, %v3269_v50  ;;  %v9098_v55 = vmax.f32 %v2583_v61, 0.0  ;;  %v2586_v49 = vsub.f32 1.0, %v2522_v31  ;;  %v2841_v43 = vmul.f32 %v9092_v18, %v8688_v51  ;;  %v5643_v61 = vld [vmem:[#allocation6 + $0x84] sm:$0xf0] }
 0x325   : > { %v2584_v14 = vsub.f32 1.0, %v2520_v53  ;;  %v5423_v6 = vor.u32 %v5626_v27, %v5420_v44  ;;  %3857 = vmatpush.bf16.msrb.mxu3 %v5487_v2 }
 0x326   : > { %3135 = vmatmul.bf16.gmra.mxu0 %v8896_v35  ;;  %v2839_v22 = vmul.f32 %v9098_v55, %v8613_v26  ;;  %v9104_v30 = vmax.f32 %v2586_v49, 0.0 }
 0x327   : > { %v3182_v34 = vpop.f32.mrf.mxu1  ;;  %v9108_v50 = vmax.f32 %v2584_v14, 0.0  ;;  %3768 = vmatpush.bf16.msrb.mxu2 %v5423_v6 }
 0x328   : > { %3313 = vmatmul.bf16.gmra.mxu2 %v8896_v35  ;;  %v3093_v8 = vpop.f32.mrf.mxu0  ;;  %v2873_v51 = vpack.c.bf16 %v2841_v43, %v2839_v22  ;;  %v2842_v40 = vmul.f32 %v9104_v30, %v8712_v25 }
 0x329   : > { %v9089_v47 = vadd.f32 %v3182_v34, %v3093_v8  ;;  %v2840_v26 = vmul.f32 %v9108_v50, %v8637_v54  ;;  %v5482_v8 = vld [vmem:[#allocation6 + $0x80] sm:$0xf]  ;;  %v5419_v34 = vor.u32 %v5627_v52, %v5418_v39 }
 0x32a   : > { %v3271_v32 = vpop.f32.mrf.mxu2  ;;  %v5483_v53 = vor.u32 %v5643_v61, %v5482_v8  ;;  %v10475_v52 = vld [vmem:[#allocation81_spill] sm:$0xff]  ;;  %v10477_v8 = vld [vmem:[#allocation76_spill] sm:$0xff] }
 0x32b   : > { %v3360_v56 = vpop.f32.mrf.mxu3  ;;  %v2874_v31 = vpack.c.bf16 %v2842_v40, %v2840_v26  ;;  %3590 = vmatpush.bf16.msrb.mxu0 %v5419_v34  ;;  %v10474_v26 = vld [vmem:[#allocation77_spill] sm:$0xff] }
 0x32c   : > { %3224 = vmatmul.bf16.gmra.mxu1 %v8935_v15  ;;  %v9096_v35 = vadd.f32 %v3360_v56, %v3271_v32 }
 0x32d   : > { %3402 = vmatmul.bf16.gmra.mxu3 %v8935_v15  ;;  %3679 = vmatpush.bf16.msrb.mxu1 %v5483_v53  ;;  %v10478_v53 = vld [vmem:[#allocation9_spill] sm:$0xff] }
 0x32f   : > { %v3185_v29 = vpop.f32.mrf.mxu1 }
 0x330   : > { %v3096_v13 = vpop.f32.mrf.mxu0 }
 0x331   : > { %v9106_v15 = vadd.f32 %v3185_v29, %v3096_v13 }
 0x332   : > { %v3274_v24 = vpop.f32.mrf.mxu2 }
 0x333   : > { %v3363_v11 = vpop.f32.mrf.mxu3 }
 0x334   : > { %v9110_v9 = vadd.f32 %v3363_v11, %v3274_v24 }
 0x336   : > { %3140 = vmatmul.bf16.gmra.mxu0 %v9000_v48 }
 0x337   : > { %v3187_v28 = vpop.f32.mrf.mxu1 }
 0x338   : > { %3318 = vmatmul.bf16.gmra.mxu2 %v9000_v48  ;;  %v3098_v12 = vpop.f32.mrf.mxu0 }
 0x33a   : > { %v3276_v32 = vpop.f32.mrf.mxu2 }
 0x33b   : > { %v3365_v56 = vpop.f32.mrf.mxu3  ;;  %v10479_v32 = vld [vmem:[#allocation75_spill] sm:$0xff] }
 0x33c   : > { %3229 = vmatmul.bf16.gmra.mxu1 %v9039_v63  ;;  %v2655_v56 = vmul.f32 %v10479_v32, %v10478_v53 }
 0x33d   : > { %3407 = vmatmul.bf16.gmra.mxu3 %v9039_v63 }
 0x33f   : > { %v3190_v25 = vpop.f32.mrf.mxu1 }
 0x340   : > { %v3101_v54 = vpop.f32.mrf.mxu0 }
 0x342   : > { %v3279_v48 = vpop.f32.mrf.mxu2 }
 0x343   : > { %v3368_v49 = vpop.f32.mrf.mxu3 }
 0x344   : > { %v10480_v49 = vld [vmem:[#allocation12_spill] sm:$0xff] }
 0x346   : > { %3145 = vmatmul.bf16.gmra.mxu0 %v9071_v33 }
 0x347   : > { %v3192_v43 = vpop.f32.mrf.mxu1 }
 0x348   : > { %3323 = vmatmul.bf16.gmra.mxu2 %v9071_v33  ;;  %v3103_v14 = vpop.f32.mrf.mxu0 }
 0x349   : > { %v10481_v14 = vld [vmem:[#allocation31_spill] sm:$0xff] }
 0x34a   : > { %v3281_v13 = vpop.f32.mrf.mxu2  ;;  %v2658_v43 = vmul.f32 %v10481_v14, %v10480_v49  ;;  %v10493_v49 = vld [vmem:[#allocation80_spill] sm:$0xff] }
 0x34b   : > { %v3370_v29 = vpop.f32.mrf.mxu3  ;;  %v10482_v13 = vld [vmem:[#allocation10_spill] sm:$0xff] }
 0x34c   : > { %3234 = vmatmul.bf16.gmra.mxu1 %v2872_v38  ;;  %v10483_v29 = vld [vmem:[#allocation74_spill] sm:$0xff] }
 0x34d   : > { %3412 = vmatmul.bf16.gmra.mxu3 %v2872_v38 }
 0x34f   : > { %v3195_v44 = vpop.f32.mrf.mxu1 }
 0x350   : > { %v3106_v27 = vpop.f32.mrf.mxu0 }
 0x351   : > { %v2656_v27 = vmul.f32 %v10483_v29, %v10482_v13  ;;  %v10494_v29 = vld [vmem:[#allocation17_spill] sm:$0xff] }
 0x352   : > { %v3284_v3 = vpop.f32.mrf.mxu2 }
 0x353   : > { %v3373_v63 = vpop.f32.mrf.mxu3 }
 0x354   : > { %v2718_v63 = vpack.c.bf16 %v2658_v43, %v2656_v27  ;;  %v10495_v27 = vld [vmem:[#allocation129_spill] sm:$0xff] }
 0x356   : > { %3150 = vmatmul.bf16.gmra.mxu0 %v2873_v51 }
 0x357   : > { %v3197_v6 = vpop.f32.mrf.mxu1 }
 0x358   : > { %3328 = vmatmul.bf16.gmra.mxu2 %v2873_v51  ;;  %v3108_v22 = vpop.f32.mrf.mxu0  ;;  %v10476_v51 = vld [vmem:[#allocation11_spill] sm:$0xff] }
 0x359   : > { %v2657_v34 = vmul.f32 %v10477_v8, %v10476_v51  ;;  %v10489_v51 = vld [vmem:[#allocation128_spill] sm:$0xff] }
 0x35a   : > { %v3286_v37 = vpop.f32.mrf.mxu2 }
 0x35b   : > { %v3375_v2 = vpop.f32.mrf.mxu3  ;;  %v2717_v48 = vpack.c.bf16 %v2657_v34, %v2655_v56  ;;  %v10484_v37 = vld [vmem:[#allocation15_spill] sm:$0xff]  ;;  %v10490_v34 = vld [vmem:[#allocation14_spill] sm:$0xff] }
 0x35c   : > { %3239 = vmatmul.bf16.gmra.mxu1 %v2874_v31  ;;  %v10485_v2 = vld [vmem:[#allocation127_spill] sm:$0xff] }
 0x35d   : > { %3417 = vmatmul.bf16.gmra.mxu3 %v2874_v31 }
 0x35f   : > { %v3200_v33 = vpop.f32.mrf.mxu1 }
 0x360   : > { %v3111_v24 = vpop.f32.mrf.mxu0 }
 0x361   : > { %v2661_v24 = vmul.f32 %v10485_v2, %v10484_v37  ;;  %v10497_v37 = vld [vmem:[#allocation82_spill] sm:$0xff] }
 0x362   : > { %v3289_v11 = vpop.f32.mrf.mxu2 }
 0x363   : > { %v3378_v40 = vpop.f32.mrf.mxu3 }
 0x364   : > { %v10486_v40 = vld [vmem:[#allocation13_spill] sm:$0xff] }
 0x366   : > { %3591 = vmatmul.bf16.vlgmr.msrb.gmra.mxu0 %v10474_v26 }
 0x367   : > { %v3202_v12 = vpop.f32.mrf.mxu1 }
 0x368   : > { %3769 = vmatmul.bf16.vlgmr.msrb.gmra.mxu2 %v10474_v26  ;;  %v3113_v38 = vpop.f32.mrf.mxu0  ;;  %v10487_v26 = vld [vmem:[#allocation125_spill] sm:$0xff] }
 0x369   : > { %v2659_v38 = vmul.f32 %v10487_v26, %v10486_v40 }
 0x36a   : > { %v3291_v28 = vpop.f32.mrf.mxu2 }
 0x36b   : > { %v3380_v39 = vpop.f32.mrf.mxu3 }
 0x36c   : > { %3680 = vmatmul.bf16.vlgmr.msrb.gmra.mxu1 %v10475_v52  ;;  %v2719_v39 = vpack.c.bf16 %v2661_v24, %v2659_v38  ;;  %v10498_v24 = vld [vmem:[#allocation18_spill] sm:$0xff] }
 0x36d   : > { %3858 = vmatmul.bf16.vlgmr.msrb.gmra.mxu3 %v10475_v52  ;;  %v10488_v52 = vld [vmem:[#allocation16_spill] sm:$0xff] }
 0x36e   : > { %v2662_v8 = vmul.f32 %v10489_v51, %v10488_v52  ;;  %v10501_v52 = vld [vmem:[#allocation87_spill] sm:$0xff] }
 0x36f   : > { %v3205_v31 = vpop.f32.mrf.mxu1 }
 0x370   : > { %v3116_v61 = vpop.f32.mrf.mxu0 }
 0x371   : > { %v10491_v61 = vld [vmem:[#allocation36_spill] sm:$0xff] }
 0x372   : > { %v3294_v54 = vpop.f32.mrf.mxu2  ;;  %v2660_v31 = vmul.f32 %v10491_v61, %v10490_v34  ;;  %v10502_v61 = vld [vmem:[#allocation22_spill] sm:$0xff] }
 0x373   : > { %v3383_v25 = vpop.f32.mrf.mxu3 }
 0x374   : > { %v2720_v56 = vpack.c.bf16 %v2662_v8, %v2660_v31  ;;  %v10503_v31 = vld [vmem:[#allocation84_spill] sm:$0xff] }
 0x376   : > { %3596 = vmatmul.bf16.gmra.mxu0 %v2717_v48 }
 0x377   : > { %v3207_v3 = vpop.f32.mrf.mxu1 }
 0x378   : > { %3774 = vmatmul.bf16.gmra.mxu2 %v2717_v48  ;;  %v3118_v44 = vpop.f32.mrf.mxu0  ;;  %v10492_v48 = vld [vmem:[#allocation19_spill] sm:$0xff] }
 0x379   : > { %v2665_v14 = vmul.f32 %v10493_v49, %v10492_v48  ;;  %v2663_v44 = vmul.f32 %v10495_v27, %v10494_v29  ;;  %v10504_v48 = vld [vmem:[#allocation25_spill] sm:$0xff]  ;;  %v10505_v49 = vld [vmem:[#allocation90_spill] sm:$0xff] }
 0x37a   : > { %v3296_v22 = vpop.f32.mrf.mxu2 }
 0x37b   : > { %v3385_v6 = vpop.f32.mrf.mxu3  ;;  %v2721_v22 = vpack.c.bf16 %v2665_v14, %v2663_v44  ;;  %v2670_v14 = vmul.f32 %v10505_v49, %v10504_v48  ;;  %v10516_v48 = vld [vmem:[#allocation34_spill] sm:$0xff]  ;;  %v10517_v49 = vld [vmem:[#allocation95_spill] sm:$0xff] }
 0x37c   : > { %3685 = vmatmul.bf16.gmra.mxu1 %v2718_v63  ;;  %v10496_v6 = vld [vmem:[#allocation20_spill] sm:$0xff] }
 0x37d   : > { %3863 = vmatmul.bf16.gmra.mxu3 %v2718_v63  ;;  %v2666_v2 = vmul.f32 %v10497_v37, %v10496_v6  ;;  %v10508_v6 = vld [vmem:[#allocation29_spill] sm:$0xff] }
 0x37e   : > { %v10509_v37 = vld [vmem:[#allocation121_spill] sm:$0xff] }
 0x37f   : > { %v3210_v11 = vpop.f32.mrf.mxu1 }
 0x380   : > { %v3121_v33 = vpop.f32.mrf.mxu0 }
 0x381   : > { %v10499_v33 = vld [vmem:[#allocation78_spill] sm:$0xff] }
 0x382   : > { %v3299_v12 = vpop.f32.mrf.mxu2  ;;  %v2664_v11 = vmul.f32 %v10499_v33, %v10498_v24 }
 0x383   : > { %v3388_v28 = vpop.f32.mrf.mxu3 }
 0x384   : > { %v2722_v38 = vpack.c.bf16 %v2666_v2, %v2664_v11  ;;  %v2673_v2 = vmul.f32 %v10509_v37, %v10508_v6  ;;  %v10510_v11 = vld [vmem:[#allocation27_spill] sm:$0xff]  ;;  %v10521_v37 = vld [vmem:[#allocation96_spill] sm:$0xff] }
 0x385   : > { %v10520_v6 = vld [vmem:[#allocation35_spill] sm:$0xff] }
 0x386   : > { %3601 = vmatmul.bf16.gmra.mxu0 %v2719_v39 }
 0x387   : > { %v3212_v32 = vpop.f32.mrf.mxu1 }
 0x388   : > { %3779 = vmatmul.bf16.gmra.mxu2 %v2719_v39  ;;  %v3123_v53 = vpop.f32.mrf.mxu0  ;;  %v10500_v39 = vld [vmem:[#allocation24_spill] sm:$0xff] }
 0x389   : > { %v2669_v51 = vmul.f32 %v10501_v52, %v10500_v39  ;;  %v2667_v53 = vmul.f32 %v10503_v31, %v10502_v61  ;;  %v10512_v39 = vld [vmem:[#allocation30_spill] sm:$0xff]  ;;  %v10513_v52 = vld [vmem:[#allocation73_spill] sm:$0xff] }
 0x38a   : > { %v3301_v54 = vpop.f32.mrf.mxu2 }
 0x38b   : > { %v3390_v25 = vpop.f32.mrf.mxu3  ;;  %v2723_v54 = vpack.c.bf16 %v2669_v51, %v2667_v53  ;;  %v2674_v51 = vmul.f32 %v10513_v52, %v10512_v39  ;;  %v10524_v39 = vld [vmem:[#allocation39_spill] sm:$0xff] }
 0x38c   : > { %3690 = vmatmul.bf16.gmra.mxu1 %v2720_v56  ;;  %v6180_v25 = vmov 0.0   ;;  %v10525_v52 = vld [vmem:[#allocation99_spill] sm:$0xff] }
 0x38d   : > { %3868 = vmatmul.bf16.gmra.mxu3 %v2720_v56  ;;  %5779 = vrot.lane.b32.xlu0 %v6180_v25, %s6181_s27  ;;  %4167 = vst.msk [vmem:[%s9207_s28] sm:$0xff] %vm4166_vm1, %v6180_v25 }
 0x38e   : > { %5784 = vrot.lane.b32.xlu1 %v6180_v25, %s6181_s27  ;;  %5789 = vrot.lane.b32.xlu2 %v6180_v25, %s6181_s27  ;;  %4168 = vst.msk [vmem:[%s9207_s28 + $0x8] sm:$0xff] %vm4166_vm1, %v6180_v25 }
 0x38f   : > { %v3215_v13 = vpop.f32.mrf.mxu1  ;;  %4169 = vst.msk [vmem:[%s9207_s28 + $0x10] sm:$0xff] %vm4166_vm1, %v6180_v25 }
 0x390   : > { %v3126_v43 = vpop.f32.mrf.mxu0  ;;  %v10507_v13 = vld [vmem:[#allocation21_spill] sm:$0xff]  ;;  %4170 = vst.msk [vmem:[%s9207_s28 + $0x18] sm:$0xff] %vm4166_vm1, %v6180_v25 }
 0x391   : > { %v10506_v43 = vld [vmem:[#allocation23_spill] sm:$0xff]  ;;  %4171 = vst.msk [vmem:[%s9207_s28 + $0x20] sm:$0xff] %vm4166_vm1, %v6180_v25 }
 0x392   : > { %v3304_v3 = vpop.f32.mrf.mxu2  ;;  %v2668_v29 = vmul.f32 %v10507_v13, %v10506_v43  ;;  %4172 = vst.msk [vmem:[%s9207_s28 + $0x28] sm:$0xff] %vm4166_vm1, %v6180_v25 }
 0x393   : > { %v3393_v63 = vpop.f32.mrf.mxu3  ;;  %4173 = vst.msk [vmem:[%s9207_s28 + $0x30] sm:$0xff] %vm4166_vm1, %v6180_v25 }
 0x394   : > { %v2724_v3 = vpack.c.bf16 %v2670_v14, %v2668_v29  ;;  %v2677_v14 = vmul.f32 %v10517_v49, %v10516_v48  ;;  %v10518_v29 = vld [vmem:[#allocation32_spill] sm:$0xff]  ;;  %v10529_v49 = vld [vmem:[#allocation79_spill] sm:$0xff]  ;;  %4174 = vst.msk [vmem:[%s9207_s28 + $0x38] sm:$0xff] %vm4166_vm1, %v6180_v25 }
 0x395   : > { %5794 = vrot.lane.b32.xlu0 %v6180_v25, %s6181_s27  ;;  %v10528_v48 = vld [vmem:[#allocation40_spill] sm:$0xff]  ;;  %4175 = vst.msk [vmem:[%s9207_s28 + $0x40] sm:$0xff] %vm4166_vm1, %v6180_v25 }
 0x396   : > { %3606 = vmatmul.bf16.gmra.mxu0 %v2721_v22  ;;  %5799 = vrot.lane.b32.xlu1 %v6180_v25, %s6181_s27  ;;  %4176 = vst.msk [vmem:[%s9207_s28 + $0x48] sm:$0xff] %vm4166_vm1, %v6180_v25 }
 0x397   : > { %v3217_v26 = vpop.f32.mrf.mxu1  ;;  %5804 = vrot.lane.b32.xlu2 %v6180_v25, %s6181_s27  ;;  %4177 = vst.msk [vmem:[%s9207_s28 + $0x50] sm:$0xff] %vm4166_vm1, %v6180_v25 }
 0x398   : > { %3784 = vmatmul.bf16.gmra.mxu2 %v2721_v22  ;;  %v3128_v40 = vpop.f32.mrf.mxu0  ;;  %4178 = vst.msk [vmem:[%s9207_s28 + $0x58] sm:$0xff] %vm4166_vm1, %v6180_v25 }
 0x399   : > { %v10511_v40 = vld [vmem:[#allocation26_spill] sm:$0xff]  ;;  %4179 = vst.msk [vmem:[%s9207_s28 + $0x60] sm:$0xff] %vm4166_vm1, %v6180_v25 }
 0x39a   : > { %v3306_v12 = vpop.f32.mrf.mxu2  ;;  %v2671_v26 = vmul.f32 %v10511_v40, %v10510_v11  ;;  %4180 = vst.msk [vmem:[%s9207_s28 + $0x68] sm:$0xff] %vm4166_vm1, %v6180_v25 }
 0x39b   : > { %v3395_v28 = vpop.f32.mrf.mxu3  ;;  %4181 = vst.msk [vmem:[%s9207_s28 + $0x70] sm:$0xff] %vm4166_vm1, %v6180_v25 }
 0x39c   : > { %3695 = vmatmul.bf16.gmra.mxu1 %v2722_v38  ;;  %v2725_v28 = vpack.c.bf16 %v2673_v2, %v2671_v26  ;;  %v2678_v2 = vmul.f32 %v10521_v37, %v10520_v6  ;;  %v10532_v6 = vld [vmem:[#allocation43_spill] sm:$0xff]  ;;  %4182 = vst.msk [vmem:[%s9207_s28 + $0x78] sm:$0xff] %vm4166_vm1, %v6180_v25 }
 0x39d   : > { %3873 = vmatmul.bf16.gmra.mxu3 %v2722_v38  ;;  %5809 = vrot.lane.b32.xlu0 %v6180_v25, %s6181_s27  ;;  %v10533_v37 = vld [vmem:[#allocation103_spill] sm:$0xff]  ;;  %4183 = vst.msk [vmem:[%s9207_s28 + $0x80] sm:$0xff] %vm4166_vm1, %v6180_v25 }
 0x39e   : > { %5814 = vrot.lane.b32.xlu1 %v6180_v25, %s6181_s27  ;;  %4184 = vst.msk [vmem:[%s9207_s28 + $0x88] sm:$0xff] %vm4166_vm1, %v6180_v25 }
 0x39f   : > { %v3220_v34 = vpop.f32.mrf.mxu1  ;;  %5819 = vrot.lane.b32.xlu2 %v6180_v25, %s6181_s27  ;;  %4185 = vst.msk [vmem:[%s9207_s28 + $0x90] sm:$0xff] %vm4166_vm1, %v6180_v25 }
 0x3a0   : > { %v3131_v8 = vpop.f32.mrf.mxu0  ;;  %v10515_v34 = vld [vmem:[#allocation91_spill] sm:$0xff]  ;;  %4186 = vst.msk [vmem:[%s9207_s28 + $0x98] sm:$0xff] %vm4166_vm1, %v6180_v25 }
 0x3a1   : > { %v10514_v8 = vld [vmem:[#allocation28_spill] sm:$0xff]  ;;  %4187 = vst.msk [vmem:[%s9207_s28 + $0xa0] sm:$0xff] %vm4166_vm1, %v6180_v25 }
 0x3a2   : > { %v3309_v32 = vpop.f32.mrf.mxu2  ;;  %v2672_v61 = vmul.f32 %v10515_v34, %v10514_v8  ;;  %4188 = vst.msk [vmem:[%s9207_s28 + $0xa8] sm:$0xff] %vm4166_vm1, %v6180_v25 }
 0x3a3   : > { %v3398_v56 = vpop.f32.mrf.mxu3  ;;  %4189 = vst.msk [vmem:[%s9207_s28 + $0xb0] sm:$0xff] %vm4166_vm1, %v6180_v25 }
 0x3a4   : > { %v2726_v32 = vpack.c.bf16 %v2674_v51, %v2672_v61  ;;  %v2681_v51 = vmul.f32 %v10525_v52, %v10524_v39  ;;  %v10526_v61 = vld [vmem:[#allocation37_spill] sm:$0xff]  ;;  %v10536_v39 = vld [vmem:[#allocation44_spill] sm:$0xff]  ;;  %4190 = vst.msk [vmem:[%s9207_s28 + $0xb8] sm:$0xff] %vm4166_vm1, %v6180_v25 }
 0x3a5   : > { %5824 = vrot.lane.b32.xlu0 %v6180_v25, %s6181_s27  ;;  %v10537_v52 = vld [vmem:[#allocation89_spill] sm:$0xff]  ;;  %4191 = vst.msk [vmem:[%s9207_s28 + $0xc0] sm:$0xff] %vm4166_vm1, %v6180_v25 }
 0x3a6   : > { %3611 = vmatmul.bf16.gmra.mxu0 %v2723_v54  ;;  %5829 = vrot.lane.b32.xlu1 %v6180_v25, %s6181_s27  ;;  %4192 = vst.msk [vmem:[%s9207_s28 + $0xc8] sm:$0xff] %vm4166_vm1, %v6180_v25 }
 0x3a7   : > { %v3222_v44 = vpop.f32.mrf.mxu1  ;;  %5834 = vrot.lane.b32.xlu2 %v6180_v25, %s6181_s27  ;;  %4193 = vst.msk [vmem:[%s9207_s28 + $0xd0] sm:$0xff] %vm4166_vm1, %v6180_v25 }
 0x3a8   : > { %3789 = vmatmul.bf16.gmra.mxu2 %v2723_v54  ;;  %v3133_v27 = vpop.f32.mrf.mxu0  ;;  %4194 = vst.msk [vmem:[%s9207_s28 + $0xd8] sm:$0xff] %vm4166_vm1, %v6180_v25 }
 0x3a9   : > { %v10519_v27 = vld [vmem:[#allocation93_spill] sm:$0xff]  ;;  %4195 = vst.msk [vmem:[%s9207_s28 + $0xe0] sm:$0xff] %vm4166_vm1, %v6180_v25 }
 0x3aa   : > { %v3311_v63 = vpop.f32.mrf.mxu2  ;;  %v2675_v44 = vmul.f32 %v10519_v27, %v10518_v29  ;;  %4196 = vst.msk [vmem:[%s9207_s28 + $0xe8] sm:$0xff] %vm4166_vm1, %v6180_v25 }
 0x3ab   : > { %v3400_v22 = vpop.f32.mrf.mxu3  ;;  %4197 = vst.msk [vmem:[%s9207_s28 + $0xf0] sm:$0xff] %vm4166_vm1, %v6180_v25 }
 0x3ac   : > { %3700 = vmatmul.bf16.gmra.mxu1 %v2724_v3  ;;  %v2727_v22 = vpack.c.bf16 %v2677_v14, %v2675_v44  ;;  %v2682_v14 = vmul.f32 %v10529_v49, %v10528_v48  ;;  %v10540_v48 = vld [vmem:[#allocation47_spill] sm:$0xff]  ;;  %v10541_v49 = vld [vmem:[#allocation92_spill] sm:$0xff]  ;;  %4198 = vst.msk [vmem:[%s9207_s28 + $0xf8] sm:$0xff] %vm4166_vm1, %v6180_v25 }
 0x3ad   : > { %3878 = vmatmul.bf16.gmra.mxu3 %v2724_v3  ;;  %5839 = vrot.lane.b32.xlu0 %v6180_v25, %s6181_s27  ;;  %4199 = vst.msk [vmem:[%s9207_s28 + $0x100] sm:$0xff] %vm4166_vm1, %v6180_v25 }
 0x3ae   : > { %5844 = vrot.lane.b32.xlu1 %v6180_v25, %s6181_s27 }
 0x3af   : > { %v3225_v33 = vpop.f32.mrf.mxu1  ;;  %5849 = vrot.lane.b32.xlu2 %v6180_v25, %s6181_s27 }
 0x3b0   : > { %v3136_v24 = vpop.f32.mrf.mxu0  ;;  %v10523_v33 = vld [vmem:[#allocation94_spill] sm:$0xff] }
 0x3b1   : > { %v10522_v24 = vld [vmem:[#allocation33_spill] sm:$0xff] }
 0x3b2   : > { %v3314_v38 = vpop.f32.mrf.mxu2  ;;  %v2676_v11 = vmul.f32 %v10523_v33, %v10522_v24 }
 0x3b3   : > { %v3403_v12 = vpop.f32.mrf.mxu3 }
 0x3b4   : > { %v2728_v38 = vpack.c.bf16 %v2678_v2, %v2676_v11  ;;  %v2685_v2 = vmul.f32 %v10533_v37, %v10532_v6  ;;  %v10534_v11 = vld [vmem:[#allocation41_spill] sm:$0xff] }
 0x3b5   : > { %5854 = vrot.lane.b32.xlu0 %v6180_v25, %s6181_s27 }
 0x3b6   : > { %3616 = vmatmul.bf16.gmra.mxu0 %v2725_v28  ;;  %5859 = vrot.lane.b32.xlu1 %v6180_v25, %s6181_s27 }
 0x3b7   : > { %v3227_v53 = vpop.f32.mrf.mxu1 }
 0x3b8   : > { %3794 = vmatmul.bf16.gmra.mxu2 %v2725_v28  ;;  %v3138_v31 = vpop.f32.mrf.mxu0 }
 0x3b9   : > { %v10527_v31 = vld [vmem:[#allocation97_spill] sm:$0xff] }
 0x3ba   : > { %v3316_v56 = vpop.f32.mrf.mxu2  ;;  %v2679_v53 = vmul.f32 %v10527_v31, %v10526_v61 }
 0x3bb   : > { %v3405_v54 = vpop.f32.mrf.mxu3 }
 0x3bc   : > { %3705 = vmatmul.bf16.gmra.mxu1 %v2726_v32  ;;  %v2729_v54 = vpack.c.bf16 %v2681_v51, %v2679_v53  ;;  %v2686_v51 = vmul.f32 %v10537_v52, %v10536_v39 }
 0x3bd   : > { %3883 = vmatmul.bf16.gmra.mxu3 %v2726_v32 }
 0x3bf   : > { %v3230_v13 = vpop.f32.mrf.mxu1 }
 0x3c0   : > { %v3141_v43 = vpop.f32.mrf.mxu0  ;;  %v10531_v13 = vld [vmem:[#allocation98_spill] sm:$0xff] }
 0x3c1   : > { %v10530_v43 = vld [vmem:[#allocation38_spill] sm:$0xff] }
 0x3c2   : > { %v3319_v3 = vpop.f32.mrf.mxu2  ;;  %v2680_v29 = vmul.f32 %v10531_v13, %v10530_v43 }
 0x3c3   : > { %v3408_v63 = vpop.f32.mrf.mxu3 }
 0x3c4   : > { %v2730_v3 = vpack.c.bf16 %v2682_v14, %v2680_v29  ;;  %v2689_v14 = vmul.f32 %v10541_v49, %v10540_v48 }
 0x3c6   : > { %3621 = vmatmul.bf16.gmra.mxu0 %v2727_v22 }
 0x3c7   : > { %v3232_v26 = vpop.f32.mrf.mxu1 }
 0x3c8   : > { %3799 = vmatmul.bf16.gmra.mxu2 %v2727_v22  ;;  %v3143_v40 = vpop.f32.mrf.mxu0 }
 0x3c9   : > { %v10535_v40 = vld [vmem:[#allocation85_spill] sm:$0xff] }
 0x3ca   : > { %v3321_v12 = vpop.f32.mrf.mxu2  ;;  %v2683_v26 = vmul.f32 %v10535_v40, %v10534_v11  ;;  %v10546_v40 = vld [vmem:[#allocation118_spill] sm:$0xff] }
 0x3cb   : > { %v3410_v28 = vpop.f32.mrf.mxu3 }
 0x3cc   : > { %3710 = vmatmul.bf16.gmra.mxu1 %v2728_v38  ;;  %v2731_v28 = vpack.c.bf16 %v2685_v2, %v2683_v26 }
 0x3cd   : > { %3888 = vmatmul.bf16.gmra.mxu3 %v2728_v38 }
 0x3cf   : > { %v3235_v34 = vpop.f32.mrf.mxu1 }
 0x3d0   : > { %v3146_v8 = vpop.f32.mrf.mxu0  ;;  %v10539_v34 = vld [vmem:[#allocation100_spill] sm:$0xff] }
 0x3d1   : > { %v10538_v8 = vld [vmem:[#allocation42_spill] sm:$0xff] }
 0x3d2   : > { %v3324_v32 = vpop.f32.mrf.mxu2  ;;  %v2684_v61 = vmul.f32 %v10539_v34, %v10538_v8 }
 0x3d3   : > { %v3413_v56 = vpop.f32.mrf.mxu3 }
 0x3d4   : > { %v2732_v32 = vpack.c.bf16 %v2686_v51, %v2684_v61  ;;  %v10549_v51 = vld [vmem:[#allocation119_spill] sm:$0xff]  ;;  %v4201_v61 = vld [vmem:[%s9207_s28 + $0x8] sm:$0xff] }
 0x3d6   : > { %3626 = vmatmul.bf16.gmra.mxu0 %v2729_v54 }
 0x3d7   : > { %v3237_v44 = vpop.f32.mrf.mxu1 }
 0x3d8   : > { %3804 = vmatmul.bf16.gmra.mxu2 %v2729_v54  ;;  %v3148_v27 = vpop.f32.mrf.mxu0  ;;  %v10543_v44 = vld [vmem:[#allocation83_spill] sm:$0xff] }
 0x3d9   : > { %v10542_v27 = vld [vmem:[#allocation45_spill] sm:$0xff] }
 0x3da   : > { %v3326_v63 = vpop.f32.mrf.mxu2 }
 0x3db   : > { %v3415_v22 = vpop.f32.mrf.mxu3  ;;  %v4200_v63 = vld [vmem:[%s9207_s28] sm:$0xff] }
 0x3dc   : > { %3715 = vmatmul.bf16.gmra.mxu1 %v2730_v3 }
 0x3dd   : > { %3893 = vmatmul.bf16.gmra.mxu3 %v2730_v3  ;;  %v2687_v3 = vmul.f32 %v10543_v44, %v10542_v27 }
 0x3df   : > { %v3240_v33 = vpop.f32.mrf.mxu1  ;;  %v2733_v2 = vpack.c.bf16 %v2689_v14, %v2687_v3  ;;  %v10550_v14 = vld [vmem:[#allocation51_spill] sm:$0xff]  ;;  %v10553_v3 = vld [vmem:[#allocation130_spill] sm:$0xff] }
 0x3e0   : > { %v3151_v24 = vpop.f32.mrf.mxu0  ;;  %v10545_v33 = vld [vmem:[#allocation107_spill] sm:$0xff] }
 0x3e1   : > { %v10544_v24 = vld [vmem:[#allocation48_spill] sm:$0xff] }
 0x3e2   : > { %v3329_v38 = vpop.f32.mrf.mxu2  ;;  %v2690_v11 = vmul.f32 %v10545_v33, %v10544_v24 }
 0x3e3   : > { %v3418_v12 = vpop.f32.mrf.mxu3  ;;  %v10547_v38 = vld [vmem:[#allocation46_spill] sm:$0xff] }
 0x3e4   : > { %v10548_v12 = vld [vmem:[#allocation86_spill] sm:$0xff] }
 0x3e6   : > { %3631 = vmatmul.bf16.gmra.mxu0 %v2731_v28 }
 0x3e7   : > { %v3242_v53 = vpop.f32.mrf.mxu1 }
 0x3e8   : > { %3809 = vmatmul.bf16.gmra.mxu2 %v2731_v28  ;;  %v3153_v31 = vpop.f32.mrf.mxu0  ;;  %v2688_v28 = vmul.f32 %v10548_v12, %v10547_v38  ;;  %v10557_v12 = vld [vmem:[#allocation108_spill] sm:$0xff] }
 0x3ea   : > { %v3331_v56 = vpop.f32.mrf.mxu2  ;;  %v2734_v34 = vpack.c.bf16 %v2690_v11, %v2688_v28  ;;  %v10554_v11 = vld [vmem:[#allocation52_spill] sm:$0xff] }
 0x3eb   : > { %v3420_v54 = vpop.f32.mrf.mxu3 }
 0x3ec   : > { %3720 = vmatmul.bf16.gmra.mxu1 %v2732_v32 }
 0x3ed   : > { %3898 = vmatmul.bf16.gmra.mxu3 %v2732_v32 }
 0x3ef   : > { %v3681_v13 = vpop.f32.mrf.mxu1 }
 0x3f0   : > { %v3592_v43 = vpop.f32.mrf.mxu0 }
 0x3f1   : > { %v3593_v29 = vadd.f32 %v3592_v43, %v8742_v1  ;;  %v10551_v43 = vld [vmem:[#allocation110_spill] sm:$0xff] }
 0x3f2   : > { %v3770_v6 = vpop.f32.mrf.mxu2 }
 0x3f3   : > { %v3682_v22 = vadd.f32 %v3681_v13, %v3593_v29  ;;  %v3859_v37 = vpop.f32.mrf.mxu3  ;;  %v3771_v26 = vadd.f32 %v3770_v6, %v10546_v40  ;;  %v2693_v13 = vmul.f32 %v10551_v43, %v10550_v14  ;;  %v10555_v40 = vld [vmem:[#allocation109_spill] sm:$0xff] }
 0x3f4   : > { %v10559_v14 = vld [vmem:[#allocation113_spill] sm:$0xff] }
 0x3f5   : > { %v4232_v1 = vadd.f32 %v4200_v63, %v3682_v22  ;;  %4360 = vrot.lane.b32.xlu0 %v3682_v22, %s6181_s27  ;;  %v9346_v31 = vadd.f32 %v3859_v37, %v3771_v26  ;;  %v4202_v22 = vld [vmem:[%s9207_s28 + $0x10] sm:$0xff]  ;;  %v2694_v26 = vmul.f32 %v10555_v40, %v10554_v11  ;;  %v10565_v40 = vld [vmem:[#allocation112_spill] sm:$0xff] }
 0x3f6   : > { %3636 = vmatmul.bf16.gmra.mxu0 %v2733_v2  ;;  %v10564_v11 = vld [vmem:[#allocation54_spill] sm:$0xff] }
 0x3f7   : > { %4264 = vst.msk [vmem:[%s9207_s28] sm:$0xff] %vm4166_vm1, %v4232_v1  ;;  %v3683_v52 = vpop.f32.mrf.mxu1 }
 0x3f8   : > { %3814 = vmatmul.bf16.gmra.mxu2 %v2733_v2  ;;  %v3594_v39 = vpop.f32.mrf.mxu0 }
 0x3f9   : > { %v3595_v8 = vadd.f32 %v3594_v39, %v10549_v51 }
 0x3fa   : > { %v3772_v32 = vpop.f32.mrf.mxu2 }
 0x3fb   : > { %v3684_v53 = vadd.f32 %v3683_v52, %v3595_v8  ;;  %v3861_v56 = vpop.f32.mrf.mxu3  ;;  %v3773_v54 = vadd.f32 %v3772_v32, %v8829_v46  ;;  %v10552_v46 = vld [vmem:[#allocation49_spill] sm:$0xff]  ;;  %v4203_v8 = vld [vmem:[%s9207_s28 + $0x18] sm:$0xff] }
 0x3fc   : > { %3725 = vmatmul.bf16.gmra.mxu1 %v2734_v34  ;;  %v2691_v63 = vmul.f32 %v10553_v3, %v10552_v46  ;;  %v4204_v46 = vld [vmem:[%s9207_s28 + $0x20] sm:$0xff] }
 0x3fd   : > { %3903 = vmatmul.bf16.gmra.mxu3 %v2734_v34  ;;  %v4233_v48 = vadd.f32 %v4201_v61, %v3684_v53  ;;  %4680 = vrot.lane.b32.xlu0 %v9346_v31, %s6181_s27  ;;  %v9351_v49 = vadd.f32 %v3861_v56, %v3773_v54 }
 0x3fe   : > { %v2735_v1 = vpack.c.bf16 %v2693_v13, %v2691_v63 }
 0x3ff   : > { %4265 = vst.msk [vmem:[%s9207_s28 + $0x8] sm:$0xff] %vm4166_vm1, %v4233_v48  ;;  %v3686_v27 = vpop.f32.mrf.mxu1  ;;  %4682 = vrot.lane.b32.xlu1 %v9351_v49, %s6181_s27  ;;  %v10558_v48 = vld [vmem:[#allocation55_spill] sm:$0xff] }
 0x400   : > { %v3597_v29 = vpop.f32.mrf.mxu0  ;;  %v2697_v43 = vmul.f32 %v10559_v14, %v10558_v48  ;;  %v5790_v48 = vpop.permute.xlu2 %5789 }
 0x401   : > { %v3598_v44 = vadd.f32 %v3597_v29, %v8871_v19  ;;  %v10556_v19 = vld [vmem:[#allocation50_spill] sm:$0xff] }
 0x402   : > { %v3775_v37 = vpop.f32.mrf.mxu2  ;;  %v2692_v28 = vmul.f32 %v10557_v12, %v10556_v19  ;;  %v4209_v12 = vld [vmem:[%s9207_s28 + $0x48] sm:$0xff] }
 0x403   : > { %v3687_v6 = vadd.f32 %v3686_v27, %v3598_v44  ;;  %v3864_v2 = vpop.f32.mrf.mxu3  ;;  %v3776_v24 = vadd.f32 %v3775_v37, %v8907_v60  ;;  %v10560_v27 = vld [vmem:[#allocation53_spill] sm:$0xff]  ;;  %4273 = vst.msk [vmem:[%s9207_s28 + $0x48] sm:$0xff] %vm4166_vm1, %v4209_v12 }
 0x404   : > { %v2736_v51 = vpack.c.bf16 %v2694_v26, %v2692_v28  ;;  %v2696_v26 = vmul.f32 %v10565_v40, %v10564_v11  ;;  %v4210_v28 = vld [vmem:[%s9207_s28 + $0x50] sm:$0xff] }
 0x405   : > { %v4234_v33 = vadd.f32 %v4202_v22, %v3687_v6  ;;  %4362 = vrot.lane.b32.xlu0 %v3684_v53, %s6181_s27  ;;  %v9367_v38 = vadd.f32 %v3864_v2, %v3776_v24  ;;  %4274 = vst.msk [vmem:[%s9207_s28 + $0x50] sm:$0xff] %vm4166_vm1, %v4210_v28 }
 0x406   : > { %3641 = vmatmul.bf16.gmra.mxu0 %v2735_v1 }
 0x407   : > { %4266 = vst.msk [vmem:[%s9207_s28 + $0x10] sm:$0xff] %vm4166_vm1, %v4234_v33  ;;  %v3688_v52 = vpop.f32.mrf.mxu1  ;;  %4684 = vrot.lane.b32.xlu2 %v9367_v38, %s6181_s27  ;;  %4364 = vrot.lane.b32.xlu1 %v3687_v6, %s6181_s27 }
 0x408   : > { %3819 = vmatmul.bf16.gmra.mxu2 %v2735_v1  ;;  %v3599_v39 = vpop.f32.mrf.mxu0  ;;  %v10562_v1 = vld [vmem:[#allocation56_spill] sm:$0xff] }
 0x409   : > { %v3600_v60 = vadd.f32 %v3599_v39, %v8933_v16  ;;  %v4211_v39 = vld [vmem:[%s9207_s28 + $0x58] sm:$0xff] }
 0x40a   : > { %v3777_v61 = vpop.f32.mrf.mxu2  ;;  %4275 = vst.msk [vmem:[%s9207_s28 + $0x58] sm:$0xff] %vm4166_vm1, %v4211_v39 }
 0x40b   : > { %v3689_v34 = vadd.f32 %v3688_v52, %v3600_v60  ;;  %v3866_v53 = vpop.f32.mrf.mxu3  ;;  %v3778_v32 = vadd.f32 %v3777_v61, %v8950_v41  ;;  %v10561_v41 = vld [vmem:[#allocation111_spill] sm:$0xff]  ;;  %v4214_v61 = vld [vmem:[%s9207_s28 + $0x70] sm:$0xff] }
 0x40c   : > { %3730 = vmatmul.bf16.gmra.mxu1 %v2736_v51  ;;  %v2695_v44 = vmul.f32 %v10561_v41, %v10560_v27  ;;  %4278 = vst.msk [vmem:[%s9207_s28 + $0x70] sm:$0xff] %vm4166_vm1, %v4214_v61 }
 0x40d   : > { %3908 = vmatmul.bf16.gmra.mxu3 %v2736_v51  ;;  %v4235_v56 = vadd.f32 %v4203_v8, %v3689_v34  ;;  %v9379_v54 = vadd.f32 %v3866_v53, %v3778_v32  ;;  %v5780_v51 = vpop.permute.xlu0 %5779  ;;  %v4213_v8 = vld [vmem:[%s9207_s28 + $0x68] sm:$0xff] }
 0x40e   : > { %v2737_v6 = vpack.c.bf16 %v2697_v43, %v2695_v44  ;;  %4277 = vst.msk [vmem:[%s9207_s28 + $0x68] sm:$0xff] %vm4166_vm1, %v4213_v8  ;;  %v5781_v43 = vunpack.i.l.bf16 %v5780_v51  ;;  %v5782_v27 = vunpack.i.h.bf16 %v5780_v51  ;;  %v10570_v8 = vld [vmem:[#allocation60_spill] sm:$0xff] }
 0x40f   : > { %4267 = vst.msk [vmem:[%s9207_s28 + $0x18] sm:$0xff] %vm4166_vm1, %v4235_v56  ;;  %v3691_v16 = vpop.f32.mrf.mxu1  ;;  %4366 = vrot.lane.b32.xlu1 %v3689_v34, %s6181_s27  ;;  %4686 = vrot.lane.b32.xlu0 %v9379_v54, %s6181_s27  ;;  %v4205_v34 = vld [vmem:[%s9207_s28 + $0x28] sm:$0xff] }
 0x410   : > { %v3602_v13 = vpop.f32.mrf.mxu0 }
 0x411   : > { %v3603_v29 = vadd.f32 %v3602_v13, %v8993_v17  ;;  %v10563_v17 = vld [vmem:[#allocation114_spill] sm:$0xff]  ;;  %v4216_v13 = vld [vmem:[%s9207_s28 + $0x80] sm:$0xff] }
 0x412   : > { %v3780_v63 = vpop.f32.mrf.mxu2  ;;  %v2698_v24 = vmul.f32 %v10563_v17, %v10562_v1  ;;  %4280 = vst.msk [vmem:[%s9207_s28 + $0x80] sm:$0xff] %vm4166_vm1, %v4216_v13  ;;  %v5791_v1 = vunpack.i.l.bf16 %v5790_v48  ;;  %v10568_v17 = vld [vmem:[#allocation57_spill] sm:$0xff]  ;;  %v4306_v40 = vld [vmem:[%s9207_s28 + $0x51] sm:$0xff] }
 0x413   : > { %v3692_v3 = vadd.f32 %v3691_v16, %v3603_v29  ;;  %v3869_v22 = vpop.f32.mrf.mxu3  ;;  %v3781_v37 = vadd.f32 %v3780_v63, %v9006_v57  ;;  %v4217_v16 = vld [vmem:[%s9207_s28 + $0x88] sm:$0xff] }
 0x414   : > { %v2738_v60 = vpack.c.bf16 %v2698_v24, %v2696_v26  ;;  %4281 = vst.msk [vmem:[%s9207_s28 + $0x88] sm:$0xff] %vm4166_vm1, %v4217_v16  ;;  %v10569_v24 = vld [vmem:[#allocation115_spill] sm:$0xff]  ;;  %v10571_v16 = vld [vmem:[#allocation58_spill] sm:$0xff] }
 0x415   : > { %v4236_v2 = vadd.f32 %v4204_v46, %v3692_v3  ;;  %4368 = vrot.lane.b32.xlu2 %v3692_v3, %s6181_s27  ;;  %v9396_v33 = vadd.f32 %v3869_v22, %v3781_v37  ;;  %v10566_v46 = vld [vmem:[#allocation59_spill] sm:$0xff]  ;;  %v10567_v3 = vld [vmem:[#allocation116_spill] sm:$0xff]  ;;  %v2699_v11 = vmul.f32 %v10569_v24, %v10568_v17  ;;  %v4309_v61 = vld [vmem:[%s9207_s28 + $0x69] sm:$0xff]  ;;  %v5785_v17 = vpop.permute.xlu1 %5784 }
 0x416   : > { %3646 = vmatmul.bf16.gmra.mxu0 %v2737_v6  ;;  %v2701_v63 = vmul.f32 %v10567_v3, %v10566_v46  ;;  %v4219_v22 = vld [vmem:[%s9207_s28 + $0x98] sm:$0xff] }
 0x417   : > { %4268 = vst.msk [vmem:[%s9207_s28 + $0x20] sm:$0xff] %vm4166_vm1, %v4236_v2  ;;  %v3693_v19 = vpop.f32.mrf.mxu1  ;;  %4688 = vrot.lane.b32.xlu1 %v9396_v33, %s6181_s27  ;;  %v4305_v2 = vld [vmem:[%s9207_s28 + $0x49] sm:$0xff] }
 0x418   : > { %3824 = vmatmul.bf16.gmra.mxu2 %v2737_v6  ;;  %v3604_v57 = vpop.f32.mrf.mxu0  ;;  %v4220_v6 = vld [vmem:[%s9207_s28 + $0xa0] sm:$0xff]  ;;  %v4465_v26 = vadd.f32 %v5781_v43, %v4305_v2  ;;  %4283 = vst.msk [vmem:[%s9207_s28 + $0x98] sm:$0xff] %vm4166_vm1, %v4219_v22  ;;  %v2739_v51 = vpack.c.bf16 %v2701_v63, %v2699_v11  ;;  %v5805_v43 = vpop.permute.xlu2 %5804 }
 0x419   : > { %v3605_v52 = vadd.f32 %v3604_v57, %v9037_v10  ;;  %v4215_v10 = vld [vmem:[%s9207_s28 + $0x78] sm:$0xff]  ;;  %v5792_v57 = vunpack.i.h.bf16 %v5790_v48  ;;  %4284 = vst.msk [vmem:[%s9207_s28 + $0xa0] sm:$0xff] %vm4166_vm1, %v4220_v6 }
 0x41a   : > { %v3782_v32 = vpop.f32.mrf.mxu2  ;;  %4279 = vst.msk [vmem:[%s9207_s28 + $0x78] sm:$0xff] %vm4166_vm1, %v4215_v10  ;;  %v4469_v10 = vadd.f32 %v5791_v1, %v4309_v61  ;;  %v5807_v1 = vunpack.i.h.bf16 %v5805_v43 }
 0x41b   : > { %v3694_v53 = vadd.f32 %v3693_v19, %v3605_v52  ;;  %v3871_v56 = vpop.f32.mrf.mxu3  ;;  %v3783_v29 = vadd.f32 %v3782_v32, %v9048_v20  ;;  %v4206_v20 = vld [vmem:[%s9207_s28 + $0x30] sm:$0xff]  ;;  %v5795_v19 = vpop.permute.xlu0 %5794  ;;  %v4466_v52 = vadd.f32 %v5782_v27, %v4306_v40  ;;  %4497 = vst.msk [vmem:[%s9207_s28 + $0x49] sm:$0xff] %vm4166_vm1, %v4465_v26  ;;  %v4312_v3 = vld [vmem:[%s9207_s28 + $0x81] sm:$0xff] }
 0x41c   : > { %3735 = vmatmul.bf16.gmra.mxu1 %v2738_v60  ;;  %v5797_v48 = vunpack.i.h.bf16 %v5795_v19  ;;  %4501 = vst.msk [vmem:[%s9207_s28 + $0x69] sm:$0xff] %vm4166_vm1, %v4469_v10  ;;  %v4222_v10 = vld [vmem:[%s9207_s28 + $0xb0] sm:$0xff] }
 0x41d   : > { %3913 = vmatmul.bf16.gmra.mxu3 %v2738_v60  ;;  %v4237_v14 = vadd.f32 %v4205_v34, %v3694_v53  ;;  %4370 = vrot.lane.b32.xlu2 %v3694_v53, %s6181_s27  ;;  %v4221_v60 = vld [vmem:[%s9207_s28 + $0xa8] sm:$0xff]  ;;  %v2702_v34 = vmul.f32 %v8841_v5, %v10570_v8  ;;  %v5796_v53 = vunpack.i.l.bf16 %v5795_v19  ;;  %4498 = vst.msk [vmem:[%s9207_s28 + $0x51] sm:$0xff] %vm4166_vm1, %v4466_v52  ;;  %v3940_v5 = vlaneseq }
 0x41e   : > { %4285 = vst.msk [vmem:[%s9207_s28 + $0xa8] sm:$0xff] %vm4166_vm1, %v4221_v60 }
 0x41f   : > { %4269 = vst.msk [vmem:[%s9207_s28 + $0x28] sm:$0xff] %vm4166_vm1, %v4237_v14  ;;  %v3696_v44 = vpop.f32.mrf.mxu1  ;;  %v3941_v2 = vshrl.u32 %v3940_v5, 7 }
 0x420   : > { %v3607_v41 = vpop.f32.mrf.mxu0  ;;  %4286 = vst.msk [vmem:[%s9207_s28 + $0xb0] sm:$0xff] %vm4166_vm1, %v4222_v10 }
 0x421   : > { %v3608_v37 = vadd.f32 %v3607_v41, %v9063_v7  ;;  %v9446_v7 = vadd.f32 %v3871_v56, %v3783_v29  ;;  %v4310_v56 = vld [vmem:[%s9207_s28 + $0x71] sm:$0xff]  ;;  %v2700_v29 = vmul.f32 %v8831_v23, %v10571_v16  ;;  %v4311_v27 = vld [vmem:[%s9207_s28 + $0x79] sm:$0xff]  ;;  %v5806_v41 = vunpack.i.l.bf16 %v5805_v43 }
 0x422   : > { %v3785_v28 = vpop.f32.mrf.mxu2  ;;  %v4470_v14 = vadd.f32 %v5792_v57, %v4310_v56  ;;  %v4471_v63 = vadd.f32 %v5796_v53, %v4311_v27  ;;  %v4212_v23 = vld [vmem:[%s9207_s28 + $0x60] sm:$0xff]  ;;  %v5787_v53 = vunpack.i.h.bf16 %v5785_v17 }
 0x423   : > { %v3697_v12 = vadd.f32 %v3696_v44, %v3608_v37  ;;  %v3874_v39 = vpop.f32.mrf.mxu3  ;;  %v3786_v13 = vadd.f32 %v3785_v28, %v9076_v62  ;;  %v2740_v6 = vpack.c.bf16 %v2702_v34, %v2700_v29  ;;  %v4472_v62 = vadd.f32 %v5797_v48, %v4312_v3  ;;  %v4207_v37 = vld [vmem:[%s9207_s28 + $0x38] sm:$0xff]  ;;  %4276 = vst.msk [vmem:[%s9207_s28 + $0x60] sm:$0xff] %vm4166_vm1, %v4212_v23  ;;  %v4208_v29 = vld [vmem:[%s9207_s28 + $0x40] sm:$0xff] }
 0x424   : > { %4502 = vst.msk [vmem:[%s9207_s28 + $0x71] sm:$0xff] %vm4166_vm1, %v4470_v14  ;;  %v4529_v57 = vld [vmem:[%s9207_s28 + $0x4a] sm:$0xff]  ;;  %v9494_v28 = vadd.s32 64, %v3941_v2  ;;  %v10572_v34 = vld [vmem:[#allocation63_spill] sm:$0xff] }
 0x425   : > { %v4238_v32 = vadd.f32 %v4206_v20, %v3697_v12  ;;  %4690 = vrot.lane.b32.xlu2 %v9446_v7, %s6181_s27  ;;  %4372 = vrot.lane.b32.xlu0 %v3697_v12, %s6181_s27  ;;  %4503 = vst.msk [vmem:[%s9207_s28 + $0x79] sm:$0xff] %vm4166_vm1, %v4471_v63  ;;  %v4315_v20 = vld [vmem:[%s9207_s28 + $0x99] sm:$0xff]  ;;  %v9481_v24 = vadd.f32 %v3874_v39, %v3786_v13 }
 0x426   : > { %3651 = vmatmul.bf16.gmra.mxu0 %v2739_v51  ;;  %4504 = vst.msk [vmem:[%s9207_s28 + $0x81] sm:$0xff] %vm4166_vm1, %v4472_v62  ;;  %v4475_v26 = vadd.f32 %v5806_v41, %v4315_v20  ;;  %v4316_v12 = vld [vmem:[%s9207_s28 + $0xa1] sm:$0xff]  ;;  %v2705_v61 = vmul.f32 %v8941_v58, %v10572_v34  ;;  %vm4014_vm2 = vcmp.lt.s32.totalorder %v9494_v28, 65  ;;  %v4223_v14 = vld [vmem:[%s9207_s28 + $0xb8] sm:$0xff]  ;;  %v9539_v62 = vpop.permute.xlu1 %5799 }
 0x427   : > { %4270 = vst.msk [vmem:[%s9207_s28 + $0x30] sm:$0xff] %vm4166_vm1, %v4238_v32  ;;  %v3698_v46 = vpop.f32.mrf.mxu1  ;;  %v4476_v39 = vadd.f32 %v5807_v1, %v4316_v12  ;;  %v5786_v32 = vunpack.i.l.bf16 %v5785_v17  ;;  %v10573_v58 = vld [vmem:[#allocation61_spill] sm:$0xff]  ;;  %v10574_v63 = vld [vmem:[#allocation64_spill] sm:$0xff]  ;;  %v5820_v1 = vpop.permute.xlu2 %5819 }
 0x428   : > { %3829 = vmatmul.bf16.gmra.mxu2 %v2739_v51  ;;  %v3609_v44 = vpop.f32.mrf.mxu0  ;;  %4593 = vst.msk [vmem:[%s9207_s28 + $0x4a] sm:$0xff] %vm4166_vm1, %v4529_v57  ;;  %v2703_v5 = vmul.f32 %v8927_v0, %v10573_v58  ;;  %v4225_v20 = vld [vmem:[%s9207_s28 + $0xc8] sm:$0xff]  ;;  %v5822_v58 = vunpack.i.h.bf16 %v5820_v1 }
 0x429   : > { %v3610_v22 = vadd.f32 %v3609_v44, %v9089_v47  ;;  %4507 = vst.msk [vmem:[%s9207_s28 + $0x99] sm:$0xff] %vm4166_vm1, %v4475_v26  ;;  %v4227_v26 = vld [vmem:[%s9207_s28 + $0xd8] sm:$0xff] }
 0x42a   : > { %v3787_v11 = vpop.f32.mrf.mxu2  ;;  %4508 = vst.msk [vmem:[%s9207_s28 + $0xa1] sm:$0xff] %vm4166_vm1, %v4476_v39  ;;  %v4307_v27 = vld [vmem:[%s9207_s28 + $0x59] sm:$0xff]  ;;  %v4308_v41 = vld [vmem:[%s9207_s28 + $0x61] sm:$0xff]  ;;  %v2741_v44 = vpack.c.bf16 %v2705_v61, %v2703_v5 }
 0x42b   : > { %v3699_v47 = vadd.f32 %v3698_v46, %v3610_v22  ;;  %v3876_v40 = vpop.f32.mrf.mxu3  ;;  %v3788_v52 = vadd.f32 %v3787_v11, %v9096_v35  ;;  %v4533_v8 = vld [vmem:[%s9207_s28 + $0x6a] sm:$0xff]  ;;  %v4467_v46 = vadd.f32 %v5786_v32, %v4307_v27  ;;  %v4468_v3 = vadd.f32 %v5787_v53, %v4308_v41  ;;  %4287 = vst.msk [vmem:[%s9207_s28 + $0xb8] sm:$0xff] %vm4166_vm1, %v4223_v14  ;;  %v4228_v5 = vld [vmem:[%s9207_s28 + $0xe0] sm:$0xff]  ;;  %v10576_v14 = vld [vmem:[#allocation67_spill] sm:$0xff] }
 0x42c   : > { %3740 = vmatmul.bf16.gmra.mxu1 %v2740_v6  ;;  %4597 = vst.msk [vmem:[%s9207_s28 + $0x6a] sm:$0xff] %vm4166_vm1, %v4533_v8  ;;  %v4534_v35 = vld [vmem:[%s9207_s28 + $0x72] sm:$0xff]  ;;  %v2706_v22 = vmul.f32 %v8981_v42, %v10574_v63  ;;  %v5821_v32 = vunpack.i.l.bf16 %v5820_v1  ;;  %v5801_v27 = vunpack.i.l.bf16 %v9539_v62  ;;  %v4229_v41 = vld [vmem:[%s9207_s28 + $0xe8] sm:$0xff] }
 0x42d   : > { %3918 = vmatmul.bf16.gmra.mxu3 %v2740_v6  ;;  %v4239_v19 = vadd.f32 %v4207_v37, %v3699_v47  ;;  %4374 = vrot.lane.b32.xlu1 %v3699_v47, %s6181_s27  ;;  %v4535_v48 = vld [vmem:[%s9207_s28 + $0x7a] sm:$0xff]  ;;  %4598 = vst.msk [vmem:[%s9207_s28 + $0x72] sm:$0xff] %vm4166_vm1, %v4534_v35  ;;  %v9518_v43 = vadd.f32 %v3876_v40, %v3788_v52  ;;  %v5810_v6 = vpop.permute.xlu0 %5809  ;;  %v10575_v37 = vld [vmem:[#allocation62_spill] sm:$0xff] }
 0x42e   : > { %4692 = vrot.lane.b32.xlu0 %v9481_v24, %s6181_s27  ;;  %4599 = vst.msk [vmem:[%s9207_s28 + $0x7a] sm:$0xff] %vm4166_vm1, %v4535_v48  ;;  %v2704_v2 = vmul.f32 %v8979_v21, %v10575_v37  ;;  %v4226_v11 = vld [vmem:[%s9207_s28 + $0xd0] sm:$0xff]  ;;  %v5811_v21 = vunpack.i.l.bf16 %v5810_v6  ;;  %v5812_v57 = vunpack.i.h.bf16 %v5810_v6  ;;  %v9583_v35 = vpop.permute.xlu1 %5814 }
 0x42f   : > { %4271 = vst.msk [vmem:[%s9207_s28 + $0x38] sm:$0xff] %vm4166_vm1, %v4239_v19  ;;  %v3701_v51 = vpop.f32.mrf.mxu1  ;;  %v4218_v19 = vld [vmem:[%s9207_s28 + $0x90] sm:$0xff] }
 0x430   : > { %v3612_v60 = vpop.f32.mrf.mxu0  ;;  %4499 = vst.msk [vmem:[%s9207_s28 + $0x59] sm:$0xff] %vm4166_vm1, %v4467_v46  ;;  %v2742_v40 = vpack.c.bf16 %v2706_v22, %v2704_v2  ;;  %v4317_v52 = vld [vmem:[%s9207_s28 + $0xa9] sm:$0xff] }
 0x431   : > { %v3613_v56 = vadd.f32 %v3612_v60, %v9106_v15  ;;  %v4539_v42 = vld [vmem:[%s9207_s28 + $0x9a] sm:$0xff]  ;;  %4500 = vst.msk [vmem:[%s9207_s28 + $0x61] sm:$0xff] %vm4166_vm1, %v4468_v3  ;;  %v4477_v34 = vadd.f32 %v5811_v21, %v4317_v52  ;;  %v10577_v46 = vld [vmem:[#allocation65_spill] sm:$0xff] }
 0x432   : > { %v3790_v15 = vpop.f32.mrf.mxu2  ;;  %4603 = vst.msk [vmem:[%s9207_s28 + $0x9a] sm:$0xff] %vm4166_vm1, %v4539_v42  ;;  %v4318_v60 = vld [vmem:[%s9207_s28 + $0xb1] sm:$0xff]  ;;  %v2707_v3 = vmul.f32 %v9050_v45, %v10577_v46 }
 0x433   : > { %v3702_v13 = vadd.f32 %v3701_v51, %v3613_v56  ;;  %v9520_v16 = vpop.f32.mrf.mxu3  ;;  %4289 = vst.msk [vmem:[%s9207_s28 + $0xc8] sm:$0xff] %vm4166_vm1, %v4225_v20  ;;  %v3791_v51 = vadd.f32 %v3790_v15, %v9110_v9  ;;  %v4478_v9 = vadd.f32 %v5812_v57, %v4318_v60  ;;  %v10578_v20 = vld [vmem:[#allocation68_spill] sm:$0xff]  ;;  %v4231_v57 = vld [vmem:[%s9207_s28 + $0xf8] sm:$0xff] }
 0x434   : > { %4290 = vst.msk [vmem:[%s9207_s28 + $0xd0] sm:$0xff] %vm4166_vm1, %v4226_v11  ;;  %v10579_v11 = vld [vmem:[#allocation66_spill] sm:$0xff] }
 0x435   : > { %4694 = vrot.lane.b32.xlu1 %v9518_v43, %s6181_s27  ;;  %v4118_v0 = vsel %vm4014_vm2, %v3702_v13, 0.0  ;;  %4291 = vst.msk [vmem:[%s9207_s28 + $0xd8] sm:$0xff] %vm4166_vm1, %v4227_v26  ;;  %v9581_v56 = vpop.permute.xlu0 %5824  ;;  %v2709_v13 = vmul.f32 %v9042_v36, %v10576_v14  ;;  %v3880_v15 = vadd.f32 %v9520_v16, %v3791_v51  ;;  %v9601_v36 = vpop.permute.xlu2 %5834 }
 0x436   : > { %5869 = vrot.lane.b32.xlu0 %v6180_v25, %s6181_s27  ;;  %v4240_v23 = vadd.f32 %v4208_v29, %v4118_v0  ;;  %4376 = vrot.lane.b32.xlu2 %v4118_v0, %s6181_s27  ;;  %4282 = vst.msk [vmem:[%s9207_s28 + $0x90] sm:$0xff] %vm4166_vm1, %v4218_v19  ;;  %v5802_v29 = vunpack.i.h.bf16 %v9539_v62  ;;  %v5837_v45 = vunpack.i.h.bf16 %v9601_v36  ;;  %v5826_v28 = vunpack.i.l.bf16 %v9581_v56  ;;  %v9642_v51 = vpop.permute.xlu1 %5829 }
 0x437   : > { %3656 = vmatmul.bf16.gmra.mxu0 %v2741_v44  ;;  %v3703_v47 = vpop.f32.mrf.mxu1  ;;  %v4530_v8 = vld [vmem:[%s9207_s28 + $0x52] sm:$0xff]  ;;  %4509 = vst.msk [vmem:[%s9207_s28 + $0xa9] sm:$0xff] %vm4166_vm1, %v4477_v34  ;;  %v2743_v37 = vpack.c.bf16 %v2709_v13, %v2707_v3  ;;  %v9615_v2 = vsel %vm4014_vm2, %v3880_v15, 0.0  ;;  %v5836_v14 = vunpack.i.l.bf16 %v9601_v36 }
 0x438   : > { %3834 = vmatmul.bf16.gmra.mxu2 %v2741_v44  ;;  %4272 = vst.msk [vmem:[%s9207_s28 + $0x40] sm:$0xff] %vm4166_vm1, %v4240_v23  ;;  %v3614_v17 = vpop.f32.mrf.mxu0  ;;  %v4531_v61 = vld [vmem:[%s9207_s28 + $0x5a] sm:$0xff]  ;;  %v4532_v53 = vld [vmem:[%s9207_s28 + $0x62] sm:$0xff] }
 0x439   : > { %4594 = vst.msk [vmem:[%s9207_s28 + $0x52] sm:$0xff] %vm4166_vm1, %v4530_v8  ;;  %v2710_v17 = vmul.f32 %v9061_v59, %v10578_v20  ;;  %v10580_v3 = vld [vmem:[#allocation71_spill] sm:$0xff] }
 0x43a   : > { %v3792_v12 = vpop.f32.mrf.mxu2  ;;  %4595 = vst.msk [vmem:[%s9207_s28 + $0x5a] sm:$0xff] %vm4166_vm1, %v4531_v61 }
 0x43b   : > { %v3881_v39 = vpop.f32.mrf.mxu3  ;;  %4596 = vst.msk [vmem:[%s9207_s28 + $0x62] sm:$0xff] %vm4166_vm1, %v4532_v53  ;;  %v4321_v44 = vld [vmem:[%s9207_s28 + $0xc9] sm:$0xff] }
 0x43c   : > { %3745 = vmatmul.bf16.gmra.mxu1 %v2742_v40  ;;  %4510 = vst.msk [vmem:[%s9207_s28 + $0xb1] sm:$0xff] %vm4166_vm1, %v4478_v9  ;;  %v4322_v63 = vld [vmem:[%s9207_s28 + $0xd1] sm:$0xff]  ;;  %v4481_v22 = vadd.f32 %v5821_v32, %v4321_v44 }
 0x43d   : > { %3923 = vmatmul.bf16.gmra.mxu3 %v2742_v40  ;;  %5874 = vrot.lane.b32.xlu1 %v6180_v25, %s6181_s27  ;;  %4292 = vst.msk [vmem:[%s9207_s28 + $0xe0] sm:$0xff] %vm4166_vm1, %v4228_v5  ;;  %v4482_v6 = vadd.f32 %v5822_v58, %v4322_v63  ;;  %v4313_v62 = vld [vmem:[%s9207_s28 + $0x89] sm:$0xff]  ;;  %v4314_v23 = vld [vmem:[%s9207_s28 + $0x91] sm:$0xff]  ;;  %v2708_v40 = vmul.f32 %v9068_v4, %v10579_v11  ;;  %v5840_v52 = vpop.permute.xlu0 %5839  ;;  %v5827_v4 = vunpack.i.h.bf16 %v9581_v56  ;;  %v5850_v15 = vpop.permute.xlu2 %5849 }
 0x43e   : > { %5884 = vrot.lane.b32.xlu0 %v6180_v25, %s6181_s27  ;;  %5864 = vrot.lane.b32.xlu2 %v6180_v25, %s6181_s27  ;;  %4293 = vst.msk [vmem:[%s9207_s28 + $0xe8] sm:$0xff] %vm4166_vm1, %v4229_v41  ;;  %v4473_v42 = vadd.f32 %v5801_v27, %v4313_v62  ;;  %v4474_v1 = vadd.f32 %v5802_v29, %v4314_v23  ;;  %v4540_v21 = vld [vmem:[%s9207_s28 + $0xa2] sm:$0xff]  ;;  %v5841_v9 = vunpack.i.l.bf16 %v5840_v52  ;;  %v5842_v13 = vunpack.i.h.bf16 %v5840_v52  ;;  %v5845_v62 = vpop.permute.xlu1 %5844 }
 0x43f   : > { %v3706_v48 = vpop.f32.mrf.mxu1  ;;  %4513 = vst.msk [vmem:[%s9207_s28 + $0xc9] sm:$0xff] %vm4166_vm1, %v4481_v22  ;;  %v2744_v39 = vpack.c.bf16 %v2710_v17, %v2708_v40  ;;  %v4224_v41 = vld [vmem:[%s9207_s28 + $0xc0] sm:$0xff]  ;;  %v10581_v22 = vld [vmem:[#allocation69_spill] sm:$0xff]  ;;  %v5817_v40 = vunpack.i.h.bf16 %v9583_v35 }
 0x440   : > { %v3617_v10 = vpop.f32.mrf.mxu0  ;;  %v4625_v47 = vld [vmem:[%s9207_s28 + $0x4b] sm:$0xff]  ;;  %4514 = vst.msk [vmem:[%s9207_s28 + $0xd1] sm:$0xff] %vm4166_vm1, %v4482_v6  ;;  %v2711_v6 = vmul.f32 %v9098_v55, %v10581_v22  ;;  %v10582_v55 = vld [vmem:[#allocation72_spill] sm:$0xff] }
 0x441   : > { %4505 = vst.msk [vmem:[%s9207_s28 + $0x89] sm:$0xff] %vm4166_vm1, %v4473_v42  ;;  %v4785_v19 = vadd.f32 %v5837_v45, %v4625_v47  ;;  %v4626_v56 = vld [vmem:[%s9207_s28 + $0x53] sm:$0xff]  ;;  %v5852_v42 = vunpack.i.h.bf16 %v5850_v15 }
 0x442   : > { %v3795_v0 = vpop.f32.mrf.mxu2  ;;  %4506 = vst.msk [vmem:[%s9207_s28 + $0x91] sm:$0xff] %vm4166_vm1, %v4474_v1  ;;  %v4627_v44 = vld [vmem:[%s9207_s28 + $0x5b] sm:$0xff]  ;;  %v4786_v46 = vadd.f32 %v5841_v9, %v4626_v56  ;;  %v4628_v9 = vld [vmem:[%s9207_s28 + $0x63] sm:$0xff] }
 0x443   : > { %v3884_v16 = vpop.f32.mrf.mxu3  ;;  %v4541_v12 = vld [vmem:[%s9207_s28 + $0xaa] sm:$0xff]  ;;  %4604 = vst.msk [vmem:[%s9207_s28 + $0xa2] sm:$0xff] %vm4166_vm1, %v4540_v21  ;;  %v2713_v0 = vmul.f32 %v9092_v18, %v10580_v3  ;;  %v4787_v45 = vadd.f32 %v5842_v13, %v4627_v44  ;;  %v5816_v21 = vunpack.i.l.bf16 %v9583_v35 }
 0x444   : > { %4605 = vst.msk [vmem:[%s9207_s28 + $0xaa] sm:$0xff] %vm4166_vm1, %v4541_v12  ;;  %v4323_v60 = vld [vmem:[%s9207_s28 + $0xd9] sm:$0xff] }
 0x445   : > { %5889 = vrot.lane.b32.xlu1 %v6180_v25, %s6181_s27  ;;  %v4324_v61 = vld [vmem:[%s9207_s28 + $0xe1] sm:$0xff]  ;;  %v4483_v53 = vadd.f32 %v5826_v28, %v4323_v60  ;;  %4295 = vst.msk [vmem:[%s9207_s28 + $0xf8] sm:$0xff] %vm4166_vm1, %v4231_v57  ;;  %v4630_v16 = vld [vmem:[%s9207_s28 + $0x73] sm:$0xff]  ;;  %v5855_v63 = vpop.permute.xlu0 %5854  ;;  %v2745_v47 = vpack.c.bf16 %v2713_v0, %v2711_v6  ;;  %v2714_v28 = vmul.f32 %v9104_v30, %v10582_v55 }
 0x446   : > { %4696 = vrot.lane.b32.xlu2 %v9615_v2, %s6181_s27  ;;  %4817 = vst.msk [vmem:[%s9207_s28 + $0x4b] sm:$0xff] %vm4166_vm1, %v4785_v19  ;;  %v4484_v48 = vadd.f32 %v5827_v4, %v4324_v61  ;;  %v5856_v17 = vunpack.i.l.bf16 %v5855_v63  ;;  %v10583_v57 = vld [vmem:[#allocation70_spill] sm:$0xff]  ;;  %v5857_v52 = vunpack.i.h.bf16 %v5855_v63  ;;  %v5832_v63 = vunpack.i.h.bf16 %v9642_v51 }
 0x447   : > { %3661 = vmatmul.bf16.gmra.mxu0 %v2743_v37  ;;  %v3708_v26 = vpop.f32.mrf.mxu1  ;;  %v4545_v32 = vld [vmem:[%s9207_s28 + $0xca] sm:$0xff]  ;;  %4515 = vst.msk [vmem:[%s9207_s28 + $0xd9] sm:$0xff] %vm4166_vm1, %v4483_v53  ;;  %v2712_v30 = vmul.f32 %v9108_v50, %v10583_v57  ;;  %v5847_v53 = vunpack.i.h.bf16 %v5845_v62 }
 0x448   : > { %3839 = vmatmul.bf16.gmra.mxu2 %v2743_v37  ;;  %v3619_v59 = vpop.f32.mrf.mxu0  ;;  %4609 = vst.msk [vmem:[%s9207_s28 + $0xca] sm:$0xff] %vm4166_vm1, %v4545_v32  ;;  %v4536_v10 = vld [vmem:[%s9207_s28 + $0x82] sm:$0xff]  ;;  %v5860_v32 = vpop.permute.xlu1 %5859 }
 0x449   : > { %v4537_v58 = vld [vmem:[%s9207_s28 + $0x8a] sm:$0xff]  ;;  %v4538_v5 = vld [vmem:[%s9207_s28 + $0x92] sm:$0xff]  ;;  %4600 = vst.msk [vmem:[%s9207_s28 + $0x82] sm:$0xff] %vm4166_vm1, %v4536_v10 }
 0x44a   : > { %v3797_v8 = vpop.f32.mrf.mxu2  ;;  %4601 = vst.msk [vmem:[%s9207_s28 + $0x8a] sm:$0xff] %vm4166_vm1, %v4537_v58  ;;  %v4635_v44 = vld [vmem:[%s9207_s28 + $0x9b] sm:$0xff] }
 0x44b   : > { %v3886_v34 = vpop.f32.mrf.mxu3  ;;  %4602 = vst.msk [vmem:[%s9207_s28 + $0x92] sm:$0xff] %vm4166_vm1, %v4538_v5  ;;  %v2746_v8 = vpack.c.bf16 %v2714_v28, %v2712_v30  ;;  %v4629_v5 = vld [vmem:[%s9207_s28 + $0x6b] sm:$0xff] }
 0x44c   : > { %3750 = vmatmul.bf16.gmra.mxu1 %v2744_v39  ;;  %4516 = vst.msk [vmem:[%s9207_s28 + $0xe1] sm:$0xff] %vm4166_vm1, %v4484_v48  ;;  %v4327_v36 = vld [vmem:[%s9207_s28 + $0xf9] sm:$0xff]  ;;  %v5846_v34 = vunpack.i.l.bf16 %v5845_v62 }
 0x44d   : > { %3928 = vmatmul.bf16.gmra.mxu3 %v2744_v39  ;;  %v4487_v23 = vadd.f32 %v5836_v14, %v4327_v36  ;;  %4288 = vst.msk [vmem:[%s9207_s28 + $0xc0] sm:$0xff] %vm4166_vm1, %v4224_v41  ;;  %v4230_v39 = vld [vmem:[%s9207_s28 + $0xf0] sm:$0xff]  ;;  %v5861_v14 = vunpack.i.l.bf16 %v5860_v32 }
 0x44e   : > { %5879 = vrot.lane.b32.xlu2 %v6180_v25, %s6181_s27  ;;  %v5851_v25 = vunpack.i.l.bf16 %v5850_v15  ;;  %v4546_v1 = vld [vmem:[%s9207_s28 + $0xd2] sm:$0xff]  ;;  %4818 = vst.msk [vmem:[%s9207_s28 + $0x53] sm:$0xff] %vm4166_vm1, %v4786_v46  ;;  %v5862_v15 = vunpack.i.h.bf16 %v5860_v32  ;;  %v4788_v41 = vadd.f32 %v5846_v34, %v4628_v9  ;;  %v4789_v46 = vadd.f32 %v5847_v53, %v4629_v5 }
 0x44f   : > { %v3711_v27 = vpop.f32.mrf.mxu1  ;;  %4610 = vst.msk [vmem:[%s9207_s28 + $0xd2] sm:$0xff] %vm4166_vm1, %v4546_v1 }
 0x450   : > { %v3622_v29 = vpop.f32.mrf.mxu0  ;;  %v4790_v20 = vadd.f32 %v5851_v25, %v4630_v16  ;;  %4519 = vst.msk [vmem:[%s9207_s28 + $0xf9] sm:$0xff] %vm4166_vm1, %v4487_v23  ;;  %v4631_v11 = vld [vmem:[%s9207_s28 + $0x7b] sm:$0xff]  ;;  %v5831_v25 = vunpack.i.l.bf16 %v9642_v51  ;;  %v4795_v36 = vadd.f32 %v5862_v15, %v4635_v44 }
 0x451   : > { %4819 = vst.msk [vmem:[%s9207_s28 + $0x5b] sm:$0xff] %vm4166_vm1, %v4787_v45  ;;  %v4791_v59 = vadd.f32 %v5852_v42, %v4631_v11  ;;  %v4632_v26 = vld [vmem:[%s9207_s28 + $0x83] sm:$0xff] }
 0x452   : > { %v3800_v37 = vpop.f32.mrf.mxu2  ;;  %4822 = vst.msk [vmem:[%s9207_s28 + $0x73] sm:$0xff] %vm4166_vm1, %v4790_v20  ;;  %v4792_v35 = vadd.f32 %v5856_v17, %v4632_v26  ;;  %v4633_v60 = vld [vmem:[%s9207_s28 + $0x8b] sm:$0xff]  ;;  %v4634_v29 = vld [vmem:[%s9207_s28 + $0x93] sm:$0xff]  ;;  %v4296_v17 = vld [vmem:[%s9207_s28 + $0x1] sm:$0xff] }
 0x453   : > { %v3889_v18 = vpop.f32.mrf.mxu3  ;;  %v4547_v4 = vld [vmem:[%s9207_s28 + $0xda] sm:$0xff]  ;;  %4823 = vst.msk [vmem:[%s9207_s28 + $0x7b] sm:$0xff] %vm4166_vm1, %v4791_v59  ;;  %v4793_v13 = vadd.f32 %v5857_v52, %v4633_v60  ;;  %v4794_v3 = vadd.f32 %v5861_v14, %v4634_v29 }
 0x454   : > { %4611 = vst.msk [vmem:[%s9207_s28 + $0xda] sm:$0xff] %vm4166_vm1, %v4547_v4  ;;  %v4319_v50 = vld [vmem:[%s9207_s28 + $0xb9] sm:$0xff]  ;;  %v4320_v61 = vld [vmem:[%s9207_s28 + $0xc1] sm:$0xff] }
 0x455   : > { %v4479_v56 = vadd.f32 %v5816_v21, %v4319_v50  ;;  %v4480_v10 = vadd.f32 %v5817_v40, %v4320_v61  ;;  %4294 = vst.msk [vmem:[%s9207_s28 + $0xf0] sm:$0xff] %vm4166_vm1, %v4230_v39  ;;  %v4300_v26 = vld [vmem:[%s9207_s28 + $0x21] sm:$0xff]  ;;  %v4297_v50 = vld [vmem:[%s9207_s28 + $0x9] sm:$0xff] }
 0x456   : > { %4824 = vst.msk [vmem:[%s9207_s28 + $0x83] sm:$0xff] %vm4166_vm1, %v4792_v35 }
 0x457   : > { %3666 = vmatmul.bf16.gmra.mxu0 %v2745_v47  ;;  %v3713_v12 = vpop.f32.mrf.mxu1  ;;  %v4551_v27 = vld [vmem:[%s9207_s28 + $0xfa] sm:$0xff]  ;;  %4511 = vst.msk [vmem:[%s9207_s28 + $0xb9] sm:$0xff] %vm4166_vm1, %v4479_v56 }
 0x458   : > { %3844 = vmatmul.bf16.gmra.mxu2 %v2745_v47  ;;  %v3624_v19 = vpop.f32.mrf.mxu0  ;;  %4615 = vst.msk [vmem:[%s9207_s28 + $0xfa] sm:$0xff] %vm4166_vm1, %v4551_v27 }
 0x459   : > { %4512 = vst.msk [vmem:[%s9207_s28 + $0xc1] sm:$0xff] %vm4166_vm1, %v4480_v10 }
 0x45a   : > { %v3802_v48 = vpop.f32.mrf.mxu2  ;;  %4825 = vst.msk [vmem:[%s9207_s28 + $0x8b] sm:$0xff] %vm4166_vm1, %v4793_v13 }
 0x45b   : > { %v3891_v58 = vpop.f32.mrf.mxu3  ;;  %4820 = vst.msk [vmem:[%s9207_s28 + $0x63] sm:$0xff] %vm4166_vm1, %v4788_v41  ;;  %v4298_v48 = vld [vmem:[%s9207_s28 + $0x11] sm:$0xff]  ;;  %v4299_v41 = vld [vmem:[%s9207_s28 + $0x19] sm:$0xff] }
 0x45c   : > { %3755 = vmatmul.bf16.gmra.mxu1 %v2746_v8  ;;  %v4325_v22 = vld [vmem:[%s9207_s28 + $0xe9] sm:$0xff]  ;;  %v4326_v6 = vld [vmem:[%s9207_s28 + $0xf1] sm:$0xff]  ;;  %4821 = vst.msk [vmem:[%s9207_s28 + $0x6b] sm:$0xff] %vm4166_vm1, %v4789_v46 }
 0x45d   : > { %3933 = vmatmul.bf16.gmra.mxu3 %v2746_v8  ;;  %v4485_v62 = vadd.f32 %v5831_v25, %v4325_v22  ;;  %4826 = vst.msk [vmem:[%s9207_s28 + $0x93] sm:$0xff] %vm4166_vm1, %v4794_v3  ;;  %v4486_v51 = vadd.f32 %v5832_v63, %v4326_v6  ;;  %v4301_v8 = vld [vmem:[%s9207_s28 + $0x29] sm:$0xff] }
 0x45e   : > { %v4542_v18 = vld [vmem:[%s9207_s28 + $0xb2] sm:$0xff]  ;;  %4827 = vst.msk [vmem:[%s9207_s28 + $0x9b] sm:$0xff] %vm4166_vm1, %v4795_v36 }
 0x45f   : > { %v3716_v16 = vpop.f32.mrf.mxu1  ;;  %4606 = vst.msk [vmem:[%s9207_s28 + $0xb2] sm:$0xff] %vm4166_vm1, %v4542_v18 }
 0x460   : > { %v3627_v0 = vpop.f32.mrf.mxu0  ;;  %v4543_v45 = vld [vmem:[%s9207_s28 + $0xba] sm:$0xff]  ;;  %v4544_v42 = vld [vmem:[%s9207_s28 + $0xc2] sm:$0xff]  ;;  %4517 = vst.msk [vmem:[%s9207_s28 + $0xe9] sm:$0xff] %vm4166_vm1, %v4485_v62 }
 0x461   : > { %4607 = vst.msk [vmem:[%s9207_s28 + $0xba] sm:$0xff] %vm4166_vm1, %v4543_v45  ;;  %v9745_v1 = vpop.permute.xlu2 %4684 }
 0x462   : > { %v3805_v23 = vpop.f32.mrf.mxu2  ;;  %4608 = vst.msk [vmem:[%s9207_s28 + $0xc2] sm:$0xff] %vm4166_vm1, %v4544_v42 }
 0x463   : > { %v3894_v37 = vpop.f32.mrf.mxu3  ;;  %4518 = vst.msk [vmem:[%s9207_s28 + $0xf1] sm:$0xff] %vm4166_vm1, %v4486_v51 }
 0x467   : > { %v4361_v20 = vpop.permute.xlu0 %4360  ;;  %v3718_v28 = vpop.f32.mrf.mxu1  ;;  %v4548_v21 = vld [vmem:[%s9207_s28 + $0xe2] sm:$0xff] }
 0x468   : > { %v4456_v47 = vadd.f32 %v4361_v20, %v4296_v17  ;;  %v3629_v55 = vpop.f32.mrf.mxu0  ;;  %4612 = vst.msk [vmem:[%s9207_s28 + $0xe2] sm:$0xff] %vm4166_vm1, %v4548_v21  ;;  %v4302_v21 = vld [vmem:[%s9207_s28 + $0x31] sm:$0xff] }
 0x46a   : > { %4488 = vst.msk [vmem:[%s9207_s28 + $0x1] sm:$0xff] %vm4166_vm1, %v4456_v47  ;;  %v3807_v11 = vpop.f32.mrf.mxu2  ;;  %v4549_v30 = vld [vmem:[%s9207_s28 + $0xea] sm:$0xff]  ;;  %v4550_v19 = vld [vmem:[%s9207_s28 + $0xf2] sm:$0xff]  ;;  %v4304_v47 = vld [vmem:[%s9207_s28 + $0x41] sm:$0xff] }
 0x46b   : > { %v3896_v40 = vpop.f32.mrf.mxu3  ;;  %4613 = vst.msk [vmem:[%s9207_s28 + $0xea] sm:$0xff] %vm4166_vm1, %v4549_v30 }
 0x46c   : > { %4614 = vst.msk [vmem:[%s9207_s28 + $0xf2] sm:$0xff] %vm4166_vm1, %v4550_v19 }
 0x46f   : > { %v4369_v59 = vpop.permute.xlu2 %4368  ;;  %v4681_v57 = vpop.permute.xlu0 %4680 }
 0x470   : > { %v4460_v12 = vadd.f32 %v4369_v59, %v4300_v26  ;;  %v3632_v39 = vpop.f32.mrf.mxu0  ;;  %v3721_v52 = vpop.f32.mrf.mxu1 }
 0x471   : > { %v9764_v35 = vpop.permute.xlu1 %4682 }
 0x472   : > { %4492 = vst.msk [vmem:[%s9207_s28 + $0x21] sm:$0xff] %vm4166_vm1, %v4460_v12  ;;  %v3810_v4 = vpop.f32.mrf.mxu2  ;;  %v4636_v12 = vld [vmem:[%s9207_s28 + $0xa3] sm:$0xff] }
 0x473   : > { %v3899_v60 = vpop.f32.mrf.mxu3  ;;  %v4637_v4 = vld [vmem:[%s9207_s28 + $0xab] sm:$0xff] }
 0x477   : > { %v4371_v34 = vpop.permute.xlu2 %4370  ;;  %v4363_v61 = vpop.permute.xlu0 %4362 }
 0x478   : > { %v4461_v53 = vadd.f32 %v4371_v34, %v4301_v8  ;;  %v4457_v9 = vadd.f32 %v4363_v61, %v4297_v50  ;;  %v3634_v32 = vpop.f32.mrf.mxu0  ;;  %v3723_v56 = vpop.f32.mrf.mxu1 }
 0x479   : > { %v4365_v10 = vpop.permute.xlu1 %4364 }
 0x47a   : > { %4493 = vst.msk [vmem:[%s9207_s28 + $0x29] sm:$0xff] %vm4166_vm1, %v4461_v53  ;;  %v4458_v58 = vadd.f32 %v4365_v10, %v4298_v48  ;;  %v3812_v5 = vpop.f32.mrf.mxu2 }
 0x47b   : > { %4489 = vst.msk [vmem:[%s9207_s28 + $0x9] sm:$0xff] %vm4166_vm1, %v4457_v9  ;;  %v3901_v14 = vpop.f32.mrf.mxu3 }
 0x47c   : > { %4490 = vst.msk [vmem:[%s9207_s28 + $0x11] sm:$0xff] %vm4166_vm1, %v4458_v58 }
 0x47f   : > { %v9792_v22 = vpop.permute.xlu2 %4690 }
 0x480   : > { %v3637_v13 = vpop.f32.mrf.mxu0  ;;  %v3726_v15 = vpop.f32.mrf.mxu1 }
 0x481   : > { %v4524_v29 = vld [vmem:[%s9207_s28 + $0x22] sm:$0xff]  ;;  %v4367_v44 = vpop.permute.xlu1 %4366  ;;  %v4687_v42 = vpop.permute.xlu0 %4686 }
 0x482   : > { %v4520_v27 = vld [vmem:[%s9207_s28 + $0x2] sm:$0xff]  ;;  %v4556_v46 = vadd.f32 %v4524_v29, %v9396_v33  ;;  %v4459_v3 = vadd.f32 %v4367_v44, %v4299_v41  ;;  %v3815_v0 = vpop.f32.mrf.mxu2 }
 0x483   : > { %v4552_v25 = vadd.f32 %v4520_v27, %v9346_v31  ;;  %v3904_v16 = vpop.f32.mrf.mxu3  ;;  %v4521_v36 = vld [vmem:[%s9207_s28 + $0xa] sm:$0xff] }
 0x484   : > { %4588 = vst.msk [vmem:[%s9207_s28 + $0x22] sm:$0xff] %vm4166_vm1, %v4556_v46  ;;  %v4553_v63 = vadd.f32 %v4521_v36, %v9351_v49 }
 0x485   : > { %4584 = vst.msk [vmem:[%s9207_s28 + $0x2] sm:$0xff] %vm4166_vm1, %v4552_v25 }
 0x486   : > { %4491 = vst.msk [vmem:[%s9207_s28 + $0x19] sm:$0xff] %vm4166_vm1, %v4459_v3 }
 0x487   : > { %4585 = vst.msk [vmem:[%s9207_s28 + $0xa] sm:$0xff] %vm4166_vm1, %v4553_v63 }
 0x488   : > { %v3639_v33 = vpop.f32.mrf.mxu0  ;;  %v3728_v31 = vpop.f32.mrf.mxu1 }
 0x489   : > { %v9809_v40 = vpop.permute.xlu1 %4688  ;;  %v4639_v31 = vld [vmem:[%s9207_s28 + $0xbb] sm:$0xff] }
 0x48a   : > { %v3817_v6 = vpop.f32.mrf.mxu2 }
 0x48b   : > { %v3906_v62 = vpop.f32.mrf.mxu3 }
 0x48d   : > { %v4522_v23 = vld [vmem:[%s9207_s28 + $0x12] sm:$0xff]  ;;  %v4523_v37 = vld [vmem:[%s9207_s28 + $0x1a] sm:$0xff] }
 0x48e   : > { %v4616_v18 = vld [vmem:[%s9207_s28 + $0x3] sm:$0xff]  ;;  %v4554_v49 = vadd.f32 %v4522_v23, %v9367_v38  ;;  %v4555_v51 = vadd.f32 %v4523_v37, %v9379_v54 }
 0x48f   : > { %v4776_v45 = vadd.f32 %v4681_v57, %v4616_v18  ;;  %v4643_v18 = vld [vmem:[%s9207_s28 + $0xdb] sm:$0xff] }
 0x490   : > { %4586 = vst.msk [vmem:[%s9207_s28 + $0x12] sm:$0xff] %vm4166_vm1, %v4554_v49  ;;  %v3642_v20 = vpop.f32.mrf.mxu0  ;;  %v3731_v17 = vpop.f32.mrf.mxu1  ;;  %v4638_v49 = vld [vmem:[%s9207_s28 + $0xb3] sm:$0xff] }
 0x491   : > { %4808 = vst.msk [vmem:[%s9207_s28 + $0x3] sm:$0xff] %vm4166_vm1, %v4776_v45  ;;  %v4377_v55 = vpop.permute.xlu2 %4376 }
 0x492   : > { %4587 = vst.msk [vmem:[%s9207_s28 + $0x1a] sm:$0xff] %vm4166_vm1, %v4555_v51  ;;  %v4464_v38 = vadd.f32 %v4377_v55, %v4304_v47  ;;  %v3820_v28 = vpop.f32.mrf.mxu2  ;;  %v4642_v51 = vld [vmem:[%s9207_s28 + $0xd3] sm:$0xff] }
 0x493   : > { %v3909_v54 = vpop.f32.mrf.mxu3 }
 0x494   : > { %4496 = vst.msk [vmem:[%s9207_s28 + $0x41] sm:$0xff] %vm4166_vm1, %v4464_v38 }
 0x497   : > { %v4617_v11 = vld [vmem:[%s9207_s28 + $0xb] sm:$0xff]  ;;  %v4373_v59 = vpop.permute.xlu0 %4372 }
 0x498   : > { %v4777_v26 = vadd.f32 %v9764_v35, %v4617_v11  ;;  %v4462_v57 = vadd.f32 %v4373_v59, %v4302_v21  ;;  %v3644_v30 = vpop.f32.mrf.mxu0  ;;  %v3733_v19 = vpop.f32.mrf.mxu1 }
 0x499   : > { %v4618_v39 = vld [vmem:[%s9207_s28 + $0x13] sm:$0xff]  ;;  %v4619_v52 = vld [vmem:[%s9207_s28 + $0x1b] sm:$0xff]  ;;  %v5865_v60 = vpop.permute.xlu2 %5864 }
 0x49a   : > { %4809 = vst.msk [vmem:[%s9207_s28 + $0xb] sm:$0xff] %vm4166_vm1, %v4777_v26  ;;  %v4778_v8 = vadd.f32 %v9745_v1, %v4618_v39  ;;  %v4779_v34 = vadd.f32 %v4687_v42, %v4619_v52  ;;  %v5867_v35 = vunpack.i.h.bf16 %v5865_v60  ;;  %v5866_v50 = vunpack.i.l.bf16 %v5865_v60  ;;  %v3822_v61 = vpop.f32.mrf.mxu2  ;;  %v4303_v1 = vld [vmem:[%s9207_s28 + $0x39] sm:$0xff]  ;;  %v4640_v26 = vld [vmem:[%s9207_s28 + $0xc3] sm:$0xff] }
 0x49b   : > { %4494 = vst.msk [vmem:[%s9207_s28 + $0x31] sm:$0xff] %vm4166_vm1, %v4462_v57  ;;  %v3911_v53 = vpop.f32.mrf.mxu3  ;;  %v4528_v9 = vld [vmem:[%s9207_s28 + $0x42] sm:$0xff]  ;;  %v4641_v57 = vld [vmem:[%s9207_s28 + $0xcb] sm:$0xff] }
 0x49c   : > { %4810 = vst.msk [vmem:[%s9207_s28 + $0x13] sm:$0xff] %vm4166_vm1, %v4778_v8  ;;  %v4797_v32 = vadd.f32 %v5867_v35, %v4637_v4  ;;  %v4796_v56 = vadd.f32 %v5866_v50, %v4636_v12  ;;  %v4560_v10 = vadd.f32 %v4528_v9, %v9615_v2  ;;  %v4645_v50 = vld [vmem:[%s9207_s28 + $0xeb] sm:$0xff]  ;;  %v4644_v9 = vld [vmem:[%s9207_s28 + $0xe3] sm:$0xff] }
 0x49d   : > { %4811 = vst.msk [vmem:[%s9207_s28 + $0x1b] sm:$0xff] %vm4166_vm1, %v4779_v34 }
 0x49e   : > { %4829 = vst.msk [vmem:[%s9207_s28 + $0xab] sm:$0xff] %vm4166_vm1, %v4797_v32 }
 0x49f   : > { %4828 = vst.msk [vmem:[%s9207_s28 + $0xa3] sm:$0xff] %vm4166_vm1, %v4796_v56  ;;  %v4375_v48 = vpop.permute.xlu1 %4374 }
 0x4a0   : > { %v9833_v58 = vpop.permute.xlu0 %4692  ;;  %v4463_v5 = vadd.f32 %v4375_v48, %v4303_v1  ;;  %v3647_v14 = vpop.f32.mrf.mxu0  ;;  %4592 = vst.msk [vmem:[%s9207_s28 + $0x42] sm:$0xff] %vm4166_vm1, %v4560_v10 }
 0x4a1   : > { %v3736_v13 = vpop.f32.mrf.mxu1  ;;  %v4697_v15 = vpop.permute.xlu2 %4696  ;;  %v4647_v14 = vld [vmem:[%s9207_s28 + $0xfb] sm:$0xff] }
 0x4a2   : > { %v4525_v2 = vld [vmem:[%s9207_s28 + $0x2a] sm:$0xff]  ;;  %4495 = vst.msk [vmem:[%s9207_s28 + $0x39] sm:$0xff] %vm4166_vm1, %v4463_v5  ;;  %v3825_v27 = vpop.f32.mrf.mxu2  ;;  %v4646_v5 = vld [vmem:[%s9207_s28 + $0xf3] sm:$0xff] }
 0x4a3   : > { %v4557_v29 = vadd.f32 %v4525_v2, %v9446_v7  ;;  %v3914_v41 = vpop.f32.mrf.mxu3 }
 0x4a5   : > { %4589 = vst.msk [vmem:[%s9207_s28 + $0x2a] sm:$0xff] %vm4166_vm1, %v4557_v29 }
 0x4a7   : > { %v4624_v44 = vld [vmem:[%s9207_s28 + $0x43] sm:$0xff]  ;;  %v4695_v46 = vpop.permute.xlu1 %4694 }
 0x4a8   : > { %v5870_v25 = vpop.permute.xlu0 %5869  ;;  %v4784_v3 = vadd.f32 %v4697_v15, %v4624_v44  ;;  %v3649_v36 = vpop.f32.mrf.mxu0 }
 0x4a9   : > { %v5872_v0 = vunpack.i.h.bf16 %v5870_v25  ;;  %v5871_v16 = vunpack.i.l.bf16 %v5870_v25  ;;  %v3738_v63 = vpop.f32.mrf.mxu1  ;;  %v4526_v33 = vld [vmem:[%s9207_s28 + $0x32] sm:$0xff]  ;;  %v4527_v7 = vld [vmem:[%s9207_s28 + $0x3a] sm:$0xff]  ;;  %v5880_v6 = vpop.permute.xlu2 %5879 }
 0x4aa   : > { %v4558_v62 = vadd.f32 %v4526_v33, %v9481_v24  ;;  %v4559_v23 = vadd.f32 %v4527_v7, %v9518_v43  ;;  %4816 = vst.msk [vmem:[%s9207_s28 + $0x43] sm:$0xff] %vm4166_vm1, %v4784_v3  ;;  %v5882_v45 = vunpack.i.h.bf16 %v5880_v6  ;;  %v5881_v42 = vunpack.i.l.bf16 %v5880_v6  ;;  %v3827_v20 = vpop.f32.mrf.mxu2 }
 0x4ab   : > { %v4799_v37 = vadd.f32 %v5872_v0, %v4639_v31  ;;  %v3916_v17 = vpop.f32.mrf.mxu3  ;;  %v4798_v24 = vadd.f32 %v5871_v16, %v4638_v49 }
 0x4ac   : > { %v4620_v47 = vld [vmem:[%s9207_s28 + $0x23] sm:$0xff]  ;;  %4590 = vst.msk [vmem:[%s9207_s28 + $0x32] sm:$0xff] %vm4166_vm1, %v4558_v62  ;;  %v4803_v55 = vadd.f32 %v5882_v45, %v4643_v18  ;;  %v4802_v38 = vadd.f32 %v5881_v42, %v4642_v51 }
 0x4ad   : > { %v4780_v43 = vadd.f32 %v9809_v40, %v4620_v47  ;;  %4591 = vst.msk [vmem:[%s9207_s28 + $0x3a] sm:$0xff] %vm4166_vm1, %v4559_v23 }
 0x4ae   : > { %4831 = vst.msk [vmem:[%s9207_s28 + $0xbb] sm:$0xff] %vm4166_vm1, %v4799_v37 }
 0x4af   : > { %4812 = vst.msk [vmem:[%s9207_s28 + $0x23] sm:$0xff] %vm4166_vm1, %v4780_v43  ;;  %v5875_v28 = vpop.permute.xlu1 %5874 }
 0x4b0   : > { %v5885_v54 = vpop.permute.xlu0 %5884  ;;  %4830 = vst.msk [vmem:[%s9207_s28 + $0xb3] sm:$0xff] %vm4166_vm1, %v4798_v24  ;;  %v5877_v11 = vunpack.i.h.bf16 %v5875_v28  ;;  %v5876_v21 = vunpack.i.l.bf16 %v5875_v28  ;;  %v3652_v59 = vpop.f32.mrf.mxu0 }
 0x4b1   : > { %v3741_v40 = vpop.f32.mrf.mxu1  ;;  %4835 = vst.msk [vmem:[%s9207_s28 + $0xdb] sm:$0xff] %vm4166_vm1, %v4803_v55  ;;  %v5887_v30 = vunpack.i.h.bf16 %v5885_v54  ;;  %v5886_v39 = vunpack.i.l.bf16 %v5885_v54 }
 0x4b2   : > { %4834 = vst.msk [vmem:[%s9207_s28 + $0xd3] sm:$0xff] %vm4166_vm1, %v4802_v38  ;;  %v4801_v19 = vadd.f32 %v5877_v11, %v4641_v57  ;;  %v4800_v12 = vadd.f32 %v5876_v21, %v4640_v26  ;;  %v3830_v4 = vpop.f32.mrf.mxu2 }
 0x4b3   : > { %v4621_v52 = vld [vmem:[%s9207_s28 + $0x2b] sm:$0xff]  ;;  %v3919_v60 = vpop.f32.mrf.mxu3  ;;  %v4805_v32 = vadd.f32 %v5887_v30, %v4645_v50  ;;  %v4804_v56 = vadd.f32 %v5886_v39, %v4644_v9 }
 0x4b4   : > { %v4622_v8 = vld [vmem:[%s9207_s28 + $0x33] sm:$0xff]  ;;  %v4781_v34 = vadd.f32 %v9792_v22, %v4621_v52  ;;  %v4623_v35 = vld [vmem:[%s9207_s28 + $0x3b] sm:$0xff]  ;;  %4833 = vst.msk [vmem:[%s9207_s28 + $0xcb] sm:$0xff] %vm4166_vm1, %v4801_v19 }
 0x4b5   : > { %v4782_v61 = vadd.f32 %v9833_v58, %v4622_v8  ;;  %v4783_v53 = vadd.f32 %v4695_v46, %v4623_v35  ;;  %4832 = vst.msk [vmem:[%s9207_s28 + $0xc3] sm:$0xff] %vm4166_vm1, %v4800_v12 }
 0x4b6   : > { %4813 = vst.msk [vmem:[%s9207_s28 + $0x2b] sm:$0xff] %vm4166_vm1, %v4781_v34 }
 0x4b7   : > { %4814 = vst.msk [vmem:[%s9207_s28 + $0x33] sm:$0xff] %vm4166_vm1, %v4782_v61  ;;  %v5890_v22 = vpop.permute.xlu1 %5889 }
 0x4b8   : > { %4815 = vst.msk [vmem:[%s9207_s28 + $0x3b] sm:$0xff] %vm4166_vm1, %v4783_v53  ;;  %v5892_v10 = vunpack.i.h.bf16 %v5890_v22  ;;  %v5891_v1 = vunpack.i.l.bf16 %v5890_v22  ;;  %v3654_v48 = vpop.f32.mrf.mxu0 }
 0x4b9   : > { %v3743_v58 = vpop.f32.mrf.mxu1  ;;  %4837 = vst.msk [vmem:[%s9207_s28 + $0xeb] sm:$0xff] %vm4166_vm1, %v4805_v32 }
 0x4ba   : > { %4836 = vst.msk [vmem:[%s9207_s28 + $0xe3] sm:$0xff] %vm4166_vm1, %v4804_v56  ;;  %v4807_v13 = vadd.f32 %v5892_v10, %v4647_v14  ;;  %v4806_v15 = vadd.f32 %v5891_v1, %v4646_v5  ;;  %v3832_v2 = vpop.f32.mrf.mxu2 }
 0x4bb   : > { %v3921_v29 = vpop.f32.mrf.mxu3 }
 0x4bc   : > { %4839 = vst.msk [vmem:[%s9207_s28 + $0xfb] sm:$0xff] %vm4166_vm1, %v4807_v13 }
 0x4bd   : > { %4838 = vst.msk [vmem:[%s9207_s28 + $0xf3] sm:$0xff] %vm4166_vm1, %v4806_v15 }
 0x4c0   : > { %v3657_v27 = vpop.f32.mrf.mxu0 }
 0x4c1   : > { %v3746_v41 = vpop.f32.mrf.mxu1 }
 0x4c2   : > { %v3835_v44 = vpop.f32.mrf.mxu2 }
 0x4c3   : > { %v3924_v46 = vpop.f32.mrf.mxu3 }
 0x4c8   : > { %v3659_v25 = vpop.f32.mrf.mxu0 }
 0x4c9   : > { %v3748_v3 = vpop.f32.mrf.mxu1 }
 0x4ca   : > { %v3837_v0 = vpop.f32.mrf.mxu2 }
 0x4cb   : > { %v3926_v16 = vpop.f32.mrf.mxu3 }
 0x4d0   : > { %v3662_v36 = vpop.f32.mrf.mxu0 }
 0x4d1   : > { %v3751_v63 = vpop.f32.mrf.mxu1 }
 0x4d2   : > { %v3840_v33 = vpop.f32.mrf.mxu2 }
 0x4d3   : > { %v3929_v7 = vpop.f32.mrf.mxu3 }
 0x4d8   : > { %v3664_v31 = vpop.f32.mrf.mxu0 }
 0x4d9   : > { %v3753_v6 = vpop.f32.mrf.mxu1 }
 0x4da   : > { %v3842_v62 = vpop.f32.mrf.mxu2 }
 0x4db   : > { %v3931_v23 = vpop.f32.mrf.mxu3 }
 0x4e0   : > { %v3667_v37 = vpop.f32.mrf.mxu0 }
 0x4e1   : > { %v3756_v18 = vpop.f32.mrf.mxu1 }
 0x4e2   : > { %v3845_v49 = vpop.f32.mrf.mxu2 }
 0x4e3   : > { %v3934_v51 = vpop.f32.mrf.mxu3 }
 0x4e8   : > { %v3669_v45 = vpop.f32.mrf.mxu0 }
 0x4e9   : > { %v3758_v42 = vpop.f32.mrf.mxu1 }
 0x4ea   : > { %v3847_v20 = vpop.f32.mrf.mxu2 }
 0x4eb   : > { %v3936_v17 = vpop.f32.mrf.mxu3 }
 0x4ec PF: > { %s18_s20 = sadd.s32 1, %s6170_s20   ;;  %s10584_s15 = smov %s6154_s16 }
 0x4ed   : > { %p15_p2 = scmp.ge.s32.totalorder %s18_s20, 4   ;;  %s10585_s16 = smov %s6158_s17 }
 0x4ee   : > { %s10586_s17 = smov %s6276_s26  ;;  %s10587_s18 = smov %s6166_s19 }
 0x4ef   : > { %s10588_s19 = smov %s10590_s13  ;;  %17 = sbr.rel (!%p15_p2) target bundleno = 5 (0x5), region = 84 }
 0x4f4   :  { %4869 = vsyncpa [#allocation3], 1 }
 0x4f5   :  { %4871 = vsyncpa [#allocation3 + $0x1], 1 }
 0x4f6   :  { %4872 = vsyncpa [#allocation5], 1 }

</bundles_post_ra>
